<compile_context>
chip_gen: v6e
topology: v6e:2x2x1
jax: 0.10.0
libtpu: 0.0.40
codegen_flags: <defaults>
</compile_context>

<pallas_src>
import functools
import math

import jax
import jax.numpy as jnp
from jax import lax
from jax.experimental import pallas as pl
from jax.experimental.pallas import tpu as pltpu


# ----------------------------------------------------------------------------
# Pallas kernels
# ----------------------------------------------------------------------------
def _conv_mm_kernel(x_ref, w_ref, s_ref, b_ref, o_ref, *, relu):
    # out = [relu]( (x @ w) * scale + shift ) — bf16 MXU operands, f32 acc.
    acc = jnp.dot(x_ref[...], w_ref[...], preferred_element_type=jnp.float32)
    acc = acc * s_ref[...] + b_ref[...]
    if relu:
        acc = jnp.maximum(acc, 0.0)
    o_ref[...] = acc.astype(o_ref.dtype)


def _conv_mm_res_kernel(x_ref, w_ref, s_ref, b_ref, r_ref, o_ref, *, relu):
    # out = [relu]( (x @ w) * scale + shift + residual )
    acc = jnp.dot(x_ref[...], w_ref[...], preferred_element_type=jnp.float32)
    acc = acc * s_ref[...] + b_ref[...] + r_ref[...].astype(jnp.float32)
    if relu:
        acc = jnp.maximum(acc, 0.0)
    o_ref[...] = acc.astype(o_ref.dtype)


def _maxpool_kernel(x_ref, o_ref):
    # x_ref: (9, M, C) window-position-major — elementwise max over windows.
    o_ref[...] = jnp.max(x_ref[...], axis=0)


def _tokens_transformer_pool_kernel(
    x_ref, tokw_ref, tokb_ref,
    inw_ref, inb_ref, outw_ref, outb_ref, ln1g_ref, ln1b_ref,
    ff1w_ref, ff1b_ref, ff2w_ref, ff2b_ref, ln2g_ref, ln2b_ref,
    o_ref, t_ref, *, nhead):
    """One (batch element, transformer layer) step.

    grid = (B, L); batch parallel, layer arbitrary.  Token state (S, C) lives
    in the VMEM scratch t_ref across the layer axis: conv_to_tokens at l==0,
    AdaptiveAvgPool1d(1) written at l==L-1.
    """
    l = pl.program_id(1)
    C = tokw_ref.shape[1]
    S = t_ref.shape[0]
    Dh = C // nhead
    scale = 1.0 / math.sqrt(Dh)
    bf16 = jnp.bfloat16

    def layernorm(x, g, b):
        mu = jnp.mean(x, axis=-1, keepdims=True)
        xc = x - mu
        var = jnp.mean(xc * xc, axis=-1, keepdims=True)
        return xc * lax.rsqrt(var + 1e-5) * g + b

    # conv_to_tokens (1x1 conv == matmul + bias), only on the first layer step.
    @pl.when(l == 0)
    def _():
        t_ref[...] = (jnp.dot(x_ref[0].astype(bf16), tokw_ref[...],
                              preferred_element_type=jnp.float32)
                      + tokb_ref[...])

    t = t_ref[...]                                             # (S, C) f32

    # --- multi-head self-attention (post-norm encoder layer) ---
    qkv = (jnp.dot(t.astype(bf16), inw_ref[0],
                   preferred_element_type=jnp.float32) + inb_ref[0])  # (S, 3C)

    # Per-head loop with NO concat: each head's context is folded directly
    # into the output projection (out_proj rows are sublane-aligned slices).
    attn_acc = jnp.zeros((S, C), jnp.float32)
    for h in range(nhead):
        q_h = qkv[:, h * Dh:(h + 1) * Dh].astype(bf16)               # (S, Dh)
        k_h = qkv[:, C + h * Dh:C + (h + 1) * Dh].astype(bf16)
        v_h = qkv[:, 2 * C + h * Dh:2 * C + (h + 1) * Dh].astype(bf16)
        # scores = q @ k^T  ('nt' dot_general, no transpose materialized)
        s = lax.dot_general(q_h, k_h, (((1,), (1,)), ((), ())),
                            preferred_element_type=jnp.float32) * scale
        s = s - jnp.max(s, axis=-1, keepdims=True)
        p = jnp.exp(s)
        p = p * pl.reciprocal(jnp.sum(p, axis=-1, keepdims=True), approx=True)
        ctx = jnp.dot(p.astype(bf16), v_h,
                      preferred_element_type=jnp.float32)             # (S, Dh)
        attn_acc = attn_acc + jnp.dot(
            ctx.astype(bf16), outw_ref[0, h * Dh:(h + 1) * Dh, :],
            preferred_element_type=jnp.float32)

    attn_out = attn_acc + outb_ref[0] + t
    t1 = layernorm(attn_out, ln1g_ref[0], ln1b_ref[0])

    # --- feed-forward ---
    ff = (jnp.dot(t1.astype(bf16), ff1w_ref[0],
                  preferred_element_type=jnp.float32) + ff1b_ref[0])
    ff = jnp.maximum(ff, 0.0)
    ff = (jnp.dot(ff.astype(bf16), ff2w_ref[0],
                  preferred_element_type=jnp.float32) + ff2b_ref[0] + t1)
    t2 = layernorm(ff, ln2g_ref[0], ln2b_ref[0])
    t_ref[...] = t2
    # TODO(synk): dropout omitted (eval-mode semantics).

    # AdaptiveAvgPool1d(1) over the sequence, written on the last layer step.
    @pl.when(l == pl.num_programs(1) - 1)
    def _():
        o_ref[...] = jnp.mean(t2, axis=0, keepdims=True).reshape(1, 1, C)


# ----------------------------------------------------------------------------
# Pallas wrappers
# ----------------------------------------------------------------------------
def pallas_conv_matmul(cols, w, scale, shift, relu=False, res=None, tile_m=None):
    """out = [relu]((cols @ w) * scale + shift [+ res]); cols/w bf16, out bf16."""
    M, K = cols.shape
    N = w.shape[1]
    # Single full-M block unless a tile is requested and divides M
    # (conv1 uses tm=256 -> 2 parallel grid steps -> both TCs on v7x).
    tm = tile_m if (tile_m is not None and M % tile_m == 0) else M
    grid = (M // tm,)

    in_specs = [
        pl.BlockSpec((tm, K), lambda i: (i, 0)),
        pl.BlockSpec((K, N), lambda i: (0, 0)),
        pl.BlockSpec((1, N), lambda i: (0, 0)),
        pl.BlockSpec((1, N), lambda i: (0, 0)),
    ]
    args = [cols, w, scale, shift]
    if res is not None:
        in_specs.append(pl.BlockSpec((tm, N), lambda i: (i, 0)))
        args.append(res)
        kernel = functools.partial(_conv_mm_res_kernel, relu=relu)
    else:
        kernel = functools.partial(_conv_mm_kernel, relu=relu)

    nbytes = 2 * (M * K + K * N + 2 * M * N) + 8 * N
    return pl.pallas_call(
        kernel,
        out_shape=jax.ShapeDtypeStruct((M, N), jnp.bfloat16),
        grid=grid,
        in_specs=in_specs,
        out_specs=pl.BlockSpec((tm, N), lambda i: (i, 0)),
        compiler_params=pltpu.CompilerParams(
            dimension_semantics=("parallel",) if grid[0] > 1 else ("arbitrary",)),
        cost_estimate=pl.CostEstimate(flops=2 * M * K * N, transcendentals=0,
                                      bytes_accessed=int(nbytes)),
    )(*args)


def pallas_maxpool(patches_kmc):
    K, M, C = patches_kmc.shape
    return pl.pallas_call(
        _maxpool_kernel,
        out_shape=jax.ShapeDtypeStruct((M, C), patches_kmc.dtype),
        cost_estimate=pl.CostEstimate(flops=K * M * C, transcendentals=0,
                                      bytes_accessed=int(2 * (K + 1) * M * C)),
    )(patches_kmc)


# ----------------------------------------------------------------------------
# Glue: im2col patch extraction (plain JAX, bf16, no f32 expansion)
# ----------------------------------------------------------------------------
def _im2col_cols(x_nhwc, kh, kw, stride, pad, pad_val=0.0):
    B, H, W, C = x_nhwc.shape
    xp = jnp.pad(x_nhwc, ((0, 0), (pad, pad), (pad, pad), (0, 0)),
                 constant_values=pad_val)
    Ho = (H + 2 * pad - kh) // stride + 1
    Wo = (W + 2 * pad - kw) // stride + 1
    cols = []
    for i in range(kh):
        for j in range(kw):
            cols.append(xp[:, i:i + stride * (Ho - 1) + 1:stride,
                           j:j + stride * (Wo - 1) + 1:stride, :])
    return cols, Ho, Wo


def conv_bn(x, w_kn, scale, shift, kh, kw, stride, pad,
            relu=True, res=None, tile_m=None):
    B = x.shape[0]
    cols, Ho, Wo = _im2col_cols(x, kh, kw, stride, pad)
    cols = jnp.concatenate(cols, axis=-1).reshape(B * Ho * Wo, -1)  # bf16
    res_flat = None if res is None else res.reshape(B * Ho * Wo, -1)
    out = pallas_conv_matmul(cols, w_kn, scale, shift, relu=relu,
                             res=res_flat, tile_m=tile_m)
    return out.reshape(B, Ho, Wo, -1)


def maxpool_3x3_s2(x):
    B, H, W, C = x.shape
    cols, Ho, Wo = _im2col_cols(x, 3, 3, 2, 1, pad_val=-jnp.inf)
    patches = jnp.stack(cols, axis=0).reshape(9, B * Ho * Wo, C)   # bf16
    out = pallas_maxpool(patches)
    return out.reshape(B, Ho, Wo, C)


# ----------------------------------------------------------------------------
# Parameters (deterministic synthetic init; BN folded; weights pre-packed bf16)
# ----------------------------------------------------------------------------
def init_params(key, embed_dim=256, ffn_dim=512, num_layers=2):
    keys = iter(jax.random.split(key, 128))

    def w(shape, fan_in):
        return jax.random.normal(next(keys), shape, jnp.float32) * (2.0 / fan_in) ** 0.5

    def bn(c):
        gamma = 1.0 + 0.1 * jax.random.normal(next(keys), (c,), jnp.float32)
        beta = 0.1 * jax.random.normal(next(keys), (c,), jnp.float32)
        mean = 0.1 * jax.random.normal(next(keys), (c,), jnp.float32)
        var = 1.0 + 0.1 * jax.random.uniform(next(keys), (c,), jnp.float32)
        scale = gamma * lax.rsqrt(var + 1e-5)
        shift = beta - mean * scale
        return scale.reshape(1, c), shift.reshape(1, c)

    def conv(kh, kw, cin, cout):
        # Pre-packed for the Pallas matmul: (kh*kw*cin, cout) bf16.
        wt = w((kh, kw, cin, cout), kh * kw * cin)
        return wt.reshape(kh * kw * cin, cout).astype(jnp.bfloat16)

    def block(cin, cout, downsample):
        bp = {"c1_w": conv(3, 3, cin, cout)}
        bp["b1_s"], bp["b1_b"] = bn(cout)
        bp["c2_w"] = conv(3, 3, cout, cout)
        bp["b2_s"], bp["b2_b"] = bn(cout)
        if downsample:
            bp["ds_w"] = conv(1, 1, cin, cout)
            bp["ds_s"], bp["ds_b"] = bn(cout)
        return bp

    p = {}
    p["conv1_w"] = conv(7, 7, 3, 64)
    p["bn1_s"], p["bn1_b"] = bn(64)
    p["l1b0"] = block(64, 64, False)
    p["l1b1"] = block(64, 64, False)
    p["l2b0"] = block(64, 128, True)
    p["l2b1"] = block(128, 128, False)
    p["tok_w"] = conv(1, 1, 128, embed_dim)
    p["tok_b"] = (0.1 * jax.random.normal(next(keys), (embed_dim,),
                                          jnp.float32)).reshape(1, embed_dim)

    # Transformer layer weights stacked on a leading layer axis.
    acc = {k: [] for k in ["in_w", "in_b", "out_w", "out_b", "ln1_g", "ln1_b",
                           "ff1_w", "ff1_b", "ff2_w", "ff2_b", "ln2_g", "ln2_b"]}
    for _ in range(num_layers):
        acc["in_w"].append(w((embed_dim, 3 * embed_dim), embed_dim).astype(jnp.bfloat16))
        acc["in_b"].append(0.02 * jax.random.normal(next(keys), (1, 3 * embed_dim), jnp.float32))
        acc["out_w"].append(w((embed_dim, embed_dim), embed_dim).astype(jnp.bfloat16))
        acc["out_b"].append(0.02 * jax.random.normal(next(keys), (1, embed_dim), jnp.float32))
        acc["ln1_g"].append(jnp.ones((1, embed_dim), jnp.float32))
        acc["ln1_b"].append(jnp.zeros((1, embed_dim), jnp.float32))
        acc["ff1_w"].append(w((embed_dim, ffn_dim), embed_dim).astype(jnp.bfloat16))
        acc["ff1_b"].append(0.02 * jax.random.normal(next(keys), (1, ffn_dim), jnp.float32))
        acc["ff2_w"].append(w((ffn_dim, embed_dim), ffn_dim).astype(jnp.bfloat16))
        acc["ff2_b"].append(0.02 * jax.random.normal(next(keys), (1, embed_dim), jnp.float32))
        acc["ln2_g"].append(jnp.ones((1, embed_dim), jnp.float32))
        acc["ln2_b"].append(jnp.zeros((1, embed_dim), jnp.float32))
    p["tf"] = {k: jnp.stack(v, axis=0) for k, v in acc.items()}
    return p


# ----------------------------------------------------------------------------
# Forward pass
# ----------------------------------------------------------------------------
def feature_extractor_forward(x_nchw, params, nhead=8):
    p = params
    C = p["tok_w"].shape[1]
    tf = p["tf"]
    L = tf["in_w"].shape[0]
    F = tf["ff1_w"].shape[2]

    x = jnp.transpose(x_nchw, (0, 2, 3, 1)).astype(jnp.bfloat16)   # NCHW -> NHWC bf16

    # --- ResNet18 stem + layer1 + layer2 (truncated backbone, BN folded) ---
    x = conv_bn(x, p["conv1_w"], p["bn1_s"], p["bn1_b"], 7, 7, 2, 3,
                relu=True, tile_m=256)
    x = maxpool_3x3_s2(x)

    def basic_block(x, bp, stride):
        if "ds_w" in bp:
            identity = conv_bn(x, bp["ds_w"], bp["ds_s"], bp["ds_b"],
                               1, 1, stride, 0, relu=False)
        else:
            identity = x
        out = conv_bn(x, bp["c1_w"], bp["b1_s"], bp["b1_b"],
                      3, 3, stride, 1, relu=True)
        out = conv_bn(out, bp["c2_w"], bp["b2_s"], bp["b2_b"],
                      3, 3, 1, 1, relu=True, res=identity)   # residual before final relu
        return out

    for bp, stride in [(p["l1b0"], 1), (p["l1b1"], 1), (p["l2b0"], 2), (p["l2b1"], 1)]:
        x = basic_block(x, bp, stride)

    # --- fused: conv_to_tokens + TransformerEncoder + mean pool ---
    B, H, W, Ci = x.shape
    S = H * W
    x3 = x.reshape(B, S, Ci)   # rows s-ordered per batch; math identical to (S,B,C)

    w_bytes = 2 * (Ci * C + L * (C * 3 * C + C * C + 2 * C * F))
    flops = B * (2 * S * Ci * C
                 + L * (2 * S * C * 3 * C + 4 * S * S * C + 2 * S * C * C + 4 * S * C * F))
    ce = pl.CostEstimate(flops=int(flops),
                         transcendentals=int(B * L * nhead * S * S),
                         bytes_accessed=int(B * w_bytes + 2 * B * S * Ci + 4 * B * C))

    layer_w = lambda b, l: (l, 0, 0)
    shared2 = lambda b, l: (0, 0)
    pooled = pl.pallas_call(
        functools.partial(_tokens_transformer_pool_kernel, nhead=nhead),
        out_shape=jax.ShapeDtypeStruct((B, 1, C), jnp.float32),
        grid=(B, L),
        in_specs=[
            pl.BlockSpec((1, S, Ci), lambda b, l: (b, 0, 0)),      # x tokens-in
            pl.BlockSpec((Ci, C), shared2),                        # tok_w
            pl.BlockSpec((1, C), shared2),                         # tok_b
            pl.BlockSpec((1, C, 3 * C), layer_w),                  # in_w
            pl.BlockSpec((1, 1, 3 * C), layer_w),                  # in_b
            pl.BlockSpec((1, C, C), layer_w),                      # out_w
            pl.BlockSpec((1, 1, C), layer_w),                      # out_b
            pl.BlockSpec((1, 1, C), layer_w),                      # ln1_g
            pl.BlockSpec((1, 1, C), layer_w),                      # ln1_b
            pl.BlockSpec((1, C, F), layer_w),                      # ff1_w
            pl.BlockSpec((1, 1, F), layer_w),                      # ff1_b
            pl.BlockSpec((1, F, C), layer_w),                      # ff2_w
            pl.BlockSpec((1, 1, C), layer_w),                      # ff2_b
            pl.BlockSpec((1, 1, C), layer_w),                      # ln2_g
            pl.BlockSpec((1, 1, C), layer_w),                      # ln2_b
        ],
        out_specs=pl.BlockSpec((1, 1, C), lambda b, l: (b, 0, 0)),
        scratch_shapes=[pltpu.VMEM((S, C), jnp.float32)],
        compiler_params=pltpu.CompilerParams(
            dimension_semantics=("parallel", "arbitrary"),
            vmem_limit_bytes=32 * 1024 * 1024),
        cost_estimate=ce,
    )(x3, p["tok_w"], p["tok_b"],
      tf["in_w"], tf["in_b"], tf["out_w"], tf["out_b"],
      tf["ln1_g"], tf["ln1_b"],
      tf["ff1_w"], tf["ff1_b"], tf["ff2_w"], tf["ff2_b"],
      tf["ln2_g"], tf["ln2_b"])
    return pooled.reshape(B, C)


# ----------------------------------------------------------------------------
if __name__ == "__main__":
    key = jax.random.PRNGKey(0)
    kp, kx = jax.random.split(key)
    params = init_params(kp, embed_dim=256)
    x = jax.random.normal(kx, (2, 3, 32, 32), jnp.float32)  # NCHW, like PyTorch

    fwd = jax.jit(functools.partial(feature_extractor_forward, nhead=8))
    out = fwd(x, params)
    out = jax.block_until_ready(out)
    assert out.shape == (2, 256), out.shape
    assert bool(jnp.all(jnp.isfinite(out)))
    print("KERNEL_OK")
</pallas_src>

<mosaic_0001>
module attributes {stable_mosaic.version = 11 : i64} {
  func.func @_conv_mm_kernel(%arg0: i32, %arg1: memref<256x147xbf16, #tpu.memory_space<vmem>>, %arg2: memref<147x64xbf16, #tpu.memory_space<vmem>>, %arg3: memref<1x64xf32, #tpu.memory_space<vmem>>, %arg4: memref<1x64xf32, #tpu.memory_space<vmem>>, %arg5: memref<256x64xbf16, #tpu.memory_space<vmem>>) attributes {dimension_semantics = [#tpu.dimension_semantics<parallel>], iteration_bounds = array<i64: 2>, scalar_prefetch = 0 : i64, scratch_operands = 0 : i64, tpu.core_type = #tpu.core_type<tc>, window_params = [{transform_indices = @transform_0, window_bounds = array<i64: 256, 147>}, {pipeline_mode = #tpu.pipeline_mode<synchronous>, transform_indices = @transform_1, window_bounds = array<i64: 147, 64>}, {pipeline_mode = #tpu.pipeline_mode<synchronous>, transform_indices = @transform_2, window_bounds = array<i64: 1, 64>}, {pipeline_mode = #tpu.pipeline_mode<synchronous>, transform_indices = @transform_3, window_bounds = array<i64: 1, 64>}, {transform_indices = @transform_4, window_bounds = array<i64: 256, 64>}]} {
    %c0 = arith.constant 0 : index
    %c0_0 = arith.constant 0 : index
    %0 = vector.load %arg1[%c0, %c0_0] : memref<256x147xbf16, #tpu.memory_space<vmem>>, vector<256x147xbf16>
    %c0_1 = arith.constant 0 : index
    %c0_2 = arith.constant 0 : index
    %1 = vector.load %arg2[%c0_1, %c0_2] : memref<147x64xbf16, #tpu.memory_space<vmem>>, vector<147x64xbf16>
    %cst = arith.constant dense<0.000000e+00> : vector<256x64xf32>
    %2 = tpu.matmul %0, %1, %cst {dimension_numbers = #tpu.dot_dimension_numbers<[1], [0], [0], [1], [0, 0, 1, 1], [], []>} : vector<256x147xbf16>, vector<147x64xbf16>, vector<256x64xf32> -> vector<256x64xf32>
    %c0_3 = arith.constant 0 : index
    %c0_4 = arith.constant 0 : index
    %3 = vector.load %arg3[%c0_3, %c0_4] : memref<1x64xf32, #tpu.memory_space<vmem>>, vector<1x64xf32>
    %4 = vector.broadcast %3 : vector<1x64xf32> to vector<256x64xf32>
    %5 = arith.mulf %2, %4 : vector<256x64xf32>
    %c0_5 = arith.constant 0 : index
    %c0_6 = arith.constant 0 : index
    %6 = vector.load %arg4[%c0_5, %c0_6] : memref<1x64xf32, #tpu.memory_space<vmem>>, vector<1x64xf32>
    %7 = vector.broadcast %6 : vector<1x64xf32> to vector<256x64xf32>
    %8 = arith.addf %5, %7 : vector<256x64xf32>
    %cst_7 = arith.constant 0.000000e+00 : f32
    %9 = vector.broadcast %cst_7 : f32 to vector<256x64xf32>
    %10 = arith.maximumf %8, %9 : vector<256x64xf32>
    %11 = arith.truncf %10 : vector<256x64xf32> to vector<256x64xbf16>
    %c0_8 = arith.constant 0 : index
    %c0_9 = arith.constant 0 : index
    %12 = vector.load %arg5[%c0_8, %c0_9] : memref<256x64xbf16, #tpu.memory_space<vmem>>, vector<256x64xbf16>
    tpu.vector_store %arg5[%c0_8, %c0_9], %11 {strides = array<i32>} : memref<256x64xbf16, #tpu.memory_space<vmem>>, vector<256x64xbf16>,
    return
  }
  func.func @transform_0(%arg0: i32) -> (i32, i32) {
    %c0_i32 = arith.constant 0 : i32
    %c0_i32_0 = arith.constant 0 : i32
    return %arg0, %c0_i32 : i32, i32
  }
  func.func @transform_1(%arg0: i32) -> (i32, i32) {
    %c0_i32 = arith.constant 0 : i32
    %c0_i32_0 = arith.constant 0 : i32
    %c0_i32_1 = arith.constant 0 : i32
    return %c0_i32, %c0_i32_0 : i32, i32
  }
  func.func @transform_2(%arg0: i32) -> (i32, i32) {
    %c0_i32 = arith.constant 0 : i32
    %c0_i32_0 = arith.constant 0 : i32
    %c0_i32_1 = arith.constant 0 : i32
    return %c0_i32, %c0_i32_0 : i32, i32
  }
  func.func @transform_3(%arg0: i32) -> (i32, i32) {
    %c0_i32 = arith.constant 0 : i32
    %c0_i32_0 = arith.constant 0 : i32
    %c0_i32_1 = arith.constant 0 : i32
    return %c0_i32, %c0_i32_0 : i32, i32
  }
  func.func @transform_4(%arg0: i32) -> (i32, i32) {
    %c0_i32 = arith.constant 0 : i32
    %c0_i32_0 = arith.constant 0 : i32
    return %arg0, %c0_i32 : i32, i32
  }
}

module attributes {stable_mosaic.version = 11 : i64} {
  func.func @_maxpool_kernel(%arg0: memref<9x128x64xbf16, #tpu.memory_space<vmem>>, %arg1: memref<128x64xbf16, #tpu.memory_space<vmem>>) attributes {dimension_semantics = [], scalar_prefetch = 0 : i64, scratch_operands = 0 : i64, tpu.core_type = #tpu.core_type<tc>} {
    %c0 = arith.constant 0 : index
    %c0_0 = arith.constant 0 : index
    %c0_1 = arith.constant 0 : index
    %0 = vector.load %arg0[%c0, %c0_0, %c0_1] : memref<9x128x64xbf16, #tpu.memory_space<vmem>>, vector<9x128x64xbf16>
    %cst = arith.constant dense<0xFF80> : vector<128x64xbf16>
    %1 = vector.multi_reduction <maximumf>, %0, %cst [0] : vector<9x128x64xbf16> to vector<128x64xbf16>
    %c0_2 = arith.constant 0 : index
    %c0_3 = arith.constant 0 : index
    %2 = vector.load %arg1[%c0_2, %c0_3] : memref<128x64xbf16, #tpu.memory_space<vmem>>, vector<128x64xbf16>
    tpu.vector_store %arg1[%c0_2, %c0_3], %1 {strides = array<i32>} : memref<128x64xbf16, #tpu.memory_space<vmem>>, vector<128x64xbf16>,
    return
  }
}

module attributes {stable_mosaic.version = 11 : i64} {
  func.func @_conv_mm_kernel(%arg0: i32, %arg1: memref<128x576xbf16, #tpu.memory_space<vmem>>, %arg2: memref<576x64xbf16, #tpu.memory_space<vmem>>, %arg3: memref<1x64xf32, #tpu.memory_space<vmem>>, %arg4: memref<1x64xf32, #tpu.memory_space<vmem>>, %arg5: memref<128x64xbf16, #tpu.memory_space<vmem>>) attributes {dimension_semantics = [#tpu.dimension_semantics<arbitrary>], iteration_bounds = array<i64: 1>, scalar_prefetch = 0 : i64, scratch_operands = 0 : i64, tpu.core_type = #tpu.core_type<tc>, window_params = [{transform_indices = @transform_0, window_bounds = array<i64: 128, 576>}, {pipeline_mode = #tpu.pipeline_mode<synchronous>, transform_indices = @transform_1, window_bounds = array<i64: 576, 64>}, {pipeline_mode = #tpu.pipeline_mode<synchronous>, transform_indices = @transform_2, window_bounds = array<i64: 1, 64>}, {pipeline_mode = #tpu.pipeline_mode<synchronous>, transform_indices = @transform_3, window_bounds = array<i64: 1, 64>}, {transform_indices = @transform_4, window_bounds = array<i64: 128, 64>}]} {
    %c0 = arith.constant 0 : index
    %c0_0 = arith.constant 0 : index
    %0 = vector.load %arg1[%c0, %c0_0] : memref<128x576xbf16, #tpu.memory_space<vmem>>, vector<128x576xbf16>
    %c0_1 = arith.constant 0 : index
    %c0_2 = arith.constant 0 : index
    %1 = vector.load %arg2[%c0_1, %c0_2] : memref<576x64xbf16, #tpu.memory_space<vmem>>, vector<576x64xbf16>
    %cst = arith.constant dense<0.000000e+00> : vector<128x64xf32>
    %2 = tpu.matmul %0, %1, %cst {dimension_numbers = #tpu.dot_dimension_numbers<[1], [0], [0], [1], [0, 0, 1, 1], [], []>} : vector<128x576xbf16>, vector<576x64xbf16>, vector<128x64xf32> -> vector<128x64xf32>
    %c0_3 = arith.constant 0 : index
    %c0_4 = arith.constant 0 : index
    %3 = vector.load %arg3[%c0_3, %c0_4] : memref<1x64xf32, #tpu.memory_space<vmem>>, vector<1x64xf32>
    %4 = vector.broadcast %3 : vector<1x64xf32> to vector<128x64xf32>
    %5 = arith.mulf %2, %4 : vector<128x64xf32>
    %c0_5 = arith.constant 0 : index
    %c0_6 = arith.constant 0 : index
    %6 = vector.load %arg4[%c0_5, %c0_6] : memref<1x64xf32, #tpu.memory_space<vmem>>, vector<1x64xf32>
    %7 = vector.broadcast %6 : vector<1x64xf32> to vector<128x64xf32>
    %8 = arith.addf %5, %7 : vector<128x64xf32>
    %cst_7 = arith.constant 0.000000e+00 : f32
    %9 = vector.broadcast %cst_7 : f32 to vector<128x64xf32>
    %10 = arith.maximumf %8, %9 : vector<128x64xf32>
    %11 = arith.truncf %10 : vector<128x64xf32> to vector<128x64xbf16>
    %c0_8 = arith.constant 0 : index
    %c0_9 = arith.constant 0 : index
    %12 = vector.load %arg5[%c0_8, %c0_9] : memref<128x64xbf16, #tpu.memory_space<vmem>>, vector<128x64xbf16>
    tpu.vector_store %arg5[%c0_8, %c0_9], %11 {strides = array<i32>} : memref<128x64xbf16, #tpu.memory_space<vmem>>, vector<128x64xbf16>,
    return
  }
  func.func @transform_0(%arg0: i32) -> (i32, i32) {
    %c0_i32 = arith.constant 0 : i32
    %c0_i32_0 = arith.constant 0 : i32
    return %arg0, %c0_i32 : i32, i32
  }
  func.func @transform_1(%arg0: i32) -> (i32, i32) {
    %c0_i32 = arith.constant 0 : i32
    %c0_i32_0 = arith.constant 0 : i32
    %c0_i32_1 = arith.constant 0 : i32
    return %c0_i32, %c0_i32_0 : i32, i32
  }
  func.func @transform_2(%arg0: i32) -> (i32, i32) {
    %c0_i32 = arith.constant 0 : i32
    %c0_i32_0 = arith.constant 0 : i32
    %c0_i32_1 = arith.constant 0 : i32
    return %c0_i32, %c0_i32_0 : i32, i32
  }
  func.func @transform_3(%arg0: i32) -> (i32, i32) {
    %c0_i32 = arith.constant 0 : i32
    %c0_i32_0 = arith.constant 0 : i32
    %c0_i32_1 = arith.constant 0 : i32
    return %c0_i32, %c0_i32_0 : i32, i32
  }
  func.func @transform_4(%arg0: i32) -> (i32, i32) {
    %c0_i32 = arith.constant 0 : i32
    %c0_i32_0 = arith.constant 0 : i32
    return %arg0, %c0_i32 : i32, i32
  }
}

module attributes {stable_mosaic.version = 11 : i64} {
  func.func @_conv_mm_res_kernel(%arg0: i32, %arg1: memref<128x576xbf16, #tpu.memory_space<vmem>>, %arg2: memref<576x64xbf16, #tpu.memory_space<vmem>>, %arg3: memref<1x64xf32, #tpu.memory_space<vmem>>, %arg4: memref<1x64xf32, #tpu.memory_space<vmem>>, %arg5: memref<128x64xbf16, #tpu.memory_space<vmem>>, %arg6: memref<128x64xbf16, #tpu.memory_space<vmem>>) attributes {dimension_semantics = [#tpu.dimension_semantics<arbitrary>], iteration_bounds = array<i64: 1>, scalar_prefetch = 0 : i64, scratch_operands = 0 : i64, tpu.core_type = #tpu.core_type<tc>, window_params = [{transform_indices = @transform_0, window_bounds = array<i64: 128, 576>}, {pipeline_mode = #tpu.pipeline_mode<synchronous>, transform_indices = @transform_1, window_bounds = array<i64: 576, 64>}, {pipeline_mode = #tpu.pipeline_mode<synchronous>, transform_indices = @transform_2, window_bounds = array<i64: 1, 64>}, {pipeline_mode = #tpu.pipeline_mode<synchronous>, transform_indices = @transform_3, window_bounds = array<i64: 1, 64>}, {transform_indices = @transform_4, window_bounds = array<i64: 128, 64>}, {transform_indices = @transform_5, window_bounds = array<i64: 128, 64>}]} {
    %c0 = arith.constant 0 : index
    %c0_0 = arith.constant 0 : index
    %0 = vector.load %arg1[%c0, %c0_0] : memref<128x576xbf16, #tpu.memory_space<vmem>>, vector<128x576xbf16>
    %c0_1 = arith.constant 0 : index
    %c0_2 = arith.constant 0 : index
    %1 = vector.load %arg2[%c0_1, %c0_2] : memref<576x64xbf16, #tpu.memory_space<vmem>>, vector<576x64xbf16>
    %cst = arith.constant dense<0.000000e+00> : vector<128x64xf32>
    %2 = tpu.matmul %0, %1, %cst {dimension_numbers = #tpu.dot_dimension_numbers<[1], [0], [0], [1], [0, 0, 1, 1], [], []>} : vector<128x576xbf16>, vector<576x64xbf16>, vector<128x64xf32> -> vector<128x64xf32>
    %c0_3 = arith.constant 0 : index
    %c0_4 = arith.constant 0 : index
    %3 = vector.load %arg3[%c0_3, %c0_4] : memref<1x64xf32, #tpu.memory_space<vmem>>, vector<1x64xf32>
    %4 = vector.broadcast %3 : vector<1x64xf32> to vector<128x64xf32>
    %5 = arith.mulf %2, %4 : vector<128x64xf32>
    %c0_5 = arith.constant 0 : index
    %c0_6 = arith.constant 0 : index
    %6 = vector.load %arg4[%c0_5, %c0_6] : memref<1x64xf32, #tpu.memory_space<vmem>>, vector<1x64xf32>
    %7 = vector.broadcast %6 : vector<1x64xf32> to vector<128x64xf32>
    %8 = arith.addf %5, %7 : vector<128x64xf32>
    %c0_7 = arith.constant 0 : index
    %c0_8 = arith.constant 0 : index
    %9 = vector.load %arg5[%c0_7, %c0_8] : memref<128x64xbf16, #tpu.memory_space<vmem>>, vector<128x64xbf16>
    %10 = arith.extf %9 : vector<128x64xbf16> to vector<128x64xf32>
    %11 = arith.addf %8, %10 : vector<128x64xf32>
    %cst_9 = arith.constant 0.000000e+00 : f32
    %12 = vector.broadcast %cst_9 : f32 to vector<128x64xf32>
    %13 = arith.maximumf %11, %12 : vector<128x64xf32>
    %14 = arith.truncf %13 : vector<128x64xf32> to vector<128x64xbf16>
    %c0_10 = arith.constant 0 : index
    %c0_11 = arith.constant 0 : index
    %15 = vector.load %arg6[%c0_10, %c0_11] : memref<128x64xbf16, #tpu.memory_space<vmem>>, vector<128x64xbf16>
    tpu.vector_store %arg6[%c0_10, %c0_11], %14 {strides = array<i32>} : memref<128x64xbf16, #tpu.memory_space<vmem>>, vector<128x64xbf16>,
    return
  }
  func.func @transform_0(%arg0: i32) -> (i32, i32) {
    %c0_i32 = arith.constant 0 : i32
    %c0_i32_0 = arith.constant 0 : i32
    return %arg0, %c0_i32 : i32, i32
  }
  func.func @transform_1(%arg0: i32) -> (i32, i32) {
    %c0_i32 = arith.constant 0 : i32
    %c0_i32_0 = arith.constant 0 : i32
    %c0_i32_1 = arith.constant 0 : i32
    return %c0_i32, %c0_i32_0 : i32, i32
  }
  func.func @transform_2(%arg0: i32) -> (i32, i32) {
    %c0_i32 = arith.constant 0 : i32
    %c0_i32_0 = arith.constant 0 : i32
    %c0_i32_1 = arith.constant 0 : i32
    return %c0_i32, %c0_i32_0 : i32, i32
  }
  func.func @transform_3(%arg0: i32) -> (i32, i32) {
    %c0_i32 = arith.constant 0 : i32
    %c0_i32_0 = arith.constant 0 : i32
    %c0_i32_1 = arith.constant 0 : i32
    return %c0_i32, %c0_i32_0 : i32, i32
  }
  func.func @transform_4(%arg0: i32) -> (i32, i32) {
    %c0_i32 = arith.constant 0 : i32
    %c0_i32_0 = arith.constant 0 : i32
    return %arg0, %c0_i32 : i32, i32
  }
  func.func @transform_5(%arg0: i32) -> (i32, i32) {
    %c0_i32 = arith.constant 0 : i32
    %c0_i32_0 = arith.constant 0 : i32
    return %arg0, %c0_i32 : i32, i32
  }
}

module attributes {stable_mosaic.version = 11 : i64} {
  func.func @_conv_mm_kernel(%arg0: i32, %arg1: memref<32x576xbf16, #tpu.memory_space<vmem>>, %arg2: memref<576x128xbf16, #tpu.memory_space<vmem>>, %arg3: memref<1x128xf32, #tpu.memory_space<vmem>>, %arg4: memref<1x128xf32, #tpu.memory_space<vmem>>, %arg5: memref<32x128xbf16, #tpu.memory_space<vmem>>) attributes {dimension_semantics = [#tpu.dimension_semantics<arbitrary>], iteration_bounds = array<i64: 1>, scalar_prefetch = 0 : i64, scratch_operands = 0 : i64, tpu.core_type = #tpu.core_type<tc>, window_params = [{transform_indices = @transform_0, window_bounds = array<i64: 32, 576>}, {pipeline_mode = #tpu.pipeline_mode<synchronous>, transform_indices = @transform_1, window_bounds = array<i64: 576, 128>}, {pipeline_mode = #tpu.pipeline_mode<synchronous>, transform_indices = @transform_2, window_bounds = array<i64: 1, 128>}, {pipeline_mode = #tpu.pipeline_mode<synchronous>, transform_indices = @transform_3, window_bounds = array<i64: 1, 128>}, {transform_indices = @transform_4, window_bounds = array<i64: 32, 128>}]} {
    %c0 = arith.constant 0 : index
    %c0_0 = arith.constant 0 : index
    %0 = vector.load %arg1[%c0, %c0_0] : memref<32x576xbf16, #tpu.memory_space<vmem>>, vector<32x576xbf16>
    %c0_1 = arith.constant 0 : index
    %c0_2 = arith.constant 0 : index
    %1 = vector.load %arg2[%c0_1, %c0_2] : memref<576x128xbf16, #tpu.memory_space<vmem>>, vector<576x128xbf16>
    %cst = arith.constant dense<0.000000e+00> : vector<32x128xf32>
    %2 = tpu.matmul %0, %1, %cst {dimension_numbers = #tpu.dot_dimension_numbers<[1], [0], [0], [1], [0, 0, 1, 1], [], []>} : vector<32x576xbf16>, vector<576x128xbf16>, vector<32x128xf32> -> vector<32x128xf32>
    %c0_3 = arith.constant 0 : index
    %c0_4 = arith.constant 0 : index
    %3 = vector.load %arg3[%c0_3, %c0_4] : memref<1x128xf32, #tpu.memory_space<vmem>>, vector<1x128xf32>
    %4 = vector.broadcast %3 : vector<1x128xf32> to vector<32x128xf32>
    %5 = arith.mulf %2, %4 : vector<32x128xf32>
    %c0_5 = arith.constant 0 : index
    %c0_6 = arith.constant 0 : index
    %6 = vector.load %arg4[%c0_5, %c0_6] : memref<1x128xf32, #tpu.memory_space<vmem>>, vector<1x128xf32>
    %7 = vector.broadcast %6 : vector<1x128xf32> to vector<32x128xf32>
    %8 = arith.addf %5, %7 : vector<32x128xf32>
    %cst_7 = arith.constant 0.000000e+00 : f32
    %9 = vector.broadcast %cst_7 : f32 to vector<32x128xf32>
    %10 = arith.maximumf %8, %9 : vector<32x128xf32>
    %11 = arith.truncf %10 : vector<32x128xf32> to vector<32x128xbf16>
    %c0_8 = arith.constant 0 : index
    %c0_9 = arith.constant 0 : index
    %12 = vector.load %arg5[%c0_8, %c0_9] : memref<32x128xbf16, #tpu.memory_space<vmem>>, vector<32x128xbf16>
    tpu.vector_store %arg5[%c0_8, %c0_9], %11 {strides = array<i32>} : memref<32x128xbf16, #tpu.memory_space<vmem>>, vector<32x128xbf16>,
    return
  }
  func.func @transform_0(%arg0: i32) -> (i32, i32) {
    %c0_i32 = arith.constant 0 : i32
    %c0_i32_0 = arith.constant 0 : i32
    return %arg0, %c0_i32 : i32, i32
  }
  func.func @transform_1(%arg0: i32) -> (i32, i32) {
    %c0_i32 = arith.constant 0 : i32
    %c0_i32_0 = arith.constant 0 : i32
    %c0_i32_1 = arith.constant 0 : i32
    return %c0_i32, %c0_i32_0 : i32, i32
  }
  func.func @transform_2(%arg0: i32) -> (i32, i32) {
    %c0_i32 = arith.constant 0 : i32
    %c0_i32_0 = arith.constant 0 : i32
    %c0_i32_1 = arith.constant 0 : i32
    return %c0_i32, %c0_i32_0 : i32, i32
  }
  func.func @transform_3(%arg0: i32) -> (i32, i32) {
    %c0_i32 = arith.constant 0 : i32
    %c0_i32_0 = arith.constant 0 : i32
    %c0_i32_1 = arith.constant 0 : i32
    return %c0_i32, %c0_i32_0 : i32, i32
  }
  func.func @transform_4(%arg0: i32) -> (i32, i32) {
    %c0_i32 = arith.constant 0 : i32
    %c0_i32_0 = arith.constant 0 : i32
    return %arg0, %c0_i32 : i32, i32
  }
}

module attributes {stable_mosaic.version = 11 : i64} {
  func.func @_conv_mm_kernel(%arg0: i32, %arg1: memref<32x64xbf16, #tpu.memory_space<vmem>>, %arg2: memref<64x128xbf16, #tpu.memory_space<vmem>>, %arg3: memref<1x128xf32, #tpu.memory_space<vmem>>, %arg4: memref<1x128xf32, #tpu.memory_space<vmem>>, %arg5: memref<32x128xbf16, #tpu.memory_space<vmem>>) attributes {dimension_semantics = [#tpu.dimension_semantics<arbitrary>], iteration_bounds = array<i64: 1>, scalar_prefetch = 0 : i64, scratch_operands = 0 : i64, tpu.core_type = #tpu.core_type<tc>, window_params = [{transform_indices = @transform_0, window_bounds = array<i64: 32, 64>}, {pipeline_mode = #tpu.pipeline_mode<synchronous>, transform_indices = @transform_1, window_bounds = array<i64: 64, 128>}, {pipeline_mode = #tpu.pipeline_mode<synchronous>, transform_indices = @transform_2, window_bounds = array<i64: 1, 128>}, {pipeline_mode = #tpu.pipeline_mode<synchronous>, transform_indices = @transform_3, window_bounds = array<i64: 1, 128>}, {transform_indices = @transform_4, window_bounds = array<i64: 32, 128>}]} {
    %c0 = arith.constant 0 : index
    %c0_0 = arith.constant 0 : index
    %0 = vector.load %arg1[%c0, %c0_0] : memref<32x64xbf16, #tpu.memory_space<vmem>>, vector<32x64xbf16>
    %c0_1 = arith.constant 0 : index
    %c0_2 = arith.constant 0 : index
    %1 = vector.load %arg2[%c0_1, %c0_2] : memref<64x128xbf16, #tpu.memory_space<vmem>>, vector<64x128xbf16>
    %cst = arith.constant dense<0.000000e+00> : vector<32x128xf32>
    %2 = tpu.matmul %0, %1, %cst {dimension_numbers = #tpu.dot_dimension_numbers<[1], [0], [0], [1], [0, 0, 1, 1], [], []>} : vector<32x64xbf16>, vector<64x128xbf16>, vector<32x128xf32> -> vector<32x128xf32>
    %c0_3 = arith.constant 0 : index
    %c0_4 = arith.constant 0 : index
    %3 = vector.load %arg3[%c0_3, %c0_4] : memref<1x128xf32, #tpu.memory_space<vmem>>, vector<1x128xf32>
    %4 = vector.broadcast %3 : vector<1x128xf32> to vector<32x128xf32>
    %5 = arith.mulf %2, %4 : vector<32x128xf32>
    %c0_5 = arith.constant 0 : index
    %c0_6 = arith.constant 0 : index
    %6 = vector.load %arg4[%c0_5, %c0_6] : memref<1x128xf32, #tpu.memory_space<vmem>>, vector<1x128xf32>
    %7 = vector.broadcast %6 : vector<1x128xf32> to vector<32x128xf32>
    %8 = arith.addf %5, %7 : vector<32x128xf32>
    %9 = arith.truncf %8 : vector<32x128xf32> to vector<32x128xbf16>
    %c0_7 = arith.constant 0 : index
    %c0_8 = arith.constant 0 : index
    %10 = vector.load %arg5[%c0_7, %c0_8] : memref<32x128xbf16, #tpu.memory_space<vmem>>, vector<32x128xbf16>
    tpu.vector_store %arg5[%c0_7, %c0_8], %9 {strides = array<i32>} : memref<32x128xbf16, #tpu.memory_space<vmem>>, vector<32x128xbf16>,
    return
  }
  func.func @transform_0(%arg0: i32) -> (i32, i32) {
    %c0_i32 = arith.constant 0 : i32
    %c0_i32_0 = arith.constant 0 : i32
    return %arg0, %c0_i32 : i32, i32
  }
  func.func @transform_1(%arg0: i32) -> (i32, i32) {
    %c0_i32 = arith.constant 0 : i32
    %c0_i32_0 = arith.constant 0 : i32
    %c0_i32_1 = arith.constant 0 : i32
    return %c0_i32, %c0_i32_0 : i32, i32
  }
  func.func @transform_2(%arg0: i32) -> (i32, i32) {
    %c0_i32 = arith.constant 0 : i32
    %c0_i32_0 = arith.constant 0 : i32
    %c0_i32_1 = arith.constant 0 : i32
    return %c0_i32, %c0_i32_0 : i32, i32
  }
  func.func @transform_3(%arg0: i32) -> (i32, i32) {
    %c0_i32 = arith.constant 0 : i32
    %c0_i32_0 = arith.constant 0 : i32
    %c0_i32_1 = arith.constant 0 : i32
    return %c0_i32, %c0_i32_0 : i32, i32
  }
  func.func @transform_4(%arg0: i32) -> (i32, i32) {
    %c0_i32 = arith.constant 0 : i32
    %c0_i32_0 = arith.constant 0 : i32
    return %arg0, %c0_i32 : i32, i32
  }
}

module attributes {stable_mosaic.version = 11 : i64} {
  func.func @_conv_mm_res_kernel(%arg0: i32, %arg1: memref<32x1152xbf16, #tpu.memory_space<vmem>>, %arg2: memref<1152x128xbf16, #tpu.memory_space<vmem>>, %arg3: memref<1x128xf32, #tpu.memory_space<vmem>>, %arg4: memref<1x128xf32, #tpu.memory_space<vmem>>, %arg5: memref<32x128xbf16, #tpu.memory_space<vmem>>, %arg6: memref<32x128xbf16, #tpu.memory_space<vmem>>) attributes {dimension_semantics = [#tpu.dimension_semantics<arbitrary>], iteration_bounds = array<i64: 1>, scalar_prefetch = 0 : i64, scratch_operands = 0 : i64, tpu.core_type = #tpu.core_type<tc>, window_params = [{transform_indices = @transform_0, window_bounds = array<i64: 32, 1152>}, {pipeline_mode = #tpu.pipeline_mode<synchronous>, transform_indices = @transform_1, window_bounds = array<i64: 1152, 128>}, {pipeline_mode = #tpu.pipeline_mode<synchronous>, transform_indices = @transform_2, window_bounds = array<i64: 1, 128>}, {pipeline_mode = #tpu.pipeline_mode<synchronous>, transform_indices = @transform_3, window_bounds = array<i64: 1, 128>}, {transform_indices = @transform_4, window_bounds = array<i64: 32, 128>}, {transform_indices = @transform_5, window_bounds = array<i64: 32, 128>}]} {
    %c0 = arith.constant 0 : index
    %c0_0 = arith.constant 0 : index
    %0 = vector.load %arg1[%c0, %c0_0] : memref<32x1152xbf16, #tpu.memory_space<vmem>>, vector<32x1152xbf16>
    %c0_1 = arith.constant 0 : index
    %c0_2 = arith.constant 0 : index
    %1 = vector.load %arg2[%c0_1, %c0_2] : memref<1152x128xbf16, #tpu.memory_space<vmem>>, vector<1152x128xbf16>
    %cst = arith.constant dense<0.000000e+00> : vector<32x128xf32>
    %2 = tpu.matmul %0, %1, %cst {dimension_numbers = #tpu.dot_dimension_numbers<[1], [0], [0], [1], [0, 0, 1, 1], [], []>} : vector<32x1152xbf16>, vector<1152x128xbf16>, vector<32x128xf32> -> vector<32x128xf32>
    %c0_3 = arith.constant 0 : index
    %c0_4 = arith.constant 0 : index
    %3 = vector.load %arg3[%c0_3, %c0_4] : memref<1x128xf32, #tpu.memory_space<vmem>>, vector<1x128xf32>
    %4 = vector.broadcast %3 : vector<1x128xf32> to vector<32x128xf32>
    %5 = arith.mulf %2, %4 : vector<32x128xf32>
    %c0_5 = arith.constant 0 : index
    %c0_6 = arith.constant 0 : index
    %6 = vector.load %arg4[%c0_5, %c0_6] : memref<1x128xf32, #tpu.memory_space<vmem>>, vector<1x128xf32>
    %7 = vector.broadcast %6 : vector<1x128xf32> to vector<32x128xf32>
    %8 = arith.addf %5, %7 : vector<32x128xf32>
    %c0_7 = arith.constant 0 : index
    %c0_8 = arith.constant 0 : index
    %9 = vector.load %arg5[%c0_7, %c0_8] : memref<32x128xbf16, #tpu.memory_space<vmem>>, vector<32x128xbf16>
    %10 = arith.extf %9 : vector<32x128xbf16> to vector<32x128xf32>
    %11 = arith.addf %8, %10 : vector<32x128xf32>
    %cst_9 = arith.constant 0.000000e+00 : f32
    %12 = vector.broadcast %cst_9 : f32 to vector<32x128xf32>
    %13 = arith.maximumf %11, %12 : vector<32x128xf32>
    %14 = arith.truncf %13 : vector<32x128xf32> to vector<32x128xbf16>
    %c0_10 = arith.constant 0 : index
    %c0_11 = arith.constant 0 : index
    %15 = vector.load %arg6[%c0_10, %c0_11] : memref<32x128xbf16, #tpu.memory_space<vmem>>, vector<32x128xbf16>
    tpu.vector_store %arg6[%c0_10, %c0_11], %14 {strides = array<i32>} : memref<32x128xbf16, #tpu.memory_space<vmem>>, vector<32x128xbf16>,
    return
  }
  func.func @transform_0(%arg0: i32) -> (i32, i32) {
    %c0_i32 = arith.constant 0 : i32
    %c0_i32_0 = arith.constant 0 : i32
    return %arg0, %c0_i32 : i32, i32
  }
  func.func @transform_1(%arg0: i32) -> (i32, i32) {
    %c0_i32 = arith.constant 0 : i32
    %c0_i32_0 = arith.constant 0 : i32
    %c0_i32_1 = arith.constant 0 : i32
    return %c0_i32, %c0_i32_0 : i32, i32
  }
  func.func @transform_2(%arg0: i32) -> (i32, i32) {
    %c0_i32 = arith.constant 0 : i32
    %c0_i32_0 = arith.constant 0 : i32
    %c0_i32_1 = arith.constant 0 : i32
    return %c0_i32, %c0_i32_0 : i32, i32
  }
  func.func @transform_3(%arg0: i32) -> (i32, i32) {
    %c0_i32 = arith.constant 0 : i32
    %c0_i32_0 = arith.constant 0 : i32
    %c0_i32_1 = arith.constant 0 : i32
    return %c0_i32, %c0_i32_0 : i32, i32
  }
  func.func @transform_4(%arg0: i32) -> (i32, i32) {
    %c0_i32 = arith.constant 0 : i32
    %c0_i32_0 = arith.constant 0 : i32
    return %arg0, %c0_i32 : i32, i32
  }
  func.func @transform_5(%arg0: i32) -> (i32, i32) {
    %c0_i32 = arith.constant 0 : i32
    %c0_i32_0 = arith.constant 0 : i32
    return %arg0, %c0_i32 : i32, i32
  }
}

module attributes {stable_mosaic.version = 11 : i64} {
  func.func @_conv_mm_kernel(%arg0: i32, %arg1: memref<32x1152xbf16, #tpu.memory_space<vmem>>, %arg2: memref<1152x128xbf16, #tpu.memory_space<vmem>>, %arg3: memref<1x128xf32, #tpu.memory_space<vmem>>, %arg4: memref<1x128xf32, #tpu.memory_space<vmem>>, %arg5: memref<32x128xbf16, #tpu.memory_space<vmem>>) attributes {dimension_semantics = [#tpu.dimension_semantics<arbitrary>], iteration_bounds = array<i64: 1>, scalar_prefetch = 0 : i64, scratch_operands = 0 : i64, tpu.core_type = #tpu.core_type<tc>, window_params = [{transform_indices = @transform_0, window_bounds = array<i64: 32, 1152>}, {pipeline_mode = #tpu.pipeline_mode<synchronous>, transform_indices = @transform_1, window_bounds = array<i64: 1152, 128>}, {pipeline_mode = #tpu.pipeline_mode<synchronous>, transform_indices = @transform_2, window_bounds = array<i64: 1, 128>}, {pipeline_mode = #tpu.pipeline_mode<synchronous>, transform_indices = @transform_3, window_bounds = array<i64: 1, 128>}, {transform_indices = @transform_4, window_bounds = array<i64: 32, 128>}]} {
    %c0 = arith.constant 0 : index
    %c0_0 = arith.constant 0 : index
    %0 = vector.load %arg1[%c0, %c0_0] : memref<32x1152xbf16, #tpu.memory_space<vmem>>, vector<32x1152xbf16>
    %c0_1 = arith.constant 0 : index
    %c0_2 = arith.constant 0 : index
    %1 = vector.load %arg2[%c0_1, %c0_2] : memref<1152x128xbf16, #tpu.memory_space<vmem>>, vector<1152x128xbf16>
    %cst = arith.constant dense<0.000000e+00> : vector<32x128xf32>
    %2 = tpu.matmul %0, %1, %cst {dimension_numbers = #tpu.dot_dimension_numbers<[1], [0], [0], [1], [0, 0, 1, 1], [], []>} : vector<32x1152xbf16>, vector<1152x128xbf16>, vector<32x128xf32> -> vector<32x128xf32>
    %c0_3 = arith.constant 0 : index
    %c0_4 = arith.constant 0 : index
    %3 = vector.load %arg3[%c0_3, %c0_4] : memref<1x128xf32, #tpu.memory_space<vmem>>, vector<1x128xf32>
    %4 = vector.broadcast %3 : vector<1x128xf32> to vector<32x128xf32>
    %5 = arith.mulf %2, %4 : vector<32x128xf32>
    %c0_5 = arith.constant 0 : index
    %c0_6 = arith.constant 0 : index
    %6 = vector.load %arg4[%c0_5, %c0_6] : memref<1x128xf32, #tpu.memory_space<vmem>>, vector<1x128xf32>
    %7 = vector.broadcast %6 : vector<1x128xf32> to vector<32x128xf32>
    %8 = arith.addf %5, %7 : vector<32x128xf32>
    %cst_7 = arith.constant 0.000000e+00 : f32
    %9 = vector.broadcast %cst_7 : f32 to vector<32x128xf32>
    %10 = arith.maximumf %8, %9 : vector<32x128xf32>
    %11 = arith.truncf %10 : vector<32x128xf32> to vector<32x128xbf16>
    %c0_8 = arith.constant 0 : index
    %c0_9 = arith.constant 0 : index
    %12 = vector.load %arg5[%c0_8, %c0_9] : memref<32x128xbf16, #tpu.memory_space<vmem>>, vector<32x128xbf16>
    tpu.vector_store %arg5[%c0_8, %c0_9], %11 {strides = array<i32>} : memref<32x128xbf16, #tpu.memory_space<vmem>>, vector<32x128xbf16>,
    return
  }
  func.func @transform_0(%arg0: i32) -> (i32, i32) {
    %c0_i32 = arith.constant 0 : i32
    %c0_i32_0 = arith.constant 0 : i32
    return %arg0, %c0_i32 : i32, i32
  }
  func.func @transform_1(%arg0: i32) -> (i32, i32) {
    %c0_i32 = arith.constant 0 : i32
    %c0_i32_0 = arith.constant 0 : i32
    %c0_i32_1 = arith.constant 0 : i32
    return %c0_i32, %c0_i32_0 : i32, i32
  }
  func.func @transform_2(%arg0: i32) -> (i32, i32) {
    %c0_i32 = arith.constant 0 : i32
    %c0_i32_0 = arith.constant 0 : i32
    %c0_i32_1 = arith.constant 0 : i32
    return %c0_i32, %c0_i32_0 : i32, i32
  }
  func.func @transform_3(%arg0: i32) -> (i32, i32) {
    %c0_i32 = arith.constant 0 : i32
    %c0_i32_0 = arith.constant 0 : i32
    %c0_i32_1 = arith.constant 0 : i32
    return %c0_i32, %c0_i32_0 : i32, i32
  }
  func.func @transform_4(%arg0: i32) -> (i32, i32) {
    %c0_i32 = arith.constant 0 : i32
    %c0_i32_0 = arith.constant 0 : i32
    return %arg0, %c0_i32 : i32, i32
  }
}

module attributes {stable_mosaic.version = 11 : i64} {
  func.func @_tokens_transformer_pool_kernel(%arg0: i32, %arg1: i32, %arg2: memref<1x16x128xbf16, #tpu.memory_space<vmem>>, %arg3: memref<128x256xbf16, #tpu.memory_space<vmem>>, %arg4: memref<1x256xf32, #tpu.memory_space<vmem>>, %arg5: memref<1x256x768xbf16, #tpu.memory_space<vmem>>, %arg6: memref<1x1x768xf32, #tpu.memory_space<vmem>>, %arg7: memref<1x256x256xbf16, #tpu.memory_space<vmem>>, %arg8: memref<1x1x256xf32, #tpu.memory_space<vmem>>, %arg9: memref<1x1x256xf32, #tpu.memory_space<vmem>>, %arg10: memref<1x1x256xf32, #tpu.memory_space<vmem>>, %arg11: memref<1x256x512xbf16, #tpu.memory_space<vmem>>, %arg12: memref<1x1x512xf32, #tpu.memory_space<vmem>>, %arg13: memref<1x512x256xbf16, #tpu.memory_space<vmem>>, %arg14: memref<1x1x256xf32, #tpu.memory_space<vmem>>, %arg15: memref<1x1x256xf32, #tpu.memory_space<vmem>>, %arg16: memref<1x1x256xf32, #tpu.memory_space<vmem>>, %arg17: memref<1x1x256xf32, #tpu.memory_space<vmem>>, %arg18: memref<16x256xf32, #tpu.memory_space<vmem>>) attributes {dimension_semantics = [#tpu.dimension_semantics<parallel>, #tpu.dimension_semantics<arbitrary>], iteration_bounds = array<i64: 2, 2>, scalar_prefetch = 0 : i64, scratch_operands = 1 : i64, tpu.core_type = #tpu.core_type<tc>, window_params = [{transform_indices = @transform_0, window_bounds = array<i64: 1, 16, 128>}, {pipeline_mode = #tpu.pipeline_mode<synchronous>, transform_indices = @transform_1, window_bounds = array<i64: 128, 256>}, {pipeline_mode = #tpu.pipeline_mode<synchronous>, transform_indices = @transform_2, window_bounds = array<i64: 1, 256>}, {transform_indices = @transform_3, window_bounds = array<i64: 1, 256, 768>}, {transform_indices = @transform_4, window_bounds = array<i64: 1, 1, 768>}, {transform_indices = @transform_5, window_bounds = array<i64: 1, 256, 256>}, {transform_indices = @transform_6, window_bounds = array<i64: 1, 1, 256>}, {transform_indices = @transform_7, window_bounds = array<i64: 1, 1, 256>}, {transform_indices = @transform_8, window_bounds = array<i64: 1, 1, 256>}, {transform_indices = @transform_9, window_bounds = array<i64: 1, 256, 512>}, {transform_indices = @transform_10, window_bounds = array<i64: 1, 1, 512>}, {transform_indices = @transform_11, window_bounds = array<i64: 1, 512, 256>}, {transform_indices = @transform_12, window_bounds = array<i64: 1, 1, 256>}, {transform_indices = @transform_13, window_bounds = array<i64: 1, 1, 256>}, {transform_indices = @transform_14, window_bounds = array<i64: 1, 1, 256>}, {transform_indices = @transform_15, window_bounds = array<i64: 1, 1, 256>}]} {
    %c0_i32 = arith.constant 0 : i32
    %0 = arith.cmpi eq, %arg1, %c0_i32 : i32
    %1 = arith.extui %0 : i1 to i32
    %c0_i32_0 = arith.constant 0 : i32
    %2 = arith.cmpi ne, %1, %c0_i32_0 : i32
    scf.if %2 {
      %c0_117 = arith.constant 0 : index
      %c0_118 = arith.constant 0 : index
      %c0_119 = arith.constant 0 : index
      %297 = vector.load %arg2[%c0_117, %c0_118, %c0_119] : memref<1x16x128xbf16, #tpu.memory_space<vmem>>, vector<1x16x128xbf16>
      %298 = vector.shape_cast %297 : vector<1x16x128xbf16> to vector<16x128xbf16>
      %c0_120 = arith.constant 0 : index
      %c0_121 = arith.constant 0 : index
      %299 = vector.load %arg3[%c0_120, %c0_121] : memref<128x256xbf16, #tpu.memory_space<vmem>>, vector<128x256xbf16>
      %cst_122 = arith.constant dense<0.000000e+00> : vector<16x256xf32>
      %300 = tpu.matmul %298, %299, %cst_122 {dimension_numbers = #tpu.dot_dimension_numbers<[1], [0], [0], [1], [0, 0, 1, 1], [], []>} : vector<16x128xbf16>, vector<128x256xbf16>, vector<16x256xf32> -> vector<16x256xf32>
      %c0_123 = arith.constant 0 : index
      %c0_124 = arith.constant 0 : index
      %301 = vector.load %arg4[%c0_123, %c0_124] : memref<1x256xf32, #tpu.memory_space<vmem>>, vector<1x256xf32>
      %302 = vector.broadcast %301 : vector<1x256xf32> to vector<16x256xf32>
      %303 = arith.addf %300, %302 : vector<16x256xf32>
      %c0_125 = arith.constant 0 : index
      %c0_126 = arith.constant 0 : index
      %304 = vector.load %arg18[%c0_125, %c0_126] : memref<16x256xf32, #tpu.memory_space<vmem>>, vector<16x256xf32>
      tpu.vector_store %arg18[%c0_125, %c0_126], %303 {strides = array<i32>} : memref<16x256xf32, #tpu.memory_space<vmem>>, vector<16x256xf32>,
    } else {
    }
    %c0 = arith.constant 0 : index
    %c0_1 = arith.constant 0 : index
    %3 = vector.load %arg18[%c0, %c0_1] : memref<16x256xf32, #tpu.memory_space<vmem>>, vector<16x256xf32>
    %4 = arith.truncf %3 : vector<16x256xf32> to vector<16x256xbf16>
    %c0_2 = arith.constant 0 : index
    %c0_3 = arith.constant 0 : index
    %c0_4 = arith.constant 0 : index
    %5 = vector.load %arg5[%c0_2, %c0_3, %c0_4] : memref<1x256x768xbf16, #tpu.memory_space<vmem>>, vector<1x256x768xbf16>
    %6 = vector.shape_cast %5 : vector<1x256x768xbf16> to vector<256x768xbf16>
    %cst = arith.constant dense<0.000000e+00> : vector<16x768xf32>
    %7 = tpu.matmul %4, %6, %cst {dimension_numbers = #tpu.dot_dimension_numbers<[1], [0], [0], [1], [0, 0, 1, 1], [], []>} : vector<16x256xbf16>, vector<256x768xbf16>, vector<16x768xf32> -> vector<16x768xf32>
    %c0_5 = arith.constant 0 : index
    %c0_6 = arith.constant 0 : index
    %c0_7 = arith.constant 0 : index
    %8 = vector.load %arg6[%c0_5, %c0_6, %c0_7] : memref<1x1x768xf32, #tpu.memory_space<vmem>>, vector<1x1x768xf32>
    %9 = vector.shape_cast %8 : vector<1x1x768xf32> to vector<1x768xf32>
    %10 = vector.broadcast %9 : vector<1x768xf32> to vector<16x768xf32>
    %11 = arith.addf %7, %10 : vector<16x768xf32>
    %cst_8 = arith.constant 0.000000e+00 : f32
    %12 = vector.broadcast %cst_8 : f32 to vector<16x256xf32>
    %13 = vector.extract_strided_slice %11 {offsets = [0, 0], sizes = [16, 32], strides = [1, 1]} : vector<16x768xf32> to vector<16x32xf32>
    %14 = arith.truncf %13 : vector<16x32xf32> to vector<16x32xbf16>
    %15 = vector.extract_strided_slice %11 {offsets = [0, 256], sizes = [16, 32], strides = [1, 1]} : vector<16x768xf32> to vector<16x32xf32>
    %16 = arith.truncf %15 : vector<16x32xf32> to vector<16x32xbf16>
    %17 = vector.extract_strided_slice %11 {offsets = [0, 512], sizes = [16, 32], strides = [1, 1]} : vector<16x768xf32> to vector<16x32xf32>
    %18 = arith.truncf %17 : vector<16x32xf32> to vector<16x32xbf16>
    %cst_9 = arith.constant dense<0.000000e+00> : vector<16x16xf32>
    %19 = tpu.matmul %14, %16, %cst_9 {dimension_numbers = #tpu.dot_dimension_numbers<[1], [1], [0], [0], [0, 0, 1, 0], [], []>} : vector<16x32xbf16>, vector<16x32xbf16>, vector<16x16xf32> -> vector<16x16xf32>
    %cst_10 = arith.constant 0.176776692 : f32
    %20 = vector.broadcast %cst_10 : f32 to vector<16x16xf32>
    %21 = arith.mulf %19, %20 : vector<16x16xf32>
    %cst_11 = arith.constant dense<0xFF800000> : vector<16xf32>
    %22 = vector.multi_reduction <maximumf>, %21, %cst_11 [1] : vector<16x16xf32> to vector<16xf32>
    %23 = vector.shape_cast %22 : vector<16xf32> to vector<16x1xf32>
    %24 = vector.broadcast %23 : vector<16x1xf32> to vector<16x16xf32>
    %25 = arith.subf %21, %24 : vector<16x16xf32>
    %26 = math.exp %25 : vector<16x16xf32>
    %cst_12 = arith.constant dense<0.000000e+00> : vector<16xf32>
    %27 = vector.multi_reduction <add>, %26, %cst_12 [1] : vector<16x16xf32> to vector<16xf32>
    %28 = vector.shape_cast %27 : vector<16xf32> to vector<16x1xf32>
    %29 = tpu.reciprocal %28 {approx = true} : vector<16x1xf32> -> vector<16x1xf32>
    %30 = vector.broadcast %29 : vector<16x1xf32> to vector<16x16xf32>
    %31 = arith.mulf %26, %30 : vector<16x16xf32>
    %32 = arith.truncf %31 : vector<16x16xf32> to vector<16x16xbf16>
    %cst_13 = arith.constant dense<0.000000e+00> : vector<16x32xf32>
    %33 = tpu.matmul %32, %18, %cst_13 {dimension_numbers = #tpu.dot_dimension_numbers<[1], [0], [0], [1], [0, 0, 1, 1], [], []>} : vector<16x16xbf16>, vector<16x32xbf16>, vector<16x32xf32> -> vector<16x32xf32>
    %34 = arith.truncf %33 : vector<16x32xf32> to vector<16x32xbf16>
    %c0_14 = arith.constant 0 : index
    %c0_15 = arith.constant 0 : index
    %c0_16 = arith.constant 0 : index
    %35 = vector.load %arg7[%c0_14, %c0_15, %c0_16] : memref<1x256x256xbf16, #tpu.memory_space<vmem>>, vector<1x32x256xbf16>
    %36 = vector.shape_cast %35 : vector<1x32x256xbf16> to vector<32x256xbf16>
    %cst_17 = arith.constant dense<0.000000e+00> : vector<16x256xf32>
    %37 = tpu.matmul %34, %36, %cst_17 {dimension_numbers = #tpu.dot_dimension_numbers<[1], [0], [0], [1], [0, 0, 1, 1], [], []>} : vector<16x32xbf16>, vector<32x256xbf16>, vector<16x256xf32> -> vector<16x256xf32>
    %38 = arith.addf %12, %37 : vector<16x256xf32>
    %39 = vector.extract_strided_slice %11 {offsets = [0, 32], sizes = [16, 32], strides = [1, 1]} : vector<16x768xf32> to vector<16x32xf32>
    %40 = arith.truncf %39 : vector<16x32xf32> to vector<16x32xbf16>
    %41 = vector.extract_strided_slice %11 {offsets = [0, 288], sizes = [16, 32], strides = [1, 1]} : vector<16x768xf32> to vector<16x32xf32>
    %42 = arith.truncf %41 : vector<16x32xf32> to vector<16x32xbf16>
    %43 = vector.extract_strided_slice %11 {offsets = [0, 544], sizes = [16, 32], strides = [1, 1]} : vector<16x768xf32> to vector<16x32xf32>
    %44 = arith.truncf %43 : vector<16x32xf32> to vector<16x32xbf16>
    %cst_18 = arith.constant dense<0.000000e+00> : vector<16x16xf32>
    %45 = tpu.matmul %40, %42, %cst_18 {dimension_numbers = #tpu.dot_dimension_numbers<[1], [1], [0], [0], [0, 0, 1, 0], [], []>} : vector<16x32xbf16>, vector<16x32xbf16>, vector<16x16xf32> -> vector<16x16xf32>
    %cst_19 = arith.constant 0.176776692 : f32
    %46 = vector.broadcast %cst_19 : f32 to vector<16x16xf32>
    %47 = arith.mulf %45, %46 : vector<16x16xf32>
    %cst_20 = arith.constant dense<0xFF800000> : vector<16xf32>
    %48 = vector.multi_reduction <maximumf>, %47, %cst_20 [1] : vector<16x16xf32> to vector<16xf32>
    %49 = vector.shape_cast %48 : vector<16xf32> to vector<16x1xf32>
    %50 = vector.broadcast %49 : vector<16x1xf32> to vector<16x16xf32>
    %51 = arith.subf %47, %50 : vector<16x16xf32>
    %52 = math.exp %51 : vector<16x16xf32>
    %cst_21 = arith.constant dense<0.000000e+00> : vector<16xf32>
    %53 = vector.multi_reduction <add>, %52, %cst_21 [1] : vector<16x16xf32> to vector<16xf32>
    %54 = vector.shape_cast %53 : vector<16xf32> to vector<16x1xf32>
    %55 = tpu.reciprocal %54 {approx = true} : vector<16x1xf32> -> vector<16x1xf32>
    %56 = vector.broadcast %55 : vector<16x1xf32> to vector<16x16xf32>
    %57 = arith.mulf %52, %56 : vector<16x16xf32>
    %58 = arith.truncf %57 : vector<16x16xf32> to vector<16x16xbf16>
    %cst_22 = arith.constant dense<0.000000e+00> : vector<16x32xf32>
    %59 = tpu.matmul %58, %44, %cst_22 {dimension_numbers = #tpu.dot_dimension_numbers<[1], [0], [0], [1], [0, 0, 1, 1], [], []>} : vector<16x16xbf16>, vector<16x32xbf16>, vector<16x32xf32> -> vector<16x32xf32>
    %60 = arith.truncf %59 : vector<16x32xf32> to vector<16x32xbf16>
    %c0_23 = arith.constant 0 : index
    %c32 = arith.constant 32 : index
    %c0_24 = arith.constant 0 : index
    %61 = vector.load %arg7[%c0_23, %c32, %c0_24] : memref<1x256x256xbf16, #tpu.memory_space<vmem>>, vector<1x32x256xbf16>
    %62 = vector.shape_cast %61 : vector<1x32x256xbf16> to vector<32x256xbf16>
    %cst_25 = arith.constant dense<0.000000e+00> : vector<16x256xf32>
    %63 = tpu.matmul %60, %62, %cst_25 {dimension_numbers = #tpu.dot_dimension_numbers<[1], [0], [0], [1], [0, 0, 1, 1], [], []>} : vector<16x32xbf16>, vector<32x256xbf16>, vector<16x256xf32> -> vector<16x256xf32>
    %64 = arith.addf %38, %63 : vector<16x256xf32>
    %65 = vector.extract_strided_slice %11 {offsets = [0, 64], sizes = [16, 32], strides = [1, 1]} : vector<16x768xf32> to vector<16x32xf32>
    %66 = arith.truncf %65 : vector<16x32xf32> to vector<16x32xbf16>
    %67 = vector.extract_strided_slice %11 {offsets = [0, 320], sizes = [16, 32], strides = [1, 1]} : vector<16x768xf32> to vector<16x32xf32>
    %68 = arith.truncf %67 : vector<16x32xf32> to vector<16x32xbf16>
    %69 = vector.extract_strided_slice %11 {offsets = [0, 576], sizes = [16, 32], strides = [1, 1]} : vector<16x768xf32> to vector<16x32xf32>
    %70 = arith.truncf %69 : vector<16x32xf32> to vector<16x32xbf16>
    %cst_26 = arith.constant dense<0.000000e+00> : vector<16x16xf32>
    %71 = tpu.matmul %66, %68, %cst_26 {dimension_numbers = #tpu.dot_dimension_numbers<[1], [1], [0], [0], [0, 0, 1, 0], [], []>} : vector<16x32xbf16>, vector<16x32xbf16>, vector<16x16xf32> -> vector<16x16xf32>
    %cst_27 = arith.constant 0.176776692 : f32
    %72 = vector.broadcast %cst_27 : f32 to vector<16x16xf32>
    %73 = arith.mulf %71, %72 : vector<16x16xf32>
    %cst_28 = arith.constant dense<0xFF800000> : vector<16xf32>
    %74 = vector.multi_reduction <maximumf>, %73, %cst_28 [1] : vector<16x16xf32> to vector<16xf32>
    %75 = vector.shape_cast %74 : vector<16xf32> to vector<16x1xf32>
    %76 = vector.broadcast %75 : vector<16x1xf32> to vector<16x16xf32>
    %77 = arith.subf %73, %76 : vector<16x16xf32>
    %78 = math.exp %77 : vector<16x16xf32>
    %cst_29 = arith.constant dense<0.000000e+00> : vector<16xf32>
    %79 = vector.multi_reduction <add>, %78, %cst_29 [1] : vector<16x16xf32> to vector<16xf32>
    %80 = vector.shape_cast %79 : vector<16xf32> to vector<16x1xf32>
    %81 = tpu.reciprocal %80 {approx = true} : vector<16x1xf32> -> vector<16x1xf32>
    %82 = vector.broadcast %81 : vector<16x1xf32> to vector<16x16xf32>
    %83 = arith.mulf %78, %82 : vector<16x16xf32>
    %84 = arith.truncf %83 : vector<16x16xf32> to vector<16x16xbf16>
    %cst_30 = arith.constant dense<0.000000e+00> : vector<16x32xf32>
    %85 = tpu.matmul %84, %70, %cst_30 {dimension_numbers = #tpu.dot_dimension_numbers<[1], [0], [0], [1], [0, 0, 1, 1], [], []>} : vector<16x16xbf16>, vector<16x32xbf16>, vector<16x32xf32> -> vector<16x32xf32>
    %86 = arith.truncf %85 : vector<16x32xf32> to vector<16x32xbf16>
    %c0_31 = arith.constant 0 : index
    %c64 = arith.constant 64 : index
    %c0_32 = arith.constant 0 : index
    %87 = vector.load %arg7[%c0_31, %c64, %c0_32] : memref<1x256x256xbf16, #tpu.memory_space<vmem>>, vector<1x32x256xbf16>
    %88 = vector.shape_cast %87 : vector<1x32x256xbf16> to vector<32x256xbf16>
    %cst_33 = arith.constant dense<0.000000e+00> : vector<16x256xf32>
    %89 = tpu.matmul %86, %88, %cst_33 {dimension_numbers = #tpu.dot_dimension_numbers<[1], [0], [0], [1], [0, 0, 1, 1], [], []>} : vector<16x32xbf16>, vector<32x256xbf16>, vector<16x256xf32> -> vector<16x256xf32>
    %90 = arith.addf %64, %89 : vector<16x256xf32>
    %91 = vector.extract_strided_slice %11 {offsets = [0, 96], sizes = [16, 32], strides = [1, 1]} : vector<16x768xf32> to vector<16x32xf32>
    %92 = arith.truncf %91 : vector<16x32xf32> to vector<16x32xbf16>
    %93 = vector.extract_strided_slice %11 {offsets = [0, 352], sizes = [16, 32], strides = [1, 1]} : vector<16x768xf32> to vector<16x32xf32>
    %94 = arith.truncf %93 : vector<16x32xf32> to vector<16x32xbf16>
    %95 = vector.extract_strided_slice %11 {offsets = [0, 608], sizes = [16, 32], strides = [1, 1]} : vector<16x768xf32> to vector<16x32xf32>
    %96 = arith.truncf %95 : vector<16x32xf32> to vector<16x32xbf16>
    %cst_34 = arith.constant dense<0.000000e+00> : vector<16x16xf32>
    %97 = tpu.matmul %92, %94, %cst_34 {dimension_numbers = #tpu.dot_dimension_numbers<[1], [1], [0], [0], [0, 0, 1, 0], [], []>} : vector<16x32xbf16>, vector<16x32xbf16>, vector<16x16xf32> -> vector<16x16xf32>
    %cst_35 = arith.constant 0.176776692 : f32
    %98 = vector.broadcast %cst_35 : f32 to vector<16x16xf32>
    %99 = arith.mulf %97, %98 : vector<16x16xf32>
    %cst_36 = arith.constant dense<0xFF800000> : vector<16xf32>
    %100 = vector.multi_reduction <maximumf>, %99, %cst_36 [1] : vector<16x16xf32> to vector<16xf32>
    %101 = vector.shape_cast %100 : vector<16xf32> to vector<16x1xf32>
    %102 = vector.broadcast %101 : vector<16x1xf32> to vector<16x16xf32>
    %103 = arith.subf %99, %102 : vector<16x16xf32>
    %104 = math.exp %103 : vector<16x16xf32>
    %cst_37 = arith.constant dense<0.000000e+00> : vector<16xf32>
    %105 = vector.multi_reduction <add>, %104, %cst_37 [1] : vector<16x16xf32> to vector<16xf32>
    %106 = vector.shape_cast %105 : vector<16xf32> to vector<16x1xf32>
    %107 = tpu.reciprocal %106 {approx = true} : vector<16x1xf32> -> vector<16x1xf32>
    %108 = vector.broadcast %107 : vector<16x1xf32> to vector<16x16xf32>
    %109 = arith.mulf %104, %108 : vector<16x16xf32>
    %110 = arith.truncf %109 : vector<16x16xf32> to vector<16x16xbf16>
    %cst_38 = arith.constant dense<0.000000e+00> : vector<16x32xf32>
    %111 = tpu.matmul %110, %96, %cst_38 {dimension_numbers = #tpu.dot_dimension_numbers<[1], [0], [0], [1], [0, 0, 1, 1], [], []>} : vector<16x16xbf16>, vector<16x32xbf16>, vector<16x32xf32> -> vector<16x32xf32>
    %112 = arith.truncf %111 : vector<16x32xf32> to vector<16x32xbf16>
    %c0_39 = arith.constant 0 : index
    %c96 = arith.constant 96 : index
    %c0_40 = arith.constant 0 : index
    %113 = vector.load %arg7[%c0_39, %c96, %c0_40] : memref<1x256x256xbf16, #tpu.memory_space<vmem>>, vector<1x32x256xbf16>
    %114 = vector.shape_cast %113 : vector<1x32x256xbf16> to vector<32x256xbf16>
    %cst_41 = arith.constant dense<0.000000e+00> : vector<16x256xf32>
    %115 = tpu.matmul %112, %114, %cst_41 {dimension_numbers = #tpu.dot_dimension_numbers<[1], [0], [0], [1], [0, 0, 1, 1], [], []>} : vector<16x32xbf16>, vector<32x256xbf16>, vector<16x256xf32> -> vector<16x256xf32>
    %116 = arith.addf %90, %115 : vector<16x256xf32>
    %117 = vector.extract_strided_slice %11 {offsets = [0, 128], sizes = [16, 32], strides = [1, 1]} : vector<16x768xf32> to vector<16x32xf32>
    %118 = arith.truncf %117 : vector<16x32xf32> to vector<16x32xbf16>
    %119 = vector.extract_strided_slice %11 {offsets = [0, 384], sizes = [16, 32], strides = [1, 1]} : vector<16x768xf32> to vector<16x32xf32>
    %120 = arith.truncf %119 : vector<16x32xf32> to vector<16x32xbf16>
    %121 = vector.extract_strided_slice %11 {offsets = [0, 640], sizes = [16, 32], strides = [1, 1]} : vector<16x768xf32> to vector<16x32xf32>
    %122 = arith.truncf %121 : vector<16x32xf32> to vector<16x32xbf16>
    %cst_42 = arith.constant dense<0.000000e+00> : vector<16x16xf32>
    %123 = tpu.matmul %118, %120, %cst_42 {dimension_numbers = #tpu.dot_dimension_numbers<[1], [1], [0], [0], [0, 0, 1, 0], [], []>} : vector<16x32xbf16>, vector<16x32xbf16>, vector<16x16xf32> -> vector<16x16xf32>
    %cst_43 = arith.constant 0.176776692 : f32
    %124 = vector.broadcast %cst_43 : f32 to vector<16x16xf32>
    %125 = arith.mulf %123, %124 : vector<16x16xf32>
    %cst_44 = arith.constant dense<0xFF800000> : vector<16xf32>
    %126 = vector.multi_reduction <maximumf>, %125, %cst_44 [1] : vector<16x16xf32> to vector<16xf32>
    %127 = vector.shape_cast %126 : vector<16xf32> to vector<16x1xf32>
    %128 = vector.broadcast %127 : vector<16x1xf32> to vector<16x16xf32>
    %129 = arith.subf %125, %128 : vector<16x16xf32>
    %130 = math.exp %129 : vector<16x16xf32>
    %cst_45 = arith.constant dense<0.000000e+00> : vector<16xf32>
    %131 = vector.multi_reduction <add>, %130, %cst_45 [1] : vector<16x16xf32> to vector<16xf32>
    %132 = vector.shape_cast %131 : vector<16xf32> to vector<16x1xf32>
    %133 = tpu.reciprocal %132 {approx = true} : vector<16x1xf32> -> vector<16x1xf32>
    %134 = vector.broadcast %133 : vector<16x1xf32> to vector<16x16xf32>
    %135 = arith.mulf %130, %134 : vector<16x16xf32>
    %136 = arith.truncf %135 : vector<16x16xf32> to vector<16x16xbf16>
    %cst_46 = arith.constant dense<0.000000e+00> : vector<16x32xf32>
    %137 = tpu.matmul %136, %122, %cst_46 {dimension_numbers = #tpu.dot_dimension_numbers<[1], [0], [0], [1], [0, 0, 1, 1], [], []>} : vector<16x16xbf16>, vector<16x32xbf16>, vector<16x32xf32> -> vector<16x32xf32>
    %138 = arith.truncf %137 : vector<16x32xf32> to vector<16x32xbf16>
    %c0_47 = arith.constant 0 : index
    %c128 = arith.constant 128 : index
    %c0_48 = arith.constant 0 : index
    %139 = vector.load %arg7[%c0_47, %c128, %c0_48] : memref<1x256x256xbf16, #tpu.memory_space<vmem>>, vector<1x32x256xbf16>
    %140 = vector.shape_cast %139 : vector<1x32x256xbf16> to vector<32x256xbf16>
    %cst_49 = arith.constant dense<0.000000e+00> : vector<16x256xf32>
    %141 = tpu.matmul %138, %140, %cst_49 {dimension_numbers = #tpu.dot_dimension_numbers<[1], [0], [0], [1], [0, 0, 1, 1], [], []>} : vector<16x32xbf16>, vector<32x256xbf16>, vector<16x256xf32> -> vector<16x256xf32>
    %142 = arith.addf %116, %141 : vector<16x256xf32>
    %143 = vector.extract_strided_slice %11 {offsets = [0, 160], sizes = [16, 32], strides = [1, 1]} : vector<16x768xf32> to vector<16x32xf32>
    %144 = arith.truncf %143 : vector<16x32xf32> to vector<16x32xbf16>
    %145 = vector.extract_strided_slice %11 {offsets = [0, 416], sizes = [16, 32], strides = [1, 1]} : vector<16x768xf32> to vector<16x32xf32>
    %146 = arith.truncf %145 : vector<16x32xf32> to vector<16x32xbf16>
    %147 = vector.extract_strided_slice %11 {offsets = [0, 672], sizes = [16, 32], strides = [1, 1]} : vector<16x768xf32> to vector<16x32xf32>
    %148 = arith.truncf %147 : vector<16x32xf32> to vector<16x32xbf16>
    %cst_50 = arith.constant dense<0.000000e+00> : vector<16x16xf32>
    %149 = tpu.matmul %144, %146, %cst_50 {dimension_numbers = #tpu.dot_dimension_numbers<[1], [1], [0], [0], [0, 0, 1, 0], [], []>} : vector<16x32xbf16>, vector<16x32xbf16>, vector<16x16xf32> -> vector<16x16xf32>
    %cst_51 = arith.constant 0.176776692 : f32
    %150 = vector.broadcast %cst_51 : f32 to vector<16x16xf32>
    %151 = arith.mulf %149, %150 : vector<16x16xf32>
    %cst_52 = arith.constant dense<0xFF800000> : vector<16xf32>
    %152 = vector.multi_reduction <maximumf>, %151, %cst_52 [1] : vector<16x16xf32> to vector<16xf32>
    %153 = vector.shape_cast %152 : vector<16xf32> to vector<16x1xf32>
    %154 = vector.broadcast %153 : vector<16x1xf32> to vector<16x16xf32>
    %155 = arith.subf %151, %154 : vector<16x16xf32>
    %156 = math.exp %155 : vector<16x16xf32>
    %cst_53 = arith.constant dense<0.000000e+00> : vector<16xf32>
    %157 = vector.multi_reduction <add>, %156, %cst_53 [1] : vector<16x16xf32> to vector<16xf32>
    %158 = vector.shape_cast %157 : vector<16xf32> to vector<16x1xf32>
    %159 = tpu.reciprocal %158 {approx = true} : vector<16x1xf32> -> vector<16x1xf32>
    %160 = vector.broadcast %159 : vector<16x1xf32> to vector<16x16xf32>
    %161 = arith.mulf %156, %160 : vector<16x16xf32>
    %162 = arith.truncf %161 : vector<16x16xf32> to vector<16x16xbf16>
    %cst_54 = arith.constant dense<0.000000e+00> : vector<16x32xf32>
    %163 = tpu.matmul %162, %148, %cst_54 {dimension_numbers = #tpu.dot_dimension_numbers<[1], [0], [0], [1], [0, 0, 1, 1], [], []>} : vector<16x16xbf16>, vector<16x32xbf16>, vector<16x32xf32> -> vector<16x32xf32>
    %164 = arith.truncf %163 : vector<16x32xf32> to vector<16x32xbf16>
    %c0_55 = arith.constant 0 : index
    %c160 = arith.constant 160 : index
    %c0_56 = arith.constant 0 : index
    %165 = vector.load %arg7[%c0_55, %c160, %c0_56] : memref<1x256x256xbf16, #tpu.memory_space<vmem>>, vector<1x32x256xbf16>
    %166 = vector.shape_cast %165 : vector<1x32x256xbf16> to vector<32x256xbf16>
    %cst_57 = arith.constant dense<0.000000e+00> : vector<16x256xf32>
    %167 = tpu.matmul %164, %166, %cst_57 {dimension_numbers = #tpu.dot_dimension_numbers<[1], [0], [0], [1], [0, 0, 1, 1], [], []>} : vector<16x32xbf16>, vector<32x256xbf16>, vector<16x256xf32> -> vector<16x256xf32>
    %168 = arith.addf %142, %167 : vector<16x256xf32>
    %169 = vector.extract_strided_slice %11 {offsets = [0, 192], sizes = [16, 32], strides = [1, 1]} : vector<16x768xf32> to vector<16x32xf32>
    %170 = arith.truncf %169 : vector<16x32xf32> to vector<16x32xbf16>
    %171 = vector.extract_strided_slice %11 {offsets = [0, 448], sizes = [16, 32], strides = [1, 1]} : vector<16x768xf32> to vector<16x32xf32>
    %172 = arith.truncf %171 : vector<16x32xf32> to vector<16x32xbf16>
    %173 = vector.extract_strided_slice %11 {offsets = [0, 704], sizes = [16, 32], strides = [1, 1]} : vector<16x768xf32> to vector<16x32xf32>
    %174 = arith.truncf %173 : vector<16x32xf32> to vector<16x32xbf16>
    %cst_58 = arith.constant dense<0.000000e+00> : vector<16x16xf32>
    %175 = tpu.matmul %170, %172, %cst_58 {dimension_numbers = #tpu.dot_dimension_numbers<[1], [1], [0], [0], [0, 0, 1, 0], [], []>} : vector<16x32xbf16>, vector<16x32xbf16>, vector<16x16xf32> -> vector<16x16xf32>
    %cst_59 = arith.constant 0.176776692 : f32
    %176 = vector.broadcast %cst_59 : f32 to vector<16x16xf32>
    %177 = arith.mulf %175, %176 : vector<16x16xf32>
    %cst_60 = arith.constant dense<0xFF800000> : vector<16xf32>
    %178 = vector.multi_reduction <maximumf>, %177, %cst_60 [1] : vector<16x16xf32> to vector<16xf32>
    %179 = vector.shape_cast %178 : vector<16xf32> to vector<16x1xf32>
    %180 = vector.broadcast %179 : vector<16x1xf32> to vector<16x16xf32>
    %181 = arith.subf %177, %180 : vector<16x16xf32>
    %182 = math.exp %181 : vector<16x16xf32>
    %cst_61 = arith.constant dense<0.000000e+00> : vector<16xf32>
    %183 = vector.multi_reduction <add>, %182, %cst_61 [1] : vector<16x16xf32> to vector<16xf32>
    %184 = vector.shape_cast %183 : vector<16xf32> to vector<16x1xf32>
    %185 = tpu.reciprocal %184 {approx = true} : vector<16x1xf32> -> vector<16x1xf32>
    %186 = vector.broadcast %185 : vector<16x1xf32> to vector<16x16xf32>
    %187 = arith.mulf %182, %186 : vector<16x16xf32>
    %188 = arith.truncf %187 : vector<16x16xf32> to vector<16x16xbf16>
    %cst_62 = arith.constant dense<0.000000e+00> : vector<16x32xf32>
    %189 = tpu.matmul %188, %174, %cst_62 {dimension_numbers = #tpu.dot_dimension_numbers<[1], [0], [0], [1], [0, 0, 1, 1], [], []>} : vector<16x16xbf16>, vector<16x32xbf16>, vector<16x32xf32> -> vector<16x32xf32>
    %190 = arith.truncf %189 : vector<16x32xf32> to vector<16x32xbf16>
    %c0_63 = arith.constant 0 : index
    %c192 = arith.constant 192 : index
    %c0_64 = arith.constant 0 : index
    %191 = vector.load %arg7[%c0_63, %c192, %c0_64] : memref<1x256x256xbf16, #tpu.memory_space<vmem>>, vector<1x32x256xbf16>
    %192 = vector.shape_cast %191 : vector<1x32x256xbf16> to vector<32x256xbf16>
    %cst_65 = arith.constant dense<0.000000e+00> : vector<16x256xf32>
    %193 = tpu.matmul %190, %192, %cst_65 {dimension_numbers = #tpu.dot_dimension_numbers<[1], [0], [0], [1], [0, 0, 1, 1], [], []>} : vector<16x32xbf16>, vector<32x256xbf16>, vector<16x256xf32> -> vector<16x256xf32>
    %194 = arith.addf %168, %193 : vector<16x256xf32>
    %195 = vector.extract_strided_slice %11 {offsets = [0, 224], sizes = [16, 32], strides = [1, 1]} : vector<16x768xf32> to vector<16x32xf32>
    %196 = arith.truncf %195 : vector<16x32xf32> to vector<16x32xbf16>
    %197 = vector.extract_strided_slice %11 {offsets = [0, 480], sizes = [16, 32], strides = [1, 1]} : vector<16x768xf32> to vector<16x32xf32>
    %198 = arith.truncf %197 : vector<16x32xf32> to vector<16x32xbf16>
    %199 = vector.extract_strided_slice %11 {offsets = [0, 736], sizes = [16, 32], strides = [1, 1]} : vector<16x768xf32> to vector<16x32xf32>
    %200 = arith.truncf %199 : vector<16x32xf32> to vector<16x32xbf16>
    %cst_66 = arith.constant dense<0.000000e+00> : vector<16x16xf32>
    %201 = tpu.matmul %196, %198, %cst_66 {dimension_numbers = #tpu.dot_dimension_numbers<[1], [1], [0], [0], [0, 0, 1, 0], [], []>} : vector<16x32xbf16>, vector<16x32xbf16>, vector<16x16xf32> -> vector<16x16xf32>
    %cst_67 = arith.constant 0.176776692 : f32
    %202 = vector.broadcast %cst_67 : f32 to vector<16x16xf32>
    %203 = arith.mulf %201, %202 : vector<16x16xf32>
    %cst_68 = arith.constant dense<0xFF800000> : vector<16xf32>
    %204 = vector.multi_reduction <maximumf>, %203, %cst_68 [1] : vector<16x16xf32> to vector<16xf32>
    %205 = vector.shape_cast %204 : vector<16xf32> to vector<16x1xf32>
    %206 = vector.broadcast %205 : vector<16x1xf32> to vector<16x16xf32>
    %207 = arith.subf %203, %206 : vector<16x16xf32>
    %208 = math.exp %207 : vector<16x16xf32>
    %cst_69 = arith.constant dense<0.000000e+00> : vector<16xf32>
    %209 = vector.multi_reduction <add>, %208, %cst_69 [1] : vector<16x16xf32> to vector<16xf32>
    %210 = vector.shape_cast %209 : vector<16xf32> to vector<16x1xf32>
    %211 = tpu.reciprocal %210 {approx = true} : vector<16x1xf32> -> vector<16x1xf32>
    %212 = vector.broadcast %211 : vector<16x1xf32> to vector<16x16xf32>
    %213 = arith.mulf %208, %212 : vector<16x16xf32>
    %214 = arith.truncf %213 : vector<16x16xf32> to vector<16x16xbf16>
    %cst_70 = arith.constant dense<0.000000e+00> : vector<16x32xf32>
    %215 = tpu.matmul %214, %200, %cst_70 {dimension_numbers = #tpu.dot_dimension_numbers<[1], [0], [0], [1], [0, 0, 1, 1], [], []>} : vector<16x16xbf16>, vector<16x32xbf16>, vector<16x32xf32> -> vector<16x32xf32>
    %216 = arith.truncf %215 : vector<16x32xf32> to vector<16x32xbf16>
    %c0_71 = arith.constant 0 : index
    %c224 = arith.constant 224 : index
    %c0_72 = arith.constant 0 : index
    %217 = vector.load %arg7[%c0_71, %c224, %c0_72] : memref<1x256x256xbf16, #tpu.memory_space<vmem>>, vector<1x32x256xbf16>
    %218 = vector.shape_cast %217 : vector<1x32x256xbf16> to vector<32x256xbf16>
    %cst_73 = arith.constant dense<0.000000e+00> : vector<16x256xf32>
    %219 = tpu.matmul %216, %218, %cst_73 {dimension_numbers = #tpu.dot_dimension_numbers<[1], [0], [0], [1], [0, 0, 1, 1], [], []>} : vector<16x32xbf16>, vector<32x256xbf16>, vector<16x256xf32> -> vector<16x256xf32>
    %220 = arith.addf %194, %219 : vector<16x256xf32>
    %c0_74 = arith.constant 0 : index
    %c0_75 = arith.constant 0 : index
    %c0_76 = arith.constant 0 : index
    %221 = vector.load %arg8[%c0_74, %c0_75, %c0_76] : memref<1x1x256xf32, #tpu.memory_space<vmem>>, vector<1x1x256xf32>
    %222 = vector.shape_cast %221 : vector<1x1x256xf32> to vector<1x256xf32>
    %223 = vector.broadcast %222 : vector<1x256xf32> to vector<16x256xf32>
    %224 = arith.addf %220, %223 : vector<16x256xf32>
    %225 = arith.addf %224, %3 : vector<16x256xf32>
    %c0_77 = arith.constant 0 : index
    %c0_78 = arith.constant 0 : index
    %c0_79 = arith.constant 0 : index
    %226 = vector.load %arg9[%c0_77, %c0_78, %c0_79] : memref<1x1x256xf32, #tpu.memory_space<vmem>>, vector<1x1x256xf32>
    %227 = vector.shape_cast %226 : vector<1x1x256xf32> to vector<1x256xf32>
    %c0_80 = arith.constant 0 : index
    %c0_81 = arith.constant 0 : index
    %c0_82 = arith.constant 0 : index
    %228 = vector.load %arg10[%c0_80, %c0_81, %c0_82] : memref<1x1x256xf32, #tpu.memory_space<vmem>>, vector<1x1x256xf32>
    %229 = vector.shape_cast %228 : vector<1x1x256xf32> to vector<1x256xf32>
    %cst_83 = arith.constant dense<0.000000e+00> : vector<16xf32>
    %230 = vector.multi_reduction <add>, %225, %cst_83 [1] : vector<16x256xf32> to vector<16xf32>
    %231 = vector.shape_cast %230 : vector<16xf32> to vector<16x1xf32>
    %cst_84 = arith.constant 2.560000e+02 : f32
    %232 = vector.broadcast %cst_84 : f32 to vector<16x1xf32>
    %233 = arith.divf %231, %232 : vector<16x1xf32>
    %234 = vector.broadcast %233 : vector<16x1xf32> to vector<16x256xf32>
    %235 = arith.subf %225, %234 : vector<16x256xf32>
    %236 = arith.mulf %235, %235 : vector<16x256xf32>
    %cst_85 = arith.constant dense<0.000000e+00> : vector<16xf32>
    %237 = vector.multi_reduction <add>, %236, %cst_85 [1] : vector<16x256xf32> to vector<16xf32>
    %238 = vector.shape_cast %237 : vector<16xf32> to vector<16x1xf32>
    %cst_86 = arith.constant 2.560000e+02 : f32
    %239 = vector.broadcast %cst_86 : f32 to vector<16x1xf32>
    %240 = arith.divf %238, %239 : vector<16x1xf32>
    %cst_87 = arith.constant 9.99999974E-6 : f32
    %241 = vector.broadcast %cst_87 : f32 to vector<16x1xf32>
    %242 = arith.addf %240, %241 : vector<16x1xf32>
    %243 = math.rsqrt %242 : vector<16x1xf32>
    %244 = vector.broadcast %243 : vector<16x1xf32> to vector<16x256xf32>
    %245 = arith.mulf %235, %244 : vector<16x256xf32>
    %246 = vector.broadcast %227 : vector<1x256xf32> to vector<16x256xf32>
    %247 = arith.mulf %245, %246 : vector<16x256xf32>
    %248 = vector.broadcast %229 : vector<1x256xf32> to vector<16x256xf32>
    %249 = arith.addf %247, %248 : vector<16x256xf32>
    %250 = arith.truncf %249 : vector<16x256xf32> to vector<16x256xbf16>
    %c0_88 = arith.constant 0 : index
    %c0_89 = arith.constant 0 : index
    %c0_90 = arith.constant 0 : index
    %251 = vector.load %arg11[%c0_88, %c0_89, %c0_90] : memref<1x256x512xbf16, #tpu.memory_space<vmem>>, vector<1x256x512xbf16>
    %252 = vector.shape_cast %251 : vector<1x256x512xbf16> to vector<256x512xbf16>
    %cst_91 = arith.constant dense<0.000000e+00> : vector<16x512xf32>
    %253 = tpu.matmul %250, %252, %cst_91 {dimension_numbers = #tpu.dot_dimension_numbers<[1], [0], [0], [1], [0, 0, 1, 1], [], []>} : vector<16x256xbf16>, vector<256x512xbf16>, vector<16x512xf32> -> vector<16x512xf32>
    %c0_92 = arith.constant 0 : index
    %c0_93 = arith.constant 0 : index
    %c0_94 = arith.constant 0 : index
    %254 = vector.load %arg12[%c0_92, %c0_93, %c0_94] : memref<1x1x512xf32, #tpu.memory_space<vmem>>, vector<1x1x512xf32>
    %255 = vector.shape_cast %254 : vector<1x1x512xf32> to vector<1x512xf32>
    %256 = vector.broadcast %255 : vector<1x512xf32> to vector<16x512xf32>
    %257 = arith.addf %253, %256 : vector<16x512xf32>
    %cst_95 = arith.constant 0.000000e+00 : f32
    %258 = vector.broadcast %cst_95 : f32 to vector<16x512xf32>
    %259 = arith.maximumf %257, %258 : vector<16x512xf32>
    %260 = arith.truncf %259 : vector<16x512xf32> to vector<16x512xbf16>
    %c0_96 = arith.constant 0 : index
    %c0_97 = arith.constant 0 : index
    %c0_98 = arith.constant 0 : index
    %261 = vector.load %arg13[%c0_96, %c0_97, %c0_98] : memref<1x512x256xbf16, #tpu.memory_space<vmem>>, vector<1x512x256xbf16>
    %262 = vector.shape_cast %261 : vector<1x512x256xbf16> to vector<512x256xbf16>
    %cst_99 = arith.constant dense<0.000000e+00> : vector<16x256xf32>
    %263 = tpu.matmul %260, %262, %cst_99 {dimension_numbers = #tpu.dot_dimension_numbers<[1], [0], [0], [1], [0, 0, 1, 1], [], []>} : vector<16x512xbf16>, vector<512x256xbf16>, vector<16x256xf32> -> vector<16x256xf32>
    %c0_100 = arith.constant 0 : index
    %c0_101 = arith.constant 0 : index
    %c0_102 = arith.constant 0 : index
    %264 = vector.load %arg14[%c0_100, %c0_101, %c0_102] : memref<1x1x256xf32, #tpu.memory_space<vmem>>, vector<1x1x256xf32>
    %265 = vector.shape_cast %264 : vector<1x1x256xf32> to vector<1x256xf32>
    %266 = vector.broadcast %265 : vector<1x256xf32> to vector<16x256xf32>
    %267 = arith.addf %263, %266 : vector<16x256xf32>
    %268 = arith.addf %267, %249 : vector<16x256xf32>
    %c0_103 = arith.constant 0 : index
    %c0_104 = arith.constant 0 : index
    %c0_105 = arith.constant 0 : index
    %269 = vector.load %arg15[%c0_103, %c0_104, %c0_105] : memref<1x1x256xf32, #tpu.memory_space<vmem>>, vector<1x1x256xf32>
    %270 = vector.shape_cast %269 : vector<1x1x256xf32> to vector<1x256xf32>
    %c0_106 = arith.constant 0 : index
    %c0_107 = arith.constant 0 : index
    %c0_108 = arith.constant 0 : index
    %271 = vector.load %arg16[%c0_106, %c0_107, %c0_108] : memref<1x1x256xf32, #tpu.memory_space<vmem>>, vector<1x1x256xf32>
    %272 = vector.shape_cast %271 : vector<1x1x256xf32> to vector<1x256xf32>
    %cst_109 = arith.constant dense<0.000000e+00> : vector<16xf32>
    %273 = vector.multi_reduction <add>, %268, %cst_109 [1] : vector<16x256xf32> to vector<16xf32>
    %274 = vector.shape_cast %273 : vector<16xf32> to vector<16x1xf32>
    %cst_110 = arith.constant 2.560000e+02 : f32
    %275 = vector.broadcast %cst_110 : f32 to vector<16x1xf32>
    %276 = arith.divf %274, %275 : vector<16x1xf32>
    %277 = vector.broadcast %276 : vector<16x1xf32> to vector<16x256xf32>
    %278 = arith.subf %268, %277 : vector<16x256xf32>
    %279 = arith.mulf %278, %278 : vector<16x256xf32>
    %cst_111 = arith.constant dense<0.000000e+00> : vector<16xf32>
    %280 = vector.multi_reduction <add>, %279, %cst_111 [1] : vector<16x256xf32> to vector<16xf32>
    %281 = vector.shape_cast %280 : vector<16xf32> to vector<16x1xf32>
    %cst_112 = arith.constant 2.560000e+02 : f32
    %282 = vector.broadcast %cst_112 : f32 to vector<16x1xf32>
    %283 = arith.divf %281, %282 : vector<16x1xf32>
    %cst_113 = arith.constant 9.99999974E-6 : f32
    %284 = vector.broadcast %cst_113 : f32 to vector<16x1xf32>
    %285 = arith.addf %283, %284 : vector<16x1xf32>
    %286 = math.rsqrt %285 : vector<16x1xf32>
    %287 = vector.broadcast %286 : vector<16x1xf32> to vector<16x256xf32>
    %288 = arith.mulf %278, %287 : vector<16x256xf32>
    %289 = vector.broadcast %270 : vector<1x256xf32> to vector<16x256xf32>
    %290 = arith.mulf %288, %289 : vector<16x256xf32>
    %291 = vector.broadcast %272 : vector<1x256xf32> to vector<16x256xf32>
    %292 = arith.addf %290, %291 : vector<16x256xf32>
    %c0_114 = arith.constant 0 : index
    %c0_115 = arith.constant 0 : index
    %293 = vector.load %arg18[%c0_114, %c0_115] : memref<16x256xf32, #tpu.memory_space<vmem>>, vector<16x256xf32>
    tpu.vector_store %arg18[%c0_114, %c0_115], %292 {strides = array<i32>} : memref<16x256xf32, #tpu.memory_space<vmem>>, vector<16x256xf32>,
    %c1_i32 = arith.constant 1 : i32
    %294 = arith.cmpi eq, %arg1, %c1_i32 : i32
    %295 = arith.extui %294 : i1 to i32
    %c0_i32_116 = arith.constant 0 : i32
    %296 = arith.cmpi ne, %295, %c0_i32_116 : i32
    scf.if %296 {
      %cst_117 = arith.constant dense<0.000000e+00> : vector<256xf32>
      %297 = vector.multi_reduction <add>, %292, %cst_117 [0] : vector<16x256xf32> to vector<256xf32>
      %298 = vector.shape_cast %297 : vector<256xf32> to vector<1x256xf32>
      %cst_118 = arith.constant 1.600000e+01 : f32
      %299 = vector.broadcast %cst_118 : f32 to vector<1x256xf32>
      %300 = arith.divf %298, %299 : vector<1x256xf32>
      %301 = vector.shape_cast %300 : vector<1x256xf32> to vector<1x1x256xf32>
      %c0_119 = arith.constant 0 : index
      %c0_120 = arith.constant 0 : index
      %c0_121 = arith.constant 0 : index
      %302 = vector.load %arg17[%c0_119, %c0_120, %c0_121] : memref<1x1x256xf32, #tpu.memory_space<vmem>>, vector<1x1x256xf32>
      tpu.vector_store %arg17[%c0_119, %c0_120, %c0_121], %301 {strides = array<i32>} : memref<1x1x256xf32, #tpu.memory_space<vmem>>, vector<1x1x256xf32>,
    } else {
    }
    return
  }
  func.func @transform_0(%arg0: i32, %arg1: i32) -> (i32, i32, i32) {
    %c0_i32 = arith.constant 0 : i32
    %c0_i32_0 = arith.constant 0 : i32
    %c0_i32_1 = arith.constant 0 : i32
    return %arg0, %c0_i32, %c0_i32_0 : i32, i32, i32
  }
  func.func @transform_1(%arg0: i32, %arg1: i32) -> (i32, i32) {
    %c0_i32 = arith.constant 0 : i32
    %c0_i32_0 = arith.constant 0 : i32
    %c0_i32_1 = arith.constant 0 : i32
    return %c0_i32, %c0_i32_0 : i32, i32
  }
  func.func @transform_2(%arg0: i32, %arg1: i32) -> (i32, i32) {
    %c0_i32 = arith.constant 0 : i32
    %c0_i32_0 = arith.constant 0 : i32
    %c0_i32_1 = arith.constant 0 : i32
    return %c0_i32, %c0_i32_0 : i32, i32
  }
  func.func @transform_3(%arg0: i32, %arg1: i32) -> (i32, i32, i32) {
    %c0_i32 = arith.constant 0 : i32
    %c0_i32_0 = arith.constant 0 : i32
    %c0_i32_1 = arith.constant 0 : i32
    return %arg1, %c0_i32, %c0_i32_0 : i32, i32, i32
  }
  func.func @transform_4(%arg0: i32, %arg1: i32) -> (i32, i32, i32) {
    %c0_i32 = arith.constant 0 : i32
    %c0_i32_0 = arith.constant 0 : i32
    %c0_i32_1 = arith.constant 0 : i32
    return %arg1, %c0_i32, %c0_i32_0 : i32, i32, i32
  }
  func.func @transform_5(%arg0: i32, %arg1: i32) -> (i32, i32, i32) {
    %c0_i32 = arith.constant 0 : i32
    %c0_i32_0 = arith.constant 0 : i32
    %c0_i32_1 = arith.constant 0 : i32
    return %arg1, %c0_i32, %c0_i32_0 : i32, i32, i32
  }
  func.func @transform_6(%arg0: i32, %arg1: i32) -> (i32, i32, i32) {
    %c0_i32 = arith.constant 0 : i32
    %c0_i32_0 = arith.constant 0 : i32
    %c0_i32_1 = arith.constant 0 : i32
    return %arg1, %c0_i32, %c0_i32_0 : i32, i32, i32
  }
  func.func @transform_7(%arg0: i32, %arg1: i32) -> (i32, i32, i32) {
    %c0_i32 = arith.constant 0 : i32
    %c0_i32_0 = arith.constant 0 : i32
    %c0_i32_1 = arith.constant 0 : i32
    return %arg1, %c0_i32, %c0_i32_0 : i32, i32, i32
  }
  func.func @transform_8(%arg0: i32, %arg1: i32) -> (i32, i32, i32) {
    %c0_i32 = arith.constant 0 : i32
    %c0_i32_0 = arith.constant 0 : i32
    %c0_i32_1 = arith.constant 0 : i32
    return %arg1, %c0_i32, %c0_i32_0 : i32, i32, i32
  }
  func.func @transform_9(%arg0: i32, %arg1: i32) -> (i32, i32, i32) {
    %c0_i32 = arith.constant 0 : i32
    %c0_i32_0 = arith.constant 0 : i32
    %c0_i32_1 = arith.constant 0 : i32
    return %arg1, %c0_i32, %c0_i32_0 : i32, i32, i32
  }
  func.func @transform_10(%arg0: i32, %arg1: i32) -> (i32, i32, i32) {
    %c0_i32 = arith.constant 0 : i32
    %c0_i32_0 = arith.constant 0 : i32
    %c0_i32_1 = arith.constant 0 : i32
    return %arg1, %c0_i32, %c0_i32_0 : i32, i32, i32
  }
  func.func @transform_11(%arg0: i32, %arg1: i32) -> (i32, i32, i32) {
    %c0_i32 = arith.constant 0 : i32
    %c0_i32_0 = arith.constant 0 : i32
    %c0_i32_1 = arith.constant 0 : i32
    return %arg1, %c0_i32, %c0_i32_0 : i32, i32, i32
  }
  func.func @transform_12(%arg0: i32, %arg1: i32) -> (i32, i32, i32) {
    %c0_i32 = arith.constant 0 : i32
    %c0_i32_0 = arith.constant 0 : i32
    %c0_i32_1 = arith.constant 0 : i32
    return %arg1, %c0_i32, %c0_i32_0 : i32, i32, i32
  }
  func.func @transform_13(%arg0: i32, %arg1: i32) -> (i32, i32, i32) {
    %c0_i32 = arith.constant 0 : i32
    %c0_i32_0 = arith.constant 0 : i32
    %c0_i32_1 = arith.constant 0 : i32
    return %arg1, %c0_i32, %c0_i32_0 : i32, i32, i32
  }
  func.func @transform_14(%arg0: i32, %arg1: i32) -> (i32, i32, i32) {
    %c0_i32 = arith.constant 0 : i32
    %c0_i32_0 = arith.constant 0 : i32
    %c0_i32_1 = arith.constant 0 : i32
    return %arg1, %c0_i32, %c0_i32_0 : i32, i32, i32
  }
  func.func @transform_15(%arg0: i32, %arg1: i32) -> (i32, i32, i32) {
    %c0_i32 = arith.constant 0 : i32
    %c0_i32_0 = arith.constant 0 : i32
    %c0_i32_1 = arith.constant 0 : i32
    return %arg0, %c0_i32, %c0_i32_0 : i32, i32, i32
  }
}

</mosaic_0001>

<bundles_post_ra>
// kernel: feature_extractor_forward.12
= control target key start
LH: loop header
LB: loop body
LE: loop exit
PB: predicated region body
PF: predicated region fallthrough
CT: control target
= control target key end

     0   :  { %s1261_s15 = smov 0   ;;  %s1502_s0 = inlined_call_operand.vmem [shape: bf16[512,147], index: 0, kind: input, shape index: {}]   ;;  %s1503_s1 = inlined_call_operand.vmem [shape: bf16[147,64], index: 1, kind: input, shape index: {}]   ;;  %s1504_s2 = inlined_call_operand.vmem [shape: f32[1,64], index: 2, kind: input, shape index: {}]   ;;  %s1505_s3 = inlined_call_operand.vmem [shape: f32[1,64], index: 3, kind: input, shape index: {}]   ;;  %s1506_s4 = inlined_call_operand.vmem [shape: bf16[512,64], index: 4, kind: output, shape index: {}]  }
   0x1 LB: > { %s1001_s16 = sadd.s32 4294967295, %s1232_s15   ;;  %p1005_p0 = scmp.ge.s32.totalorder %s1232_s15, 1  ;;  %s1232_s15 = sphi %s1261_s15, %s14_s15  }
   0x2   : > { %p164_p1 = scmp.lt.s32.totalorder %s1232_s15, 3 }
   0x4   : > { %p165_p2 = pnand %p1005_p0, %p164_p1 }
   0x5   : > { %s1006_s23 = sshll.u32 (!%p165_p2), %s1001_s16, 5 }
   0x6   : > { %168 = sbr.rel (%p165_p2) target bundleno = 314 (0x13a), region = 36  ;;  %p192_p3 = scmp.lt.s32.totalorder (!%p165_p2), %s1006_s23, 63 }
   0xb   : > { %v1168_v0 = vld [vmem:[%s1503_s1 + $0x38] sm:$0xff]   ;;  %v1234_v1 = vmov 0   ;;  %v1169_v2 = vld [vmem:[%s1503_s1 + $0x30] sm:$0xff]   ;;  %v1170_v3 = vld [vmem:[%s1503_s1 + $0x28] sm:$0xff]   ;;  %s1508_s23 = smov (!%p192_p3, %s1006_s23), 63  ;;  %vm457_vm0 = vcmask 154624  }
   0xc   : > { %513 = vmatprep.subr.bf16.mxu0 %v1234_v1  ;;  %1138 = vmatprep.subr.bf16.mxu1 %v1234_v1  ;;  %v1171_v4 = vld [vmem:[%s1503_s1 + $0x20] sm:$0xff]   ;;  %s1105_s26 = sshll.u32 %s1508_s23, 3  ;;  %v1172_v5 = vld [vmem:[%s1503_s1 + $0x18] sm:$0xff]   ;;  %v1173_v8 = vld [vmem:[%s1503_s1 + $0x10] sm:$0xff]   ;;  %vm506_vm1 = vcmask 1040384   ;;  %vm507_vm2 = vcmask 1041408  }
   0xd   : > { %514 = vmatpush1.bf16.msra.mxu0 %v1168_v0  ;;  %1148 = vmatpush1.bf16.msra.mxu1 %v1168_v0  ;;  %s1287_s29 = scalar_lea.vmem %s1502_s0, %s1105_s26  ;;  %v1174_v9 = vld [vmem:[%s1503_s1 + $0x8] sm:$0xff]   ;;  %v1235_v10 = vmov 65535   ;;  %v1175_v12 = vld [vmem:[%s1503_s1] sm:$0xff]   ;;  %s1010_s21 = sshll.u32 %s1508_s23, 2  ;;  %vm912_vm3 = vcmask 519168  }
   0xe   : > { %515 = vmatprep.subr.bf16.mxu0 %v1234_v1  ;;  %1139 = vmatprep.subr.bf16.mxu1 %v1234_v1  ;;  %v1180_v6 = vld [vmem:[%s1287_s29 + $0x4] ss:$8 sps:$4 sm:$0xff]   ;;  %v508_v11 = vsel %vm506_vm1, 4294967295, %v1235_v10  ;;  %v1176_v13 = vld [vmem:[%s1503_s1 + $0x48] ss:$0 sps:$4 sm:$0x33]   ;;  %s1375_s25 = scalar_lea.vmem %s1506_s4, %s1010_s21 }
   0xf   : > { %v1183_v7 = vld [vmem:[%s1287_s29 + $0x84] ss:$8 sps:$4 sm:$0xff]   ;;  %1053 = vmatprep.mubr.msk.bf16.mxu0 %vm457_vm0, %v1180_v6  ;;  %v509_v14 = vsel %vm507_vm2, %v508_v11, 0  ;;  %v1178_v17 = vld [vmem:[%s1287_s29] ss:$8 sps:$4 sm:$0xff]  }
  0x10   : > { %1061 = vmatprep.mubr.msk.bf16.mxu1 %vm457_vm0, %v1183_v7  ;;  %v511_v15 = vand.u32 %v1176_v13, %v509_v14  ;;  %v1177_v16 = vld [vmem:[%s1503_s1 + $0x40] sm:$0xff]   ;;  %v1184_v19 = vld [vmem:[%s1287_s29 + $0x14] ss:$8 sps:$4 sm:$0xff]   ;;  %v1188_v21 = vld [vmem:[%s1287_s29 + $0x10] ss:$8 sps:$4 sm:$0xff]  }
  0x11   : > { %516 = vmatpush1.bf16.msra.mxu0 %v1169_v2  ;;  %1149 = vmatpush1.bf16.msra.mxu1 %v1169_v2  ;;  %v1181_v18 = vld [vmem:[%s1287_s29 + $0x80] ss:$8 sps:$4 sm:$0xff]   ;;  %v1186_v20 = vld [vmem:[%s1287_s29 + $0x94] ss:$8 sps:$4 sm:$0xff]   ;;  %v1189_v22 = vld [vmem:[%s1287_s29 + $0x90] ss:$8 sps:$4 sm:$0xff]  }
  0x12   : > { %517 = vmatprep.subr.bf16.mxu0 %v1234_v1  ;;  %1140 = vmatprep.subr.bf16.mxu1 %v1234_v1  ;;  %v1190_v23 = vld [vmem:[%s1287_s29 + $0x24] ss:$8 sps:$4 sm:$0xff]   ;;  %v1194_v25 = vld [vmem:[%s1287_s29 + $0x20] ss:$8 sps:$4 sm:$0xff]   ;;  %v1196_v27 = vld [vmem:[%s1287_s29 + $0x34] ss:$8 sps:$4 sm:$0xff]  }
  0x13   : > { %v1192_v24 = vld [vmem:[%s1287_s29 + $0xa4] ss:$8 sps:$4 sm:$0xff]   ;;  %v1195_v26 = vld [vmem:[%s1287_s29 + $0xa0] ss:$8 sps:$4 sm:$0xff]   ;;  %v1198_v28 = vld [vmem:[%s1287_s29 + $0xb4] ss:$8 sps:$4 sm:$0xff]  }
  0x14   : > { %v1200_v29 = vld [vmem:[%s1287_s29 + $0x30] ss:$8 sps:$4 sm:$0xff]   ;;  %v1202_v31 = vld [vmem:[%s1287_s29 + $0x44] ss:$8 sps:$4 sm:$0xff]   ;;  %v1206_v33 = vld [vmem:[%s1287_s29 + $0x40] ss:$8 sps:$4 sm:$0xff]  }
  0x15   : > { %518 = vmatpush1.bf16.msra.mxu0 %v1170_v3  ;;  %1150 = vmatpush1.bf16.msra.mxu1 %v1170_v3  ;;  %v1201_v30 = vld [vmem:[%s1287_s29 + $0xb0] ss:$8 sps:$4 sm:$0xff]   ;;  %v1204_v32 = vld [vmem:[%s1287_s29 + $0xc4] ss:$8 sps:$4 sm:$0xff]   ;;  %v1207_v34 = vld [vmem:[%s1287_s29 + $0xc0] ss:$8 sps:$4 sm:$0xff]  }
  0x16   : > { %519 = vmatprep.subr.bf16.mxu0 %v1234_v1  ;;  %1141 = vmatprep.subr.bf16.mxu1 %v1234_v1  ;;  %v1208_v35 = vld [vmem:[%s1287_s29 + $0x54] ss:$8 sps:$4 sm:$0xff]   ;;  %v1212_v37 = vld [vmem:[%s1287_s29 + $0x50] ss:$8 sps:$4 sm:$0xff]   ;;  %v1214_v39 = vld [vmem:[%s1287_s29 + $0x64] ss:$8 sps:$4 sm:$0xff]  }
  0x17   : > { %v1210_v36 = vld [vmem:[%s1287_s29 + $0xd4] ss:$8 sps:$4 sm:$0xff]   ;;  %v1213_v38 = vld [vmem:[%s1287_s29 + $0xd0] ss:$8 sps:$4 sm:$0xff]   ;;  %v1216_v40 = vld [vmem:[%s1287_s29 + $0xe4] ss:$8 sps:$4 sm:$0xff]  }
  0x18   : > { %v1218_v41 = vld [vmem:[%s1287_s29 + $0x60] ss:$8 sps:$4 sm:$0xff]   ;;  %v1220_v43 = vld [vmem:[%s1287_s29 + $0x74] ss:$8 sps:$4 sm:$0xff]   ;;  %v1224_v45 = vld [vmem:[%s1287_s29 + $0x70] ss:$8 sps:$4 sm:$0xff]  }
  0x19   : > { %520 = vmatpush1.bf16.msra.mxu0 %v1171_v4  ;;  %1151 = vmatpush1.bf16.msra.mxu1 %v1171_v4  ;;  %v1219_v42 = vld [vmem:[%s1287_s29 + $0xe0] ss:$8 sps:$4 sm:$0xff]   ;;  %v1222_v44 = vld [vmem:[%s1287_s29 + $0xf4] ss:$8 sps:$4 sm:$0xff]   ;;  %v1225_v46 = vld [vmem:[%s1287_s29 + $0xf0] ss:$8 sps:$4 sm:$0xff]  }
  0x1a   : > { %521 = vmatprep.subr.bf16.mxu0 %v1234_v1  ;;  %1142 = vmatprep.subr.bf16.mxu1 %v1234_v1  ;;  %v1358_v47 = vld [vmem:[%s1504_s2] ss:$0 sm:$0xff] }
  0x1b   : > { %v1363_v49 = vld [vmem:[%s1505_s3] ss:$0 sm:$0xff] }
  0x1d   : > { %522 = vmatpush1.bf16.msra.mxu0 %v1172_v5  ;;  %1152 = vmatpush1.bf16.msra.mxu1 %v1172_v5 }
  0x1e   : > { %523 = vmatprep.subr.bf16.mxu0 %v1234_v1  ;;  %1143 = vmatprep.subr.bf16.mxu1 %v1234_v1 }
  0x21   : > { %524 = vmatpush1.bf16.msra.mxu0 %v1173_v8  ;;  %1153 = vmatpush1.bf16.msra.mxu1 %v1173_v8 }
  0x22   : > { %525 = vmatprep.subr.bf16.mxu0 %v1234_v1  ;;  %1144 = vmatprep.subr.bf16.mxu1 %v1234_v1 }
  0x25   : > { %526 = vmatpush1.bf16.msra.mxu0 %v1174_v9  ;;  %1154 = vmatpush1.bf16.msra.mxu1 %v1174_v9 }
  0x26   : > { %527 = vmatprep.subr.bf16.mxu0 %v1234_v1  ;;  %1145 = vmatprep.subr.bf16.mxu1 %v1234_v1 }
  0x29   : > { %528 = vmatpush1.bf16.msra.mxu0 %v1175_v12  ;;  %1155 = vmatpush1.bf16.msra.mxu1 %v1175_v12 }
  0x2a   : > { %541 = vmatprep.subr.bf16.mxu0 %v1234_v1  ;;  %1146 = vmatprep.subr.bf16.mxu1 %v1234_v1 }
  0x2d   : > { %542 = vmatpush2.bf16.msra.mxu0 %v511_v15  ;;  %1156 = vmatpush2.bf16.msra.mxu1 %v511_v15 }
  0x2e   : > { %543 = vmatprep.subr.bf16.mxu0 %v1234_v1  ;;  %1147 = vmatprep.subr.bf16.mxu1 %v1234_v1 }
  0x31   : > { %544 = vmatpush2.bf16.msra.mxu0 %v1177_v16  ;;  %1157 = vmatpush2.bf16.msra.mxu1 %v1177_v16 }
  0x34   : > { %546 = vmatmul.mubr.bf16.vlgmr.msra.gmra.mxu0 %v1178_v17  ;;  %610 = vmatmul.mubr.bf16.vlgmr.msra.gmra.mxu1 %v1181_v18 }
  0x35   : > { %1054 = vmatprep.mubr.msk.bf16.mxu0 %vm457_vm0, %v1184_v19  ;;  %1062 = vmatprep.mubr.msk.bf16.mxu1 %vm457_vm0, %v1186_v20 }
  0x3c   : > { %554 = vmatmul.mubr.bf16.gmra.mxu0 %v1188_v21  ;;  %618 = vmatmul.mubr.bf16.gmra.mxu1 %v1189_v22 }
  0x3d   : > { %1055 = vmatprep.mubr.msk.bf16.mxu0 %vm457_vm0, %v1190_v23  ;;  %1063 = vmatprep.mubr.msk.bf16.mxu1 %vm457_vm0, %v1192_v24 }
  0x44   : > { %562 = vmatmul.mubr.bf16.gmra.mxu0 %v1194_v25  ;;  %626 = vmatmul.mubr.bf16.gmra.mxu1 %v1195_v26 }
  0x45   : > { %1056 = vmatprep.mubr.msk.bf16.mxu0 %vm457_vm0, %v1196_v27  ;;  %1064 = vmatprep.mubr.msk.bf16.mxu1 %vm457_vm0, %v1198_v28 }
  0x4c   : > { %570 = vmatmul.mubr.bf16.gmra.mxu0 %v1200_v29  ;;  %634 = vmatmul.mubr.bf16.gmra.mxu1 %v1201_v30 }
  0x4d   : > { %1057 = vmatprep.mubr.msk.bf16.mxu0 %vm457_vm0, %v1202_v31  ;;  %1065 = vmatprep.mubr.msk.bf16.mxu1 %vm457_vm0, %v1204_v32 }
  0x54   : > { %578 = vmatmul.mubr.bf16.gmra.mxu0 %v1206_v33  ;;  %642 = vmatmul.mubr.bf16.gmra.mxu1 %v1207_v34 }
  0x55   : > { %1058 = vmatprep.mubr.msk.bf16.mxu0 %vm457_vm0, %v1208_v35  ;;  %1066 = vmatprep.mubr.msk.bf16.mxu1 %vm457_vm0, %v1210_v36 }
  0x5c   : > { %586 = vmatmul.mubr.bf16.gmra.mxu0 %v1212_v37  ;;  %650 = vmatmul.mubr.bf16.gmra.mxu1 %v1213_v38 }
  0x5d   : > { %1059 = vmatprep.mubr.msk.bf16.mxu0 %vm457_vm0, %v1214_v39  ;;  %1067 = vmatprep.mubr.msk.bf16.mxu1 %vm457_vm0, %v1216_v40 }
  0x64   : > { %594 = vmatmul.mubr.bf16.gmra.mxu0 %v1218_v41  ;;  %658 = vmatmul.mubr.bf16.gmra.mxu1 %v1219_v42 }
  0x65   : > { %1060 = vmatprep.mubr.msk.bf16.mxu0 %vm457_vm0, %v1220_v43  ;;  %1068 = vmatprep.mubr.msk.bf16.mxu1 %vm457_vm0, %v1222_v44 }
  0x6c   : > { %602 = vmatmul.mubr.bf16.gmra.mxu0 %v1224_v45  ;;  %666 = vmatmul.mubr.bf16.gmra.mxu1 %v1225_v46 }
  0xf4   : > { %v547_v48 = vpop.f32.mrf.mxu0  ;;  %v611_v50 = vpop.f32.mrf.mxu1 }
  0xf5   : > { %v681_v51 = vmul.f32 %v1358_v47, %v547_v48  ;;  %v697_v52 = vmul.f32 %v1358_v47, %v611_v50 }
  0xf6   : > { %v549_v53 = vpop.f32.mrf.mxu0  ;;  %v613_v54 = vpop.f32.mrf.mxu1 }
  0xf7   : > { %v720_v55 = vadd.f32 %v1363_v49, %v681_v51  ;;  %v736_v56 = vadd.f32 %v1363_v49, %v697_v52 }
  0xf8   : > { %v550_v57 = vpop.f32.mrf.mxu0  ;;  %v614_v58 = vpop.f32.mrf.mxu1 }
  0xf9   : > { %v752_v59 = vmax.f32 %v720_v55, 0.0  ;;  %v768_v60 = vmax.f32 %v736_v56, 0.0  ;;  %v682_v61 = vmul.f32 %v1358_v47, %v550_v57  ;;  %v698_v62 = vmul.f32 %v1358_v47, %v614_v58 }
  0xfa   : > { %v552_v63 = vpop.f32.mrf.mxu0  ;;  %v616_v0 = vpop.f32.mrf.mxu1 }
  0xfb   : > { %v1106_v1 = vpack.c.bf16 %v752_v59, %v752_v59  ;;  %v1122_v2 = vpack.c.bf16 %v768_v60, %v768_v60  ;;  %v721_v3 = vadd.f32 %v1363_v49, %v682_v61  ;;  %v737_v4 = vadd.f32 %v1363_v49, %v698_v62 }
  0xfc   : > { %v555_v5 = vpop.f32.mrf.mxu0  ;;  %v619_v6 = vpop.f32.mrf.mxu1 }
  0xfd   : > { %913 = vst.msk [vmem:[%s1375_s25] sm:$0xf] %vm912_vm3, %v1106_v1  ;;  %929 = vst.msk [vmem:[%s1375_s25 + $0x40] sm:$0xf] %vm912_vm3, %v1122_v2  ;;  %v753_v7 = vmax.f32 %v721_v3, 0.0  ;;  %v769_v8 = vmax.f32 %v737_v4, 0.0  ;;  %v683_v9 = vmul.f32 %v1358_v47, %v555_v5  ;;  %v699_v10 = vmul.f32 %v1358_v47, %v619_v6 }
  0xfe   : > { %v557_v11 = vpop.f32.mrf.mxu0  ;;  %v621_v12 = vpop.f32.mrf.mxu1 }
  0xff   : > { %v1107_v13 = vpack.c.bf16 %v753_v7, %v753_v7  ;;  %v1123_v14 = vpack.c.bf16 %v769_v8, %v769_v8  ;;  %v722_v15 = vadd.f32 %v1363_v49, %v683_v9  ;;  %v738_v16 = vadd.f32 %v1363_v49, %v699_v10 }
 0x100   : > { %v558_v17 = vpop.f32.mrf.mxu0  ;;  %v622_v18 = vpop.f32.mrf.mxu1 }
 0x101   : > { %914 = vst.msk [vmem:[%s1375_s25 + $0x4] sm:$0xf] %vm912_vm3, %v1107_v13  ;;  %930 = vst.msk [vmem:[%s1375_s25 + $0x44] sm:$0xf] %vm912_vm3, %v1123_v14  ;;  %v754_v19 = vmax.f32 %v722_v15, 0.0  ;;  %v770_v20 = vmax.f32 %v738_v16, 0.0  ;;  %v684_v21 = vmul.f32 %v1358_v47, %v558_v17  ;;  %v700_v22 = vmul.f32 %v1358_v47, %v622_v18 }
 0x102   : > { %v560_v23 = vpop.f32.mrf.mxu0  ;;  %v624_v24 = vpop.f32.mrf.mxu1 }
 0x103   : > { %v1108_v25 = vpack.c.bf16 %v754_v19, %v754_v19  ;;  %v1124_v26 = vpack.c.bf16 %v770_v20, %v770_v20  ;;  %v723_v27 = vadd.f32 %v1363_v49, %v684_v21  ;;  %v739_v28 = vadd.f32 %v1363_v49, %v700_v22 }
 0x104   : > { %v563_v29 = vpop.f32.mrf.mxu0  ;;  %v627_v30 = vpop.f32.mrf.mxu1 }
 0x105   : > { %915 = vst.msk [vmem:[%s1375_s25 + $0x8] sm:$0xf] %vm912_vm3, %v1108_v25  ;;  %931 = vst.msk [vmem:[%s1375_s25 + $0x48] sm:$0xf] %vm912_vm3, %v1124_v26  ;;  %v755_v31 = vmax.f32 %v723_v27, 0.0  ;;  %v771_v32 = vmax.f32 %v739_v28, 0.0  ;;  %v685_v33 = vmul.f32 %v1358_v47, %v563_v29  ;;  %v701_v34 = vmul.f32 %v1358_v47, %v627_v30 }
 0x106   : > { %v565_v35 = vpop.f32.mrf.mxu0  ;;  %v629_v36 = vpop.f32.mrf.mxu1 }
 0x107   : > { %v1109_v37 = vpack.c.bf16 %v755_v31, %v755_v31  ;;  %v1125_v38 = vpack.c.bf16 %v771_v32, %v771_v32  ;;  %v724_v39 = vadd.f32 %v1363_v49, %v685_v33  ;;  %v740_v40 = vadd.f32 %v1363_v49, %v701_v34 }
 0x108   : > { %v566_v41 = vpop.f32.mrf.mxu0  ;;  %v630_v42 = vpop.f32.mrf.mxu1 }
 0x109   : > { %916 = vst.msk [vmem:[%s1375_s25 + $0xc] sm:$0xf] %vm912_vm3, %v1109_v37  ;;  %932 = vst.msk [vmem:[%s1375_s25 + $0x4c] sm:$0xf] %vm912_vm3, %v1125_v38  ;;  %v756_v43 = vmax.f32 %v724_v39, 0.0  ;;  %v772_v44 = vmax.f32 %v740_v40, 0.0  ;;  %v686_v45 = vmul.f32 %v1358_v47, %v566_v41  ;;  %v702_v46 = vmul.f32 %v1358_v47, %v630_v42 }
 0x10a   : > { %v568_v48 = vpop.f32.mrf.mxu0  ;;  %v632_v50 = vpop.f32.mrf.mxu1 }
 0x10b   : > { %v1110_v51 = vpack.c.bf16 %v756_v43, %v756_v43  ;;  %v1126_v52 = vpack.c.bf16 %v772_v44, %v772_v44  ;;  %v725_v53 = vadd.f32 %v1363_v49, %v686_v45  ;;  %v741_v54 = vadd.f32 %v1363_v49, %v702_v46 }
 0x10c   : > { %v571_v55 = vpop.f32.mrf.mxu0  ;;  %v635_v56 = vpop.f32.mrf.mxu1 }
 0x10d   : > { %917 = vst.msk [vmem:[%s1375_s25 + $0x10] sm:$0xf] %vm912_vm3, %v1110_v51  ;;  %933 = vst.msk [vmem:[%s1375_s25 + $0x50] sm:$0xf] %vm912_vm3, %v1126_v52  ;;  %v757_v57 = vmax.f32 %v725_v53, 0.0  ;;  %v773_v58 = vmax.f32 %v741_v54, 0.0  ;;  %v687_v59 = vmul.f32 %v1358_v47, %v571_v55  ;;  %v703_v60 = vmul.f32 %v1358_v47, %v635_v56 }
 0x10e   : > { %v573_v61 = vpop.f32.mrf.mxu0  ;;  %v637_v62 = vpop.f32.mrf.mxu1 }
 0x10f   : > { %v1111_v63 = vpack.c.bf16 %v757_v57, %v757_v57  ;;  %v1127_v0 = vpack.c.bf16 %v773_v58, %v773_v58  ;;  %v726_v1 = vadd.f32 %v1363_v49, %v687_v59  ;;  %v742_v2 = vadd.f32 %v1363_v49, %v703_v60 }
 0x110   : > { %v574_v3 = vpop.f32.mrf.mxu0  ;;  %v638_v4 = vpop.f32.mrf.mxu1 }
 0x111   : > { %918 = vst.msk [vmem:[%s1375_s25 + $0x14] sm:$0xf] %vm912_vm3, %v1111_v63  ;;  %934 = vst.msk [vmem:[%s1375_s25 + $0x54] sm:$0xf] %vm912_vm3, %v1127_v0  ;;  %v758_v5 = vmax.f32 %v726_v1, 0.0  ;;  %v774_v6 = vmax.f32 %v742_v2, 0.0  ;;  %v688_v7 = vmul.f32 %v1358_v47, %v574_v3  ;;  %v704_v8 = vmul.f32 %v1358_v47, %v638_v4 }
 0x112   : > { %v576_v9 = vpop.f32.mrf.mxu0  ;;  %v640_v10 = vpop.f32.mrf.mxu1 }
 0x113   : > { %v1112_v11 = vpack.c.bf16 %v758_v5, %v758_v5  ;;  %v1128_v12 = vpack.c.bf16 %v774_v6, %v774_v6  ;;  %v727_v13 = vadd.f32 %v1363_v49, %v688_v7  ;;  %v743_v14 = vadd.f32 %v1363_v49, %v704_v8 }
 0x114   : > { %v579_v15 = vpop.f32.mrf.mxu0  ;;  %v643_v16 = vpop.f32.mrf.mxu1 }
 0x115   : > { %919 = vst.msk [vmem:[%s1375_s25 + $0x18] sm:$0xf] %vm912_vm3, %v1112_v11  ;;  %935 = vst.msk [vmem:[%s1375_s25 + $0x58] sm:$0xf] %vm912_vm3, %v1128_v12  ;;  %v759_v17 = vmax.f32 %v727_v13, 0.0  ;;  %v775_v18 = vmax.f32 %v743_v14, 0.0  ;;  %v689_v19 = vmul.f32 %v1358_v47, %v579_v15  ;;  %v705_v20 = vmul.f32 %v1358_v47, %v643_v16 }
 0x116   : > { %v581_v21 = vpop.f32.mrf.mxu0  ;;  %v645_v22 = vpop.f32.mrf.mxu1 }
 0x117   : > { %v1113_v23 = vpack.c.bf16 %v759_v17, %v759_v17  ;;  %v1129_v24 = vpack.c.bf16 %v775_v18, %v775_v18  ;;  %v728_v25 = vadd.f32 %v1363_v49, %v689_v19  ;;  %v744_v26 = vadd.f32 %v1363_v49, %v705_v20 }
 0x118   : > { %v582_v27 = vpop.f32.mrf.mxu0  ;;  %v646_v28 = vpop.f32.mrf.mxu1 }
 0x119   : > { %920 = vst.msk [vmem:[%s1375_s25 + $0x1c] sm:$0xf] %vm912_vm3, %v1113_v23  ;;  %936 = vst.msk [vmem:[%s1375_s25 + $0x5c] sm:$0xf] %vm912_vm3, %v1129_v24  ;;  %v760_v29 = vmax.f32 %v728_v25, 0.0  ;;  %v776_v30 = vmax.f32 %v744_v26, 0.0  ;;  %v690_v31 = vmul.f32 %v1358_v47, %v582_v27  ;;  %v706_v32 = vmul.f32 %v1358_v47, %v646_v28 }
 0x11a   : > { %v584_v33 = vpop.f32.mrf.mxu0  ;;  %v648_v34 = vpop.f32.mrf.mxu1 }
 0x11b   : > { %v1114_v35 = vpack.c.bf16 %v760_v29, %v760_v29  ;;  %v1130_v36 = vpack.c.bf16 %v776_v30, %v776_v30  ;;  %v729_v37 = vadd.f32 %v1363_v49, %v690_v31  ;;  %v745_v38 = vadd.f32 %v1363_v49, %v706_v32 }
 0x11c   : > { %v587_v39 = vpop.f32.mrf.mxu0  ;;  %v651_v40 = vpop.f32.mrf.mxu1 }
 0x11d   : > { %921 = vst.msk [vmem:[%s1375_s25 + $0x20] sm:$0xf] %vm912_vm3, %v1114_v35  ;;  %937 = vst.msk [vmem:[%s1375_s25 + $0x60] sm:$0xf] %vm912_vm3, %v1130_v36  ;;  %v761_v41 = vmax.f32 %v729_v37, 0.0  ;;  %v777_v42 = vmax.f32 %v745_v38, 0.0  ;;  %v691_v43 = vmul.f32 %v1358_v47, %v587_v39  ;;  %v707_v44 = vmul.f32 %v1358_v47, %v651_v40 }
 0x11e   : > { %v589_v45 = vpop.f32.mrf.mxu0  ;;  %v653_v46 = vpop.f32.mrf.mxu1 }
 0x11f   : > { %v1115_v48 = vpack.c.bf16 %v761_v41, %v761_v41  ;;  %v1131_v50 = vpack.c.bf16 %v777_v42, %v777_v42  ;;  %v730_v51 = vadd.f32 %v1363_v49, %v691_v43  ;;  %v746_v52 = vadd.f32 %v1363_v49, %v707_v44 }
 0x120   : > { %v590_v53 = vpop.f32.mrf.mxu0  ;;  %v654_v54 = vpop.f32.mrf.mxu1 }
 0x121   : > { %922 = vst.msk [vmem:[%s1375_s25 + $0x24] sm:$0xf] %vm912_vm3, %v1115_v48  ;;  %938 = vst.msk [vmem:[%s1375_s25 + $0x64] sm:$0xf] %vm912_vm3, %v1131_v50  ;;  %v762_v55 = vmax.f32 %v730_v51, 0.0  ;;  %v778_v56 = vmax.f32 %v746_v52, 0.0  ;;  %v692_v57 = vmul.f32 %v1358_v47, %v590_v53  ;;  %v708_v58 = vmul.f32 %v1358_v47, %v654_v54 }
 0x122   : > { %v592_v59 = vpop.f32.mrf.mxu0  ;;  %v656_v60 = vpop.f32.mrf.mxu1 }
 0x123   : > { %v1116_v61 = vpack.c.bf16 %v762_v55, %v762_v55  ;;  %v1132_v62 = vpack.c.bf16 %v778_v56, %v778_v56  ;;  %v731_v63 = vadd.f32 %v1363_v49, %v692_v57  ;;  %v747_v0 = vadd.f32 %v1363_v49, %v708_v58 }
 0x124   : > { %v595_v1 = vpop.f32.mrf.mxu0  ;;  %v659_v2 = vpop.f32.mrf.mxu1 }
 0x125   : > { %923 = vst.msk [vmem:[%s1375_s25 + $0x28] sm:$0xf] %vm912_vm3, %v1116_v61  ;;  %939 = vst.msk [vmem:[%s1375_s25 + $0x68] sm:$0xf] %vm912_vm3, %v1132_v62  ;;  %v763_v3 = vmax.f32 %v731_v63, 0.0  ;;  %v779_v4 = vmax.f32 %v747_v0, 0.0  ;;  %v693_v5 = vmul.f32 %v1358_v47, %v595_v1  ;;  %v709_v6 = vmul.f32 %v1358_v47, %v659_v2 }
 0x126   : > { %v597_v7 = vpop.f32.mrf.mxu0  ;;  %v661_v8 = vpop.f32.mrf.mxu1 }
 0x127   : > { %v1117_v9 = vpack.c.bf16 %v763_v3, %v763_v3  ;;  %v1133_v10 = vpack.c.bf16 %v779_v4, %v779_v4  ;;  %v732_v11 = vadd.f32 %v1363_v49, %v693_v5  ;;  %v748_v12 = vadd.f32 %v1363_v49, %v709_v6 }
 0x128   : > { %v598_v13 = vpop.f32.mrf.mxu0  ;;  %v662_v14 = vpop.f32.mrf.mxu1 }
 0x129   : > { %924 = vst.msk [vmem:[%s1375_s25 + $0x2c] sm:$0xf] %vm912_vm3, %v1117_v9  ;;  %940 = vst.msk [vmem:[%s1375_s25 + $0x6c] sm:$0xf] %vm912_vm3, %v1133_v10  ;;  %v764_v15 = vmax.f32 %v732_v11, 0.0  ;;  %v780_v16 = vmax.f32 %v748_v12, 0.0  ;;  %v694_v17 = vmul.f32 %v1358_v47, %v598_v13  ;;  %v710_v18 = vmul.f32 %v1358_v47, %v662_v14 }
 0x12a   : > { %v600_v19 = vpop.f32.mrf.mxu0  ;;  %v664_v20 = vpop.f32.mrf.mxu1 }
 0x12b   : > { %v1118_v21 = vpack.c.bf16 %v764_v15, %v764_v15  ;;  %v1134_v22 = vpack.c.bf16 %v780_v16, %v780_v16  ;;  %v733_v23 = vadd.f32 %v1363_v49, %v694_v17  ;;  %v749_v24 = vadd.f32 %v1363_v49, %v710_v18 }
 0x12c   : > { %v603_v25 = vpop.f32.mrf.mxu0  ;;  %v667_v26 = vpop.f32.mrf.mxu1 }
 0x12d   : > { %925 = vst.msk [vmem:[%s1375_s25 + $0x30] sm:$0xf] %vm912_vm3, %v1118_v21  ;;  %941 = vst.msk [vmem:[%s1375_s25 + $0x70] sm:$0xf] %vm912_vm3, %v1134_v22  ;;  %v765_v27 = vmax.f32 %v733_v23, 0.0  ;;  %v781_v28 = vmax.f32 %v749_v24, 0.0  ;;  %v695_v29 = vmul.f32 %v1358_v47, %v603_v25  ;;  %v711_v30 = vmul.f32 %v1358_v47, %v667_v26 }
 0x12e   : > { %v605_v31 = vpop.f32.mrf.mxu0  ;;  %v669_v32 = vpop.f32.mrf.mxu1 }
 0x12f   : > { %v1119_v33 = vpack.c.bf16 %v765_v27, %v765_v27  ;;  %v1135_v34 = vpack.c.bf16 %v781_v28, %v781_v28  ;;  %v734_v35 = vadd.f32 %v1363_v49, %v695_v29  ;;  %v750_v36 = vadd.f32 %v1363_v49, %v711_v30 }
 0x130   : > { %v606_v37 = vpop.f32.mrf.mxu0  ;;  %v670_v38 = vpop.f32.mrf.mxu1 }
 0x131   : > { %926 = vst.msk [vmem:[%s1375_s25 + $0x34] sm:$0xf] %vm912_vm3, %v1119_v33  ;;  %942 = vst.msk [vmem:[%s1375_s25 + $0x74] sm:$0xf] %vm912_vm3, %v1135_v34  ;;  %v766_v39 = vmax.f32 %v734_v35, 0.0  ;;  %v782_v40 = vmax.f32 %v750_v36, 0.0  ;;  %v696_v41 = vmul.f32 %v1358_v47, %v606_v37  ;;  %v712_v42 = vmul.f32 %v1358_v47, %v670_v38 }
 0x132   : > { %v608_v43 = vpop.f32.mrf.mxu0  ;;  %v672_v44 = vpop.f32.mrf.mxu1 }
 0x133   : > { %v1120_v45 = vpack.c.bf16 %v766_v39, %v766_v39  ;;  %v1136_v46 = vpack.c.bf16 %v782_v40, %v782_v40  ;;  %v735_v48 = vadd.f32 %v1363_v49, %v696_v41  ;;  %v751_v50 = vadd.f32 %v1363_v49, %v712_v42 }
 0x135   : > { %927 = vst.msk [vmem:[%s1375_s25 + $0x38] sm:$0xf] %vm912_vm3, %v1120_v45  ;;  %943 = vst.msk [vmem:[%s1375_s25 + $0x78] sm:$0xf] %vm912_vm3, %v1136_v46  ;;  %v767_v51 = vmax.f32 %v735_v48, 0.0  ;;  %v783_v52 = vmax.f32 %v751_v50, 0.0 }
 0x137   : > { %v1121_v53 = vpack.c.bf16 %v767_v51, %v767_v51  ;;  %v1137_v54 = vpack.c.bf16 %v783_v52, %v783_v52 }
 0x139   : > { %928 = vst.msk [vmem:[%s1375_s25 + $0x3c] sm:$0xf] %vm912_vm3, %v1121_v53  ;;  %944 = vst.msk [vmem:[%s1375_s25 + $0x7c] sm:$0xf] %vm912_vm3, %v1137_v54 }
 0x13a PF: > { %s14_s15 = sadd.s32 1, %s1232_s15  }
 0x13b   : > { %p11_p4 = scmp.ge.s32.totalorder %s14_s15, 4  }
 0x13d   :  { %13 = sbr.rel (!%p11_p4) target bundleno = 1 (0x1), region = 66 }

// kernel: feature_extractor_forward.13
= control target key start
LH: loop header
LB: loop body
LE: loop exit
PB: predicated region body
PF: predicated region fallthrough
CT: control target
= control target key end

     0   :  { %vm153_vm0 = vcmask 519168   ;;  %s1385_s0 = inlined_call_operand.vmem [shape: bf16[9,128,64], index: 0, kind: input, shape index: {}]   ;;  %s1386_s1 = inlined_call_operand.vmem [shape: bf16[128,64], index: 1, kind: output, shape index: {}]  }
   0x1   :  { %v9_v0 = vld [vmem:[%s1385_s0] sm:$0xf]  ;;  %v10_v12 = vld [vmem:[%s1385_s0 + $0x4] sm:$0xf]  ;;  %v11_v33 = vld [vmem:[%s1385_s0 + $0x8] sm:$0xf] }
   0x2   :  { %v25_v1 = vld [vmem:[%s1385_s0 + $0x40] sm:$0xf]  ;;  %v156_v4 = vsel %vm153_vm0, %v9_v0, 4286644096  ;;  %v26_v13 = vld [vmem:[%s1385_s0 + $0x44] sm:$0xf] }
   0x3   :  { %v41_v2 = vld [vmem:[%s1385_s0 + $0x80] sm:$0xf]  ;;  %v159_v5 = vsel %vm153_vm0, %v25_v1, 4286644096  ;;  %v42_v14 = vld [vmem:[%s1385_s0 + $0x84] sm:$0xf] }
   0x4   :  { %v57_v3 = vld [vmem:[%s1385_s0 + $0xc0] sm:$0xf]  ;;  %v163_v6 = vsel %vm153_vm0, %v41_v2, 4286644096  ;;  %v161_v8 = vmax.bf16 %v159_v5, %v156_v4  ;;  %v58_v19 = vld [vmem:[%s1385_s0 + $0xc4] sm:$0xf] }
   0x5   :  { %v73_v7 = vld [vmem:[%s1385_s0 + $0x100] sm:$0xf]  ;;  %v167_v10 = vsel %vm153_vm0, %v57_v3, 4286644096  ;;  %v191_v20 = vsel %vm153_vm0, %v10_v12, 4286644096 }
   0x6   :  { %v89_v9 = vld [vmem:[%s1385_s0 + $0x140] sm:$0xf]  ;;  %v165_v11 = vmax.bf16 %v163_v6, %v161_v8  ;;  %v171_v15 = vsel %vm153_vm0, %v73_v7, 4286644096  ;;  %v194_v21 = vsel %vm153_vm0, %v26_v13, 4286644096 }
   0x7   :  { %v105_v16 = vld [vmem:[%s1385_s0 + $0x180] sm:$0xf]  ;;  %v175_v18 = vsel %vm153_vm0, %v89_v9, 4286644096  ;;  %v198_v22 = vsel %vm153_vm0, %v42_v14, 4286644096  ;;  %v196_v27 = vmax.bf16 %v194_v21, %v191_v20 }
   0x8   :  { %v169_v17 = vmax.bf16 %v167_v10, %v165_v11  ;;  %v121_v23 = vld [vmem:[%s1385_s0 + $0x1c0] sm:$0xf]  ;;  %v74_v26 = vld [vmem:[%s1385_s0 + $0x104] sm:$0xf]  ;;  %v179_v28 = vsel %vm153_vm0, %v105_v16, 4286644096 }
   0x9   :  { %v137_v24 = vld [vmem:[%s1385_s0 + $0x200] sm:$0xf]  ;;  %v90_v29 = vld [vmem:[%s1385_s0 + $0x144] sm:$0xf]  ;;  %v202_v30 = vsel %vm153_vm0, %v58_v19, 4286644096  ;;  %v200_v32 = vmax.bf16 %v198_v22, %v196_v27 }
   0xa   :  { %v173_v25 = vmax.bf16 %v171_v15, %v169_v17  ;;  %v27_v34 = vld [vmem:[%s1385_s0 + $0x48] sm:$0xf]  ;;  %v183_v36 = vsel %vm153_vm0, %v121_v23, 4286644096  ;;  %v187_v37 = vsel %vm153_vm0, %v137_v24, 4286644096 }
   0xb   :  { %v43_v35 = vld [vmem:[%s1385_s0 + $0x88] sm:$0xf]  ;;  %v206_v38 = vsel %vm153_vm0, %v74_v26, 4286644096  ;;  %v106_v40 = vld [vmem:[%s1385_s0 + $0x184] sm:$0xf]  ;;  %v204_v41 = vmax.bf16 %v202_v30, %v200_v32 }
   0xc   :  { %v177_v31 = vmax.bf16 %v175_v18, %v173_v25  ;;  %v210_v42 = vsel %vm153_vm0, %v90_v29, 4286644096  ;;  %v59_v43 = vld [vmem:[%s1385_s0 + $0xc8] sm:$0xf]  ;;  %v226_v44 = vsel %vm153_vm0, %v11_v33, 4286644096 }
   0xd   :  { %v229_v45 = vsel %vm153_vm0, %v27_v34, 4286644096  ;;  %v233_v46 = vsel %vm153_vm0, %v43_v35, 4286644096  ;;  %v122_v48 = vld [vmem:[%s1385_s0 + $0x1c4] sm:$0xf]  ;;  %v208_v50 = vmax.bf16 %v206_v38, %v204_v41 }
   0xe   :  { %v181_v39 = vmax.bf16 %v179_v28, %v177_v31  ;;  %v138_v49 = vld [vmem:[%s1385_s0 + $0x204] sm:$0xf]  ;;  %v75_v51 = vld [vmem:[%s1385_s0 + $0x108] sm:$0xf]  ;;  %v231_v52 = vmax.bf16 %v229_v45, %v226_v44  ;;  %v214_v53 = vsel %vm153_vm0, %v106_v40, 4286644096 }
   0xf   :  { %v91_v54 = vld [vmem:[%s1385_s0 + $0x148] sm:$0xf]  ;;  %v237_v55 = vsel %vm153_vm0, %v59_v43, 4286644096  ;;  %v212_v57 = vmax.bf16 %v210_v42, %v208_v50  ;;  %v12_v59 = vld [vmem:[%s1385_s0 + $0xc] sm:$0xf] }
  0x10   :  { %v185_v47 = vmax.bf16 %v183_v36, %v181_v39  ;;  %v235_v58 = vmax.bf16 %v233_v46, %v231_v52  ;;  %v28_v60 = vld [vmem:[%s1385_s0 + $0x4c] sm:$0xf]  ;;  %v218_v62 = vsel %vm153_vm0, %v122_v48, 4286644096  ;;  %v222_v63 = vsel %vm153_vm0, %v138_v49, 4286644096 }
  0x11   :  { %v44_v61 = vld [vmem:[%s1385_s0 + $0x8c] sm:$0xf]  ;;  %v241_v0 = vsel %vm153_vm0, %v75_v51, 4286644096  ;;  %v216_v1 = vmax.bf16 %v214_v53, %v212_v57  ;;  %v107_v2 = vld [vmem:[%s1385_s0 + $0x188] sm:$0xf] }
  0x12   :  { %v189_v56 = vmax.bf16 %v187_v37, %v185_v47  ;;  %v239_v3 = vmax.bf16 %v237_v55, %v235_v58  ;;  %v245_v4 = vsel %vm153_vm0, %v91_v54, 4286644096  ;;  %v60_v5 = vld [vmem:[%s1385_s0 + $0xcc] sm:$0xf]  ;;  %v261_v6 = vsel %vm153_vm0, %v12_v59, 4286644096 }
  0x13   :  { %v264_v7 = vsel %vm153_vm0, %v28_v60, 4286644096  ;;  %v268_v8 = vsel %vm153_vm0, %v44_v61, 4286644096  ;;  %v220_v9 = vmax.bf16 %v218_v62, %v216_v1  ;;  %v123_v10 = vld [vmem:[%s1385_s0 + $0x1c8] sm:$0xf] }
  0x14   :  { %715 = vst.msk [vmem:[%s1386_s1] sm:$0xf] %vm153_vm0, %v189_v56  ;;  %v139_v11 = vld [vmem:[%s1385_s0 + $0x208] sm:$0xf]  ;;  %v243_v12 = vmax.bf16 %v241_v0, %v239_v3  ;;  %v76_v13 = vld [vmem:[%s1385_s0 + $0x10c] sm:$0xf]  ;;  %v266_v14 = vmax.bf16 %v264_v7, %v261_v6 }
  0x15   :  { %v249_v15 = vsel %vm153_vm0, %v107_v2, 4286644096  ;;  %v92_v16 = vld [vmem:[%s1385_s0 + $0x14c] sm:$0xf]  ;;  %v272_v17 = vsel %vm153_vm0, %v60_v5, 4286644096  ;;  %v224_v18 = vmax.bf16 %v222_v63, %v220_v9 }
  0x16   :  { %v247_v19 = vmax.bf16 %v245_v4, %v243_v12  ;;  %v270_v20 = vmax.bf16 %v268_v8, %v266_v14  ;;  %v13_v21 = vld [vmem:[%s1385_s0 + $0x10] sm:$0xf]  ;;  %v253_v24 = vsel %vm153_vm0, %v123_v10, 4286644096  ;;  %v257_v25 = vsel %vm153_vm0, %v139_v11, 4286644096 }
  0x17   :  { %v29_v22 = vld [vmem:[%s1385_s0 + $0x50] sm:$0xf]  ;;  %v276_v26 = vsel %vm153_vm0, %v76_v13, 4286644096  ;;  %716 = vst.msk [vmem:[%s1386_s1 + $0x4] sm:$0xf] %vm153_vm0, %v224_v18 }
  0x18   :  { %v45_v23 = vld [vmem:[%s1385_s0 + $0x90] sm:$0xf]  ;;  %v251_v27 = vmax.bf16 %v249_v15, %v247_v19  ;;  %v108_v28 = vld [vmem:[%s1385_s0 + $0x18c] sm:$0xf]  ;;  %v274_v29 = vmax.bf16 %v272_v17, %v270_v20  ;;  %v280_v30 = vsel %vm153_vm0, %v92_v16, 4286644096 }
  0x19   :  { %v61_v31 = vld [vmem:[%s1385_s0 + $0xd0] sm:$0xf]  ;;  %v296_v32 = vsel %vm153_vm0, %v13_v21, 4286644096  ;;  %v299_v33 = vsel %vm153_vm0, %v29_v22, 4286644096 }
  0x1a   :  { %v303_v34 = vsel %vm153_vm0, %v45_v23, 4286644096  ;;  %v255_v35 = vmax.bf16 %v253_v24, %v251_v27  ;;  %v124_v36 = vld [vmem:[%s1385_s0 + $0x1cc] sm:$0xf]  ;;  %v278_v38 = vmax.bf16 %v276_v26, %v274_v29  ;;  %v77_v39 = vld [vmem:[%s1385_s0 + $0x110] sm:$0xf]  ;;  %v301_v40 = vmax.bf16 %v299_v33, %v296_v32 }
  0x1b   :  { %v140_v37 = vld [vmem:[%s1385_s0 + $0x20c] sm:$0xf]  ;;  %v284_v41 = vsel %vm153_vm0, %v108_v28, 4286644096  ;;  %v93_v42 = vld [vmem:[%s1385_s0 + $0x150] sm:$0xf] }
  0x1c   :  { %v307_v43 = vsel %vm153_vm0, %v61_v31, 4286644096  ;;  %v259_v44 = vmax.bf16 %v257_v25, %v255_v35  ;;  %v282_v45 = vmax.bf16 %v280_v30, %v278_v38  ;;  %v305_v46 = vmax.bf16 %v303_v34, %v301_v40  ;;  %v14_v47 = vld [vmem:[%s1385_s0 + $0x14] sm:$0xf]  ;;  %v109_v54 = vld [vmem:[%s1385_s0 + $0x190] sm:$0xf] }
  0x1d   :  { %v30_v48 = vld [vmem:[%s1385_s0 + $0x54] sm:$0xf]  ;;  %v288_v50 = vsel %vm153_vm0, %v124_v36, 4286644096  ;;  %v292_v51 = vsel %vm153_vm0, %v140_v37, 4286644096 }
  0x1e   :  { %v46_v49 = vld [vmem:[%s1385_s0 + $0x94] sm:$0xf]  ;;  %v311_v52 = vsel %vm153_vm0, %v77_v39, 4286644096  ;;  %717 = vst.msk [vmem:[%s1386_s1 + $0x8] sm:$0xf] %vm153_vm0, %v259_v44  ;;  %v286_v53 = vmax.bf16 %v284_v41, %v282_v45  ;;  %v309_v55 = vmax.bf16 %v307_v43, %v305_v46 }
  0x1f   :  { %v315_v56 = vsel %vm153_vm0, %v93_v42, 4286644096  ;;  %v62_v57 = vld [vmem:[%s1385_s0 + $0xd4] sm:$0xf]  ;;  %v331_v58 = vsel %vm153_vm0, %v14_v47, 4286644096 }
  0x20   :  { %v334_v59 = vsel %vm153_vm0, %v30_v48, 4286644096  ;;  %v338_v60 = vsel %vm153_vm0, %v46_v49, 4286644096  ;;  %v290_v61 = vmax.bf16 %v288_v50, %v286_v53  ;;  %v125_v62 = vld [vmem:[%s1385_s0 + $0x1d0] sm:$0xf]  ;;  %v313_v0 = vmax.bf16 %v311_v52, %v309_v55 }
  0x21   :  { %v141_v63 = vld [vmem:[%s1385_s0 + $0x210] sm:$0xf]  ;;  %v78_v1 = vld [vmem:[%s1385_s0 + $0x114] sm:$0xf]  ;;  %v336_v2 = vmax.bf16 %v334_v59, %v331_v58  ;;  %v319_v3 = vsel %vm153_vm0, %v109_v54, 4286644096 }
  0x22   :  { %v94_v4 = vld [vmem:[%s1385_s0 + $0x154] sm:$0xf]  ;;  %v342_v5 = vsel %vm153_vm0, %v62_v57, 4286644096  ;;  %v294_v6 = vmax.bf16 %v292_v51, %v290_v61  ;;  %v317_v7 = vmax.bf16 %v315_v56, %v313_v0  ;;  %v15_v9 = vld [vmem:[%s1385_s0 + $0x18] sm:$0xf] }
  0x23   :  { %v340_v8 = vmax.bf16 %v338_v60, %v336_v2  ;;  %v31_v10 = vld [vmem:[%s1385_s0 + $0x58] sm:$0xf]  ;;  %v323_v12 = vsel %vm153_vm0, %v125_v62, 4286644096  ;;  %v327_v13 = vsel %vm153_vm0, %v141_v63, 4286644096 }
  0x24   :  { %v47_v11 = vld [vmem:[%s1385_s0 + $0x98] sm:$0xf]  ;;  %v346_v14 = vsel %vm153_vm0, %v78_v1, 4286644096  ;;  %718 = vst.msk [vmem:[%s1386_s1 + $0xc] sm:$0xf] %vm153_vm0, %v294_v6  ;;  %v321_v15 = vmax.bf16 %v319_v3, %v317_v7 }
  0x25   :  { %v110_v16 = vld [vmem:[%s1385_s0 + $0x194] sm:$0xf]  ;;  %v344_v17 = vmax.bf16 %v342_v5, %v340_v8  ;;  %v350_v18 = vsel %vm153_vm0, %v94_v4, 4286644096  ;;  %v63_v19 = vld [vmem:[%s1385_s0 + $0xd8] sm:$0xf] }
  0x26   :  { %v366_v20 = vsel %vm153_vm0, %v15_v9, 4286644096  ;;  %v369_v21 = vsel %vm153_vm0, %v31_v10, 4286644096  ;;  %v373_v22 = vsel %vm153_vm0, %v47_v11, 4286644096  ;;  %v325_v23 = vmax.bf16 %v323_v12, %v321_v15 }
  0x27   :  { %v126_v24 = vld [vmem:[%s1385_s0 + $0x1d4] sm:$0xf]  ;;  %v348_v26 = vmax.bf16 %v346_v14, %v344_v17  ;;  %v79_v27 = vld [vmem:[%s1385_s0 + $0x118] sm:$0xf]  ;;  %v371_v28 = vmax.bf16 %v369_v21, %v366_v20  ;;  %v354_v29 = vsel %vm153_vm0, %v110_v16, 4286644096 }
  0x28   :  { %v142_v25 = vld [vmem:[%s1385_s0 + $0x214] sm:$0xf]  ;;  %v95_v30 = vld [vmem:[%s1385_s0 + $0x158] sm:$0xf]  ;;  %v377_v31 = vsel %vm153_vm0, %v63_v19, 4286644096  ;;  %v329_v32 = vmax.bf16 %v327_v13, %v325_v23 }
  0x29   :  { %v352_v33 = vmax.bf16 %v350_v18, %v348_v26  ;;  %v375_v34 = vmax.bf16 %v373_v22, %v371_v28  ;;  %v16_v35 = vld [vmem:[%s1385_s0 + $0x1c] sm:$0xf]  ;;  %v358_v38 = vsel %vm153_vm0, %v126_v24, 4286644096  ;;  %v362_v39 = vsel %vm153_vm0, %v142_v25, 4286644096 }
  0x2a   :  { %v32_v36 = vld [vmem:[%s1385_s0 + $0x5c] sm:$0xf]  ;;  %v381_v40 = vsel %vm153_vm0, %v79_v27, 4286644096  ;;  %719 = vst.msk [vmem:[%s1386_s1 + $0x10] sm:$0xf] %vm153_vm0, %v329_v32 }
  0x2b   :  { %v48_v37 = vld [vmem:[%s1385_s0 + $0x9c] sm:$0xf]  ;;  %v356_v41 = vmax.bf16 %v354_v29, %v352_v33  ;;  %v111_v42 = vld [vmem:[%s1385_s0 + $0x198] sm:$0xf]  ;;  %v379_v43 = vmax.bf16 %v377_v31, %v375_v34  ;;  %v385_v44 = vsel %vm153_vm0, %v95_v30, 4286644096 }
  0x2c   :  { %v64_v45 = vld [vmem:[%s1385_s0 + $0xdc] sm:$0xf]  ;;  %v401_v46 = vsel %vm153_vm0, %v16_v35, 4286644096  ;;  %v404_v47 = vsel %vm153_vm0, %v32_v36, 4286644096 }
  0x2d   :  { %v408_v48 = vsel %vm153_vm0, %v48_v37, 4286644096  ;;  %v360_v49 = vmax.bf16 %v358_v38, %v356_v41  ;;  %v127_v50 = vld [vmem:[%s1385_s0 + $0x1d8] sm:$0xf]  ;;  %v383_v52 = vmax.bf16 %v381_v40, %v379_v43  ;;  %v80_v53 = vld [vmem:[%s1385_s0 + $0x11c] sm:$0xf]  ;;  %v406_v54 = vmax.bf16 %v404_v47, %v401_v46 }
  0x2e   :  { %v143_v51 = vld [vmem:[%s1385_s0 + $0x218] sm:$0xf]  ;;  %v389_v55 = vsel %vm153_vm0, %v111_v42, 4286644096  ;;  %v96_v56 = vld [vmem:[%s1385_s0 + $0x15c] sm:$0xf] }
  0x2f   :  { %v412_v57 = vsel %vm153_vm0, %v64_v45, 4286644096  ;;  %v364_v58 = vmax.bf16 %v362_v39, %v360_v49  ;;  %v387_v59 = vmax.bf16 %v385_v44, %v383_v52  ;;  %v410_v60 = vmax.bf16 %v408_v48, %v406_v54  ;;  %v17_v61 = vld [vmem:[%s1385_s0 + $0x20] sm:$0xf]  ;;  %v112_v4 = vld [vmem:[%s1385_s0 + $0x19c] sm:$0xf] }
  0x30   :  { %v33_v62 = vld [vmem:[%s1385_s0 + $0x60] sm:$0xf]  ;;  %v393_v0 = vsel %vm153_vm0, %v127_v50, 4286644096  ;;  %v397_v1 = vsel %vm153_vm0, %v143_v51, 4286644096 }
  0x31   :  { %v49_v63 = vld [vmem:[%s1385_s0 + $0xa0] sm:$0xf]  ;;  %v416_v2 = vsel %vm153_vm0, %v80_v53, 4286644096  ;;  %720 = vst.msk [vmem:[%s1386_s1 + $0x14] sm:$0xf] %vm153_vm0, %v364_v58  ;;  %v391_v3 = vmax.bf16 %v389_v55, %v387_v59  ;;  %v414_v5 = vmax.bf16 %v412_v57, %v410_v60 }
  0x32   :  { %v420_v6 = vsel %vm153_vm0, %v96_v56, 4286644096  ;;  %v65_v7 = vld [vmem:[%s1385_s0 + $0xe0] sm:$0xf]  ;;  %v436_v8 = vsel %vm153_vm0, %v17_v61, 4286644096 }
  0x33   :  { %v439_v9 = vsel %vm153_vm0, %v33_v62, 4286644096  ;;  %v443_v10 = vsel %vm153_vm0, %v49_v63, 4286644096  ;;  %v395_v11 = vmax.bf16 %v393_v0, %v391_v3  ;;  %v128_v12 = vld [vmem:[%s1385_s0 + $0x1dc] sm:$0xf]  ;;  %v418_v14 = vmax.bf16 %v416_v2, %v414_v5 }
  0x34   :  { %v144_v13 = vld [vmem:[%s1385_s0 + $0x21c] sm:$0xf]  ;;  %v81_v15 = vld [vmem:[%s1385_s0 + $0x120] sm:$0xf]  ;;  %v441_v16 = vmax.bf16 %v439_v9, %v436_v8  ;;  %v424_v17 = vsel %vm153_vm0, %v112_v4, 4286644096 }
  0x35   :  { %v97_v18 = vld [vmem:[%s1385_s0 + $0x160] sm:$0xf]  ;;  %v447_v19 = vsel %vm153_vm0, %v65_v7, 4286644096  ;;  %v399_v20 = vmax.bf16 %v397_v1, %v395_v11  ;;  %v422_v21 = vmax.bf16 %v420_v6, %v418_v14  ;;  %v18_v23 = vld [vmem:[%s1385_s0 + $0x24] sm:$0xf] }
  0x36   :  { %v445_v22 = vmax.bf16 %v443_v10, %v441_v16  ;;  %v34_v24 = vld [vmem:[%s1385_s0 + $0x64] sm:$0xf]  ;;  %v428_v26 = vsel %vm153_vm0, %v128_v12, 4286644096  ;;  %v432_v27 = vsel %vm153_vm0, %v144_v13, 4286644096 }
  0x37   :  { %v50_v25 = vld [vmem:[%s1385_s0 + $0xa4] sm:$0xf]  ;;  %v451_v28 = vsel %vm153_vm0, %v81_v15, 4286644096  ;;  %721 = vst.msk [vmem:[%s1386_s1 + $0x18] sm:$0xf] %vm153_vm0, %v399_v20  ;;  %v426_v29 = vmax.bf16 %v424_v17, %v422_v21 }
  0x38   :  { %v113_v30 = vld [vmem:[%s1385_s0 + $0x1a0] sm:$0xf]  ;;  %v449_v31 = vmax.bf16 %v447_v19, %v445_v22  ;;  %v455_v32 = vsel %vm153_vm0, %v97_v18, 4286644096  ;;  %v66_v33 = vld [vmem:[%s1385_s0 + $0xe4] sm:$0xf] }
  0x39   :  { %v471_v34 = vsel %vm153_vm0, %v18_v23, 4286644096  ;;  %v474_v35 = vsel %vm153_vm0, %v34_v24, 4286644096  ;;  %v478_v36 = vsel %vm153_vm0, %v50_v25, 4286644096  ;;  %v430_v37 = vmax.bf16 %v428_v26, %v426_v29 }
  0x3a   :  { %v129_v38 = vld [vmem:[%s1385_s0 + $0x1e0] sm:$0xf]  ;;  %v453_v40 = vmax.bf16 %v451_v28, %v449_v31  ;;  %v82_v41 = vld [vmem:[%s1385_s0 + $0x124] sm:$0xf]  ;;  %v476_v42 = vmax.bf16 %v474_v35, %v471_v34  ;;  %v459_v43 = vsel %vm153_vm0, %v113_v30, 4286644096 }
  0x3b   :  { %v145_v39 = vld [vmem:[%s1385_s0 + $0x220] sm:$0xf]  ;;  %v98_v44 = vld [vmem:[%s1385_s0 + $0x164] sm:$0xf]  ;;  %v482_v45 = vsel %vm153_vm0, %v66_v33, 4286644096  ;;  %v434_v46 = vmax.bf16 %v432_v27, %v430_v37 }
  0x3c   :  { %v457_v47 = vmax.bf16 %v455_v32, %v453_v40  ;;  %v480_v48 = vmax.bf16 %v478_v36, %v476_v42  ;;  %v19_v49 = vld [vmem:[%s1385_s0 + $0x28] sm:$0xf]  ;;  %v463_v52 = vsel %vm153_vm0, %v129_v38, 4286644096  ;;  %v467_v53 = vsel %vm153_vm0, %v145_v39, 4286644096 }
  0x3d   :  { %v35_v50 = vld [vmem:[%s1385_s0 + $0x68] sm:$0xf]  ;;  %v486_v54 = vsel %vm153_vm0, %v82_v41, 4286644096  ;;  %722 = vst.msk [vmem:[%s1386_s1 + $0x1c] sm:$0xf] %vm153_vm0, %v434_v46 }
  0x3e   :  { %v51_v51 = vld [vmem:[%s1385_s0 + $0xa8] sm:$0xf]  ;;  %v461_v55 = vmax.bf16 %v459_v43, %v457_v47  ;;  %v114_v56 = vld [vmem:[%s1385_s0 + $0x1a4] sm:$0xf]  ;;  %v484_v57 = vmax.bf16 %v482_v45, %v480_v48  ;;  %v490_v58 = vsel %vm153_vm0, %v98_v44, 4286644096 }
  0x3f   :  { %v67_v59 = vld [vmem:[%s1385_s0 + $0xe8] sm:$0xf]  ;;  %v506_v60 = vsel %vm153_vm0, %v19_v49, 4286644096  ;;  %v509_v61 = vsel %vm153_vm0, %v35_v50, 4286644096 }
  0x40   :  { %v513_v62 = vsel %vm153_vm0, %v51_v51, 4286644096  ;;  %v465_v63 = vmax.bf16 %v463_v52, %v461_v55  ;;  %v130_v0 = vld [vmem:[%s1385_s0 + $0x1e4] sm:$0xf]  ;;  %v488_v2 = vmax.bf16 %v486_v54, %v484_v57  ;;  %v83_v3 = vld [vmem:[%s1385_s0 + $0x128] sm:$0xf]  ;;  %v511_v4 = vmax.bf16 %v509_v61, %v506_v60 }
  0x41   :  { %v146_v1 = vld [vmem:[%s1385_s0 + $0x224] sm:$0xf]  ;;  %v494_v5 = vsel %vm153_vm0, %v114_v56, 4286644096  ;;  %v99_v6 = vld [vmem:[%s1385_s0 + $0x168] sm:$0xf] }
  0x42   :  { %v517_v7 = vsel %vm153_vm0, %v67_v59, 4286644096  ;;  %v469_v8 = vmax.bf16 %v467_v53, %v465_v63  ;;  %v492_v9 = vmax.bf16 %v490_v58, %v488_v2  ;;  %v515_v10 = vmax.bf16 %v513_v62, %v511_v4  ;;  %v20_v11 = vld [vmem:[%s1385_s0 + $0x2c] sm:$0xf]  ;;  %v115_v18 = vld [vmem:[%s1385_s0 + $0x1a8] sm:$0xf] }
  0x43   :  { %v36_v12 = vld [vmem:[%s1385_s0 + $0x6c] sm:$0xf]  ;;  %v498_v14 = vsel %vm153_vm0, %v130_v0, 4286644096  ;;  %v502_v15 = vsel %vm153_vm0, %v146_v1, 4286644096 }
  0x44   :  { %v52_v13 = vld [vmem:[%s1385_s0 + $0xac] sm:$0xf]  ;;  %v521_v16 = vsel %vm153_vm0, %v83_v3, 4286644096  ;;  %723 = vst.msk [vmem:[%s1386_s1 + $0x20] sm:$0xf] %vm153_vm0, %v469_v8  ;;  %v496_v17 = vmax.bf16 %v494_v5, %v492_v9  ;;  %v519_v19 = vmax.bf16 %v517_v7, %v515_v10 }
  0x45   :  { %v525_v20 = vsel %vm153_vm0, %v99_v6, 4286644096  ;;  %v68_v21 = vld [vmem:[%s1385_s0 + $0xec] sm:$0xf]  ;;  %v541_v22 = vsel %vm153_vm0, %v20_v11, 4286644096 }
  0x46   :  { %v544_v23 = vsel %vm153_vm0, %v36_v12, 4286644096  ;;  %v548_v24 = vsel %vm153_vm0, %v52_v13, 4286644096  ;;  %v500_v25 = vmax.bf16 %v498_v14, %v496_v17  ;;  %v131_v26 = vld [vmem:[%s1385_s0 + $0x1e8] sm:$0xf]  ;;  %v523_v28 = vmax.bf16 %v521_v16, %v519_v19 }
  0x47   :  { %v147_v27 = vld [vmem:[%s1385_s0 + $0x228] sm:$0xf]  ;;  %v84_v29 = vld [vmem:[%s1385_s0 + $0x12c] sm:$0xf]  ;;  %v546_v30 = vmax.bf16 %v544_v23, %v541_v22  ;;  %v529_v31 = vsel %vm153_vm0, %v115_v18, 4286644096 }
  0x48   :  { %v100_v32 = vld [vmem:[%s1385_s0 + $0x16c] sm:$0xf]  ;;  %v552_v33 = vsel %vm153_vm0, %v68_v21, 4286644096  ;;  %v504_v34 = vmax.bf16 %v502_v15, %v500_v25  ;;  %v527_v35 = vmax.bf16 %v525_v20, %v523_v28  ;;  %v21_v37 = vld [vmem:[%s1385_s0 + $0x30] sm:$0xf] }
  0x49   :  { %v550_v36 = vmax.bf16 %v548_v24, %v546_v30  ;;  %v37_v38 = vld [vmem:[%s1385_s0 + $0x70] sm:$0xf]  ;;  %v533_v40 = vsel %vm153_vm0, %v131_v26, 4286644096  ;;  %v537_v41 = vsel %vm153_vm0, %v147_v27, 4286644096 }
  0x4a   :  { %v53_v39 = vld [vmem:[%s1385_s0 + $0xb0] sm:$0xf]  ;;  %v556_v42 = vsel %vm153_vm0, %v84_v29, 4286644096  ;;  %724 = vst.msk [vmem:[%s1386_s1 + $0x24] sm:$0xf] %vm153_vm0, %v504_v34  ;;  %v531_v43 = vmax.bf16 %v529_v31, %v527_v35 }
  0x4b   :  { %v116_v44 = vld [vmem:[%s1385_s0 + $0x1ac] sm:$0xf]  ;;  %v554_v45 = vmax.bf16 %v552_v33, %v550_v36  ;;  %v560_v46 = vsel %vm153_vm0, %v100_v32, 4286644096  ;;  %v69_v47 = vld [vmem:[%s1385_s0 + $0xf0] sm:$0xf] }
  0x4c   :  { %v576_v48 = vsel %vm153_vm0, %v21_v37, 4286644096  ;;  %v579_v49 = vsel %vm153_vm0, %v37_v38, 4286644096  ;;  %v583_v50 = vsel %vm153_vm0, %v53_v39, 4286644096  ;;  %v535_v51 = vmax.bf16 %v533_v40, %v531_v43 }
  0x4d   :  { %v132_v52 = vld [vmem:[%s1385_s0 + $0x1ec] sm:$0xf]  ;;  %v558_v54 = vmax.bf16 %v556_v42, %v554_v45  ;;  %v85_v55 = vld [vmem:[%s1385_s0 + $0x130] sm:$0xf]  ;;  %v581_v56 = vmax.bf16 %v579_v49, %v576_v48  ;;  %v564_v57 = vsel %vm153_vm0, %v116_v44, 4286644096 }
  0x4e   :  { %v148_v53 = vld [vmem:[%s1385_s0 + $0x22c] sm:$0xf]  ;;  %v101_v58 = vld [vmem:[%s1385_s0 + $0x170] sm:$0xf]  ;;  %v587_v59 = vsel %vm153_vm0, %v69_v47, 4286644096  ;;  %v539_v60 = vmax.bf16 %v537_v41, %v535_v51 }
  0x4f   :  { %v562_v61 = vmax.bf16 %v560_v46, %v558_v54  ;;  %v585_v62 = vmax.bf16 %v583_v50, %v581_v56  ;;  %v22_v63 = vld [vmem:[%s1385_s0 + $0x34] sm:$0xf]  ;;  %v568_v2 = vsel %vm153_vm0, %v132_v52, 4286644096  ;;  %v572_v3 = vsel %vm153_vm0, %v148_v53, 4286644096 }
  0x50   :  { %v38_v0 = vld [vmem:[%s1385_s0 + $0x74] sm:$0xf]  ;;  %v591_v4 = vsel %vm153_vm0, %v85_v55, 4286644096  ;;  %725 = vst.msk [vmem:[%s1386_s1 + $0x28] sm:$0xf] %vm153_vm0, %v539_v60 }
  0x51   :  { %v54_v1 = vld [vmem:[%s1385_s0 + $0xb4] sm:$0xf]  ;;  %v566_v5 = vmax.bf16 %v564_v57, %v562_v61  ;;  %v117_v6 = vld [vmem:[%s1385_s0 + $0x1b0] sm:$0xf]  ;;  %v589_v7 = vmax.bf16 %v587_v59, %v585_v62  ;;  %v595_v8 = vsel %vm153_vm0, %v101_v58, 4286644096 }
  0x52   :  { %v70_v9 = vld [vmem:[%s1385_s0 + $0xf4] sm:$0xf]  ;;  %v611_v10 = vsel %vm153_vm0, %v22_v63, 4286644096  ;;  %v614_v11 = vsel %vm153_vm0, %v38_v0, 4286644096 }
  0x53   :  { %v618_v12 = vsel %vm153_vm0, %v54_v1, 4286644096  ;;  %v570_v13 = vmax.bf16 %v568_v2, %v566_v5  ;;  %v133_v14 = vld [vmem:[%s1385_s0 + $0x1f0] sm:$0xf]  ;;  %v593_v16 = vmax.bf16 %v591_v4, %v589_v7  ;;  %v86_v17 = vld [vmem:[%s1385_s0 + $0x134] sm:$0xf]  ;;  %v616_v18 = vmax.bf16 %v614_v11, %v611_v10 }
  0x54   :  { %v149_v15 = vld [vmem:[%s1385_s0 + $0x230] sm:$0xf]  ;;  %v599_v19 = vsel %vm153_vm0, %v117_v6, 4286644096  ;;  %v102_v20 = vld [vmem:[%s1385_s0 + $0x174] sm:$0xf] }
  0x55   :  { %v622_v21 = vsel %vm153_vm0, %v70_v9, 4286644096  ;;  %v574_v22 = vmax.bf16 %v572_v3, %v570_v13  ;;  %v597_v23 = vmax.bf16 %v595_v8, %v593_v16  ;;  %v620_v24 = vmax.bf16 %v618_v12, %v616_v18  ;;  %v23_v25 = vld [vmem:[%s1385_s0 + $0x38] sm:$0xf]  ;;  %v118_v32 = vld [vmem:[%s1385_s0 + $0x1b4] sm:$0xf] }
  0x56   :  { %v39_v26 = vld [vmem:[%s1385_s0 + $0x78] sm:$0xf]  ;;  %v603_v28 = vsel %vm153_vm0, %v133_v14, 4286644096  ;;  %v607_v29 = vsel %vm153_vm0, %v149_v15, 4286644096 }
  0x57   :  { %v55_v27 = vld [vmem:[%s1385_s0 + $0xb8] sm:$0xf]  ;;  %v626_v30 = vsel %vm153_vm0, %v86_v17, 4286644096  ;;  %726 = vst.msk [vmem:[%s1386_s1 + $0x2c] sm:$0xf] %vm153_vm0, %v574_v22  ;;  %v601_v31 = vmax.bf16 %v599_v19, %v597_v23  ;;  %v624_v33 = vmax.bf16 %v622_v21, %v620_v24 }
  0x58   :  { %v630_v34 = vsel %vm153_vm0, %v102_v20, 4286644096  ;;  %v71_v35 = vld [vmem:[%s1385_s0 + $0xf8] sm:$0xf]  ;;  %v646_v36 = vsel %vm153_vm0, %v23_v25, 4286644096 }
  0x59   :  { %v649_v37 = vsel %vm153_vm0, %v39_v26, 4286644096  ;;  %v653_v38 = vsel %vm153_vm0, %v55_v27, 4286644096  ;;  %v605_v39 = vmax.bf16 %v603_v28, %v601_v31  ;;  %v134_v40 = vld [vmem:[%s1385_s0 + $0x1f4] sm:$0xf]  ;;  %v628_v42 = vmax.bf16 %v626_v30, %v624_v33 }
  0x5a   :  { %v150_v41 = vld [vmem:[%s1385_s0 + $0x234] sm:$0xf]  ;;  %v87_v43 = vld [vmem:[%s1385_s0 + $0x138] sm:$0xf]  ;;  %v651_v44 = vmax.bf16 %v649_v37, %v646_v36  ;;  %v634_v45 = vsel %vm153_vm0, %v118_v32, 4286644096 }
  0x5b   :  { %v103_v46 = vld [vmem:[%s1385_s0 + $0x178] sm:$0xf]  ;;  %v657_v47 = vsel %vm153_vm0, %v71_v35, 4286644096  ;;  %v609_v48 = vmax.bf16 %v607_v29, %v605_v39  ;;  %v632_v49 = vmax.bf16 %v630_v34, %v628_v42  ;;  %v24_v51 = vld [vmem:[%s1385_s0 + $0x3c] sm:$0xf] }
  0x5c   :  { %v655_v50 = vmax.bf16 %v653_v38, %v651_v44  ;;  %v40_v52 = vld [vmem:[%s1385_s0 + $0x7c] sm:$0xf]  ;;  %v638_v54 = vsel %vm153_vm0, %v134_v40, 4286644096  ;;  %v642_v55 = vsel %vm153_vm0, %v150_v41, 4286644096 }
  0x5d   :  { %v56_v53 = vld [vmem:[%s1385_s0 + $0xbc] sm:$0xf]  ;;  %v661_v56 = vsel %vm153_vm0, %v87_v43, 4286644096  ;;  %727 = vst.msk [vmem:[%s1386_s1 + $0x30] sm:$0xf] %vm153_vm0, %v609_v48  ;;  %v636_v57 = vmax.bf16 %v634_v45, %v632_v49 }
  0x5e   :  { %v119_v58 = vld [vmem:[%s1385_s0 + $0x1b8] sm:$0xf]  ;;  %v659_v59 = vmax.bf16 %v657_v47, %v655_v50  ;;  %v665_v60 = vsel %vm153_vm0, %v103_v46, 4286644096  ;;  %v72_v61 = vld [vmem:[%s1385_s0 + $0xfc] sm:$0xf] }
  0x5f   :  { %v681_v62 = vsel %vm153_vm0, %v24_v51, 4286644096  ;;  %v684_v63 = vsel %vm153_vm0, %v40_v52, 4286644096  ;;  %v688_v0 = vsel %vm153_vm0, %v56_v53, 4286644096  ;;  %v640_v1 = vmax.bf16 %v638_v54, %v636_v57 }
  0x60   :  { %v135_v2 = vld [vmem:[%s1385_s0 + $0x1f8] sm:$0xf]  ;;  %v663_v3 = vmax.bf16 %v661_v56, %v659_v59  ;;  %v88_v4 = vld [vmem:[%s1385_s0 + $0x13c] sm:$0xf]  ;;  %v686_v5 = vmax.bf16 %v684_v63, %v681_v62  ;;  %v669_v6 = vsel %vm153_vm0, %v119_v58, 4286644096 }
  0x61   :  { %v692_v7 = vsel %vm153_vm0, %v72_v61, 4286644096  ;;  %v644_v8 = vmax.bf16 %v642_v55, %v640_v1  ;;  %v151_v9 = vld [vmem:[%s1385_s0 + $0x238] sm:$0xf]  ;;  %v104_v11 = vld [vmem:[%s1385_s0 + $0x17c] sm:$0xf] }
  0x62   :  { %v667_v10 = vmax.bf16 %v665_v60, %v663_v3  ;;  %v690_v12 = vmax.bf16 %v688_v0, %v686_v5  ;;  %v673_v13 = vsel %vm153_vm0, %v135_v2, 4286644096  ;;  %v696_v14 = vsel %vm153_vm0, %v88_v4, 4286644096  ;;  %v120_v16 = vld [vmem:[%s1385_s0 + $0x1bc] sm:$0xf] }
  0x63   :  { %728 = vst.msk [vmem:[%s1386_s1 + $0x34] sm:$0xf] %vm153_vm0, %v644_v8  ;;  %v677_v18 = vsel %vm153_vm0, %v151_v9, 4286644096  ;;  %v700_v19 = vsel %vm153_vm0, %v104_v11, 4286644096 }
  0x64   :  { %v671_v15 = vmax.bf16 %v669_v6, %v667_v10  ;;  %v694_v17 = vmax.bf16 %v692_v7, %v690_v12  ;;  %v136_v21 = vld [vmem:[%s1385_s0 + $0x1fc] sm:$0xf]  ;;  %v704_v23 = vsel %vm153_vm0, %v120_v16, 4286644096 }
  0x65   :  { %v152_v25 = vld [vmem:[%s1385_s0 + $0x23c] sm:$0xf]  ;;  %v708_v27 = vsel %vm153_vm0, %v136_v21, 4286644096 }
  0x66   :  { %v675_v20 = vmax.bf16 %v673_v13, %v671_v15  ;;  %v698_v22 = vmax.bf16 %v696_v14, %v694_v17  ;;  %v712_v29 = vsel %vm153_vm0, %v152_v25, 4286644096 }
  0x68   :  { %v679_v24 = vmax.bf16 %v677_v18, %v675_v20  ;;  %v702_v26 = vmax.bf16 %v700_v19, %v698_v22 }
  0x6a   :  { %729 = vst.msk [vmem:[%s1386_s1 + $0x38] sm:$0xf] %vm153_vm0, %v679_v24  ;;  %v706_v28 = vmax.bf16 %v704_v23, %v702_v26 }
  0x6c   :  { %v710_v30 = vmax.bf16 %v708_v27, %v706_v28 }
  0x6e   :  { %v714_v31 = vmax.bf16 %v712_v29, %v710_v30 }
  0x70   :  { %730 = vst.msk [vmem:[%s1386_s1 + $0x3c] sm:$0xf] %vm153_vm0, %v714_v31 }

// kernel: feature_extractor_forward.14
= control target key start
LH: loop header
LB: loop body
LE: loop exit
PB: predicated region body
PF: predicated region fallthrough
CT: control target
= control target key end

     0   :  { %vm554_vm0 = vcmask 523264   ;;  %vm996_vm1 = vcmask 519168   ;;  %s1781_s1 = inlined_call_operand.vmem [shape: bf16[576,64], index: 1, kind: input, shape index: {}]   ;;  %s1782_s0 = inlined_call_operand.vmem [shape: bf16[128,576], index: 0, kind: input, shape index: {}]   ;;  %s1783_s2 = inlined_call_operand.vmem [shape: f32[1,64], index: 2, kind: input, shape index: {}]   ;;  %s1784_s3 = inlined_call_operand.vmem [shape: f32[1,64], index: 3, kind: input, shape index: {}]   ;;  %s1785_s4 = inlined_call_operand.vmem [shape: bf16[128,64], index: 4, kind: output, shape index: {}]  }
   0x1   :  { %v1307_v0 = vld [vmem:[%s1781_s1 + $0x78] sm:$0xff]   ;;  %v1311_v4 = vld [vmem:[%s1781_s1 + $0x70] sm:$0xff]   ;;  %v1315_v8 = vld [vmem:[%s1781_s1 + $0x68] sm:$0xff]  }
   0x2   :  { %v1308_v1 = vld [vmem:[%s1781_s1 + $0xf8] sm:$0xff]   ;;  %1135 = vmatprep.subr.bf16.mxu0 %v1307_v0  ;;  %v1312_v5 = vld [vmem:[%s1781_s1 + $0xf0] sm:$0xff]   ;;  %v1316_v9 = vld [vmem:[%s1781_s1 + $0xe8] sm:$0xff]  }
   0x3   :  { %v1309_v2 = vld [vmem:[%s1781_s1 + $0x38] sm:$0xff]   ;;  %1199 = vmatprep.subr.bf16.mxu1 %v1308_v1  ;;  %v1313_v6 = vld [vmem:[%s1781_s1 + $0x30] sm:$0xff]   ;;  %v1317_v10 = vld [vmem:[%s1781_s1 + $0x28] sm:$0xff]  }
   0x4   :  { %v1310_v3 = vld [vmem:[%s1781_s1 + $0xb8] sm:$0xff]   ;;  %1136 = vmatpush3.bf16.msra.mxu0 %v1309_v2  ;;  %v1314_v7 = vld [vmem:[%s1781_s1 + $0xb0] sm:$0xff]   ;;  %v1318_v11 = vld [vmem:[%s1781_s1 + $0xa8] sm:$0xff]  }
   0x5   :  { %1200 = vmatpush3.bf16.msra.mxu1 %v1310_v3  ;;  %1137 = vmatprep.subr.bf16.mxu0 %v1311_v4  ;;  %v1319_v12 = vld [vmem:[%s1781_s1 + $0x60] sm:$0xff]   ;;  %v1323_v16 = vld [vmem:[%s1781_s1 + $0x58] sm:$0xff]   ;;  %v1327_v20 = vld [vmem:[%s1781_s1 + $0x50] sm:$0xff]  }
   0x6   :  { %1201 = vmatprep.subr.bf16.mxu1 %v1312_v5  ;;  %v1320_v13 = vld [vmem:[%s1781_s1 + $0xe0] sm:$0xff]   ;;  %v1324_v17 = vld [vmem:[%s1781_s1 + $0xd8] sm:$0xff]   ;;  %v1328_v21 = vld [vmem:[%s1781_s1 + $0xd0] sm:$0xff]  }
   0x7   :  { %v1321_v14 = vld [vmem:[%s1781_s1 + $0x20] sm:$0xff]   ;;  %v1325_v18 = vld [vmem:[%s1781_s1 + $0x18] sm:$0xff]   ;;  %v1329_v22 = vld [vmem:[%s1781_s1 + $0x10] sm:$0xff]  }
   0x8   :  { %1138 = vmatpush3.bf16.msra.mxu0 %v1313_v6  ;;  %v1322_v15 = vld [vmem:[%s1781_s1 + $0xa0] sm:$0xff]   ;;  %v1326_v19 = vld [vmem:[%s1781_s1 + $0x98] sm:$0xff]   ;;  %v1330_v23 = vld [vmem:[%s1781_s1 + $0x90] sm:$0xff]  }
   0x9   :  { %1202 = vmatpush3.bf16.msra.mxu1 %v1314_v7  ;;  %1139 = vmatprep.subr.bf16.mxu0 %v1315_v8  ;;  %v1331_v24 = vld [vmem:[%s1781_s1 + $0x48] sm:$0xff]   ;;  %v1335_v28 = vld [vmem:[%s1781_s1 + $0x40] sm:$0xff]   ;;  %v1345_v36 = vld [vmem:[%s1781_s1 + $0x118] sm:$0xff]  }
   0xa   :  { %1203 = vmatprep.subr.bf16.mxu1 %v1316_v9  ;;  %v1332_v25 = vld [vmem:[%s1781_s1 + $0xc8] sm:$0xff]   ;;  %v1336_v29 = vld [vmem:[%s1781_s1 + $0xc0] sm:$0xff]   ;;  %v1358_v42 = vld [vmem:[%s1781_s1 + $0x110] sm:$0xff]  }
   0xb   :  { %v1333_v26 = vld [vmem:[%s1781_s1 + $0x8] sm:$0xff]   ;;  %v1337_v30 = vld [vmem:[%s1781_s1] sm:$0xff]   ;;  %v1354_v43 = vld [vmem:[%s1782_s0 + $0x5c] ss:$20 sps:$4 sm:$0xff]  }
   0xc   :  { %1140 = vmatpush3.bf16.msra.mxu0 %v1317_v10  ;;  %v1334_v27 = vld [vmem:[%s1781_s1 + $0x88] sm:$0xff]   ;;  %v1338_v31 = vld [vmem:[%s1781_s1 + $0x80] sm:$0xff]   ;;  %v1359_v47 = vld [vmem:[%s1782_s0 + $0x7c] ss:$20 sps:$4 sm:$0xff]  }
   0xd   :  { %1204 = vmatpush3.bf16.msra.mxu1 %v1318_v11  ;;  %1141 = vmatprep.subr.bf16.mxu0 %v1319_v12  ;;  %v1339_v32 = vld [vmem:[%s1782_s0] ss:$20 sps:$4 sm:$0xff]   ;;  %v1341_v33 = vld [vmem:[%s1782_s0 + $0x4] ss:$20 sps:$4 sm:$0xff]   ;;  %v1342_v34 = vld [vmem:[%s1782_s0 + $0x8] ss:$20 sps:$4 sm:$0xff]  }
   0xe   :  { %1205 = vmatprep.subr.bf16.mxu1 %v1320_v13  ;;  %v1344_v35 = vld [vmem:[%s1782_s0 + $0xc] ss:$20 sps:$4 sm:$0xff]   ;;  %611 = vmatprep.mubr.bf16.mxu0 %v1341_v33  ;;  %v1348_v38 = vld [vmem:[%s1782_s0 + $0x34] ss:$20 sps:$4 sm:$0xff]   ;;  %v1351_v40 = vld [vmem:[%s1782_s0 + $0x30] ss:$20 sps:$4 sm:$0xff]  }
   0xf   :  { %708 = vmatprep.mubr.bf16.mxu1 %v1344_v35  ;;  %v1346_v37 = vld [vmem:[%s1782_s0 + $0x2c] ss:$20 sps:$4 sm:$0xff]   ;;  %v1350_v39 = vld [vmem:[%s1782_s0 + $0x28] ss:$20 sps:$4 sm:$0xff]   ;;  %v1356_v44 = vld [vmem:[%s1782_s0 + $0x50] ss:$20 sps:$4 sm:$0xff]  }
  0x10   :  { %1142 = vmatpush3.bf16.msra.mxu0 %v1321_v14  ;;  %v1352_v41 = vld [vmem:[%s1782_s0 + $0x54] ss:$20 sps:$4 sm:$0xff]   ;;  %v1357_v45 = vld [vmem:[%s1782_s0 + $0x58] ss:$20 sps:$4 sm:$0xff]   ;;  %v1384_v49 = vld [vmem:[%s1781_s1 + $0x100] sm:$0xff]  }
  0x11   :  { %1206 = vmatpush3.bf16.msra.mxu1 %v1322_v15  ;;  %1143 = vmatprep.subr.bf16.mxu0 %v1323_v16  ;;  %v1371_v46 = vld [vmem:[%s1781_s1 + $0x108] sm:$0xff]   ;;  %v1361_v48 = vld [vmem:[%s1782_s0 + $0x84] ss:$20 sps:$4 sm:$0xff]   ;;  %v1364_v51 = vld [vmem:[%s1782_s0 + $0x80] ss:$20 sps:$4 sm:$0xff]  }
  0x12   :  { %1207 = vmatprep.subr.bf16.mxu1 %v1324_v17  ;;  %v1363_v50 = vld [vmem:[%s1782_s0 + $0x78] ss:$20 sps:$4 sm:$0xff]   ;;  %v1369_v54 = vld [vmem:[%s1782_s0 + $0xa0] ss:$20 sps:$4 sm:$0xff]   ;;  %v1370_v55 = vld [vmem:[%s1782_s0 + $0xa8] ss:$20 sps:$4 sm:$0xff]  }
  0x13   :  { %v1365_v52 = vld [vmem:[%s1782_s0 + $0xa4] ss:$20 sps:$4 sm:$0xff]   ;;  %v1367_v53 = vld [vmem:[%s1782_s0 + $0xac] ss:$20 sps:$4 sm:$0xff]   ;;  %v1374_v57 = vld [vmem:[%s1782_s0 + $0xd4] ss:$20 sps:$4 sm:$0xff]  }
  0x14   :  { %1144 = vmatpush3.bf16.msra.mxu0 %v1325_v18  ;;  %v1372_v56 = vld [vmem:[%s1782_s0 + $0xcc] ss:$20 sps:$4 sm:$0xff]   ;;  %v1376_v58 = vld [vmem:[%s1782_s0 + $0xc8] ss:$20 sps:$4 sm:$0xff]   ;;  %v1377_v59 = vld [vmem:[%s1782_s0 + $0xd0] ss:$20 sps:$4 sm:$0xff]  }
  0x15   :  { %1208 = vmatpush3.bf16.msra.mxu1 %v1326_v19  ;;  %1145 = vmatprep.subr.bf16.mxu0 %v1327_v20  ;;  %v1378_v60 = vld [vmem:[%s1782_s0 + $0xf4] ss:$20 sps:$4 sm:$0xff]   ;;  %v1380_v61 = vld [vmem:[%s1782_s0 + $0xfc] ss:$20 sps:$4 sm:$0xff]   ;;  %v1383_v63 = vld [vmem:[%s1782_s0 + $0xf8] ss:$20 sps:$4 sm:$0xff]  }
  0x16   :  { %1209 = vmatprep.subr.bf16.mxu1 %v1328_v21  ;;  %v1382_v62 = vld [vmem:[%s1782_s0 + $0xf0] ss:$20 sps:$4 sm:$0xff]   ;;  %v1389_v2 = vld [vmem:[%s1782_s0 + $0x118] ss:$20 sps:$4 sm:$0xff]   ;;  %v1390_v3 = vld [vmem:[%s1782_s0 + $0x120] ss:$20 sps:$4 sm:$0xff]  }
  0x17   :  { %v1385_v0 = vld [vmem:[%s1782_s0 + $0x11c] ss:$20 sps:$4 sm:$0xff]   ;;  %v1387_v1 = vld [vmem:[%s1782_s0 + $0x124] ss:$20 sps:$4 sm:$0xff]   ;;  %v1395_v8 = vld [vmem:[%s1782_s0 + $0x60] ss:$20 sps:$4 sm:$0xff]  }
  0x18   :  { %1146 = vmatpush3.bf16.msra.mxu0 %v1329_v22  ;;  %v1391_v4 = vld [vmem:[%s1782_s0 + $0x10] ss:$20 sps:$4 sm:$0xff]   ;;  %v1393_v6 = vld [vmem:[%s1782_s0 + $0x38] ss:$20 sps:$4 sm:$0xff]   ;;  %v1396_v9 = vld [vmem:[%s1782_s0 + $0x100] ss:$20 sps:$4 sm:$0xff]  }
  0x19   :  { %1210 = vmatpush3.bf16.msra.mxu1 %v1330_v23  ;;  %1147 = vmatprep.subr.bf16.mxu0 %v1331_v24  ;;  %v1392_v5 = vld [vmem:[%s1782_s0 + $0xb0] ss:$20 sps:$4 sm:$0xff]   ;;  %v1394_v7 = vld [vmem:[%s1782_s0 + $0xd8] ss:$20 sps:$4 sm:$0xff]   ;;  %v1397_v10 = vld [vmem:[%s1782_s0 + $0x88] ss:$20 sps:$4 sm:$0xff]  }
  0x1a   :  { %1211 = vmatprep.subr.bf16.mxu1 %v1332_v25  ;;  %v1398_v11 = vld [vmem:[%s1782_s0 + $0x128] ss:$20 sps:$4 sm:$0xff]  }
  0x1c   :  { %1148 = vmatpush3.bf16.msra.mxu0 %v1333_v26 }
  0x1d   :  { %1212 = vmatpush3.bf16.msra.mxu1 %v1334_v27  ;;  %1149 = vmatprep.subr.bf16.mxu0 %v1335_v28 }
  0x1e   :  { %1213 = vmatprep.subr.bf16.mxu1 %v1336_v29 }
  0x20   :  { %1150 = vmatpush3.bf16.msra.mxu0 %v1337_v30 }
  0x21   :  { %1214 = vmatpush3.bf16.msra.mxu1 %v1338_v31  ;;  %1275 = vmatprep.subr.bf16.mxu0 %v1345_v36 }
  0x22   :  { %1299 = vmatprep.subr.bf16.mxu1 %v1345_v36 }
  0x23   :  { %612 = vmatmul.mubr.bf16.vlgmr.msra.gmra.mxu0 %v1339_v32 }
  0x24   :  { %709 = vmatmul.mubr.bf16.vlgmr.msra.gmra.mxu1 %v1342_v34  ;;  %1276 = vmatpush3.bf16.msra.mxu0 %v1345_v36 }
  0x25   :  { %1303 = vmatpush3.bf16.msra.mxu1 %v1345_v36  ;;  %619 = vmatprep.mubr.bf16.mxu0 %v1346_v37 }
  0x26   :  { %716 = vmatprep.mubr.bf16.mxu1 %v1348_v38  ;;  %1277 = vmatprep.subr.bf16.mxu0 %v1358_v42 }
  0x27   :  { %1300 = vmatprep.subr.bf16.mxu1 %v1358_v42 }
  0x28   :  { %1278 = vmatpush3.bf16.msra.mxu0 %v1358_v42 }
  0x29   :  { %1304 = vmatpush3.bf16.msra.mxu1 %v1358_v42  ;;  %1279 = vmatprep.subr.bf16.mxu0 %v1371_v46 }
  0x2a   :  { %1301 = vmatprep.subr.bf16.mxu1 %v1371_v46 }
  0x2b   :  { %620 = vmatmul.mubr.bf16.gmra.mxu0 %v1350_v39 }
  0x2c   :  { %717 = vmatmul.mubr.bf16.gmra.mxu1 %v1351_v40  ;;  %627 = vmatprep.mubr.bf16.mxu0 %v1352_v41 }
  0x2d   :  { %724 = vmatprep.mubr.bf16.mxu1 %v1354_v43  ;;  %1280 = vmatpush3.bf16.msra.mxu0 %v1371_v46 }
  0x2e   :  { %1305 = vmatpush3.bf16.msra.mxu1 %v1371_v46  ;;  %1281 = vmatprep.subr.bf16.mxu0 %v1384_v49 }
  0x2f   :  { %1302 = vmatprep.subr.bf16.mxu1 %v1384_v49 }
  0x31   :  { %1282 = vmatpush3.bf16.msra.mxu0 %v1384_v49 }
  0x32   :  { %1306 = vmatpush3.bf16.msra.mxu1 %v1384_v49 }
  0x33   :  { %628 = vmatmul.mubr.bf16.gmra.mxu0 %v1356_v44 }
  0x34   :  { %725 = vmatmul.mubr.bf16.gmra.mxu1 %v1357_v45  ;;  %635 = vmatprep.mubr.bf16.mxu0 %v1359_v47 }
  0x35   :  { %732 = vmatprep.mubr.bf16.mxu1 %v1361_v48 }
  0x3b   :  { %636 = vmatmul.mubr.bf16.gmra.mxu0 %v1363_v50 }
  0x3c   :  { %733 = vmatmul.mubr.bf16.gmra.mxu1 %v1364_v51  ;;  %643 = vmatprep.mubr.bf16.mxu0 %v1365_v52 }
  0x3d   :  { %740 = vmatprep.mubr.bf16.mxu1 %v1367_v53 }
  0x43   :  { %644 = vmatmul.mubr.bf16.gmra.mxu0 %v1369_v54 }
  0x44   :  { %741 = vmatmul.mubr.bf16.gmra.mxu1 %v1370_v55  ;;  %651 = vmatprep.mubr.bf16.mxu0 %v1372_v56 }
  0x45   :  { %748 = vmatprep.mubr.bf16.mxu1 %v1374_v57 }
  0x4b   :  { %652 = vmatmul.mubr.bf16.gmra.mxu0 %v1376_v58 }
  0x4c   :  { %749 = vmatmul.mubr.bf16.gmra.mxu1 %v1377_v59  ;;  %659 = vmatprep.mubr.bf16.mxu0 %v1378_v60 }
  0x4d   :  { %756 = vmatprep.mubr.bf16.mxu1 %v1380_v61 }
  0x53   :  { %660 = vmatmul.mubr.bf16.gmra.mxu0 %v1382_v62 }
  0x54   :  { %757 = vmatmul.mubr.bf16.gmra.mxu1 %v1383_v63  ;;  %667 = vmatprep.mubr.bf16.mxu0 %v1385_v0 }
  0x55   :  { %764 = vmatprep.mubr.bf16.mxu1 %v1387_v1 }
  0x5b   :  { %668 = vmatmul.mubr.bf16.gmra.mxu0 %v1389_v2 }
  0x5c   :  { %765 = vmatmul.mubr.bf16.gmra.mxu1 %v1390_v3  ;;  %1283 = vmatprep.mubr.msk.bf16.mxu0 %vm554_vm0, %v1391_v4 }
  0x5d   :  { %1291 = vmatprep.mubr.msk.bf16.mxu1 %vm554_vm0, %v1392_v5 }
  0x63   :  { %1284 = vmatmul.mubr.msk.bf16.vlgmr.msra.gmra.mxu0 %vm554_vm0, %v1393_v6 }
  0x64   :  { %1292 = vmatmul.mubr.msk.bf16.vlgmr.msra.gmra.mxu1 %vm554_vm0, %v1394_v7  ;;  %1287 = vmatprep.mubr.msk.bf16.mxu0 %vm554_vm0, %v1395_v8 }
  0x65   :  { %1295 = vmatprep.mubr.msk.bf16.mxu1 %vm554_vm0, %v1396_v9 }
  0x6b   :  { %1288 = vmatmul.mubr.msk.bf16.gmra.mxu0 %vm554_vm0, %v1397_v10 }
  0x6c   :  { %1296 = vmatmul.mubr.msk.bf16.gmra.mxu1 %vm554_vm0, %v1398_v11 }
  0xe3   :  { %v1151_v12 = vpop.f32.mrf.mxu0 }
  0xe4   :  { %v1215_v13 = vpop.f32.mrf.mxu1 }
  0xe5   :  { %v1152_v14 = vpop.f32.mrf.mxu0 }
  0xe6   :  { %v1216_v15 = vpop.f32.mrf.mxu1  ;;  %v1153_v3 = vadd.f32 %v1152_v14, %v1151_v12 }
  0xe7   :  { %v1154_v16 = vpop.f32.mrf.mxu0  ;;  %v1217_v4 = vadd.f32 %v1216_v15, %v1215_v13 }
  0xe8   :  { %v1218_v17 = vpop.f32.mrf.mxu1 }
  0xe9   :  { %v1155_v18 = vpop.f32.mrf.mxu0 }
  0xea   :  { %v1219_v19 = vpop.f32.mrf.mxu1  ;;  %v1156_v5 = vadd.f32 %v1155_v18, %v1154_v16 }
  0xeb   :  { %v1157_v20 = vpop.f32.mrf.mxu0  ;;  %v1220_v6 = vadd.f32 %v1219_v19, %v1218_v17 }
  0xec   :  { %v1221_v21 = vpop.f32.mrf.mxu1 }
  0xed   :  { %v1158_v22 = vpop.f32.mrf.mxu0 }
  0xee   :  { %v1222_v23 = vpop.f32.mrf.mxu1  ;;  %v1159_v8 = vadd.f32 %v1158_v22, %v1157_v20 }
  0xef   :  { %v1160_v24 = vpop.f32.mrf.mxu0  ;;  %v1223_v9 = vadd.f32 %v1222_v23, %v1221_v21 }
  0xf0   :  { %v1224_v25 = vpop.f32.mrf.mxu1 }
  0xf1   :  { %v1161_v26 = vpop.f32.mrf.mxu0 }
  0xf2   :  { %v1225_v27 = vpop.f32.mrf.mxu1  ;;  %v1162_v10 = vadd.f32 %v1161_v26, %v1160_v24  ;;  %v719_v26 = vadd.f32 %v1223_v9, %v1159_v8 }
  0xf3   :  { %v1163_v28 = vpop.f32.mrf.mxu0  ;;  %v1226_v11 = vadd.f32 %v1225_v27, %v1224_v25  ;;  %v711_v25 = vadd.f32 %v1217_v4, %v1153_v3 }
  0xf4   :  { %v1227_v29 = vpop.f32.mrf.mxu1 }
  0xf5   :  { %v1164_v30 = vpop.f32.mrf.mxu0  ;;  %v722_v27 = vadd.f32 %v1226_v11, %v1162_v10 }
  0xf6   :  { %v1228_v31 = vpop.f32.mrf.mxu1  ;;  %v1165_v14 = vadd.f32 %v1164_v30, %v1163_v28  ;;  %v714_v28 = vadd.f32 %v1220_v6, %v1156_v5 }
  0xf7   :  { %v1166_v32 = vpop.f32.mrf.mxu0  ;;  %v1229_v13 = vadd.f32 %v1228_v31, %v1227_v29 }
  0xf8   :  { %v1230_v33 = vpop.f32.mrf.mxu1 }
  0xf9   :  { %v1167_v34 = vpop.f32.mrf.mxu0 }
  0xfa   :  { %v1231_v35 = vpop.f32.mrf.mxu1  ;;  %v1168_v15 = vadd.f32 %v1167_v34, %v1166_v32  ;;  %v1660_v32 = vadd.f32 %v1229_v13, %v1165_v14 }
  0xfb   :  { %v1169_v36 = vpop.f32.mrf.mxu0  ;;  %v1232_v16 = vadd.f32 %v1231_v35, %v1230_v33 }
  0xfc   :  { %v1233_v37 = vpop.f32.mrf.mxu1 }
  0xfd   :  { %v1170_v38 = vpop.f32.mrf.mxu0  ;;  %v1662_v34 = vadd.f32 %v1232_v16, %v1168_v15 }
  0xfe   :  { %v1234_v39 = vpop.f32.mrf.mxu1  ;;  %v1171_v17 = vadd.f32 %v1170_v38, %v1169_v36 }
  0xff   :  { %v1172_v40 = vpop.f32.mrf.mxu0  ;;  %v1235_v19 = vadd.f32 %v1234_v39, %v1233_v37 }
 0x100   :  { %v1236_v41 = vpop.f32.mrf.mxu1 }
 0x101   :  { %v1173_v42 = vpop.f32.mrf.mxu0  ;;  %v1664_v38 = vadd.f32 %v1235_v19, %v1171_v17 }
 0x102   :  { %v1237_v43 = vpop.f32.mrf.mxu1  ;;  %v1174_v30 = vadd.f32 %v1173_v42, %v1172_v40 }
 0x103   :  { %v1175_v44 = vpop.f32.mrf.mxu0  ;;  %v1238_v29 = vadd.f32 %v1237_v43, %v1236_v41  ;;  %v1669_v43 = vld [vmem:[%s1783_s2] ss:$0 sm:$0xff] }
 0x104   :  { %v1239_v45 = vpop.f32.mrf.mxu1 }
 0x105   :  { %v1176_v46 = vpop.f32.mrf.mxu0 }
 0x106   :  { %v1240_v47 = vpop.f32.mrf.mxu1  ;;  %v1177_v33 = vadd.f32 %v1176_v46, %v1175_v44 }
 0x107   :  { %v1178_v48 = vpop.f32.mrf.mxu0  ;;  %v1241_v35 = vadd.f32 %v1240_v47, %v1239_v45 }
 0x108   :  { %v1242_v49 = vpop.f32.mrf.mxu1 }
 0x109   :  { %v1179_v50 = vpop.f32.mrf.mxu0 }
 0x10a   :  { %v1243_v51 = vpop.f32.mrf.mxu1  ;;  %v1180_v36 = vadd.f32 %v1179_v50, %v1178_v48  ;;  %v1671_v48 = vadd.f32 %v1238_v29, %v1174_v30 }
 0x10b   :  { %v1181_v52 = vpop.f32.mrf.mxu0  ;;  %v1244_v39 = vadd.f32 %v1243_v51, %v1242_v49  ;;  %v1676_v51 = vld [vmem:[%s1784_s3] ss:$0 sm:$0xff] }
 0x10c   :  { %v1245_v53 = vpop.f32.mrf.mxu1 }
 0x10d   :  { %v1182_v54 = vpop.f32.mrf.mxu0 }
 0x10e   :  { %v1246_v55 = vpop.f32.mrf.mxu1  ;;  %v1183_v22 = vadd.f32 %v1182_v54, %v1181_v52 }
 0x10f   :  { %v1184_v56 = vpop.f32.mrf.mxu0  ;;  %v1247_v21 = vadd.f32 %v1246_v55, %v1245_v53 }
 0x110   :  { %v1248_v57 = vpop.f32.mrf.mxu1 }
 0x111   :  { %v1185_v58 = vpop.f32.mrf.mxu0  ;;  %v751_v55 = vadd.f32 %v1247_v21, %v1183_v22 }
 0x112   :  { %v1249_v59 = vpop.f32.mrf.mxu1  ;;  %v1186_v52 = vadd.f32 %v1185_v58, %v1184_v56  ;;  %v743_v58 = vadd.f32 %v1241_v35, %v1177_v33 }
 0x113   :  { %v1187_v60 = vpop.f32.mrf.mxu0  ;;  %v1250_v53 = vadd.f32 %v1249_v59, %v1248_v57 }
 0x114   :  { %v1251_v61 = vpop.f32.mrf.mxu1 }
 0x115   :  { %v1188_v62 = vpop.f32.mrf.mxu0 }
 0x116   :  { %v1252_v63 = vpop.f32.mrf.mxu1  ;;  %v1189_v3 = vadd.f32 %v1188_v62, %v1187_v60  ;;  %v754_v62 = vadd.f32 %v1250_v53, %v1186_v52 }
 0x117   :  { %v1190_v0 = vpop.f32.mrf.mxu0  ;;  %v1253_v4 = vadd.f32 %v1252_v63, %v1251_v61  ;;  %v746_v63 = vadd.f32 %v1244_v39, %v1180_v36 }
 0x118   :  { %v1254_v1 = vpop.f32.mrf.mxu1 }
 0x119   :  { %v1191_v2 = vpop.f32.mrf.mxu0  ;;  %v759_v5 = vadd.f32 %v1253_v4, %v1189_v3 }
 0x11a   :  { %v1255_v7 = vpop.f32.mrf.mxu1  ;;  %v1192_v40 = vadd.f32 %v1191_v2, %v1190_v0 }
 0x11b   :  { %v1193_v12 = vpop.f32.mrf.mxu0  ;;  %v1256_v41 = vadd.f32 %v1255_v7, %v1254_v1 }
 0x11c   :  { %v1257_v18 = vpop.f32.mrf.mxu1 }
 0x11d   :  { %v1194_v20 = vpop.f32.mrf.mxu0  ;;  %v1680_v6 = vadd.f32 %v1256_v41, %v1192_v40 }
 0x11e   :  { %v1258_v23 = vpop.f32.mrf.mxu1  ;;  %v1195_v44 = vadd.f32 %v1194_v20, %v1193_v12 }
 0x11f   :  { %v1196_v24 = vpop.f32.mrf.mxu0  ;;  %v1259_v45 = vadd.f32 %v1258_v23, %v1257_v18 }
 0x120   :  { %v1260_v31 = vpop.f32.mrf.mxu1 }
 0x121   :  { %v1197_v37 = vpop.f32.mrf.mxu0  ;;  %v767_v11 = vadd.f32 %v1259_v45, %v1195_v44 }
 0x122   :  { %v1261_v54 = vpop.f32.mrf.mxu1  ;;  %v1198_v49 = vadd.f32 %v1197_v37, %v1196_v24 }
 0x123   :  { %v1285_v42 = vpop.f32.mrf.mxu0  ;;  %v1262_v50 = vadd.f32 %v1261_v54, %v1260_v31 }
 0x124   :  { %v816_v46 = vadd.f32 %v1285_v42, %v719_v26  ;;  %v1293_v47 = vpop.f32.mrf.mxu1 }
 0x125   :  { %v848_v56 = vadd.f32 %v1293_v47, %v751_v55  ;;  %v807_v57 = vpop.f32.mrf.mxu0  ;;  %v770_v16 = vadd.f32 %v1262_v50, %v1198_v49 }
 0x126   :  { %v879_v59 = vmul.f32 %v1669_v43, %v816_v46  ;;  %v808_v60 = vadd.f32 %v807_v57, %v711_v25  ;;  %v839_v61 = vpop.f32.mrf.mxu1 }
 0x127   :  { %v887_v0 = vmul.f32 %v1669_v43, %v848_v56  ;;  %v840_v1 = vadd.f32 %v839_v61, %v743_v58  ;;  %v1286_v2 = vpop.f32.mrf.mxu0 }
 0x128   :  { %v902_v7 = vadd.f32 %v1676_v51, %v879_v59  ;;  %v877_v8 = vmul.f32 %v1669_v43, %v808_v60  ;;  %v819_v9 = vadd.f32 %v1286_v2, %v722_v27  ;;  %v1294_v10 = vpop.f32.mrf.mxu1 }
 0x129   :  { %v910_v12 = vadd.f32 %v1676_v51, %v887_v0  ;;  %v885_v14 = vmul.f32 %v1669_v43, %v840_v1  ;;  %v851_v13 = vadd.f32 %v1294_v10, %v754_v62  ;;  %v810_v15 = vpop.f32.mrf.mxu0 }
 0x12a   :  { %v918_v18 = vmax.f32 %v902_v7, 0.0  ;;  %v900_v17 = vadd.f32 %v1676_v51, %v877_v8  ;;  %v880_v19 = vmul.f32 %v1669_v43, %v819_v9  ;;  %v811_v20 = vadd.f32 %v810_v15, %v714_v28  ;;  %v842_v22 = vpop.f32.mrf.mxu1 }
 0x12b   :  { %v926_v21 = vmax.f32 %v910_v12, 0.0  ;;  %v908_v23 = vadd.f32 %v1676_v51, %v885_v14  ;;  %v888_v24 = vmul.f32 %v1669_v43, %v851_v13  ;;  %v843_v26 = vadd.f32 %v842_v22, %v746_v63  ;;  %v1289_v25 = vpop.f32.mrf.mxu0 }
 0x12c   :  { %v1121_v27 = vpack.c.bf16 %v918_v18, %v918_v18  ;;  %v916_v30 = vmax.f32 %v900_v17, 0.0  ;;  %v903_v29 = vadd.f32 %v1676_v51, %v880_v19  ;;  %v878_v31 = vmul.f32 %v1669_v43, %v811_v20  ;;  %v1297_v33 = vpop.f32.mrf.mxu1 }
 0x12d   :  { %v1129_v35 = vpack.c.bf16 %v926_v21, %v926_v21  ;;  %v924_v36 = vmax.f32 %v908_v23, 0.0  ;;  %v911_v37 = vadd.f32 %v1676_v51, %v888_v24  ;;  %v886_v28 = vmul.f32 %v1669_v43, %v843_v26  ;;  %v823_v39 = vpop.f32.mrf.mxu0 }
 0x12e   :  { %999 = vst.msk [vmem:[%s1785_s4 + $0x8] sm:$0xf] %vm996_vm1, %v1121_v27  ;;  %v1119_v52 = vpack.c.bf16 %v916_v30, %v916_v30  ;;  %v919_v53 = vmax.f32 %v903_v29, 0.0  ;;  %v901_v54 = vadd.f32 %v1676_v51, %v878_v31  ;;  %v832_v55 = vadd.f32 %v1289_v25, %v1664_v38  ;;  %v855_v3 = vpop.f32.mrf.mxu1 }
 0x12f   :  { %1007 = vst.msk [vmem:[%s1785_s4 + $0x28] sm:$0xf] %vm996_vm1, %v1129_v35  ;;  %v1127_v4 = vpack.c.bf16 %v924_v36, %v924_v36  ;;  %v927_v40 = vmax.f32 %v911_v37, 0.0  ;;  %v909_v41 = vadd.f32 %v1676_v51, %v886_v28  ;;  %v864_v42 = vadd.f32 %v1297_v33, %v767_v11  ;;  %v1290_v44 = vpop.f32.mrf.mxu0 }
 0x130   :  { %997 = vst.msk [vmem:[%s1785_s4] sm:$0xf] %vm996_vm1, %v1119_v52  ;;  %v1122_v45 = vpack.c.bf16 %v919_v53, %v919_v53  ;;  %v917_v46 = vmax.f32 %v901_v54, 0.0  ;;  %v883_v38 = vmul.f32 %v1669_v43, %v832_v55  ;;  %v824_v47 = vadd.f32 %v823_v39, %v1660_v32  ;;  %v1298_v49 = vpop.f32.mrf.mxu1 }
 0x131   :  { %1005 = vst.msk [vmem:[%s1785_s4 + $0x20] sm:$0xf] %vm996_vm1, %v1127_v4  ;;  %v1130_v50 = vpack.c.bf16 %v927_v40, %v927_v40  ;;  %v925_v56 = vmax.f32 %v909_v41, 0.0  ;;  %v891_v57 = vmul.f32 %v1669_v43, %v864_v42  ;;  %v856_v58 = vadd.f32 %v855_v3, %v759_v5  ;;  %v826_v59 = vpop.f32.mrf.mxu0 }
 0x132   :  { %1000 = vst.msk [vmem:[%s1785_s4 + $0xc] sm:$0xf] %vm996_vm1, %v1122_v45  ;;  %v1120_v60 = vpack.c.bf16 %v917_v46, %v917_v46  ;;  %v906_v32 = vadd.f32 %v1676_v51, %v883_v38  ;;  %v881_v61 = vmul.f32 %v1669_v43, %v824_v47  ;;  %v835_v62 = vadd.f32 %v1290_v44, %v1671_v48  ;;  %v858_v63 = vpop.f32.mrf.mxu1 }
 0x133   :  { %1008 = vst.msk [vmem:[%s1785_s4 + $0x2c] sm:$0xf] %vm996_vm1, %v1130_v50  ;;  %v1128_v0 = vpack.c.bf16 %v925_v56, %v925_v56  ;;  %v914_v1 = vadd.f32 %v1676_v51, %v891_v57  ;;  %v889_v2 = vmul.f32 %v1669_v43, %v856_v58  ;;  %v867_v5 = vadd.f32 %v1298_v49, %v770_v16 }
 0x134   :  { %998 = vst.msk [vmem:[%s1785_s4 + $0x4] sm:$0xf] %vm996_vm1, %v1120_v60  ;;  %v922_v7 = vmax.f32 %v906_v32, 0.0  ;;  %v904_v48 = vadd.f32 %v1676_v51, %v881_v61  ;;  %v884_v8 = vmul.f32 %v1669_v43, %v835_v62  ;;  %v827_v9 = vadd.f32 %v826_v59, %v1662_v34 }
 0x135   :  { %1006 = vst.msk [vmem:[%s1785_s4 + $0x24] sm:$0xf] %vm996_vm1, %v1128_v0  ;;  %v930_v10 = vmax.f32 %v914_v1, 0.0  ;;  %v912_v11 = vadd.f32 %v1676_v51, %v889_v2  ;;  %v892_v12 = vmul.f32 %v1669_v43, %v867_v5  ;;  %v859_v14 = vadd.f32 %v858_v63, %v1680_v6 }
 0x136   :  { %v1125_v13 = vpack.c.bf16 %v922_v7, %v922_v7  ;;  %v920_v15 = vmax.f32 %v904_v48, 0.0  ;;  %v907_v16 = vadd.f32 %v1676_v51, %v884_v8  ;;  %v882_v18 = vmul.f32 %v1669_v43, %v827_v9 }
 0x137   :  { %v1133_v17 = vpack.c.bf16 %v930_v10, %v930_v10  ;;  %v928_v34 = vmax.f32 %v912_v11, 0.0  ;;  %v915_v19 = vadd.f32 %v1676_v51, %v892_v12  ;;  %v890_v20 = vmul.f32 %v1669_v43, %v859_v14 }
 0x138   :  { %1003 = vst.msk [vmem:[%s1785_s4 + $0x18] sm:$0xf] %vm996_vm1, %v1125_v13  ;;  %v1123_v22 = vpack.c.bf16 %v920_v15, %v920_v15  ;;  %v923_v21 = vmax.f32 %v907_v16, 0.0  ;;  %v905_v6 = vadd.f32 %v1676_v51, %v882_v18 }
 0x139   :  { %1011 = vst.msk [vmem:[%s1785_s4 + $0x38] sm:$0xf] %vm996_vm1, %v1133_v17  ;;  %v1131_v23 = vpack.c.bf16 %v928_v34, %v928_v34  ;;  %v931_v24 = vmax.f32 %v915_v19, 0.0  ;;  %v913_v26 = vadd.f32 %v1676_v51, %v890_v20 }
 0x13a   :  { %1001 = vst.msk [vmem:[%s1785_s4 + $0x10] sm:$0xf] %vm996_vm1, %v1123_v22  ;;  %v1126_v43 = vpack.c.bf16 %v923_v21, %v923_v21  ;;  %v921_v25 = vmax.f32 %v905_v6, 0.0 }
 0x13b   :  { %1009 = vst.msk [vmem:[%s1785_s4 + $0x30] sm:$0xf] %vm996_vm1, %v1131_v23  ;;  %v1134_v27 = vpack.c.bf16 %v931_v24, %v931_v24  ;;  %v929_v30 = vmax.f32 %v913_v26, 0.0 }
 0x13c   :  { %1004 = vst.msk [vmem:[%s1785_s4 + $0x1c] sm:$0xf] %vm996_vm1, %v1126_v43  ;;  %v1124_v51 = vpack.c.bf16 %v921_v25, %v921_v25 }
 0x13d   :  { %1012 = vst.msk [vmem:[%s1785_s4 + $0x3c] sm:$0xf] %vm996_vm1, %v1134_v27  ;;  %v1132_v29 = vpack.c.bf16 %v929_v30, %v929_v30 }
 0x13e   :  { %1002 = vst.msk [vmem:[%s1785_s4 + $0x14] sm:$0xf] %vm996_vm1, %v1124_v51 }
 0x13f   :  { %1010 = vst.msk [vmem:[%s1785_s4 + $0x34] sm:$0xf] %vm996_vm1, %v1132_v29 }

// kernel: feature_extractor_forward.15
= control target key start
LH: loop header
LB: loop body
LE: loop exit
PB: predicated region body
PF: predicated region fallthrough
CT: control target
= control target key end

     0   :  { %vm557_vm0 = vcmask 523264   ;;  %vm1047_vm1 = vcmask 519168   ;;  %s2117_s1 = inlined_call_operand.vmem [shape: bf16[576,64], index: 1, kind: input, shape index: {}]   ;;  %s2118_s0 = inlined_call_operand.vmem [shape: bf16[128,576], index: 0, kind: input, shape index: {}]   ;;  %s2119_s4 = inlined_call_operand.vmem [shape: bf16[128,64], index: 4, kind: input, shape index: {}]   ;;  %s2120_s2 = inlined_call_operand.vmem [shape: f32[1,64], index: 2, kind: input, shape index: {}]   ;;  %s2121_s3 = inlined_call_operand.vmem [shape: f32[1,64], index: 3, kind: input, shape index: {}]   ;;  %s2122_s5 = inlined_call_operand.vmem [shape: bf16[128,64], index: 5, kind: output, shape index: {}]  }
   0x1   :  { %v1397_v0 = vld [vmem:[%s2117_s1 + $0x78] sm:$0xff]   ;;  %v1401_v4 = vld [vmem:[%s2117_s1 + $0x70] sm:$0xff]   ;;  %v1405_v8 = vld [vmem:[%s2117_s1 + $0x68] sm:$0xff]  }
   0x2   :  { %v1398_v1 = vld [vmem:[%s2117_s1 + $0xf8] sm:$0xff]   ;;  %1225 = vmatprep.subr.bf16.mxu0 %v1397_v0  ;;  %v1402_v5 = vld [vmem:[%s2117_s1 + $0xf0] sm:$0xff]   ;;  %v1406_v9 = vld [vmem:[%s2117_s1 + $0xe8] sm:$0xff]  }
   0x3   :  { %v1399_v2 = vld [vmem:[%s2117_s1 + $0x38] sm:$0xff]   ;;  %1289 = vmatprep.subr.bf16.mxu1 %v1398_v1  ;;  %v1403_v6 = vld [vmem:[%s2117_s1 + $0x30] sm:$0xff]   ;;  %v1407_v10 = vld [vmem:[%s2117_s1 + $0x28] sm:$0xff]  }
   0x4   :  { %v1400_v3 = vld [vmem:[%s2117_s1 + $0xb8] sm:$0xff]   ;;  %1226 = vmatpush3.bf16.msra.mxu0 %v1399_v2  ;;  %v1404_v7 = vld [vmem:[%s2117_s1 + $0xb0] sm:$0xff]   ;;  %v1408_v11 = vld [vmem:[%s2117_s1 + $0xa8] sm:$0xff]  }
   0x5   :  { %1290 = vmatpush3.bf16.msra.mxu1 %v1400_v3  ;;  %1227 = vmatprep.subr.bf16.mxu0 %v1401_v4  ;;  %v1409_v12 = vld [vmem:[%s2117_s1 + $0x60] sm:$0xff]   ;;  %v1413_v16 = vld [vmem:[%s2117_s1 + $0x58] sm:$0xff]   ;;  %v1417_v20 = vld [vmem:[%s2117_s1 + $0x50] sm:$0xff]  }
   0x6   :  { %1291 = vmatprep.subr.bf16.mxu1 %v1402_v5  ;;  %v1410_v13 = vld [vmem:[%s2117_s1 + $0xe0] sm:$0xff]   ;;  %v1414_v17 = vld [vmem:[%s2117_s1 + $0xd8] sm:$0xff]   ;;  %v1418_v21 = vld [vmem:[%s2117_s1 + $0xd0] sm:$0xff]  }
   0x7   :  { %v1411_v14 = vld [vmem:[%s2117_s1 + $0x20] sm:$0xff]   ;;  %v1415_v18 = vld [vmem:[%s2117_s1 + $0x18] sm:$0xff]   ;;  %v1419_v22 = vld [vmem:[%s2117_s1 + $0x10] sm:$0xff]  }
   0x8   :  { %1228 = vmatpush3.bf16.msra.mxu0 %v1403_v6  ;;  %v1412_v15 = vld [vmem:[%s2117_s1 + $0xa0] sm:$0xff]   ;;  %v1416_v19 = vld [vmem:[%s2117_s1 + $0x98] sm:$0xff]   ;;  %v1420_v23 = vld [vmem:[%s2117_s1 + $0x90] sm:$0xff]  }
   0x9   :  { %1292 = vmatpush3.bf16.msra.mxu1 %v1404_v7  ;;  %1229 = vmatprep.subr.bf16.mxu0 %v1405_v8  ;;  %v1421_v24 = vld [vmem:[%s2117_s1 + $0x48] sm:$0xff]   ;;  %v1425_v28 = vld [vmem:[%s2117_s1 + $0x40] sm:$0xff]   ;;  %v1435_v36 = vld [vmem:[%s2117_s1 + $0x118] sm:$0xff]  }
   0xa   :  { %1293 = vmatprep.subr.bf16.mxu1 %v1406_v9  ;;  %v1422_v25 = vld [vmem:[%s2117_s1 + $0xc8] sm:$0xff]   ;;  %v1426_v29 = vld [vmem:[%s2117_s1 + $0xc0] sm:$0xff]   ;;  %v1448_v42 = vld [vmem:[%s2117_s1 + $0x110] sm:$0xff]  }
   0xb   :  { %v1423_v26 = vld [vmem:[%s2117_s1 + $0x8] sm:$0xff]   ;;  %v1427_v30 = vld [vmem:[%s2117_s1] sm:$0xff]   ;;  %v1444_v43 = vld [vmem:[%s2118_s0 + $0x5c] ss:$20 sps:$4 sm:$0xff]  }
   0xc   :  { %1230 = vmatpush3.bf16.msra.mxu0 %v1407_v10  ;;  %v1424_v27 = vld [vmem:[%s2117_s1 + $0x88] sm:$0xff]   ;;  %v1428_v31 = vld [vmem:[%s2117_s1 + $0x80] sm:$0xff]   ;;  %v1449_v47 = vld [vmem:[%s2118_s0 + $0x7c] ss:$20 sps:$4 sm:$0xff]  }
   0xd   :  { %1294 = vmatpush3.bf16.msra.mxu1 %v1408_v11  ;;  %1231 = vmatprep.subr.bf16.mxu0 %v1409_v12  ;;  %v1429_v32 = vld [vmem:[%s2118_s0] ss:$20 sps:$4 sm:$0xff]   ;;  %v1431_v33 = vld [vmem:[%s2118_s0 + $0x4] ss:$20 sps:$4 sm:$0xff]   ;;  %v1432_v34 = vld [vmem:[%s2118_s0 + $0x8] ss:$20 sps:$4 sm:$0xff]  }
   0xe   :  { %1295 = vmatprep.subr.bf16.mxu1 %v1410_v13  ;;  %v1434_v35 = vld [vmem:[%s2118_s0 + $0xc] ss:$20 sps:$4 sm:$0xff]   ;;  %614 = vmatprep.mubr.bf16.mxu0 %v1431_v33  ;;  %v1438_v38 = vld [vmem:[%s2118_s0 + $0x34] ss:$20 sps:$4 sm:$0xff]   ;;  %v1441_v40 = vld [vmem:[%s2118_s0 + $0x30] ss:$20 sps:$4 sm:$0xff]  }
   0xf   :  { %711 = vmatprep.mubr.bf16.mxu1 %v1434_v35  ;;  %v1436_v37 = vld [vmem:[%s2118_s0 + $0x2c] ss:$20 sps:$4 sm:$0xff]   ;;  %v1440_v39 = vld [vmem:[%s2118_s0 + $0x28] ss:$20 sps:$4 sm:$0xff]   ;;  %v1446_v44 = vld [vmem:[%s2118_s0 + $0x50] ss:$20 sps:$4 sm:$0xff]  }
  0x10   :  { %1232 = vmatpush3.bf16.msra.mxu0 %v1411_v14  ;;  %v1442_v41 = vld [vmem:[%s2118_s0 + $0x54] ss:$20 sps:$4 sm:$0xff]   ;;  %v1447_v45 = vld [vmem:[%s2118_s0 + $0x58] ss:$20 sps:$4 sm:$0xff]   ;;  %v1474_v49 = vld [vmem:[%s2117_s1 + $0x100] sm:$0xff]  }
  0x11   :  { %1296 = vmatpush3.bf16.msra.mxu1 %v1412_v15  ;;  %1233 = vmatprep.subr.bf16.mxu0 %v1413_v16  ;;  %v1461_v46 = vld [vmem:[%s2117_s1 + $0x108] sm:$0xff]   ;;  %v1451_v48 = vld [vmem:[%s2118_s0 + $0x84] ss:$20 sps:$4 sm:$0xff]   ;;  %v1454_v51 = vld [vmem:[%s2118_s0 + $0x80] ss:$20 sps:$4 sm:$0xff]  }
  0x12   :  { %1297 = vmatprep.subr.bf16.mxu1 %v1414_v17  ;;  %v1453_v50 = vld [vmem:[%s2118_s0 + $0x78] ss:$20 sps:$4 sm:$0xff]   ;;  %v1459_v54 = vld [vmem:[%s2118_s0 + $0xa0] ss:$20 sps:$4 sm:$0xff]   ;;  %v1460_v55 = vld [vmem:[%s2118_s0 + $0xa8] ss:$20 sps:$4 sm:$0xff]  }
  0x13   :  { %v1455_v52 = vld [vmem:[%s2118_s0 + $0xa4] ss:$20 sps:$4 sm:$0xff]   ;;  %v1457_v53 = vld [vmem:[%s2118_s0 + $0xac] ss:$20 sps:$4 sm:$0xff]   ;;  %v1464_v57 = vld [vmem:[%s2118_s0 + $0xd4] ss:$20 sps:$4 sm:$0xff]  }
  0x14   :  { %1234 = vmatpush3.bf16.msra.mxu0 %v1415_v18  ;;  %v1462_v56 = vld [vmem:[%s2118_s0 + $0xcc] ss:$20 sps:$4 sm:$0xff]   ;;  %v1466_v58 = vld [vmem:[%s2118_s0 + $0xc8] ss:$20 sps:$4 sm:$0xff]   ;;  %v1467_v59 = vld [vmem:[%s2118_s0 + $0xd0] ss:$20 sps:$4 sm:$0xff]  }
  0x15   :  { %1298 = vmatpush3.bf16.msra.mxu1 %v1416_v19  ;;  %1235 = vmatprep.subr.bf16.mxu0 %v1417_v20  ;;  %v1468_v60 = vld [vmem:[%s2118_s0 + $0xf4] ss:$20 sps:$4 sm:$0xff]   ;;  %v1470_v61 = vld [vmem:[%s2118_s0 + $0xfc] ss:$20 sps:$4 sm:$0xff]   ;;  %v1473_v63 = vld [vmem:[%s2118_s0 + $0xf8] ss:$20 sps:$4 sm:$0xff]  }
  0x16   :  { %1299 = vmatprep.subr.bf16.mxu1 %v1418_v21  ;;  %v1472_v62 = vld [vmem:[%s2118_s0 + $0xf0] ss:$20 sps:$4 sm:$0xff]   ;;  %v1479_v2 = vld [vmem:[%s2118_s0 + $0x118] ss:$20 sps:$4 sm:$0xff]   ;;  %v1480_v3 = vld [vmem:[%s2118_s0 + $0x120] ss:$20 sps:$4 sm:$0xff]  }
  0x17   :  { %v1475_v0 = vld [vmem:[%s2118_s0 + $0x11c] ss:$20 sps:$4 sm:$0xff]   ;;  %v1477_v1 = vld [vmem:[%s2118_s0 + $0x124] ss:$20 sps:$4 sm:$0xff]   ;;  %v1485_v8 = vld [vmem:[%s2118_s0 + $0x60] ss:$20 sps:$4 sm:$0xff]  }
  0x18   :  { %1236 = vmatpush3.bf16.msra.mxu0 %v1419_v22  ;;  %v1481_v4 = vld [vmem:[%s2118_s0 + $0x10] ss:$20 sps:$4 sm:$0xff]   ;;  %v1483_v6 = vld [vmem:[%s2118_s0 + $0x38] ss:$20 sps:$4 sm:$0xff]   ;;  %v1486_v9 = vld [vmem:[%s2118_s0 + $0x100] ss:$20 sps:$4 sm:$0xff]  }
  0x19   :  { %1300 = vmatpush3.bf16.msra.mxu1 %v1420_v23  ;;  %1237 = vmatprep.subr.bf16.mxu0 %v1421_v24  ;;  %v1482_v5 = vld [vmem:[%s2118_s0 + $0xb0] ss:$20 sps:$4 sm:$0xff]   ;;  %v1484_v7 = vld [vmem:[%s2118_s0 + $0xd8] ss:$20 sps:$4 sm:$0xff]   ;;  %v1487_v10 = vld [vmem:[%s2118_s0 + $0x88] ss:$20 sps:$4 sm:$0xff]  }
  0x1a   :  { %1301 = vmatprep.subr.bf16.mxu1 %v1422_v25  ;;  %v1488_v11 = vld [vmem:[%s2118_s0 + $0x128] ss:$20 sps:$4 sm:$0xff]  }
  0x1c   :  { %1238 = vmatpush3.bf16.msra.mxu0 %v1423_v26 }
  0x1d   :  { %1302 = vmatpush3.bf16.msra.mxu1 %v1424_v27  ;;  %1239 = vmatprep.subr.bf16.mxu0 %v1425_v28 }
  0x1e   :  { %1303 = vmatprep.subr.bf16.mxu1 %v1426_v29 }
  0x20   :  { %1240 = vmatpush3.bf16.msra.mxu0 %v1427_v30 }
  0x21   :  { %1304 = vmatpush3.bf16.msra.mxu1 %v1428_v31  ;;  %1365 = vmatprep.subr.bf16.mxu0 %v1435_v36 }
  0x22   :  { %1389 = vmatprep.subr.bf16.mxu1 %v1435_v36 }
  0x23   :  { %615 = vmatmul.mubr.bf16.vlgmr.msra.gmra.mxu0 %v1429_v32 }
  0x24   :  { %712 = vmatmul.mubr.bf16.vlgmr.msra.gmra.mxu1 %v1432_v34  ;;  %1366 = vmatpush3.bf16.msra.mxu0 %v1435_v36 }
  0x25   :  { %1393 = vmatpush3.bf16.msra.mxu1 %v1435_v36  ;;  %622 = vmatprep.mubr.bf16.mxu0 %v1436_v37 }
  0x26   :  { %719 = vmatprep.mubr.bf16.mxu1 %v1438_v38  ;;  %1367 = vmatprep.subr.bf16.mxu0 %v1448_v42 }
  0x27   :  { %1390 = vmatprep.subr.bf16.mxu1 %v1448_v42 }
  0x28   :  { %1368 = vmatpush3.bf16.msra.mxu0 %v1448_v42 }
  0x29   :  { %1394 = vmatpush3.bf16.msra.mxu1 %v1448_v42  ;;  %1369 = vmatprep.subr.bf16.mxu0 %v1461_v46 }
  0x2a   :  { %1391 = vmatprep.subr.bf16.mxu1 %v1461_v46 }
  0x2b   :  { %623 = vmatmul.mubr.bf16.gmra.mxu0 %v1440_v39 }
  0x2c   :  { %720 = vmatmul.mubr.bf16.gmra.mxu1 %v1441_v40  ;;  %630 = vmatprep.mubr.bf16.mxu0 %v1442_v41 }
  0x2d   :  { %727 = vmatprep.mubr.bf16.mxu1 %v1444_v43  ;;  %1370 = vmatpush3.bf16.msra.mxu0 %v1461_v46 }
  0x2e   :  { %1395 = vmatpush3.bf16.msra.mxu1 %v1461_v46  ;;  %1371 = vmatprep.subr.bf16.mxu0 %v1474_v49 }
  0x2f   :  { %1392 = vmatprep.subr.bf16.mxu1 %v1474_v49 }
  0x31   :  { %1372 = vmatpush3.bf16.msra.mxu0 %v1474_v49 }
  0x32   :  { %1396 = vmatpush3.bf16.msra.mxu1 %v1474_v49 }
  0x33   :  { %631 = vmatmul.mubr.bf16.gmra.mxu0 %v1446_v44 }
  0x34   :  { %728 = vmatmul.mubr.bf16.gmra.mxu1 %v1447_v45  ;;  %638 = vmatprep.mubr.bf16.mxu0 %v1449_v47 }
  0x35   :  { %735 = vmatprep.mubr.bf16.mxu1 %v1451_v48 }
  0x3b   :  { %639 = vmatmul.mubr.bf16.gmra.mxu0 %v1453_v50 }
  0x3c   :  { %736 = vmatmul.mubr.bf16.gmra.mxu1 %v1454_v51  ;;  %646 = vmatprep.mubr.bf16.mxu0 %v1455_v52 }
  0x3d   :  { %743 = vmatprep.mubr.bf16.mxu1 %v1457_v53 }
  0x43   :  { %647 = vmatmul.mubr.bf16.gmra.mxu0 %v1459_v54 }
  0x44   :  { %744 = vmatmul.mubr.bf16.gmra.mxu1 %v1460_v55  ;;  %654 = vmatprep.mubr.bf16.mxu0 %v1462_v56 }
  0x45   :  { %751 = vmatprep.mubr.bf16.mxu1 %v1464_v57 }
  0x4b   :  { %655 = vmatmul.mubr.bf16.gmra.mxu0 %v1466_v58 }
  0x4c   :  { %752 = vmatmul.mubr.bf16.gmra.mxu1 %v1467_v59  ;;  %662 = vmatprep.mubr.bf16.mxu0 %v1468_v60 }
  0x4d   :  { %759 = vmatprep.mubr.bf16.mxu1 %v1470_v61  ;;  %v1848_v61 = vld [vmem:[%s2119_s4 + $0x8] sm:$0xff]  }
  0x53   :  { %663 = vmatmul.mubr.bf16.gmra.mxu0 %v1472_v62 }
  0x54   :  { %760 = vmatmul.mubr.bf16.gmra.mxu1 %v1473_v63  ;;  %670 = vmatprep.mubr.bf16.mxu0 %v1475_v0  ;;  %v1855_v63 = vld [vmem:[%s2119_s4 + $0x28] sm:$0xff]   ;;  %v1860_v0 = vld [vmem:[%s2119_s4] sm:$0xff]  }
  0x55   :  { %767 = vmatprep.mubr.bf16.mxu1 %v1477_v1  ;;  %v1865_v1 = vld [vmem:[%s2119_s4 + $0x20] sm:$0xff]  }
  0x5b   :  { %671 = vmatmul.mubr.bf16.gmra.mxu0 %v1479_v2 }
  0x5c   :  { %768 = vmatmul.mubr.bf16.gmra.mxu1 %v1480_v3  ;;  %1373 = vmatprep.mubr.msk.bf16.mxu0 %vm557_vm0, %v1481_v4  ;;  %v1872_v3 = vld [vmem:[%s2119_s4 + $0x18] sm:$0xff]  }
  0x5d   :  { %1381 = vmatprep.mubr.msk.bf16.mxu1 %vm557_vm0, %v1482_v5  ;;  %v1879_v5 = vld [vmem:[%s2119_s4 + $0x38] sm:$0xff]  }
  0x63   :  { %1374 = vmatmul.mubr.msk.bf16.vlgmr.msra.gmra.mxu0 %vm557_vm0, %v1483_v6  ;;  %v1884_v6 = vld [vmem:[%s2119_s4 + $0x10] sm:$0xff]  }
  0x64   :  { %1382 = vmatmul.mubr.msk.bf16.vlgmr.msra.gmra.mxu1 %vm557_vm0, %v1484_v7  ;;  %1377 = vmatprep.mubr.msk.bf16.mxu0 %vm557_vm0, %v1485_v8  ;;  %v1889_v7 = vld [vmem:[%s2119_s4 + $0x30] sm:$0xff]  }
  0x65   :  { %1385 = vmatprep.mubr.msk.bf16.mxu1 %vm557_vm0, %v1486_v9 }
  0x6b   :  { %1378 = vmatmul.mubr.msk.bf16.gmra.mxu0 %vm557_vm0, %v1487_v10 }
  0x6c   :  { %1386 = vmatmul.mubr.msk.bf16.gmra.mxu1 %vm557_vm0, %v1488_v11 }
  0xe3   :  { %v1755_v12 = vpop.f32.mrf.mxu0 }
  0xe4   :  { %v1757_v13 = vpop.f32.mrf.mxu1 }
  0xe5   :  { %v1759_v14 = vpop.f32.mrf.mxu0 }
  0xe6   :  { %v1761_v15 = vpop.f32.mrf.mxu1 }
  0xe7   :  { %v1763_v16 = vpop.f32.mrf.mxu0 }
  0xe8   :  { %v1765_v17 = vpop.f32.mrf.mxu1 }
  0xe9   :  { %v1767_v18 = vpop.f32.mrf.mxu0 }
  0xea   :  { %v1769_v19 = vpop.f32.mrf.mxu1 }
  0xeb   :  { %v1771_v20 = vpop.f32.mrf.mxu0 }
  0xec   :  { %v1773_v21 = vpop.f32.mrf.mxu1 }
  0xed   :  { %v1775_v22 = vpop.f32.mrf.mxu0 }
  0xee   :  { %v1777_v23 = vpop.f32.mrf.mxu1  ;;  %v1249_v9 = vadd.f32 %v1775_v22, %v1771_v20  ;;  %v1201_v22 = vunpack.c.h.bf16 %v1872_v3 }
  0xef   :  { %v1779_v24 = vpop.f32.mrf.mxu0  ;;  %v1313_v10 = vadd.f32 %v1777_v23, %v1773_v21  ;;  %v1217_v23 = vunpack.c.h.bf16 %v1879_v5 }
  0xf0   :  { %v1781_v25 = vpop.f32.mrf.mxu1 }
  0xf1   :  { %v1783_v26 = vpop.f32.mrf.mxu0 }
  0xf2   :  { %v1785_v27 = vpop.f32.mrf.mxu1  ;;  %v1252_v11 = vadd.f32 %v1783_v26, %v1779_v24 }
  0xf3   :  { %v1787_v28 = vpop.f32.mrf.mxu0 }
  0xf4   :  { %v1789_v29 = vpop.f32.mrf.mxu1 }
  0xf5   :  { %v1791_v30 = vpop.f32.mrf.mxu0 }
  0xf6   :  { %v1793_v31 = vpop.f32.mrf.mxu1 }
  0xf7   :  { %v1795_v32 = vpop.f32.mrf.mxu0 }
  0xf8   :  { %v1797_v33 = vpop.f32.mrf.mxu1 }
  0xf9   :  { %v1799_v34 = vpop.f32.mrf.mxu0 }
  0xfa   :  { %v1801_v35 = vpop.f32.mrf.mxu1 }
  0xfb   :  { %v1803_v36 = vpop.f32.mrf.mxu0 }
  0xfc   :  { %v1805_v37 = vpop.f32.mrf.mxu1 }
  0xfd   :  { %v1807_v38 = vpop.f32.mrf.mxu0 }
  0xfe   :  { %v1809_v39 = vpop.f32.mrf.mxu1 }
  0xff   :  { %v1811_v40 = vpop.f32.mrf.mxu0  ;;  %v1325_v20 = vadd.f32 %v1809_v39, %v1805_v37 }
 0x100   :  { %v1813_v41 = vpop.f32.mrf.mxu1 }
 0x101   :  { %v1815_v42 = vpop.f32.mrf.mxu0 }
 0x102   :  { %v1817_v43 = vpop.f32.mrf.mxu1 }
 0x103   :  { %v1819_v44 = vpop.f32.mrf.mxu0 }
 0x104   :  { %v1821_v45 = vpop.f32.mrf.mxu1 }
 0x105   :  { %v1823_v46 = vpop.f32.mrf.mxu0 }
 0x106   :  { %v1825_v47 = vpop.f32.mrf.mxu1  ;;  %v1267_v39 = vadd.f32 %v1823_v46, %v1819_v44 }
 0x107   :  { %v1827_v48 = vpop.f32.mrf.mxu0 }
 0x108   :  { %v1829_v49 = vpop.f32.mrf.mxu1 }
 0x109   :  { %v1831_v50 = vpop.f32.mrf.mxu0 }
 0x10a   :  { %v1833_v51 = vpop.f32.mrf.mxu1 }
 0x10b   :  { %v1271_v52 = vpop.f32.mrf.mxu0 }
 0x10c   :  { %v1335_v53 = vpop.f32.mrf.mxu1 }
 0x10d   :  { %v1272_v54 = vpop.f32.mrf.mxu0 }
 0x10e   :  { %v1336_v55 = vpop.f32.mrf.mxu1  ;;  %v1273_v24 = vadd.f32 %v1272_v54, %v1271_v52  ;;  %v1331_v52 = vadd.f32 %v1825_v47, %v1821_v45 }
 0x10f   :  { %v1835_v56 = vpop.f32.mrf.mxu0 }
 0x110   :  { %v1837_v57 = vpop.f32.mrf.mxu1 }
 0x111   :  { %2123 = vst [vmem:[#allocation2_spill] sm:$0xff] %v1837_v57  ;;  %v1839_v58 = vpop.f32.mrf.mxu0  ;;  %v1310_v57 = vadd.f32 %v1769_v19, %v1765_v17  ;;  %v1322_v17 = vadd.f32 %v1801_v35, %v1797_v33  ;;  %v1261_v19 = vadd.f32 %v1807_v38, %v1803_v36  ;;  %v1328_v35 = vadd.f32 %v1817_v43, %v1813_v41 }
 0x112   :  { %2124 = vst [vmem:[#allocation3_spill] sm:$0xff] %v1839_v58  ;;  %v1841_v59 = vpop.f32.mrf.mxu1 }
 0x113   :  { %2125 = vst [vmem:[#allocation4_spill] sm:$0xff] %v1841_v59  ;;  %v1843_v60 = vpop.f32.mrf.mxu0  ;;  %v1246_v59 = vadd.f32 %v1767_v18, %v1763_v16  ;;  %v1258_v16 = vadd.f32 %v1799_v34, %v1795_v32  ;;  %v1264_v34 = vadd.f32 %v1815_v42, %v1811_v40  ;;  %v1334_v40 = vadd.f32 %v1833_v51, %v1829_v49  ;;  %v1967_v49 = vld [vmem:[%s2120_s2] ss:$0 sm:$0xff] }
 0x114   :  { %2126 = vst [vmem:[#allocation5_spill] sm:$0xff] %v1843_v60  ;;  %v1850_v62 = vpop.f32.mrf.mxu1 }
 0x115   :  { %2127 = vst [vmem:[#allocation6_spill] sm:$0xff] %v1850_v62  ;;  %v1867_v2 = vpop.f32.mrf.mxu0  ;;  %v717_v33 = vadd.f32 %v1310_v57, %v1246_v59  ;;  %v1943_v38 = vadd.f32 %v1322_v17, %v1258_v16  ;;  %v1969_v16 = vadd.f32 %v1328_v35, %v1264_v34 }
 0x116   :  { %2128 = vst [vmem:[#allocation7_spill] sm:$0xff] %v1867_v2  ;;  %v1874_v4 = vpop.f32.mrf.mxu1  ;;  %v1307_v2 = vadd.f32 %v1761_v15, %v1757_v13  ;;  %v1319_v15 = vadd.f32 %v1793_v31, %v1789_v29 }
 0x117   :  { %2129 = vst [vmem:[#allocation8_spill] sm:$0xff] %v1874_v4  ;;  %v1891_v8 = vpop.f32.mrf.mxu0  ;;  %v1243_v4 = vadd.f32 %v1759_v14, %v1755_v12  ;;  %v1316_v12 = vadd.f32 %v1785_v27, %v1781_v25  ;;  %v1255_v14 = vadd.f32 %v1791_v30, %v1787_v28  ;;  %v1337_v25 = vadd.f32 %v1336_v55, %v1335_v53 }
 0x118   :  { %2130 = vst [vmem:[#allocation9_spill] sm:$0xff] %v1891_v8  ;;  %v1344_v62 = vpop.f32.mrf.mxu1  ;;  %v1200_v8 = vunpack.c.l.bf16 %v1872_v3  ;;  %v1197_v27 = vunpack.c.h.bf16 %v1884_v6  ;;  %v1213_v28 = vunpack.c.h.bf16 %v1889_v7  ;;  %v722_v30 = vadd.f32 %v1313_v10, %v1249_v9  ;;  %v2132_v43 = vld [vmem:[#allocation2_spill] sm:$0xff] }
 0x119   :  { %v1281_v58 = vpop.f32.mrf.mxu0  ;;  %v714_v31 = vadd.f32 %v1307_v2, %v1243_v4  ;;  %v725_v32 = vadd.f32 %v1316_v12, %v1252_v11  ;;  %v1941_v37 = vadd.f32 %v1319_v15, %v1255_v14  ;;  %v1270_v53 = vadd.f32 %v1831_v50, %v1827_v48  ;;  %v2131_v41 = vld [vmem:[#allocation3_spill] sm:$0xff] }
 0x11a   :  { %v1345_v60 = vpop.f32.mrf.mxu1  ;;  %v1951_v55 = vadd.f32 %v1325_v20, %v1261_v19  ;;  %v1276_v42 = vadd.f32 %v2131_v41, %v1835_v56  ;;  %v2133_v57 = vld [vmem:[#allocation4_spill] sm:$0xff]  ;;  %v754_v44 = vadd.f32 %v1337_v25, %v1273_v24  ;;  %v1974_v20 = vld [vmem:[%s2121_s3] ss:$0 sm:$0xff] }
 0x11b   :  { %v1283_v13 = vpop.f32.mrf.mxu0  ;;  %v1340_v59 = vadd.f32 %v2133_v57, %v2132_v43  ;;  %v2134_v46 = vld [vmem:[#allocation5_spill] sm:$0xff]  ;;  %v1346_v11 = vadd.f32 %v1345_v60, %v1344_v62  ;;  %v746_v62 = vadd.f32 %v1331_v52, %v1267_v39  ;;  %v2139_v57 = vunpack.c.l.bf16 %v1848_v61 }
 0x11c   :  { %v1347_v18 = vpop.f32.mrf.mxu1  ;;  %v2136_v47 = vld [vmem:[#allocation6_spill] sm:$0xff] }
 0x11d   :  { %v1284_v21 = vpop.f32.mrf.mxu0  ;;  %v2135_v4 = vld [vmem:[#allocation7_spill] sm:$0xff] }
 0x11e   :  { %v1348_v26 = vpop.f32.mrf.mxu1  ;;  %v1279_v45 = vadd.f32 %v2135_v4, %v2134_v46  ;;  %v2137_v9 = vld [vmem:[#allocation8_spill] sm:$0xff]  ;;  %v1285_v51 = vadd.f32 %v1284_v21, %v1283_v13  ;;  %v749_v21 = vadd.f32 %v1334_v40, %v1270_v53 }
 0x11f   :  { %v1286_v29 = vpop.f32.mrf.mxu0  ;;  %v1343_v48 = vadd.f32 %v2137_v9, %v2136_v47  ;;  %v2138_v50 = vld [vmem:[#allocation9_spill] sm:$0xff]  ;;  %v1349_v56 = vadd.f32 %v1348_v26, %v1347_v18  ;;  %v757_v18 = vadd.f32 %v1340_v59, %v1276_v42 }
 0x120   :  { %v1350_v36 = vpop.f32.mrf.mxu1  ;;  %v1282_v10 = vadd.f32 %v1281_v58, %v2138_v50 }
 0x121   :  { %v1287_v54 = vpop.f32.mrf.mxu0  ;;  %v1978_v34 = vadd.f32 %v1343_v48, %v1279_v45  ;;  %v770_v52 = vadd.f32 %v1349_v56, %v1285_v51 }
 0x122   :  { %v1351_v2 = vpop.f32.mrf.mxu1  ;;  %v1288_v17 = vadd.f32 %v1287_v54, %v1286_v29  ;;  %v1980_v35 = vadd.f32 %v1346_v11, %v1282_v10  ;;  %v2141_v11 = vunpack.c.l.bf16 %v1860_v0 }
 0x123   :  { %v1375_v12 = vpop.f32.mrf.mxu0  ;;  %v1352_v19 = vadd.f32 %v1351_v2, %v1350_v36 }
 0x124   :  { %v819_v14 = vadd.f32 %v1375_v12, %v722_v30  ;;  %v1383_v15 = vpop.f32.mrf.mxu1 }
 0x125   :  { %v851_v58 = vadd.f32 %v1383_v15, %v754_v44  ;;  %v810_v60 = vpop.f32.mrf.mxu0  ;;  %v1986_v43 = vadd.f32 %v1352_v19, %v1288_v17  ;;  %v2142_v15 = vunpack.c.l.bf16 %v1865_v1 }
 0x126   :  { %v882_v24 = vmul.f32 %v1967_v49, %v819_v14  ;;  %v811_v25 = vadd.f32 %v810_v60, %v714_v31  ;;  %v842_v13 = vpop.f32.mrf.mxu1 }
 0x127   :  { %v890_v26 = vmul.f32 %v1967_v49, %v851_v58  ;;  %v843_v30 = vadd.f32 %v842_v13, %v746_v62  ;;  %v1376_v29 = vpop.f32.mrf.mxu0 }
 0x128   :  { %v905_v36 = vadd.f32 %v1974_v20, %v882_v24  ;;  %v880_v54 = vmul.f32 %v1967_v49, %v811_v25  ;;  %v822_v41 = vadd.f32 %v1376_v29, %v725_v32  ;;  %v1384_v39 = vpop.f32.mrf.mxu1  ;;  %v2140_v32 = vunpack.c.l.bf16 %v1855_v63 }
 0x129   :  { %v913_v31 = vadd.f32 %v1974_v20, %v890_v26  ;;  %v888_v42 = vmul.f32 %v1967_v49, %v843_v30  ;;  %v854_v53 = vadd.f32 %v1384_v39, %v757_v18  ;;  %v813_v40 = vpop.f32.mrf.mxu0  ;;  %v2143_v25 = vunpack.c.h.bf16 %v1848_v61 }
 0x12a   :  { %v953_v59 = vadd.f32 %v2139_v57, %v905_v36  ;;  %v903_v2 = vadd.f32 %v1974_v20, %v880_v54  ;;  %v883_v44 = vmul.f32 %v1967_v49, %v822_v41  ;;  %v814_v46 = vadd.f32 %v813_v40, %v717_v33  ;;  %v845_v4 = vpop.f32.mrf.mxu1 }
 0x12b   :  { %v961_v45 = vadd.f32 %v2140_v32, %v913_v31  ;;  %v911_v47 = vadd.f32 %v1974_v20, %v888_v42  ;;  %v891_v9 = vmul.f32 %v1967_v49, %v854_v53  ;;  %v846_v48 = vadd.f32 %v845_v4, %v749_v21  ;;  %v1379_v50 = vpop.f32.mrf.mxu0 }
 0x12c   :  { %v969_v10 = vmax.f32 %v953_v59, 0.0  ;;  %v951_v12 = vadd.f32 %v2141_v11, %v903_v2  ;;  %v906_v51 = vadd.f32 %v1974_v20, %v883_v44  ;;  %v881_v56 = vmul.f32 %v1967_v49, %v814_v46  ;;  %v1387_v14 = vpop.f32.mrf.mxu1 }
 0x12d   :  { %v977_v33 = vmax.f32 %v961_v45, 0.0  ;;  %v959_v17 = vadd.f32 %v2142_v15, %v911_v47  ;;  %v914_v19 = vadd.f32 %v1974_v20, %v891_v9  ;;  %v889_v58 = vmul.f32 %v1967_v49, %v846_v48  ;;  %v826_v60 = vpop.f32.mrf.mxu0 }
 0x12e   :  { %v1172_v62 = vpack.c.bf16 %v969_v10, %v969_v10  ;;  %v967_v24 = vmax.f32 %v951_v12, 0.0  ;;  %v954_v13 = vadd.f32 %v2143_v25, %v906_v51  ;;  %v904_v18 = vadd.f32 %v1974_v20, %v881_v56  ;;  %v858_v21 = vpop.f32.mrf.mxu1 }
 0x12f   :  { %v1180_v26 = vpack.c.bf16 %v977_v33, %v977_v33  ;;  %v975_v30 = vmax.f32 %v959_v17, 0.0  ;;  %v2144_v29 = vunpack.c.h.bf16 %v1855_v63  ;;  %v912_v54 = vadd.f32 %v1974_v20, %v889_v58  ;;  %v1380_v41 = vpop.f32.mrf.mxu0 }
 0x130   :  { %1050 = vst.msk [vmem:[%s2122_s5 + $0x8] sm:$0xf] %vm1047_vm1, %v1172_v62  ;;  %v1170_v39 = vpack.c.bf16 %v967_v24, %v967_v24  ;;  %v970_v31 = vmax.f32 %v954_v13, 0.0  ;;  %v2145_v61 = vunpack.c.h.bf16 %v1860_v0  ;;  %v835_v53 = vadd.f32 %v1379_v50, %v1951_v55  ;;  %v1388_v40 = vpop.f32.mrf.mxu1 }
 0x131   :  { %v962_v36 = vadd.f32 %v2144_v29, %v914_v19  ;;  %1058 = vst.msk [vmem:[%s2122_s5 + $0x28] sm:$0xf] %vm1047_vm1, %v1180_v26  ;;  %v1178_v63 = vpack.c.bf16 %v975_v30, %v975_v30  ;;  %v2146_v59 = vunpack.c.h.bf16 %v1865_v1  ;;  %v867_v44 = vadd.f32 %v1387_v14, %v770_v52  ;;  %v829_v47 = vpop.f32.mrf.mxu0 }
 0x132   :  { %v952_v42 = vadd.f32 %v2145_v61, %v904_v18  ;;  %1048 = vst.msk [vmem:[%s2122_s5] sm:$0xf] %vm1047_vm1, %v1170_v39  ;;  %v1173_v0 = vpack.c.bf16 %v970_v31, %v970_v31  ;;  %v886_v55 = vmul.f32 %v1967_v49, %v835_v53  ;;  %v827_v4 = vadd.f32 %v826_v60, %v1941_v37  ;;  %v861_v10 = vpop.f32.mrf.mxu1 }
 0x133   :  { %v978_v57 = vmax.f32 %v962_v36, 0.0  ;;  %v960_v2 = vadd.f32 %v2146_v59, %v912_v54  ;;  %1056 = vst.msk [vmem:[%s2122_s5 + $0x20] sm:$0xf] %vm1047_vm1, %v1178_v63  ;;  %v894_v52 = vmul.f32 %v1967_v49, %v867_v44  ;;  %v859_v45 = vadd.f32 %v858_v21, %v1978_v34 }
 0x134   :  { %v968_v46 = vmax.f32 %v952_v42, 0.0  ;;  %1051 = vst.msk [vmem:[%s2122_s5 + $0xc] sm:$0xf] %vm1047_vm1, %v1173_v0  ;;  %v909_v37 = vadd.f32 %v1974_v20, %v886_v55  ;;  %v884_v48 = vmul.f32 %v1967_v49, %v827_v4  ;;  %v838_v50 = vadd.f32 %v1380_v41, %v1969_v16 }
 0x135   :  { %v1181_v32 = vpack.c.bf16 %v978_v57, %v978_v57  ;;  %v976_v1 = vmax.f32 %v960_v2, 0.0  ;;  %v917_v11 = vadd.f32 %v1974_v20, %v894_v52  ;;  %v892_v12 = vmul.f32 %v1967_v49, %v859_v45 }
 0x136   :  { %v1171_v9 = vpack.c.bf16 %v968_v46, %v968_v46  ;;  %v870_v51 = vadd.f32 %v1388_v40, %v1986_v43  ;;  %v957_v16 = vadd.f32 %v1200_v8, %v909_v37  ;;  %v907_v56 = vadd.f32 %v1974_v20, %v884_v48 }
 0x137   :  { %1059 = vst.msk [vmem:[%s2122_s5 + $0x2c] sm:$0xf] %vm1047_vm1, %v1181_v32  ;;  %v1179_v34 = vpack.c.bf16 %v976_v1, %v976_v1  ;;  %v887_v14 = vmul.f32 %v1967_v49, %v838_v50  ;;  %v830_v33 = vadd.f32 %v829_v47, %v1943_v38  ;;  %v2147_v43 = vunpack.c.l.bf16 %v1879_v5 }
 0x138   :  { %1049 = vst.msk [vmem:[%s2122_s5 + $0x4] sm:$0xf] %vm1047_vm1, %v1171_v9  ;;  %v915_v17 = vadd.f32 %v1974_v20, %v892_v12  ;;  %v895_v19 = vmul.f32 %v1967_v49, %v870_v51  ;;  %v862_v8 = vadd.f32 %v861_v10, %v1980_v35  ;;  %v973_v58 = vmax.f32 %v957_v16, 0.0 }
 0x139   :  { %1057 = vst.msk [vmem:[%s2122_s5 + $0x24] sm:$0xf] %vm1047_vm1, %v1179_v34  ;;  %v965_v15 = vadd.f32 %v2147_v43, %v917_v11  ;;  %v2148_v60 = vunpack.c.l.bf16 %v1884_v6  ;;  %v910_v38 = vadd.f32 %v1974_v20, %v887_v14  ;;  %v885_v24 = vmul.f32 %v1967_v49, %v830_v33 }
 0x13a   :  { %v2149_v13 = vunpack.c.l.bf16 %v1889_v7  ;;  %v918_v21 = vadd.f32 %v1974_v20, %v895_v19  ;;  %v893_v26 = vmul.f32 %v1967_v49, %v862_v8  ;;  %v1176_v30 = vpack.c.bf16 %v973_v58, %v973_v58 }
 0x13b   :  { %v955_v62 = vadd.f32 %v2148_v60, %v907_v56  ;;  %v981_v25 = vmax.f32 %v965_v15, 0.0  ;;  %v958_v35 = vadd.f32 %v1201_v22, %v910_v38  ;;  %v908_v36 = vadd.f32 %v1974_v20, %v885_v24 }
 0x13c   :  { %v963_v18 = vadd.f32 %v2149_v13, %v915_v17  ;;  %v966_v39 = vadd.f32 %v1217_v23, %v918_v21  ;;  %v916_v31 = vadd.f32 %v1974_v20, %v893_v26  ;;  %1054 = vst.msk [vmem:[%s2122_s5 + $0x18] sm:$0xf] %vm1047_vm1, %v1176_v30 }
 0x13d   :  { %v971_v29 = vmax.f32 %v955_v62, 0.0  ;;  %v1184_v54 = vpack.c.bf16 %v981_v25, %v981_v25  ;;  %v974_v61 = vmax.f32 %v958_v35, 0.0  ;;  %v956_v3 = vadd.f32 %v1197_v27, %v908_v36 }
 0x13e   :  { %v979_v41 = vmax.f32 %v963_v18, 0.0  ;;  %v982_v5 = vmax.f32 %v966_v39, 0.0  ;;  %v964_v23 = vadd.f32 %v1213_v28, %v916_v31 }
 0x13f   :  { %v1174_v49 = vpack.c.bf16 %v971_v29, %v971_v29  ;;  %1062 = vst.msk [vmem:[%s2122_s5 + $0x38] sm:$0xf] %vm1047_vm1, %v1184_v54  ;;  %v1177_v20 = vpack.c.bf16 %v974_v61, %v974_v61  ;;  %v972_v42 = vmax.f32 %v956_v3, 0.0 }
 0x140   :  { %v1182_v22 = vpack.c.bf16 %v979_v41, %v979_v41  ;;  %v1185_v6 = vpack.c.bf16 %v982_v5, %v982_v5  ;;  %v980_v27 = vmax.f32 %v964_v23, 0.0 }
 0x141   :  { %1052 = vst.msk [vmem:[%s2122_s5 + $0x10] sm:$0xf] %vm1047_vm1, %v1174_v49  ;;  %1055 = vst.msk [vmem:[%s2122_s5 + $0x1c] sm:$0xf] %vm1047_vm1, %v1177_v20  ;;  %v1175_v7 = vpack.c.bf16 %v972_v42, %v972_v42 }
 0x142   :  { %1060 = vst.msk [vmem:[%s2122_s5 + $0x30] sm:$0xf] %vm1047_vm1, %v1182_v22  ;;  %1063 = vst.msk [vmem:[%s2122_s5 + $0x3c] sm:$0xf] %vm1047_vm1, %v1185_v6  ;;  %v1183_v28 = vpack.c.bf16 %v980_v27, %v980_v27 }
 0x143   :  { %1053 = vst.msk [vmem:[%s2122_s5 + $0x14] sm:$0xf] %vm1047_vm1, %v1175_v7 }
 0x144   :  { %1061 = vst.msk [vmem:[%s2122_s5 + $0x34] sm:$0xf] %vm1047_vm1, %v1183_v28 }

// kernel: feature_extractor_forward.19
= control target key start
LH: loop header
LB: loop body
LE: loop exit
PB: predicated region body
PF: predicated region fallthrough
CT: control target
= control target key end

     0   :  { %vm368_vm0 = vcmask 523264   ;;  %s940_s1 = inlined_call_operand.vmem [shape: bf16[576,128], index: 1, kind: input, shape index: {}]   ;;  %s941_s0 = inlined_call_operand.vmem [shape: bf16[32,576], index: 0, kind: input, shape index: {}]   ;;  %s942_s2 = inlined_call_operand.vmem [shape: f32[1,128], index: 2, kind: input, shape index: {}]   ;;  %s943_s3 = inlined_call_operand.vmem [shape: f32[1,128], index: 3, kind: input, shape index: {}]   ;;  %s944_s4 = inlined_call_operand.vmem [shape: bf16[32,128], index: 4, kind: output, shape index: {}]  }
   0x1   :  { %v715_v0 = vld [vmem:[%s940_s1 + $0x78] sm:$0xff]   ;;  %v719_v4 = vld [vmem:[%s940_s1 + $0x70] sm:$0xff]   ;;  %v723_v8 = vld [vmem:[%s940_s1 + $0x68] sm:$0xff]  }
   0x2   :  { %v716_v1 = vld [vmem:[%s940_s1 + $0xf8] sm:$0xff]   ;;  %641 = vmatprep.subr.bf16.mxu0 %v715_v0  ;;  %v720_v5 = vld [vmem:[%s940_s1 + $0xf0] sm:$0xff]   ;;  %v724_v9 = vld [vmem:[%s940_s1 + $0xe8] sm:$0xff]  }
   0x3   :  { %v717_v2 = vld [vmem:[%s940_s1 + $0x38] sm:$0xff]   ;;  %669 = vmatprep.subr.bf16.mxu1 %v716_v1  ;;  %v721_v6 = vld [vmem:[%s940_s1 + $0x30] sm:$0xff]   ;;  %v725_v10 = vld [vmem:[%s940_s1 + $0x28] sm:$0xff]  }
   0x4   :  { %v718_v3 = vld [vmem:[%s940_s1 + $0xb8] sm:$0xff]   ;;  %642 = vmatpush3.bf16.msra.mxu0 %v717_v2  ;;  %v722_v7 = vld [vmem:[%s940_s1 + $0xb0] sm:$0xff]   ;;  %v726_v11 = vld [vmem:[%s940_s1 + $0xa8] sm:$0xff]  }
   0x5   :  { %670 = vmatpush3.bf16.msra.mxu1 %v718_v3  ;;  %643 = vmatprep.subr.bf16.mxu0 %v719_v4  ;;  %v727_v12 = vld [vmem:[%s940_s1 + $0x60] sm:$0xff]   ;;  %v731_v16 = vld [vmem:[%s940_s1 + $0x58] sm:$0xff]   ;;  %v735_v20 = vld [vmem:[%s940_s1 + $0x50] sm:$0xff]  }
   0x6   :  { %671 = vmatprep.subr.bf16.mxu1 %v720_v5  ;;  %v728_v13 = vld [vmem:[%s940_s1 + $0xe0] sm:$0xff]   ;;  %v732_v17 = vld [vmem:[%s940_s1 + $0xd8] sm:$0xff]   ;;  %v736_v21 = vld [vmem:[%s940_s1 + $0xd0] sm:$0xff]  }
   0x7   :  { %v729_v14 = vld [vmem:[%s940_s1 + $0x20] sm:$0xff]   ;;  %v733_v18 = vld [vmem:[%s940_s1 + $0x18] sm:$0xff]   ;;  %v737_v22 = vld [vmem:[%s940_s1 + $0x10] sm:$0xff]  }
   0x8   :  { %644 = vmatpush3.bf16.msra.mxu0 %v721_v6  ;;  %v730_v15 = vld [vmem:[%s940_s1 + $0xa0] sm:$0xff]   ;;  %v734_v19 = vld [vmem:[%s940_s1 + $0x98] sm:$0xff]   ;;  %v738_v23 = vld [vmem:[%s940_s1 + $0x90] sm:$0xff]  }
   0x9   :  { %672 = vmatpush3.bf16.msra.mxu1 %v722_v7  ;;  %645 = vmatprep.subr.bf16.mxu0 %v723_v8  ;;  %v739_v24 = vld [vmem:[%s940_s1 + $0x48] sm:$0xff]   ;;  %v743_v28 = vld [vmem:[%s940_s1 + $0x40] sm:$0xff]   ;;  %v753_v36 = vld [vmem:[%s940_s1 + $0x118] sm:$0xff]  }
   0xa   :  { %673 = vmatprep.subr.bf16.mxu1 %v724_v9  ;;  %v740_v25 = vld [vmem:[%s940_s1 + $0xc8] sm:$0xff]   ;;  %v744_v29 = vld [vmem:[%s940_s1 + $0xc0] sm:$0xff]   ;;  %v754_v37 = vld [vmem:[%s940_s1 + $0x110] sm:$0xff]  }
   0xb   :  { %v741_v26 = vld [vmem:[%s940_s1 + $0x8] sm:$0xff]   ;;  %v745_v30 = vld [vmem:[%s940_s1] sm:$0xff]  }
   0xc   :  { %646 = vmatpush3.bf16.msra.mxu0 %v725_v10  ;;  %v742_v27 = vld [vmem:[%s940_s1 + $0x88] sm:$0xff]   ;;  %v746_v31 = vld [vmem:[%s940_s1 + $0x80] sm:$0xff]  }
   0xd   :  { %674 = vmatpush3.bf16.msra.mxu1 %v726_v11  ;;  %647 = vmatprep.subr.bf16.mxu0 %v727_v12  ;;  %v747_v32 = vld [vmem:[%s941_s0] ss:$20 sps:$4 sm:$0xff]   ;;  %v749_v33 = vld [vmem:[%s941_s0 + $0x4] ss:$20 sps:$4 sm:$0xff]   ;;  %v750_v34 = vld [vmem:[%s941_s0 + $0x8] ss:$20 sps:$4 sm:$0xff]  }
   0xe   :  { %675 = vmatprep.subr.bf16.mxu1 %v728_v13  ;;  %v752_v35 = vld [vmem:[%s941_s0 + $0xc] ss:$20 sps:$4 sm:$0xff]   ;;  %407 = vmatprep.mubr.bf16.mxu0 %v749_v33  ;;  %v757_v39 = vld [vmem:[%s941_s0 + $0x34] ss:$20 sps:$4 sm:$0xff]   ;;  %v760_v42 = vld [vmem:[%s941_s0 + $0x30] ss:$20 sps:$4 sm:$0xff]  }
   0xf   :  { %456 = vmatprep.mubr.bf16.mxu1 %v752_v35  ;;  %v755_v38 = vld [vmem:[%s941_s0 + $0x2c] ss:$20 sps:$4 sm:$0xff]   ;;  %v759_v40 = vld [vmem:[%s941_s0 + $0x28] ss:$20 sps:$4 sm:$0xff]   ;;  %v763_v43 = vld [vmem:[%s941_s0 + $0x10] ss:$20 sps:$4 sm:$0xff]  }
  0x10   :  { %648 = vmatpush3.bf16.msra.mxu0 %v729_v14  ;;  %v761_v41 = vld [vmem:[%s940_s1 + $0x108] sm:$0xff]   ;;  %v762_v44 = vld [vmem:[%s940_s1 + $0x100] sm:$0xff]  }
  0x11   :  { %676 = vmatpush3.bf16.msra.mxu1 %v730_v15  ;;  %649 = vmatprep.subr.bf16.mxu0 %v731_v16  ;;  %v764_v45 = vld [vmem:[%s941_s0 + $0x38] ss:$20 sps:$4 sm:$0xff]   ;;  %v620_v6 = vld [vmem:[%s942_s2] ss:$0 sm:$0xff] }
  0x12   :  { %677 = vmatprep.subr.bf16.mxu1 %v732_v17  ;;  %v621_v15 = vld [vmem:[%s943_s3] ss:$0 sm:$0xff] }
  0x14   :  { %650 = vmatpush3.bf16.msra.mxu0 %v733_v18 }
  0x15   :  { %678 = vmatpush3.bf16.msra.mxu1 %v734_v19  ;;  %651 = vmatprep.subr.bf16.mxu0 %v735_v20 }
  0x16   :  { %679 = vmatprep.subr.bf16.mxu1 %v736_v21 }
  0x18   :  { %652 = vmatpush3.bf16.msra.mxu0 %v737_v22 }
  0x19   :  { %680 = vmatpush3.bf16.msra.mxu1 %v738_v23  ;;  %653 = vmatprep.subr.bf16.mxu0 %v739_v24 }
  0x1a   :  { %681 = vmatprep.subr.bf16.mxu1 %v740_v25 }
  0x1c   :  { %654 = vmatpush3.bf16.msra.mxu0 %v741_v26 }
  0x1d   :  { %682 = vmatpush3.bf16.msra.mxu1 %v742_v27  ;;  %655 = vmatprep.subr.bf16.mxu0 %v743_v28 }
  0x1e   :  { %683 = vmatprep.subr.bf16.mxu1 %v744_v29 }
  0x20   :  { %656 = vmatpush3.bf16.msra.mxu0 %v745_v30 }
  0x21   :  { %684 = vmatpush3.bf16.msra.mxu1 %v746_v31  ;;  %703 = vmatprep.subr.bf16.mxu0 %v753_v36 }
  0x23   :  { %408 = vmatmul.mubr.bf16.vlgmr.msra.gmra.mxu0 %v747_v32 }
  0x24   :  { %457 = vmatmul.mubr.bf16.vlgmr.msra.gmra.mxu1 %v750_v34  ;;  %704 = vmatpush3.bf16.msra.mxu0 %v753_v36 }
  0x25   :  { %705 = vmatprep.subr.bf16.mxu0 %v754_v37  ;;  %415 = vmatprep.mubr.bf16.mxu0 %v755_v38 }
  0x26   :  { %464 = vmatprep.mubr.bf16.mxu1 %v757_v39 }
  0x28   :  { %706 = vmatpush3.bf16.msra.mxu0 %v754_v37 }
  0x29   :  { %707 = vmatprep.subr.bf16.mxu0 %v761_v41 }
  0x2b   :  { %416 = vmatmul.mubr.bf16.gmra.mxu0 %v759_v40 }
  0x2c   :  { %465 = vmatmul.mubr.bf16.gmra.mxu1 %v760_v42  ;;  %711 = vmatprep.mubr.msk.bf16.mxu0 %vm368_vm0, %v763_v43 }
  0x2d   :  { %708 = vmatpush3.bf16.msra.mxu0 %v761_v41 }
  0x2e   :  { %709 = vmatprep.subr.bf16.mxu0 %v762_v44 }
  0x31   :  { %710 = vmatpush3.bf16.msra.mxu0 %v762_v44 }
  0x34   :  { %712 = vmatmul.mubr.msk.bf16.vlgmr.msra.gmra.mxu0 %vm368_vm0, %v764_v45 }
  0xe3   :  { %v657_v46 = vpop.f32.mrf.mxu0 }
  0xe4   :  { %v685_v47 = vpop.f32.mrf.mxu1 }
  0xe5   :  { %v658_v48 = vpop.f32.mrf.mxu0 }
  0xe6   :  { %v686_v49 = vpop.f32.mrf.mxu1  ;;  %v659_v62 = vadd.f32 %v658_v48, %v657_v46 }
  0xe7   :  { %v660_v50 = vpop.f32.mrf.mxu0  ;;  %v687_v63 = vadd.f32 %v686_v49, %v685_v47 }
  0xe8   :  { %v688_v51 = vpop.f32.mrf.mxu1 }
  0xe9   :  { %v661_v52 = vpop.f32.mrf.mxu0  ;;  %v459_v10 = vadd.f32 %v687_v63, %v659_v62 }
  0xea   :  { %v689_v53 = vpop.f32.mrf.mxu1  ;;  %v662_v7 = vadd.f32 %v661_v52, %v660_v50 }
  0xeb   :  { %v663_v54 = vpop.f32.mrf.mxu0  ;;  %v690_v8 = vadd.f32 %v689_v53, %v688_v51 }
  0xec   :  { %v691_v55 = vpop.f32.mrf.mxu1 }
  0xed   :  { %v664_v56 = vpop.f32.mrf.mxu0  ;;  %v462_v19 = vadd.f32 %v690_v8, %v662_v7 }
  0xee   :  { %v692_v57 = vpop.f32.mrf.mxu1  ;;  %v665_v58 = vadd.f32 %v664_v56, %v663_v54 }
  0xef   :  { %v693_v59 = vadd.f32 %v692_v57, %v691_v55  ;;  %v666_v60 = vpop.f32.mrf.mxu0 }
  0xf0   :  { %v694_v61 = vpop.f32.mrf.mxu1 }
  0xf1   :  { %v667_v0 = vpop.f32.mrf.mxu0  ;;  %v467_v4 = vadd.f32 %v693_v59, %v665_v58 }
  0xf2   :  { %v695_v1 = vpop.f32.mrf.mxu1  ;;  %v668_v2 = vadd.f32 %v667_v0, %v666_v60 }
  0xf3   :  { %v696_v3 = vadd.f32 %v695_v1, %v694_v61 }
  0xf4   :  { %v713_v5 = vpop.f32.mrf.mxu0 }
  0xf5   :  { %v516_v9 = vadd.f32 %v713_v5, %v467_v4  ;;  %v470_v14 = vadd.f32 %v696_v3, %v668_v2 }
  0xf6   :  { %v507_v11 = vpop.f32.mrf.mxu0 }
  0xf7   :  { %v531_v12 = vmul.f32 %v620_v6, %v516_v9  ;;  %v508_v13 = vadd.f32 %v507_v11, %v459_v10 }
  0xf8   :  { %v714_v16 = vpop.f32.mrf.mxu0 }
  0xf9   :  { %v529_v17 = vmul.f32 %v620_v6, %v508_v13  ;;  %v519_v18 = vadd.f32 %v714_v16, %v470_v14  ;;  %v542_v21 = vadd.f32 %v621_v15, %v531_v12 }
  0xfa   :  { %v510_v20 = vpop.f32.mrf.mxu0 }
  0xfb   :  { %v532_v22 = vmul.f32 %v620_v6, %v519_v18  ;;  %v511_v23 = vadd.f32 %v510_v20, %v462_v19  ;;  %v540_v24 = vadd.f32 %v621_v15, %v529_v17  ;;  %v546_v27 = vmax.f32 %v542_v21, 0.0 }
  0xfd   :  { %v543_v25 = vadd.f32 %v621_v15, %v532_v22  ;;  %v530_v26 = vmul.f32 %v620_v6, %v511_v23  ;;  %v544_v30 = vmax.f32 %v540_v24, 0.0 }
  0xff   :  { %v547_v28 = vmax.f32 %v543_v25, 0.0  ;;  %v541_v29 = vadd.f32 %v621_v15, %v530_v26 }
 0x101   :  { %v638_v31 = vpack.c.bf16 %v547_v28, %v546_v27  ;;  %v545_v32 = vmax.f32 %v541_v29, 0.0 }
 0x103   :  { %640 = vst [vmem:[%s944_s4 + $0x8] sm:$0xff] %v638_v31   ;;  %v633_v33 = vpack.c.bf16 %v545_v32, %v544_v30 }
 0x105   :  { %634 = vst [vmem:[%s944_s4] sm:$0xff] %v633_v33  }

// kernel: feature_extractor_forward.18
= control target key start
LH: loop header
LB: loop body
LE: loop exit
PB: predicated region body
PF: predicated region fallthrough
CT: control target
= control target key end

     0   :  { %vm64_vm0 = vcmask 523264   ;;  %s274_s1 = inlined_call_operand.vmem [shape: bf16[64,128], index: 1, kind: input, shape index: {}]   ;;  %s275_s0 = inlined_call_operand.vmem [shape: bf16[32,64], index: 0, kind: input, shape index: {}]   ;;  %s276_s2 = inlined_call_operand.vmem [shape: f32[1,128], index: 2, kind: input, shape index: {}]   ;;  %s277_s3 = inlined_call_operand.vmem [shape: f32[1,128], index: 3, kind: input, shape index: {}]   ;;  %s278_s4 = inlined_call_operand.vmem [shape: bf16[32,128], index: 4, kind: output, shape index: {}]  }
   0x1   :  { %v213_v0 = vld [vmem:[%s274_s1 + $0x18] sm:$0xff]   ;;  %v214_v1 = vld [vmem:[%s274_s1 + $0x10] sm:$0xff]   ;;  %v215_v2 = vld [vmem:[%s274_s1 + $0x8] sm:$0xff]  }
   0x2   :  { %201 = vmatprep.subr.bf16.mxu0 %v213_v0  ;;  %v217_v3 = vld [vmem:[%s275_s0] sm:$0xff]   ;;  %v218_v5 = vld [vmem:[%s275_s0 + $0x8] sm:$0xff]  }
   0x3   :  { %202 = vmatpush3.bf16.msra.mxu0 %v213_v0  ;;  %209 = vmatprep.mubr.msk.bf16.mxu0 %vm64_vm0, %v217_v3  ;;  %v216_v4 = vld [vmem:[%s274_s1] sm:$0xff]  }
   0x4   :  { %203 = vmatprep.subr.bf16.mxu0 %v214_v1  ;;  %v174_v7 = vld [vmem:[%s276_s2] ss:$0 sm:$0xff] }
   0x5   :  { %v175_v10 = vld [vmem:[%s277_s3] ss:$0 sm:$0xff] }
   0x7   :  { %204 = vmatpush3.bf16.msra.mxu0 %v214_v1 }
   0x8   :  { %205 = vmatprep.subr.bf16.mxu0 %v215_v2 }
   0xb   :  { %206 = vmatpush3.bf16.msra.mxu0 %v215_v2 }
   0xc   :  { %207 = vmatprep.subr.bf16.mxu0 %v216_v4 }
   0xf   :  { %208 = vmatpush3.bf16.msra.mxu0 %v216_v4 }
  0x12   :  { %210 = vmatmul.mubr.msk.bf16.vlgmr.msra.gmra.mxu0 %vm64_vm0, %v218_v5 }
  0xd2   :  { %v211_v6 = vpop.f32.mrf.mxu0 }
  0xd3   :  { %v129_v9 = vmul.f32 %v211_v6, %v174_v7 }
  0xd4   :  { %v105_v8 = vpop.f32.mrf.mxu0 }
  0xd5   :  { %v127_v12 = vmul.f32 %v174_v7, %v105_v8  ;;  %v140_v15 = vadd.f32 %v175_v10, %v129_v9 }
  0xd6   :  { %v212_v11 = vpop.f32.mrf.mxu0 }
  0xd7   :  { %v130_v13 = vmul.f32 %v212_v11, %v174_v7  ;;  %v138_v18 = vadd.f32 %v175_v10, %v127_v12 }
  0xd8   :  { %v108_v14 = vpop.f32.mrf.mxu0 }
  0xd9   :  { %v141_v16 = vadd.f32 %v175_v10, %v130_v13  ;;  %v128_v17 = vmul.f32 %v174_v7, %v108_v14 }
  0xdb   :  { %v192_v19 = vpack.c.bf16 %v141_v16, %v140_v15  ;;  %v139_v20 = vadd.f32 %v175_v10, %v128_v17 }
  0xdd   :  { %194 = vst [vmem:[%s278_s4 + $0x8] sm:$0xff] %v192_v19   ;;  %v187_v21 = vpack.c.bf16 %v139_v20, %v138_v18 }
  0xdf   :  { %188 = vst [vmem:[%s278_s4] sm:$0xff] %v187_v21  }

// kernel: feature_extractor_forward.21
= control target key start
LH: loop header
LB: loop body
LE: loop exit
PB: predicated region body
PF: predicated region fallthrough
CT: control target
= control target key end

     0   :  { %s1659_s1 = inlined_call_operand.vmem [shape: bf16[1152,128], index: 1, kind: input, shape index: {}]   ;;  %s1660_s0 = inlined_call_operand.vmem [shape: bf16[32,1152], index: 0, kind: input, shape index: {}]   ;;  %s1661_s2 = inlined_call_operand.vmem [shape: f32[1,128], index: 2, kind: input, shape index: {}]   ;;  %s1662_s3 = inlined_call_operand.vmem [shape: f32[1,128], index: 3, kind: input, shape index: {}]   ;;  %s1663_s4 = inlined_call_operand.vmem [shape: bf16[32,128], index: 4, kind: output, shape index: {}]  }
   0x1   :  { %v1254_v0 = vld [vmem:[%s1659_s1 + $0x78] sm:$0xff]   ;;  %v1258_v4 = vld [vmem:[%s1659_s1 + $0x70] sm:$0xff]   ;;  %v1262_v8 = vld [vmem:[%s1659_s1 + $0x68] sm:$0xff]  }
   0x2   :  { %v1255_v1 = vld [vmem:[%s1659_s1 + $0xf8] sm:$0xff]   ;;  %1112 = vmatprep.subr.bf16.mxu0 %v1254_v0  ;;  %v1259_v5 = vld [vmem:[%s1659_s1 + $0xf0] sm:$0xff]   ;;  %v1263_v9 = vld [vmem:[%s1659_s1 + $0xe8] sm:$0xff]  }
   0x3   :  { %v1256_v2 = vld [vmem:[%s1659_s1 + $0x38] sm:$0xff]   ;;  %1140 = vmatprep.subr.bf16.mxu1 %v1255_v1  ;;  %v1260_v6 = vld [vmem:[%s1659_s1 + $0x30] sm:$0xff]   ;;  %v1264_v10 = vld [vmem:[%s1659_s1 + $0x28] sm:$0xff]  }
   0x4   :  { %v1257_v3 = vld [vmem:[%s1659_s1 + $0xb8] sm:$0xff]   ;;  %1113 = vmatpush3.bf16.msra.mxu0 %v1256_v2  ;;  %v1261_v7 = vld [vmem:[%s1659_s1 + $0xb0] sm:$0xff]   ;;  %v1265_v11 = vld [vmem:[%s1659_s1 + $0xa8] sm:$0xff]  }
   0x5   :  { %1141 = vmatpush3.bf16.msra.mxu1 %v1257_v3  ;;  %1114 = vmatprep.subr.bf16.mxu0 %v1258_v4  ;;  %v1266_v12 = vld [vmem:[%s1659_s1 + $0x60] sm:$0xff]   ;;  %v1270_v16 = vld [vmem:[%s1659_s1 + $0x58] sm:$0xff]   ;;  %v1274_v20 = vld [vmem:[%s1659_s1 + $0x50] sm:$0xff]  }
   0x6   :  { %1142 = vmatprep.subr.bf16.mxu1 %v1259_v5  ;;  %v1267_v13 = vld [vmem:[%s1659_s1 + $0xe0] sm:$0xff]   ;;  %v1271_v17 = vld [vmem:[%s1659_s1 + $0xd8] sm:$0xff]   ;;  %v1275_v21 = vld [vmem:[%s1659_s1 + $0xd0] sm:$0xff]  }
   0x7   :  { %v1268_v14 = vld [vmem:[%s1659_s1 + $0x20] sm:$0xff]   ;;  %v1272_v18 = vld [vmem:[%s1659_s1 + $0x18] sm:$0xff]   ;;  %v1276_v22 = vld [vmem:[%s1659_s1 + $0x10] sm:$0xff]  }
   0x8   :  { %1115 = vmatpush3.bf16.msra.mxu0 %v1260_v6  ;;  %v1269_v15 = vld [vmem:[%s1659_s1 + $0xa0] sm:$0xff]   ;;  %v1273_v19 = vld [vmem:[%s1659_s1 + $0x98] sm:$0xff]   ;;  %v1277_v23 = vld [vmem:[%s1659_s1 + $0x90] sm:$0xff]  }
   0x9   :  { %1143 = vmatpush3.bf16.msra.mxu1 %v1261_v7  ;;  %1116 = vmatprep.subr.bf16.mxu0 %v1262_v8  ;;  %v1278_v24 = vld [vmem:[%s1659_s1 + $0x48] sm:$0xff]   ;;  %v1282_v28 = vld [vmem:[%s1659_s1 + $0x40] sm:$0xff]   ;;  %v1292_v36 = vld [vmem:[%s1659_s1 + $0x178] sm:$0xff]  }
   0xa   :  { %1144 = vmatprep.subr.bf16.mxu1 %v1263_v9  ;;  %v1279_v25 = vld [vmem:[%s1659_s1 + $0xc8] sm:$0xff]   ;;  %v1283_v29 = vld [vmem:[%s1659_s1 + $0xc0] sm:$0xff]   ;;  %v1293_v37 = vld [vmem:[%s1659_s1 + $0x138] sm:$0xff]  }
   0xb   :  { %v1280_v26 = vld [vmem:[%s1659_s1 + $0x8] sm:$0xff]   ;;  %v1284_v30 = vld [vmem:[%s1659_s1] sm:$0xff]   ;;  %v1294_v38 = vld [vmem:[%s1659_s1 + $0x1f8] sm:$0xff]  }
   0xc   :  { %1117 = vmatpush3.bf16.msra.mxu0 %v1264_v10  ;;  %v1281_v27 = vld [vmem:[%s1659_s1 + $0x88] sm:$0xff]   ;;  %v1285_v31 = vld [vmem:[%s1659_s1 + $0x80] sm:$0xff]   ;;  %v1295_v39 = vld [vmem:[%s1659_s1 + $0x1b8] sm:$0xff]  }
   0xd   :  { %1145 = vmatpush3.bf16.msra.mxu1 %v1265_v11  ;;  %1118 = vmatprep.subr.bf16.mxu0 %v1266_v12  ;;  %v1286_v32 = vld [vmem:[%s1660_s0] ss:$36 sps:$4 sm:$0xff]   ;;  %v1289_v34 = vld [vmem:[%s1660_s0 + $0x8] ss:$36 sps:$4 sm:$0xff]   ;;  %v1296_v40 = vld [vmem:[%s1659_s1 + $0x170] sm:$0xff]  }
   0xe   :  { %1146 = vmatprep.subr.bf16.mxu1 %v1267_v13  ;;  %v1288_v33 = vld [vmem:[%s1660_s0 + $0x4] ss:$36 sps:$4 sm:$0xff]   ;;  %v1291_v35 = vld [vmem:[%s1660_s0 + $0xc] ss:$36 sps:$4 sm:$0xff]   ;;  %v1308_v52 = vld [vmem:[%s1659_s1 + $0x158] sm:$0xff]  }
   0xf   :  { %738 = vmatprep.mubr.bf16.mxu0 %v1288_v33  ;;  %787 = vmatprep.mubr.bf16.mxu1 %v1291_v35  ;;  %v1297_v41 = vld [vmem:[%s1659_s1 + $0x130] sm:$0xff]   ;;  %v1300_v44 = vld [vmem:[%s1659_s1 + $0x168] sm:$0xff]   ;;  %v1304_v48 = vld [vmem:[%s1659_s1 + $0x160] sm:$0xff]  }
  0x10   :  { %1119 = vmatpush3.bf16.msra.mxu0 %v1268_v14  ;;  %v1298_v42 = vld [vmem:[%s1659_s1 + $0x1f0] sm:$0xff]   ;;  %v1301_v45 = vld [vmem:[%s1659_s1 + $0x128] sm:$0xff]   ;;  %v1305_v49 = vld [vmem:[%s1659_s1 + $0x120] sm:$0xff]  }
  0x11   :  { %1147 = vmatpush3.bf16.msra.mxu1 %v1269_v15  ;;  %1120 = vmatprep.subr.bf16.mxu0 %v1270_v16  ;;  %v1299_v43 = vld [vmem:[%s1659_s1 + $0x1b0] sm:$0xff]   ;;  %v1302_v46 = vld [vmem:[%s1659_s1 + $0x1e8] sm:$0xff]   ;;  %v1306_v50 = vld [vmem:[%s1659_s1 + $0x1e0] sm:$0xff]  }
  0x12   :  { %1148 = vmatprep.subr.bf16.mxu1 %v1271_v17  ;;  %v1303_v47 = vld [vmem:[%s1659_s1 + $0x1a8] sm:$0xff]   ;;  %v1307_v51 = vld [vmem:[%s1659_s1 + $0x1a0] sm:$0xff]   ;;  %v1309_v53 = vld [vmem:[%s1659_s1 + $0x118] sm:$0xff]  }
  0x13   :  { %v1310_v54 = vld [vmem:[%s1660_s0 + $0x4c] ss:$36 sps:$4 sm:$0xff]   ;;  %v1312_v55 = vld [vmem:[%s1660_s0 + $0x54] ss:$36 sps:$4 sm:$0xff]   ;;  %v1326_v4 = vld [vmem:[%s1659_s1 + $0x140] sm:$0xff]  }
  0x14   :  { %1121 = vmatpush3.bf16.msra.mxu0 %v1272_v18  ;;  %v1314_v56 = vld [vmem:[%s1659_s1 + $0x1d8] sm:$0xff]   ;;  %v1315_v57 = vld [vmem:[%s1660_s0 + $0x48] ss:$36 sps:$4 sm:$0xff]   ;;  %v1316_v58 = vld [vmem:[%s1660_s0 + $0x50] ss:$36 sps:$4 sm:$0xff]  }
  0x15   :  { %1149 = vmatpush3.bf16.msra.mxu1 %v1273_v19  ;;  %1122 = vmatprep.subr.bf16.mxu0 %v1274_v20  ;;  %v1317_v59 = vld [vmem:[%s1659_s1 + $0x198] sm:$0xff]   ;;  %v1318_v60 = vld [vmem:[%s1659_s1 + $0x150] sm:$0xff]   ;;  %v1322_v0 = vld [vmem:[%s1659_s1 + $0x148] sm:$0xff]  }
  0x16   :  { %1150 = vmatprep.subr.bf16.mxu1 %v1275_v21  ;;  %v1319_v61 = vld [vmem:[%s1659_s1 + $0x110] sm:$0xff]   ;;  %v1323_v1 = vld [vmem:[%s1659_s1 + $0x108] sm:$0xff]   ;;  %v1327_v5 = vld [vmem:[%s1659_s1 + $0x100] sm:$0xff]  }
  0x17   :  { %v1320_v62 = vld [vmem:[%s1659_s1 + $0x1d0] sm:$0xff]   ;;  %v1324_v2 = vld [vmem:[%s1659_s1 + $0x1c8] sm:$0xff]   ;;  %v1328_v6 = vld [vmem:[%s1659_s1 + $0x1c0] sm:$0xff]  }
  0x18   :  { %1123 = vmatpush3.bf16.msra.mxu0 %v1276_v22  ;;  %v1321_v63 = vld [vmem:[%s1659_s1 + $0x190] sm:$0xff]   ;;  %v1325_v3 = vld [vmem:[%s1659_s1 + $0x188] sm:$0xff]   ;;  %v1332_v9 = vld [vmem:[%s1659_s1 + $0x180] sm:$0xff]  }
  0x19   :  { %1151 = vmatpush3.bf16.msra.mxu1 %v1277_v23  ;;  %1124 = vmatprep.subr.bf16.mxu0 %v1278_v24  ;;  %v1329_v7 = vld [vmem:[%s1660_s0 + $0x10] ss:$36 sps:$4 sm:$0xff]   ;;  %v1333_v10 = vld [vmem:[%s1659_s1 + $0x238] sm:$0xff]   ;;  %v1341_v16 = vld [vmem:[%s1659_s1 + $0x228] sm:$0xff]  }
  0x1a   :  { %1152 = vmatprep.subr.bf16.mxu1 %v1279_v25  ;;  %v1331_v8 = vld [vmem:[%s1660_s0 + $0x14] ss:$36 sps:$4 sm:$0xff]   ;;  %v1336_v12 = vld [vmem:[%s1660_s0 + $0x1c] ss:$36 sps:$4 sm:$0xff]   ;;  %v1342_v17 = vld [vmem:[%s1660_s0 + $0x64] ss:$36 sps:$4 sm:$0xff]  }
  0x1b   :  { %v1334_v11 = vld [vmem:[%s1660_s0 + $0x18] ss:$36 sps:$4 sm:$0xff]   ;;  %v1337_v13 = vld [vmem:[%s1659_s1 + $0x230] sm:$0xff]   ;;  %v1344_v18 = vld [vmem:[%s1660_s0 + $0x60] ss:$36 sps:$4 sm:$0xff]  }
  0x1c   :  { %1125 = vmatpush3.bf16.msra.mxu0 %v1280_v26  ;;  %v1338_v14 = vld [vmem:[%s1660_s0 + $0x5c] ss:$36 sps:$4 sm:$0xff]   ;;  %v1347_v22 = vld [vmem:[%s1659_s1 + $0x210] sm:$0xff]   ;;  %v1348_v23 = vld [vmem:[%s1659_s1 + $0x208] sm:$0xff]  }
  0x1d   :  { %1153 = vmatpush3.bf16.msra.mxu1 %v1281_v27  ;;  %1126 = vmatprep.subr.bf16.mxu0 %v1282_v28  ;;  %v1340_v15 = vld [vmem:[%s1660_s0 + $0x58] ss:$36 sps:$4 sm:$0xff]   ;;  %v1345_v19 = vld [vmem:[%s1659_s1 + $0x220] sm:$0xff]   ;;  %v1351_v25 = vld [vmem:[%s1660_s0 + $0x68] ss:$36 sps:$4 sm:$0xff]  }
  0x1e   :  { %1154 = vmatprep.subr.bf16.mxu1 %v1283_v29  ;;  %v1346_v20 = vld [vmem:[%s1659_s1 + $0x218] sm:$0xff]   ;;  %v1350_v21 = vld [vmem:[%s1660_s0 + $0x20] ss:$36 sps:$4 sm:$0xff]  }
  0x1f   :  { %v1349_v24 = vld [vmem:[%s1659_s1 + $0x200] sm:$0xff]  }
  0x20   :  { %1127 = vmatpush3.bf16.msra.mxu0 %v1284_v30 }
  0x21   :  { %1155 = vmatpush3.bf16.msra.mxu1 %v1285_v31  ;;  %1168 = vmatprep.subr.bf16.mxu0 %v1292_v36 }
  0x22   :  { %1196 = vmatprep.subr.bf16.mxu1 %v1294_v38 }
  0x23   :  { %739 = vmatmul.mubr.bf16.vlgmr.msra.gmra.mxu0 %v1286_v32 }
  0x24   :  { %788 = vmatmul.mubr.bf16.vlgmr.msra.gmra.mxu1 %v1289_v34  ;;  %1169 = vmatpush3.bf16.msra.mxu0 %v1293_v37 }
  0x25   :  { %1197 = vmatpush3.bf16.msra.mxu1 %v1295_v39  ;;  %1170 = vmatprep.subr.bf16.mxu0 %v1296_v40 }
  0x26   :  { %1198 = vmatprep.subr.bf16.mxu1 %v1298_v42  ;;  %746 = vmatprep.mubr.bf16.mxu0 %v1310_v54 }
  0x27   :  { %795 = vmatprep.mubr.bf16.mxu1 %v1312_v55 }
  0x28   :  { %1171 = vmatpush3.bf16.msra.mxu0 %v1297_v41 }
  0x29   :  { %1199 = vmatpush3.bf16.msra.mxu1 %v1299_v43  ;;  %1172 = vmatprep.subr.bf16.mxu0 %v1300_v44 }
  0x2a   :  { %1200 = vmatprep.subr.bf16.mxu1 %v1302_v46 }
  0x2b   :  { %747 = vmatmul.mubr.bf16.gmra.mxu0 %v1315_v57 }
  0x2c   :  { %1173 = vmatpush3.bf16.msra.mxu0 %v1301_v45  ;;  %796 = vmatmul.mubr.bf16.gmra.mxu1 %v1316_v58 }
  0x2d   :  { %1201 = vmatpush3.bf16.msra.mxu1 %v1303_v47  ;;  %1174 = vmatprep.subr.bf16.mxu0 %v1304_v48 }
  0x2e   :  { %1202 = vmatprep.subr.bf16.mxu1 %v1306_v50  ;;  %836 = vmatprep.mubr.bf16.mxu0 %v1331_v8 }
  0x2f   :  { %885 = vmatprep.mubr.bf16.mxu1 %v1336_v12 }
  0x30   :  { %1175 = vmatpush3.bf16.msra.mxu0 %v1305_v49 }
  0x31   :  { %1203 = vmatpush3.bf16.msra.mxu1 %v1307_v51  ;;  %1176 = vmatprep.subr.bf16.mxu0 %v1308_v52 }
  0x32   :  { %1204 = vmatprep.subr.bf16.mxu1 %v1314_v56 }
  0x34   :  { %1177 = vmatpush3.bf16.msra.mxu0 %v1309_v53 }
  0x35   :  { %1205 = vmatpush3.bf16.msra.mxu1 %v1317_v59  ;;  %1178 = vmatprep.subr.bf16.mxu0 %v1318_v60 }
  0x36   :  { %1206 = vmatprep.subr.bf16.mxu1 %v1320_v62 }
  0x38   :  { %1179 = vmatpush3.bf16.msra.mxu0 %v1319_v61 }
  0x39   :  { %1207 = vmatpush3.bf16.msra.mxu1 %v1321_v63  ;;  %1180 = vmatprep.subr.bf16.mxu0 %v1322_v0 }
  0x3a   :  { %1208 = vmatprep.subr.bf16.mxu1 %v1324_v2 }
  0x3c   :  { %1181 = vmatpush3.bf16.msra.mxu0 %v1323_v1 }
  0x3d   :  { %1209 = vmatpush3.bf16.msra.mxu1 %v1325_v3  ;;  %1182 = vmatprep.subr.bf16.mxu0 %v1326_v4 }
  0x3e   :  { %1210 = vmatprep.subr.bf16.mxu1 %v1328_v6 }
  0x40   :  { %1183 = vmatpush3.bf16.msra.mxu0 %v1327_v5 }
  0x41   :  { %1211 = vmatpush3.bf16.msra.mxu1 %v1332_v9  ;;  %1234 = vmatprep.subr.bf16.mxu0 %v1333_v10 }
  0x43   :  { %837 = vmatmul.mubr.bf16.vlgmr.msra.gmra.mxu0 %v1329_v7 }
  0x44   :  { %1235 = vmatpush3.bf16.msra.mxu0 %v1333_v10  ;;  %886 = vmatmul.mubr.bf16.vlgmr.msra.gmra.mxu1 %v1334_v11 }
  0x45   :  { %1236 = vmatprep.subr.bf16.mxu0 %v1337_v13  ;;  %844 = vmatprep.mubr.bf16.mxu0 %v1338_v14 }
  0x46   :  { %893 = vmatprep.mubr.bf16.mxu1 %v1342_v17 }
  0x48   :  { %1237 = vmatpush3.bf16.msra.mxu0 %v1337_v13 }
  0x49   :  { %1238 = vmatprep.subr.bf16.mxu0 %v1341_v16 }
  0x4b   :  { %845 = vmatmul.mubr.bf16.gmra.mxu0 %v1340_v15 }
  0x4c   :  { %1239 = vmatpush3.bf16.msra.mxu0 %v1341_v16  ;;  %894 = vmatmul.mubr.bf16.gmra.mxu1 %v1344_v18  ;;  %v1091_v18 = vld [vmem:[%s1661_s2] ss:$0 sm:$0xff] }
  0x4d   :  { %1240 = vmatprep.subr.bf16.mxu0 %v1345_v19  ;;  %1250 = vmatprep.mubr.bf16.mxu0 %v1350_v21 }
  0x50   :  { %1241 = vmatpush3.bf16.msra.mxu0 %v1345_v19 }
  0x51   :  { %1242 = vmatprep.subr.bf16.mxu0 %v1346_v20 }
  0x54   :  { %1243 = vmatpush3.bf16.msra.mxu0 %v1346_v20 }
  0x55   :  { %1244 = vmatprep.subr.bf16.mxu0 %v1347_v22 }
  0x58   :  { %1245 = vmatpush3.bf16.msra.mxu0 %v1347_v22 }
  0x59   :  { %1246 = vmatprep.subr.bf16.mxu0 %v1348_v23 }
  0x5c   :  { %1247 = vmatpush3.bf16.msra.mxu0 %v1348_v23 }
  0x5d   :  { %1248 = vmatprep.subr.bf16.mxu0 %v1349_v24 }
  0x60   :  { %1249 = vmatpush3.bf16.msra.mxu0 %v1349_v24 }
  0x63   :  { %1251 = vmatmul.mubr.bf16.vlgmr.msra.gmra.mxu0 %v1351_v25 }
  0xe3   :  { %v1128_v26 = vpop.f32.mrf.mxu0 }
  0xe4   :  { %v1156_v27 = vpop.f32.mrf.mxu1 }
  0xe5   :  { %v1129_v28 = vpop.f32.mrf.mxu0 }
  0xe6   :  { %v1157_v29 = vpop.f32.mrf.mxu1  ;;  %v1130_v57 = vadd.f32 %v1129_v28, %v1128_v26 }
  0xe7   :  { %v1131_v30 = vpop.f32.mrf.mxu0  ;;  %v1158_v58 = vadd.f32 %v1157_v29, %v1156_v27  ;;  %v1092_v27 = vld [vmem:[%s1662_s3] ss:$0 sm:$0xff] }
  0xe8   :  { %v1159_v31 = vpop.f32.mrf.mxu1 }
  0xe9   :  { %v1132_v32 = vpop.f32.mrf.mxu0  ;;  %v790_v2 = vadd.f32 %v1158_v58, %v1130_v57 }
  0xea   :  { %v1160_v34 = vpop.f32.mrf.mxu1  ;;  %v1133_v3 = vadd.f32 %v1132_v32, %v1131_v30 }
  0xeb   :  { %v1134_v33 = vpop.f32.mrf.mxu0  ;;  %v1161_v4 = vadd.f32 %v1160_v34, %v1159_v31 }
  0xec   :  { %v1162_v35 = vpop.f32.mrf.mxu1 }
  0xed   :  { %v1135_v36 = vpop.f32.mrf.mxu0  ;;  %v793_v13 = vadd.f32 %v1161_v4, %v1133_v3 }
  0xee   :  { %v1163_v37 = vpop.f32.mrf.mxu1  ;;  %v1136_v55 = vadd.f32 %v1135_v36, %v1134_v33 }
  0xef   :  { %v1137_v38 = vpop.f32.mrf.mxu0  ;;  %v1164_v56 = vadd.f32 %v1163_v37, %v1162_v35 }
  0xf0   :  { %v1165_v39 = vpop.f32.mrf.mxu1 }
  0xf1   :  { %v1138_v40 = vpop.f32.mrf.mxu0  ;;  %v798_v62 = vadd.f32 %v1164_v56, %v1136_v55 }
  0xf2   :  { %v1166_v42 = vpop.f32.mrf.mxu1  ;;  %v1139_v63 = vadd.f32 %v1138_v40, %v1137_v38 }
  0xf3   :  { %v1167_v0 = vadd.f32 %v1166_v42, %v1165_v39 }
  0xf5   :  { %v801_v9 = vadd.f32 %v1167_v0, %v1139_v63 }
 0x103   :  { %v1184_v41 = vpop.f32.mrf.mxu0 }
 0x104   :  { %v1212_v44 = vpop.f32.mrf.mxu1 }
 0x105   :  { %v1185_v43 = vpop.f32.mrf.mxu0 }
 0x106   :  { %v1213_v46 = vpop.f32.mrf.mxu1  ;;  %v1186_v1 = vadd.f32 %v1185_v43, %v1184_v41 }
 0x107   :  { %v1187_v45 = vpop.f32.mrf.mxu0  ;;  %v1214_v11 = vadd.f32 %v1213_v46, %v1212_v44 }
 0x108   :  { %v1215_v48 = vpop.f32.mrf.mxu1  ;;  %v839_v10 = vadd.f32 %v1186_v1, %v790_v2 }
 0x109   :  { %v1188_v47 = vpop.f32.mrf.mxu0 }
 0x10a   :  { %v1216_v50 = vpop.f32.mrf.mxu1  ;;  %v1189_v12 = vadd.f32 %v1188_v47, %v1187_v45  ;;  %v888_v22 = vadd.f32 %v1214_v11, %v839_v10 }
 0x10b   :  { %v1190_v49 = vpop.f32.mrf.mxu0  ;;  %v1217_v20 = vadd.f32 %v1216_v50, %v1215_v48 }
 0x10c   :  { %v1218_v52 = vpop.f32.mrf.mxu1  ;;  %v842_v19 = vadd.f32 %v1189_v12, %v793_v13 }
 0x10d   :  { %v1191_v51 = vpop.f32.mrf.mxu0 }
 0x10e   :  { %v1219_v54 = vpop.f32.mrf.mxu1  ;;  %v1192_v59 = vadd.f32 %v1191_v51, %v1190_v49  ;;  %v891_v31 = vadd.f32 %v1217_v20, %v842_v19 }
 0x10f   :  { %v1193_v53 = vpop.f32.mrf.mxu0  ;;  %v1220_v6 = vadd.f32 %v1219_v54, %v1218_v52 }
 0x110   :  { %v1221_v61 = vpop.f32.mrf.mxu1  ;;  %v847_v5 = vadd.f32 %v1192_v59, %v798_v62 }
 0x111   :  { %v1194_v60 = vpop.f32.mrf.mxu0 }
 0x112   :  { %v1195_v7 = vadd.f32 %v1194_v60, %v1193_v53  ;;  %v1222_v8 = vpop.f32.mrf.mxu1  ;;  %v896_v16 = vadd.f32 %v1220_v6, %v847_v5 }
 0x113   :  { %v1223_v15 = vadd.f32 %v1222_v8, %v1221_v61 }
 0x114   :  { %v850_v14 = vadd.f32 %v1195_v7, %v801_v9 }
 0x116   :  { %v899_v26 = vadd.f32 %v1223_v15, %v850_v14 }
 0x123   :  { %v1252_v17 = vpop.f32.mrf.mxu0 }
 0x124   :  { %v945_v21 = vadd.f32 %v1252_v17, %v896_v16 }
 0x125   :  { %v936_v23 = vpop.f32.mrf.mxu0 }
 0x126   :  { %v960_v24 = vmul.f32 %v1091_v18, %v945_v21  ;;  %v937_v25 = vadd.f32 %v936_v23, %v888_v22 }
 0x127   :  { %v1253_v28 = vpop.f32.mrf.mxu0 }
 0x128   :  { %v958_v29 = vmul.f32 %v1091_v18, %v937_v25  ;;  %v948_v30 = vadd.f32 %v1253_v28, %v899_v26  ;;  %v971_v33 = vadd.f32 %v1092_v27, %v960_v24 }
 0x129   :  { %v939_v32 = vpop.f32.mrf.mxu0 }
 0x12a   :  { %v961_v34 = vmul.f32 %v1091_v18, %v948_v30  ;;  %v940_v35 = vadd.f32 %v939_v32, %v891_v31  ;;  %v969_v36 = vadd.f32 %v1092_v27, %v958_v29  ;;  %v975_v39 = vmax.f32 %v971_v33, 0.0 }
 0x12c   :  { %v972_v37 = vadd.f32 %v1092_v27, %v961_v34  ;;  %v959_v38 = vmul.f32 %v1091_v18, %v940_v35  ;;  %v973_v42 = vmax.f32 %v969_v36, 0.0 }
 0x12e   :  { %v976_v40 = vmax.f32 %v972_v37, 0.0  ;;  %v970_v41 = vadd.f32 %v1092_v27, %v959_v38 }
 0x130   :  { %v1109_v43 = vpack.c.bf16 %v976_v40, %v975_v39  ;;  %v974_v44 = vmax.f32 %v970_v41, 0.0 }
 0x132   :  { %1111 = vst [vmem:[%s1663_s4 + $0x8] sm:$0xff] %v1109_v43   ;;  %v1104_v45 = vpack.c.bf16 %v974_v44, %v973_v42 }
 0x134   :  { %1105 = vst [vmem:[%s1663_s4] sm:$0xff] %v1104_v45  }

// kernel: feature_extractor_forward.20
= control target key start
LH: loop header
LB: loop body
LE: loop exit
PB: predicated region body
PF: predicated region fallthrough
CT: control target
= control target key end

     0   :  { %s1694_s1 = inlined_call_operand.vmem [shape: bf16[1152,128], index: 1, kind: input, shape index: {}]   ;;  %s1695_s0 = inlined_call_operand.vmem [shape: bf16[32,1152], index: 0, kind: input, shape index: {}]   ;;  %s1696_s2 = inlined_call_operand.vmem [shape: f32[1,128], index: 2, kind: input, shape index: {}]   ;;  %s1697_s4 = inlined_call_operand.vmem [shape: bf16[32,128], index: 4, kind: input, shape index: {}]   ;;  %s1698_s3 = inlined_call_operand.vmem [shape: f32[1,128], index: 3, kind: input, shape index: {}]   ;;  %s1699_s5 = inlined_call_operand.vmem [shape: bf16[32,128], index: 5, kind: output, shape index: {}]  }
   0x1   :  { %v1278_v0 = vld [vmem:[%s1694_s1 + $0x78] sm:$0xff]   ;;  %v1282_v4 = vld [vmem:[%s1694_s1 + $0x70] sm:$0xff]   ;;  %v1286_v8 = vld [vmem:[%s1694_s1 + $0x68] sm:$0xff]  }
   0x2   :  { %v1279_v1 = vld [vmem:[%s1694_s1 + $0xf8] sm:$0xff]   ;;  %1136 = vmatprep.subr.bf16.mxu0 %v1278_v0  ;;  %v1283_v5 = vld [vmem:[%s1694_s1 + $0xf0] sm:$0xff]   ;;  %v1287_v9 = vld [vmem:[%s1694_s1 + $0xe8] sm:$0xff]  }
   0x3   :  { %v1280_v2 = vld [vmem:[%s1694_s1 + $0x38] sm:$0xff]   ;;  %1164 = vmatprep.subr.bf16.mxu1 %v1279_v1  ;;  %v1284_v6 = vld [vmem:[%s1694_s1 + $0x30] sm:$0xff]   ;;  %v1288_v10 = vld [vmem:[%s1694_s1 + $0x28] sm:$0xff]  }
   0x4   :  { %v1281_v3 = vld [vmem:[%s1694_s1 + $0xb8] sm:$0xff]   ;;  %1137 = vmatpush3.bf16.msra.mxu0 %v1280_v2  ;;  %v1285_v7 = vld [vmem:[%s1694_s1 + $0xb0] sm:$0xff]   ;;  %v1289_v11 = vld [vmem:[%s1694_s1 + $0xa8] sm:$0xff]  }
   0x5   :  { %1165 = vmatpush3.bf16.msra.mxu1 %v1281_v3  ;;  %1138 = vmatprep.subr.bf16.mxu0 %v1282_v4  ;;  %v1290_v12 = vld [vmem:[%s1694_s1 + $0x60] sm:$0xff]   ;;  %v1294_v16 = vld [vmem:[%s1694_s1 + $0x58] sm:$0xff]   ;;  %v1298_v20 = vld [vmem:[%s1694_s1 + $0x50] sm:$0xff]  }
   0x6   :  { %1166 = vmatprep.subr.bf16.mxu1 %v1283_v5  ;;  %v1291_v13 = vld [vmem:[%s1694_s1 + $0xe0] sm:$0xff]   ;;  %v1295_v17 = vld [vmem:[%s1694_s1 + $0xd8] sm:$0xff]   ;;  %v1299_v21 = vld [vmem:[%s1694_s1 + $0xd0] sm:$0xff]  }
   0x7   :  { %v1292_v14 = vld [vmem:[%s1694_s1 + $0x20] sm:$0xff]   ;;  %v1296_v18 = vld [vmem:[%s1694_s1 + $0x18] sm:$0xff]   ;;  %v1300_v22 = vld [vmem:[%s1694_s1 + $0x10] sm:$0xff]  }
   0x8   :  { %1139 = vmatpush3.bf16.msra.mxu0 %v1284_v6  ;;  %v1293_v15 = vld [vmem:[%s1694_s1 + $0xa0] sm:$0xff]   ;;  %v1297_v19 = vld [vmem:[%s1694_s1 + $0x98] sm:$0xff]   ;;  %v1301_v23 = vld [vmem:[%s1694_s1 + $0x90] sm:$0xff]  }
   0x9   :  { %1167 = vmatpush3.bf16.msra.mxu1 %v1285_v7  ;;  %1140 = vmatprep.subr.bf16.mxu0 %v1286_v8  ;;  %v1302_v24 = vld [vmem:[%s1694_s1 + $0x48] sm:$0xff]   ;;  %v1306_v28 = vld [vmem:[%s1694_s1 + $0x40] sm:$0xff]   ;;  %v1316_v36 = vld [vmem:[%s1694_s1 + $0x178] sm:$0xff]  }
   0xa   :  { %1168 = vmatprep.subr.bf16.mxu1 %v1287_v9  ;;  %v1303_v25 = vld [vmem:[%s1694_s1 + $0xc8] sm:$0xff]   ;;  %v1307_v29 = vld [vmem:[%s1694_s1 + $0xc0] sm:$0xff]   ;;  %v1317_v37 = vld [vmem:[%s1694_s1 + $0x138] sm:$0xff]  }
   0xb   :  { %v1304_v26 = vld [vmem:[%s1694_s1 + $0x8] sm:$0xff]   ;;  %v1308_v30 = vld [vmem:[%s1694_s1] sm:$0xff]   ;;  %v1318_v38 = vld [vmem:[%s1694_s1 + $0x1f8] sm:$0xff]  }
   0xc   :  { %1141 = vmatpush3.bf16.msra.mxu0 %v1288_v10  ;;  %v1305_v27 = vld [vmem:[%s1694_s1 + $0x88] sm:$0xff]   ;;  %v1309_v31 = vld [vmem:[%s1694_s1 + $0x80] sm:$0xff]   ;;  %v1319_v39 = vld [vmem:[%s1694_s1 + $0x1b8] sm:$0xff]  }
   0xd   :  { %1169 = vmatpush3.bf16.msra.mxu1 %v1289_v11  ;;  %1142 = vmatprep.subr.bf16.mxu0 %v1290_v12  ;;  %v1310_v32 = vld [vmem:[%s1695_s0] ss:$36 sps:$4 sm:$0xff]   ;;  %v1313_v34 = vld [vmem:[%s1695_s0 + $0x8] ss:$36 sps:$4 sm:$0xff]   ;;  %v1320_v40 = vld [vmem:[%s1694_s1 + $0x170] sm:$0xff]  }
   0xe   :  { %1170 = vmatprep.subr.bf16.mxu1 %v1291_v13  ;;  %v1312_v33 = vld [vmem:[%s1695_s0 + $0x4] ss:$36 sps:$4 sm:$0xff]   ;;  %v1315_v35 = vld [vmem:[%s1695_s0 + $0xc] ss:$36 sps:$4 sm:$0xff]   ;;  %v1332_v52 = vld [vmem:[%s1694_s1 + $0x158] sm:$0xff]  }
   0xf   :  { %741 = vmatprep.mubr.bf16.mxu0 %v1312_v33  ;;  %790 = vmatprep.mubr.bf16.mxu1 %v1315_v35  ;;  %v1321_v41 = vld [vmem:[%s1694_s1 + $0x130] sm:$0xff]   ;;  %v1324_v44 = vld [vmem:[%s1694_s1 + $0x168] sm:$0xff]   ;;  %v1328_v48 = vld [vmem:[%s1694_s1 + $0x160] sm:$0xff]  }
  0x10   :  { %1143 = vmatpush3.bf16.msra.mxu0 %v1292_v14  ;;  %v1322_v42 = vld [vmem:[%s1694_s1 + $0x1f0] sm:$0xff]   ;;  %v1325_v45 = vld [vmem:[%s1694_s1 + $0x128] sm:$0xff]   ;;  %v1329_v49 = vld [vmem:[%s1694_s1 + $0x120] sm:$0xff]  }
  0x11   :  { %1171 = vmatpush3.bf16.msra.mxu1 %v1293_v15  ;;  %1144 = vmatprep.subr.bf16.mxu0 %v1294_v16  ;;  %v1323_v43 = vld [vmem:[%s1694_s1 + $0x1b0] sm:$0xff]   ;;  %v1326_v46 = vld [vmem:[%s1694_s1 + $0x1e8] sm:$0xff]   ;;  %v1330_v50 = vld [vmem:[%s1694_s1 + $0x1e0] sm:$0xff]  }
  0x12   :  { %1172 = vmatprep.subr.bf16.mxu1 %v1295_v17  ;;  %v1327_v47 = vld [vmem:[%s1694_s1 + $0x1a8] sm:$0xff]   ;;  %v1331_v51 = vld [vmem:[%s1694_s1 + $0x1a0] sm:$0xff]   ;;  %v1333_v53 = vld [vmem:[%s1694_s1 + $0x118] sm:$0xff]  }
  0x13   :  { %v1334_v54 = vld [vmem:[%s1695_s0 + $0x4c] ss:$36 sps:$4 sm:$0xff]   ;;  %v1336_v55 = vld [vmem:[%s1695_s0 + $0x54] ss:$36 sps:$4 sm:$0xff]   ;;  %v1350_v4 = vld [vmem:[%s1694_s1 + $0x140] sm:$0xff]  }
  0x14   :  { %1145 = vmatpush3.bf16.msra.mxu0 %v1296_v18  ;;  %v1338_v56 = vld [vmem:[%s1694_s1 + $0x1d8] sm:$0xff]   ;;  %v1339_v57 = vld [vmem:[%s1695_s0 + $0x48] ss:$36 sps:$4 sm:$0xff]   ;;  %v1340_v58 = vld [vmem:[%s1695_s0 + $0x50] ss:$36 sps:$4 sm:$0xff]  }
  0x15   :  { %1173 = vmatpush3.bf16.msra.mxu1 %v1297_v19  ;;  %1146 = vmatprep.subr.bf16.mxu0 %v1298_v20  ;;  %v1341_v59 = vld [vmem:[%s1694_s1 + $0x198] sm:$0xff]   ;;  %v1342_v60 = vld [vmem:[%s1694_s1 + $0x150] sm:$0xff]   ;;  %v1346_v0 = vld [vmem:[%s1694_s1 + $0x148] sm:$0xff]  }
  0x16   :  { %1174 = vmatprep.subr.bf16.mxu1 %v1299_v21  ;;  %v1343_v61 = vld [vmem:[%s1694_s1 + $0x110] sm:$0xff]   ;;  %v1347_v1 = vld [vmem:[%s1694_s1 + $0x108] sm:$0xff]   ;;  %v1351_v5 = vld [vmem:[%s1694_s1 + $0x100] sm:$0xff]  }
  0x17   :  { %v1344_v62 = vld [vmem:[%s1694_s1 + $0x1d0] sm:$0xff]   ;;  %v1348_v2 = vld [vmem:[%s1694_s1 + $0x1c8] sm:$0xff]   ;;  %v1352_v6 = vld [vmem:[%s1694_s1 + $0x1c0] sm:$0xff]  }
  0x18   :  { %1147 = vmatpush3.bf16.msra.mxu0 %v1300_v22  ;;  %v1345_v63 = vld [vmem:[%s1694_s1 + $0x190] sm:$0xff]   ;;  %v1349_v3 = vld [vmem:[%s1694_s1 + $0x188] sm:$0xff]   ;;  %v1356_v9 = vld [vmem:[%s1694_s1 + $0x180] sm:$0xff]  }
  0x19   :  { %1175 = vmatpush3.bf16.msra.mxu1 %v1301_v23  ;;  %1148 = vmatprep.subr.bf16.mxu0 %v1302_v24  ;;  %v1353_v7 = vld [vmem:[%s1695_s0 + $0x10] ss:$36 sps:$4 sm:$0xff]   ;;  %v1357_v10 = vld [vmem:[%s1694_s1 + $0x238] sm:$0xff]   ;;  %v1365_v16 = vld [vmem:[%s1694_s1 + $0x228] sm:$0xff]  }
  0x1a   :  { %1176 = vmatprep.subr.bf16.mxu1 %v1303_v25  ;;  %v1355_v8 = vld [vmem:[%s1695_s0 + $0x14] ss:$36 sps:$4 sm:$0xff]   ;;  %v1360_v12 = vld [vmem:[%s1695_s0 + $0x1c] ss:$36 sps:$4 sm:$0xff]   ;;  %v1366_v17 = vld [vmem:[%s1695_s0 + $0x64] ss:$36 sps:$4 sm:$0xff]  }
  0x1b   :  { %v1358_v11 = vld [vmem:[%s1695_s0 + $0x18] ss:$36 sps:$4 sm:$0xff]   ;;  %v1361_v13 = vld [vmem:[%s1694_s1 + $0x230] sm:$0xff]   ;;  %v1368_v18 = vld [vmem:[%s1695_s0 + $0x60] ss:$36 sps:$4 sm:$0xff]  }
  0x1c   :  { %1149 = vmatpush3.bf16.msra.mxu0 %v1304_v26  ;;  %v1362_v14 = vld [vmem:[%s1695_s0 + $0x5c] ss:$36 sps:$4 sm:$0xff]   ;;  %v1371_v22 = vld [vmem:[%s1694_s1 + $0x210] sm:$0xff]   ;;  %v1372_v23 = vld [vmem:[%s1694_s1 + $0x208] sm:$0xff]  }
  0x1d   :  { %1177 = vmatpush3.bf16.msra.mxu1 %v1305_v27  ;;  %1150 = vmatprep.subr.bf16.mxu0 %v1306_v28  ;;  %v1364_v15 = vld [vmem:[%s1695_s0 + $0x58] ss:$36 sps:$4 sm:$0xff]   ;;  %v1369_v19 = vld [vmem:[%s1694_s1 + $0x220] sm:$0xff]   ;;  %v1375_v25 = vld [vmem:[%s1695_s0 + $0x68] ss:$36 sps:$4 sm:$0xff]  }
  0x1e   :  { %1178 = vmatprep.subr.bf16.mxu1 %v1307_v29  ;;  %v1370_v20 = vld [vmem:[%s1694_s1 + $0x218] sm:$0xff]   ;;  %v1374_v21 = vld [vmem:[%s1695_s0 + $0x20] ss:$36 sps:$4 sm:$0xff]  }
  0x1f   :  { %v1373_v24 = vld [vmem:[%s1694_s1 + $0x200] sm:$0xff]  }
  0x20   :  { %1151 = vmatpush3.bf16.msra.mxu0 %v1308_v30 }
  0x21   :  { %1179 = vmatpush3.bf16.msra.mxu1 %v1309_v31  ;;  %1192 = vmatprep.subr.bf16.mxu0 %v1316_v36 }
  0x22   :  { %1220 = vmatprep.subr.bf16.mxu1 %v1318_v38 }
  0x23   :  { %742 = vmatmul.mubr.bf16.vlgmr.msra.gmra.mxu0 %v1310_v32 }
  0x24   :  { %791 = vmatmul.mubr.bf16.vlgmr.msra.gmra.mxu1 %v1313_v34  ;;  %1193 = vmatpush3.bf16.msra.mxu0 %v1317_v37 }
  0x25   :  { %1221 = vmatpush3.bf16.msra.mxu1 %v1319_v39  ;;  %1194 = vmatprep.subr.bf16.mxu0 %v1320_v40 }
  0x26   :  { %1222 = vmatprep.subr.bf16.mxu1 %v1322_v42  ;;  %749 = vmatprep.mubr.bf16.mxu0 %v1334_v54 }
  0x27   :  { %798 = vmatprep.mubr.bf16.mxu1 %v1336_v55 }
  0x28   :  { %1195 = vmatpush3.bf16.msra.mxu0 %v1321_v41 }
  0x29   :  { %1223 = vmatpush3.bf16.msra.mxu1 %v1323_v43  ;;  %1196 = vmatprep.subr.bf16.mxu0 %v1324_v44 }
  0x2a   :  { %1224 = vmatprep.subr.bf16.mxu1 %v1326_v46 }
  0x2b   :  { %750 = vmatmul.mubr.bf16.gmra.mxu0 %v1339_v57 }
  0x2c   :  { %1197 = vmatpush3.bf16.msra.mxu0 %v1325_v45  ;;  %799 = vmatmul.mubr.bf16.gmra.mxu1 %v1340_v58 }
  0x2d   :  { %1225 = vmatpush3.bf16.msra.mxu1 %v1327_v47  ;;  %1198 = vmatprep.subr.bf16.mxu0 %v1328_v48 }
  0x2e   :  { %1226 = vmatprep.subr.bf16.mxu1 %v1330_v50  ;;  %839 = vmatprep.mubr.bf16.mxu0 %v1355_v8 }
  0x2f   :  { %888 = vmatprep.mubr.bf16.mxu1 %v1360_v12 }
  0x30   :  { %1199 = vmatpush3.bf16.msra.mxu0 %v1329_v49 }
  0x31   :  { %1227 = vmatpush3.bf16.msra.mxu1 %v1331_v51  ;;  %1200 = vmatprep.subr.bf16.mxu0 %v1332_v52 }
  0x32   :  { %1228 = vmatprep.subr.bf16.mxu1 %v1338_v56 }
  0x34   :  { %1201 = vmatpush3.bf16.msra.mxu0 %v1333_v53 }
  0x35   :  { %1229 = vmatpush3.bf16.msra.mxu1 %v1341_v59  ;;  %1202 = vmatprep.subr.bf16.mxu0 %v1342_v60 }
  0x36   :  { %1230 = vmatprep.subr.bf16.mxu1 %v1344_v62 }
  0x38   :  { %1203 = vmatpush3.bf16.msra.mxu0 %v1343_v61 }
  0x39   :  { %1231 = vmatpush3.bf16.msra.mxu1 %v1345_v63  ;;  %1204 = vmatprep.subr.bf16.mxu0 %v1346_v0 }
  0x3a   :  { %1232 = vmatprep.subr.bf16.mxu1 %v1348_v2 }
  0x3c   :  { %1205 = vmatpush3.bf16.msra.mxu0 %v1347_v1 }
  0x3d   :  { %1233 = vmatpush3.bf16.msra.mxu1 %v1349_v3  ;;  %1206 = vmatprep.subr.bf16.mxu0 %v1350_v4 }
  0x3e   :  { %1234 = vmatprep.subr.bf16.mxu1 %v1352_v6 }
  0x40   :  { %1207 = vmatpush3.bf16.msra.mxu0 %v1351_v5 }
  0x41   :  { %1235 = vmatpush3.bf16.msra.mxu1 %v1356_v9  ;;  %1258 = vmatprep.subr.bf16.mxu0 %v1357_v10 }
  0x43   :  { %840 = vmatmul.mubr.bf16.vlgmr.msra.gmra.mxu0 %v1353_v7 }
  0x44   :  { %1259 = vmatpush3.bf16.msra.mxu0 %v1357_v10  ;;  %889 = vmatmul.mubr.bf16.vlgmr.msra.gmra.mxu1 %v1358_v11 }
  0x45   :  { %1260 = vmatprep.subr.bf16.mxu0 %v1361_v13  ;;  %847 = vmatprep.mubr.bf16.mxu0 %v1362_v14 }
  0x46   :  { %896 = vmatprep.mubr.bf16.mxu1 %v1366_v17 }
  0x48   :  { %1261 = vmatpush3.bf16.msra.mxu0 %v1361_v13 }
  0x49   :  { %1262 = vmatprep.subr.bf16.mxu0 %v1365_v16 }
  0x4b   :  { %848 = vmatmul.mubr.bf16.gmra.mxu0 %v1364_v15 }
  0x4c   :  { %1263 = vmatpush3.bf16.msra.mxu0 %v1365_v16  ;;  %897 = vmatmul.mubr.bf16.gmra.mxu1 %v1368_v18  ;;  %v1106_v18 = vld [vmem:[%s1696_s2] ss:$0 sm:$0xff] }
  0x4d   :  { %1264 = vmatprep.subr.bf16.mxu0 %v1369_v19  ;;  %1274 = vmatprep.mubr.bf16.mxu0 %v1374_v21 }
  0x50   :  { %1265 = vmatpush3.bf16.msra.mxu0 %v1369_v19 }
  0x51   :  { %1266 = vmatprep.subr.bf16.mxu0 %v1370_v20 }
  0x54   :  { %1267 = vmatpush3.bf16.msra.mxu0 %v1370_v20 }
  0x55   :  { %1268 = vmatprep.subr.bf16.mxu0 %v1371_v22 }
  0x58   :  { %1269 = vmatpush3.bf16.msra.mxu0 %v1371_v22  ;;  %v1134_v22 = vld [vmem:[%s1697_s4 + $0x8] sm:$0xff]  }
  0x59   :  { %1270 = vmatprep.subr.bf16.mxu0 %v1372_v23 }
  0x5c   :  { %1271 = vmatpush3.bf16.msra.mxu0 %v1372_v23 }
  0x5d   :  { %1272 = vmatprep.subr.bf16.mxu0 %v1373_v24 }
  0x60   :  { %1273 = vmatpush3.bf16.msra.mxu0 %v1373_v24  ;;  %v1107_v24 = vld [vmem:[%s1698_s3] ss:$0 sm:$0xff] }
  0x63   :  { %1275 = vmatmul.mubr.bf16.vlgmr.msra.gmra.mxu0 %v1375_v25 }
  0xe3   :  { %v1152_v26 = vpop.f32.mrf.mxu0 }
  0xe4   :  { %v1180_v27 = vpop.f32.mrf.mxu1 }
  0xe5   :  { %v1153_v28 = vpop.f32.mrf.mxu0 }
  0xe6   :  { %v1181_v29 = vpop.f32.mrf.mxu1  ;;  %v1154_v57 = vadd.f32 %v1153_v28, %v1152_v26  ;;  %v1117_v28 = vld [vmem:[%s1697_s4] sm:$0xff]  }
  0xe7   :  { %v1155_v30 = vpop.f32.mrf.mxu0  ;;  %v1182_v58 = vadd.f32 %v1181_v29, %v1180_v27 }
  0xe8   :  { %v1183_v31 = vpop.f32.mrf.mxu1 }
  0xe9   :  { %v1156_v32 = vpop.f32.mrf.mxu0  ;;  %v793_v2 = vadd.f32 %v1182_v58, %v1154_v57 }
  0xea   :  { %v1184_v34 = vpop.f32.mrf.mxu1  ;;  %v1157_v3 = vadd.f32 %v1156_v32, %v1155_v30  ;;  %v1122_v30 = vunpack.c.l.bf16 %v1134_v22 }
  0xeb   :  { %v1158_v33 = vpop.f32.mrf.mxu0  ;;  %v1185_v4 = vadd.f32 %v1184_v34, %v1183_v31 }
  0xec   :  { %v1186_v35 = vpop.f32.mrf.mxu1 }
  0xed   :  { %v1159_v36 = vpop.f32.mrf.mxu0  ;;  %v796_v13 = vadd.f32 %v1185_v4, %v1157_v3 }
  0xee   :  { %v1187_v37 = vpop.f32.mrf.mxu1  ;;  %v1160_v55 = vadd.f32 %v1159_v36, %v1158_v33  ;;  %v1118_v36 = vunpack.c.l.bf16 %v1117_v28 }
  0xef   :  { %v1161_v38 = vpop.f32.mrf.mxu0  ;;  %v1188_v56 = vadd.f32 %v1187_v37, %v1186_v35 }
  0xf0   :  { %v1189_v39 = vpop.f32.mrf.mxu1 }
  0xf1   :  { %v1162_v40 = vpop.f32.mrf.mxu0  ;;  %v801_v62 = vadd.f32 %v1188_v56, %v1160_v55 }
  0xf2   :  { %v1190_v42 = vpop.f32.mrf.mxu1  ;;  %v1163_v63 = vadd.f32 %v1162_v40, %v1161_v38  ;;  %v1123_v40 = vunpack.c.h.bf16 %v1134_v22 }
  0xf3   :  { %v1191_v0 = vadd.f32 %v1190_v42, %v1189_v39 }
  0xf5   :  { %v804_v9 = vadd.f32 %v1191_v0, %v1163_v63 }
 0x103   :  { %v1208_v41 = vpop.f32.mrf.mxu0 }
 0x104   :  { %v1236_v44 = vpop.f32.mrf.mxu1 }
 0x105   :  { %v1209_v43 = vpop.f32.mrf.mxu0 }
 0x106   :  { %v1237_v46 = vpop.f32.mrf.mxu1  ;;  %v1210_v1 = vadd.f32 %v1209_v43, %v1208_v41 }
 0x107   :  { %v1211_v45 = vpop.f32.mrf.mxu0  ;;  %v1238_v11 = vadd.f32 %v1237_v46, %v1236_v44 }
 0x108   :  { %v1239_v48 = vpop.f32.mrf.mxu1  ;;  %v842_v10 = vadd.f32 %v1210_v1, %v793_v2 }
 0x109   :  { %v1212_v47 = vpop.f32.mrf.mxu0 }
 0x10a   :  { %v1240_v50 = vpop.f32.mrf.mxu1  ;;  %v1213_v12 = vadd.f32 %v1212_v47, %v1211_v45  ;;  %v891_v23 = vadd.f32 %v1238_v11, %v842_v10  ;;  %v1119_v45 = vunpack.c.h.bf16 %v1117_v28 }
 0x10b   :  { %v1214_v49 = vpop.f32.mrf.mxu0  ;;  %v1241_v20 = vadd.f32 %v1240_v50, %v1239_v48 }
 0x10c   :  { %v1242_v52 = vpop.f32.mrf.mxu1  ;;  %v845_v19 = vadd.f32 %v1213_v12, %v796_v13 }
 0x10d   :  { %v1215_v51 = vpop.f32.mrf.mxu0 }
 0x10e   :  { %v1243_v54 = vpop.f32.mrf.mxu1  ;;  %v1216_v59 = vadd.f32 %v1215_v51, %v1214_v49  ;;  %v894_v35 = vadd.f32 %v1241_v20, %v845_v19 }
 0x10f   :  { %v1217_v53 = vpop.f32.mrf.mxu0  ;;  %v1244_v6 = vadd.f32 %v1243_v54, %v1242_v52 }
 0x110   :  { %v1245_v61 = vpop.f32.mrf.mxu1  ;;  %v850_v5 = vadd.f32 %v1216_v59, %v801_v62 }
 0x111   :  { %v1218_v60 = vpop.f32.mrf.mxu0 }
 0x112   :  { %v1219_v7 = vadd.f32 %v1218_v60, %v1217_v53  ;;  %v1246_v8 = vpop.f32.mrf.mxu1  ;;  %v899_v16 = vadd.f32 %v1244_v6, %v850_v5 }
 0x113   :  { %v1247_v15 = vadd.f32 %v1246_v8, %v1245_v61 }
 0x114   :  { %v853_v14 = vadd.f32 %v1219_v7, %v804_v9 }
 0x116   :  { %v902_v29 = vadd.f32 %v1247_v15, %v853_v14 }
 0x123   :  { %v1276_v17 = vpop.f32.mrf.mxu0 }
 0x124   :  { %v948_v21 = vadd.f32 %v1276_v17, %v899_v16 }
 0x125   :  { %v939_v25 = vpop.f32.mrf.mxu0 }
 0x126   :  { %v963_v26 = vmul.f32 %v1106_v18, %v948_v21  ;;  %v940_v27 = vadd.f32 %v939_v25, %v891_v23 }
 0x127   :  { %v1277_v31 = vpop.f32.mrf.mxu0 }
 0x128   :  { %v974_v32 = vadd.f32 %v1107_v24, %v963_v26  ;;  %v961_v33 = vmul.f32 %v1106_v18, %v940_v27  ;;  %v951_v34 = vadd.f32 %v1277_v31, %v902_v29 }
 0x129   :  { %v942_v37 = vpop.f32.mrf.mxu0 }
 0x12a   :  { %v972_v38 = vadd.f32 %v1107_v24, %v961_v33  ;;  %v964_v39 = vmul.f32 %v1106_v18, %v951_v34  ;;  %v943_v41 = vadd.f32 %v942_v37, %v894_v35  ;;  %v986_v42 = vadd.f32 %v1122_v30, %v974_v32 }
 0x12c   :  { %v975_v43 = vadd.f32 %v1107_v24, %v964_v39  ;;  %v962_v44 = vmul.f32 %v1106_v18, %v943_v41  ;;  %v984_v46 = vadd.f32 %v1118_v36, %v972_v38  ;;  %v990_v49 = vmax.f32 %v986_v42, 0.0 }
 0x12e   :  { %v987_v47 = vadd.f32 %v1123_v40, %v975_v43  ;;  %v973_v48 = vadd.f32 %v1107_v24, %v962_v44  ;;  %v988_v52 = vmax.f32 %v984_v46, 0.0 }
 0x130   :  { %v991_v50 = vmax.f32 %v987_v47, 0.0  ;;  %v985_v51 = vadd.f32 %v1119_v45, %v973_v48 }
 0x132   :  { %v1132_v53 = vpack.c.bf16 %v991_v50, %v990_v49  ;;  %v989_v54 = vmax.f32 %v985_v51, 0.0 }
 0x134   :  { %1135 = vst [vmem:[%s1699_s5 + $0x8] sm:$0xff] %v1132_v53   ;;  %v1127_v55 = vpack.c.bf16 %v989_v54, %v988_v52 }
 0x136   :  { %1128 = vst [vmem:[%s1699_s5] sm:$0xff] %v1127_v55  }

// kernel: feature_extractor_forward.23
= control target key start
LH: loop header
LB: loop body
LE: loop exit
PB: predicated region body
PF: predicated region fallthrough
CT: control target
= control target key end

     0   :  { %s5723_s18 = smov 0   ;;  %s5725_s19 = smov 0   ;;  %s6543_s0 = inlined_call_operand.vmem [shape: bf16[2,16,128], index: 0, kind: input, shape index: {}]   ;;  %s6544_s1 = inlined_call_operand.vmem [shape: bf16[128,256], index: 1, kind: input, shape index: {}]   ;;  %s6545_s2 = inlined_call_operand.vmem [shape: f32[1,256], index: 2, kind: input, shape index: {}]   ;;  %s6546_s3 = inlined_call_operand.vmem [shape: bf16[2,256,768], index: 3, kind: input, shape index: {}]   ;;  %s6547_s4 = inlined_call_operand.vmem [shape: f32[2,1,768], index: 4, kind: input, shape index: {}]   ;;  %s6548_s5 = inlined_call_operand.vmem [shape: bf16[2,256,256], index: 5, kind: input, shape index: {}]   ;;  %s6549_s6 = inlined_call_operand.vmem [shape: f32[2,1,256], index: 6, kind: input, shape index: {}]   ;;  %s6550_s7 = inlined_call_operand.vmem [shape: f32[2,1,256], index: 7, kind: input, shape index: {}]   ;;  %s6551_s8 = inlined_call_operand.vmem [shape: f32[2,1,256], index: 8, kind: input, shape index: {}]   ;;  %s6552_s9 = inlined_call_operand.vmem [shape: bf16[2,256,512], index: 9, kind: input, shape index: {}]   ;;  %s6553_s10 = inlined_call_operand.vmem [shape: f32[2,1,512], index: 10, kind: input, shape index: {}]   ;;  %s6554_s11 = inlined_call_operand.vmem [shape: bf16[2,512,256], index: 11, kind: input, shape index: {}]   ;;  %s6555_s12 = inlined_call_operand.vmem [shape: f32[2,1,256], index: 12, kind: input, shape index: {}]   ;;  %s6556_s13 = inlined_call_operand.vmem [shape: f32[2,1,256], index: 13, kind: input, shape index: {}]   ;;  %s6557_s14 = inlined_call_operand.vmem [shape: f32[2,1,256], index: 14, kind: input, shape index: {}]   ;;  %s6558_s15 = inlined_call_operand.vmem [shape: f32[2,1,256], index: 15, kind: output, shape index: {}]  }
   0x1   :  { %6564 = sst [smem:[#allocation9_spill]] %s6543_s0  ;;  %s5727_s20 = smov 0  }
   0x2   :  { %6565 = sst [smem:[#allocation10_spill]] %s6544_s1  ;;  %s5729_s21 = smov 0  }
   0x3   :  { %6566 = sst [smem:[#allocation11_spill]] %s6545_s2  ;;  %s5731_s22 = smov 0  }
   0x4   :  { %6567 = sst [smem:[#allocation12_spill]] %s6546_s3 }
   0x5   :  { %6568 = sst [smem:[#allocation13_spill]] %s6547_s4 }
   0x6   :  { %6569 = sst [smem:[#allocation14_spill]] %s6548_s5 }
   0x7   :  { %6570 = sst [smem:[#allocation15_spill]] %s6549_s6 }
   0x8   :  { %6571 = sst [smem:[#allocation16_spill]] %s6552_s9 }
   0x9   :  { %6572 = sst [smem:[#allocation17_spill]] %s6553_s10 }
   0xa   :  { %6573 = sst [smem:[#allocation18_spill]] %s6554_s11 }
   0xb   :  { %6574 = sst [smem:[#allocation19_spill]] %s6558_s15 }
   0xc LB: > { %6575 = sst [smem:[#allocation3_spill]] %s5617_s18  ;;  %s34_s23 = sadd.s32 1, %s5625_s20  ;;  %s5633_s22 = sphi %s5731_s22, %s25_s22   ;;  %s5629_s21 = sphi %s5729_s21, %s6604_s21   ;;  %s5625_s20 = sphi %s5727_s20, %s6603_s20   ;;  %s5621_s19 = sphi %s5725_s19, %s6602_s19   ;;  %s5617_s18 = sphi %s5723_s18, %s6601_s18  }
   0xd   : > { %6576 = sst [smem:[#allocation4_spill]] %s5625_s20  ;;  %s37_s24 = sadd.s32 1, %s5629_s21 }
   0xe   : > { %6577 = sst [smem:[#allocation5_spill]] %s5629_s21  ;;  %p35_p0 = scmp.ge.s32.totalorder %s34_s23, 2 }
   0xf   : > { %6578 = sst [smem:[#allocation6_spill]] %s5633_s22  ;;  %p4609_p1 = scmp.ge.s32.totalorder %s5633_s22, 1 }
  0x10   : > { %p561_p2 = scmp.lt.s32.totalorder %s5633_s22, 5  ;;  %s6606_s23 = smov (%p35_p0, %s34_s23), 0 }
  0x11   : > { %6579 = sst [smem:[#allocation7_spill]] %s6606_s23  ;;  %s6608_s24 = smov (!%p35_p0, %s37_s24), %s5629_s21 }
  0x12   : > { %p562_p3 = pnand %p4609_p1, %p561_p2  ;;  %p39_p4 = scmp.ge.s32.totalorder %s6608_s24, 2 }
  0x13   : > { %p660_p5 = scmp.lt.s32.totalorder (!%p562_p3), %s5621_s19, 1  ;;  %p665_p6 = scmp.lt.s32.totalorder (!%p562_p3), %s5617_s18, 1 }
  0x14   : > { %s6610_s24 = smov (%p39_p4, %s6608_s24), 0  ;;  %565 = sbr.rel (%p562_p3) target bundleno = 6387 (0x18f3), region = 80 }
  0x15   : > { %6580 = sst [smem:[#allocation8_spill]] %s6610_s24 }
  0x16   : > { %s6581_s0 = sld [smem:[#allocation9_spill]] (!%p562_p3) }
  0x17   : > { %s6582_s3 = sld [smem:[#allocation12_spill]] (!%p562_p3) }
  0x18   : > { %s6583_s5 = sld [smem:[#allocation14_spill]] (!%p562_p3) }
  0x19   : > { %s6612_s19 = smov (!%p660_p5, %s5621_s19), 1  ;;  %s6584_s4 = sld [smem:[#allocation13_spill]] }
  0x1a   : > { %s666_s25 = scalar_select %p665_p6, %s5617_s18, 1 }
  0x1b   : > { %s4928_s26 = sshll.u32 %s6612_s19, 3  ;;  %s4626_s27 = sshll.u32 %s6612_s19, 1 }
  0x1c   : > { %s5760_s30 = scalar_lea.vmem %s6581_s0, %s4928_s26  ;;  %s5060_s16 = smul.u32 768, %s666_s25 }
  0x1d   : > { %s5061_s17 = smul.u32 6, %s666_s25  ;;  %s4929_s23 = sshll.u32 %s666_s25, 8 }
  0x1e   : > { %s5765_s24 = scalar_lea.vmem %s6582_s3, %s5060_s16  ;;  %s5770_s1 = scalar_lea.vmem %s6583_s5, %s4929_s23 }
  0x1f   : > { %s5775_s15 = scalar_lea.vmem %s6584_s4, %s5061_s17  ;;  %s5777_s26 = sshll.u32 %s666_s25, 1 }
  0x20   : > { %s4930_s17 = sshll.u32 %s666_s25, 9  ;;  %s6586_s9 = sld [smem:[#allocation16_spill]] }
  0x21   : > { %s4620_s28 = sshll.u32 %s666_s25, 2  ;;  %s6587_s10 = sld [smem:[#allocation17_spill]] }
  0x22   : > { %s6588_s11 = sld [smem:[#allocation18_spill]]  ;;  %s712_s0 = scalar_lea.vmem %s6556_s13, %s5777_s26 }
  0x23   : > { %s6589_s29 = sld [smem:[#allocation19_spill]] }
  0x24   : > { %s6590_s6 = sld [smem:[#allocation3_spill]] }
  0x26   : > { %s5794_s3 = scalar_lea.vmem %s6586_s9, %s4930_s17  ;;  %s716_s9 = scalar_lea.vmem %s6557_s14, %s5777_s26 }
  0x27   : > { %s5799_s5 = scalar_lea.vmem %s6587_s10, %s4620_s28 }
  0x28   : > { %s5804_s2 = scalar_lea.vmem %s6588_s11, %s4930_s17 }
  0x29   : > { %s5821_s10 = scalar_lea.vmem %s6589_s29, %s4626_s27 }
  0x2a   : > { %p4627_p7 = scmp.ne.s32.totalorder %s6590_s6, 0 }
  0x2b   : > { %s6591_s21 = sld [smem:[#allocation10_spill]] (!%p4627_p7) }
  0x2c   : > { %725 = sbr.rel (%p4627_p7) target bundleno = 284 (0x11c), region = 84  ;;  %s6593_s27 = sld [smem:[#allocation11_spill]] (!%p4627_p7) }
  0x31   : > { %s6592_s23 = smov %s6591_s21  ;;  %v5110_v0 = vld [vmem:[%s6591_s21 + $0x74] ss:$8 sps:$4 sm:$0xff]   ;;  %v5635_v2 = vmov 0   ;;  %v5134_v17 = vld [vmem:[%s5760_s30] sm:$0xff]   ;;  %v746_v18 = vlaneseq }
  0x32   : > { %v5112_v1 = vld [vmem:[%s6592_s23 + $0x70] ss:$8 sps:$4 sm:$0xff]   ;;  %874 = vmatprep.mubr.bf16.mxu0 %v5635_v2  ;;  %842 = vmatprep.subr.bf16.mxu0 %v5110_v0  ;;  %v5113_v3 = vld [vmem:[%s6592_s23 + $0x64] ss:$8 sps:$4 sm:$0xff]   ;;  %v5115_v4 = vld [vmem:[%s6592_s23 + $0x60] ss:$8 sps:$4 sm:$0xff]  }
  0x33   : > { %843 = vmatpush1.bf16.msra.mxu0 %v5112_v1  ;;  %v5116_v5 = vld [vmem:[%s6592_s23 + $0x54] ss:$8 sps:$4 sm:$0xff]   ;;  %v5118_v6 = vld [vmem:[%s6592_s23 + $0x50] ss:$8 sps:$4 sm:$0xff]   ;;  %v5119_v7 = vld [vmem:[%s6592_s23 + $0x44] ss:$8 sps:$4 sm:$0xff]  }
  0x34   : > { %844 = vmatprep.subr.bf16.mxu0 %v5113_v3  ;;  %v5121_v8 = vld [vmem:[%s6592_s23 + $0x40] ss:$8 sps:$4 sm:$0xff]   ;;  %v5122_v9 = vld [vmem:[%s6592_s23 + $0x34] ss:$8 sps:$4 sm:$0xff]   ;;  %v5124_v10 = vld [vmem:[%s6592_s23 + $0x30] ss:$8 sps:$4 sm:$0xff]  }
  0x35   : > { %v5125_v11 = vld [vmem:[%s6592_s23 + $0x24] ss:$8 sps:$4 sm:$0xff]   ;;  %v5127_v12 = vld [vmem:[%s6592_s23 + $0x20] ss:$8 sps:$4 sm:$0xff]   ;;  %v5128_v13 = vld [vmem:[%s6592_s23 + $0x14] ss:$8 sps:$4 sm:$0xff]  }
  0x36   : > { %v5130_v14 = vld [vmem:[%s6592_s23 + $0x10] ss:$8 sps:$4 sm:$0xff]   ;;  %v5131_v15 = vld [vmem:[%s6592_s23 + $0x4] ss:$8 sps:$4 sm:$0xff]   ;;  %v5133_v16 = vld [vmem:[%s6592_s23] ss:$8 sps:$4 sm:$0xff]  }
  0x37   : > { %845 = vmatpush1.bf16.msra.mxu0 %v5115_v4  ;;  %v747_v19 = vshrl.u32 %v746_v18, 7  ;;  %v744_v21 = vld [vmem:[%s6593_s27] sm:$0x3] }
  0x38   : > { %846 = vmatprep.subr.bf16.mxu0 %v5116_v5 }
  0x39   : > { %v748_v20 = vsub.s32 0, %v747_v19  ;;  %v752_v22 = vsub.s32 1, %v747_v19 }
  0x3b   : > { %847 = vmatpush1.bf16.msra.mxu0 %v5118_v6  ;;  %v749_v23 = vrot.slane %v744_v21, %v748_v20  ;;  %v753_v24 = vrot.slane %v744_v21, %v752_v22 }
  0x3c   : > { %848 = vmatprep.subr.bf16.mxu0 %v5119_v7 }
  0x3f   : > { %849 = vmatpush1.bf16.msra.mxu0 %v5121_v8 }
  0x40   : > { %850 = vmatprep.subr.bf16.mxu0 %v5122_v9 }
  0x43   : > { %851 = vmatpush1.bf16.msra.mxu0 %v5124_v10 }
  0x44   : > { %852 = vmatprep.subr.bf16.mxu0 %v5125_v11 }
  0x47   : > { %853 = vmatpush1.bf16.msra.mxu0 %v5127_v12 }
  0x48   : > { %854 = vmatprep.subr.bf16.mxu0 %v5128_v13 }
  0x4b   : > { %855 = vmatpush1.bf16.msra.mxu0 %v5130_v14 }
  0x4c   : > { %856 = vmatprep.subr.bf16.mxu0 %v5131_v15 }
  0x4f   : > { %857 = vmatpush1.bf16.msra.mxu0 %v5133_v16 }
  0x52   : > { %875 = vmatmul.mubr.bf16.vlgmr.msra.gmra.mxu0 %v5134_v17 }
 0x112   : > { %v876_v25 = vpop.f32.mrf.mxu0 }
 0x113   : > { %v877_v26 = vadd.f32 %v876_v25, %v749_v23 }
 0x114   : > { %v878_v27 = vpop.f32.mrf.mxu0 }
 0x115   : > { %885 = vst [vmem:[#allocation2 + $0x10] sm:$0xff] %v877_v26  ;;  %v879_v28 = vadd.f32 %v878_v27, %v753_v24 }
 0x116   : > { %v880_v29 = vpop.f32.mrf.mxu0 }
 0x117   : > { %886 = vst [vmem:[#allocation2] sm:$0xff] %v879_v28  ;;  %v881_v30 = vadd.f32 %v880_v29, %v749_v23 }
 0x118   : > { %v882_v31 = vpop.f32.mrf.mxu0 }
 0x119   : > { %887 = vst [vmem:[#allocation2 + $0x18] sm:$0xff] %v881_v30  ;;  %v883_v32 = vadd.f32 %v882_v31, %v753_v24 }
 0x11b   : > { %888 = vst [vmem:[#allocation2 + $0x8] sm:$0xff] %v883_v32 }
 0x11c PF: > { %v5135_v33 = vld [vmem:[%s5765_s24 + $0x15c] ss:$24 sps:$4 sm:$0xff]   ;;  %v5137_v34 = vld [vmem:[%s5765_s24 + $0x158] ss:$24 sps:$4 sm:$0xff]   ;;  %v5141_v37 = vld [vmem:[%s5765_s24 + $0x12c] ss:$24 sps:$4 sm:$0xff]   ;;  %s6596_s18 = scalar_lea.vmem %s6550_s7, %s5777_s26  ;;  %s6597_s6 = scalar_lea.vmem %s6551_s8, %s5777_s26 }
 0x11d   : > { %1546 = vmatprep.subr.bf16.mxu1 %v5135_v33  ;;  %v5138_v35 = vld [vmem:[%s5765_s24 + $0x154] ss:$24 sps:$4 sm:$0xff]   ;;  %v5140_v36 = vld [vmem:[%s5765_s24 + $0x150] ss:$24 sps:$4 sm:$0xff]   ;;  %v5144_v39 = vld [vmem:[%s5765_s24 + $0x124] ss:$24 sps:$4 sm:$0xff]   ;;  %s6598_s20 = scalar_lea.vmem %s6555_s12, %s5777_s26 }
 0x11e   : > { %1547 = vmatpush1.bf16.msra.mxu1 %v5137_v34  ;;  %v5143_v38 = vld [vmem:[%s5765_s24 + $0x128] ss:$24 sps:$4 sm:$0xff]   ;;  %1503 = vmatprep.subr.bf16.mxu0 %v5138_v35  ;;  %v5147_v41 = vld [vmem:[%s5765_s24 + $0xfc] ss:$24 sps:$4 sm:$0xff]   ;;  %v5149_v42 = vld [vmem:[%s5765_s24 + $0xf8] ss:$24 sps:$4 sm:$0xff]  }
 0x11f   : > { %1504 = vmatpush1.bf16.msra.mxu0 %v5140_v36  ;;  %1548 = vmatprep.subr.bf16.mxu1 %v5141_v37  ;;  %v5146_v40 = vld [vmem:[%s5765_s24 + $0x120] ss:$24 sps:$4 sm:$0xff]   ;;  %v5150_v43 = vld [vmem:[%s5765_s24 + $0xf4] ss:$24 sps:$4 sm:$0xff]   ;;  %v5152_v45 = vld [vmem:[%s5765_s24 + $0xf0] ss:$24 sps:$4 sm:$0xff]  }
 0x120   : > { %1505 = vmatprep.subr.bf16.mxu0 %v5144_v39  ;;  %v5153_v44 = vld [vmem:[%s5765_s24 + $0xcc] ss:$24 sps:$4 sm:$0xff]   ;;  %v5155_v47 = vld [vmem:[%s5765_s24 + $0xc8] ss:$24 sps:$4 sm:$0xff]   ;;  %v5159_v48 = vld [vmem:[%s5765_s24 + $0x9c] ss:$24 sps:$4 sm:$0xff]  }
 0x121   : > { %v5156_v46 = vld [vmem:[%s5765_s24 + $0xc4] ss:$24 sps:$4 sm:$0xff]   ;;  %v5158_v49 = vld [vmem:[%s5765_s24 + $0xc0] ss:$24 sps:$4 sm:$0xff]   ;;  %v5162_v50 = vld [vmem:[%s5765_s24 + $0x94] ss:$24 sps:$4 sm:$0xff]  }
 0x122   : > { %1549 = vmatpush1.bf16.msra.mxu1 %v5143_v38  ;;  %v5161_v51 = vld [vmem:[%s5765_s24 + $0x98] ss:$24 sps:$4 sm:$0xff]   ;;  %v5165_v52 = vld [vmem:[%s5765_s24 + $0x6c] ss:$24 sps:$4 sm:$0xff]   ;;  %v5167_v55 = vld [vmem:[%s5765_s24 + $0x68] ss:$24 sps:$4 sm:$0xff]  }
 0x123   : > { %1550 = vmatprep.subr.bf16.mxu1 %v5147_v41  ;;  %1506 = vmatpush1.bf16.msra.mxu0 %v5146_v40  ;;  %v5164_v53 = vld [vmem:[%s5765_s24 + $0x90] ss:$24 sps:$4 sm:$0xff]   ;;  %v5168_v54 = vld [vmem:[%s5765_s24 + $0x64] ss:$24 sps:$4 sm:$0xff]   ;;  %v5170_v57 = vld [vmem:[%s5765_s24 + $0x60] ss:$24 sps:$4 sm:$0xff]   ;;  %v993_v40 = vlaneseq }
 0x124   : > { %1507 = vmatprep.subr.bf16.mxu0 %v5150_v43  ;;  %v5171_v56 = vld [vmem:[%s5765_s24 + $0x3c] ss:$24 sps:$4 sm:$0xff]   ;;  %v5173_v59 = vld [vmem:[%s5765_s24 + $0x38] ss:$24 sps:$4 sm:$0xff]   ;;  %v5177_v60 = vld [vmem:[%s5765_s24 + $0xc] ss:$24 sps:$4 sm:$0xff]  }
 0x125   : > { %v5174_v58 = vld [vmem:[%s5765_s24 + $0x34] ss:$24 sps:$4 sm:$0xff]   ;;  %v5176_v61 = vld [vmem:[%s5765_s24 + $0x30] ss:$24 sps:$4 sm:$0xff]   ;;  %v5180_v62 = vld [vmem:[%s5765_s24 + $0x4] ss:$24 sps:$4 sm:$0xff]  }
 0x126   : > { %1551 = vmatpush1.bf16.msra.mxu1 %v5149_v42  ;;  %v5179_v63 = vld [vmem:[%s5765_s24 + $0x8] ss:$24 sps:$4 sm:$0xff]   ;;  %v5183_v0 = vld [vmem:[%s5765_s24 + $0x2dc] ss:$24 sps:$4 sm:$0xff]   ;;  %v5185_v3 = vld [vmem:[%s5765_s24 + $0x2d8] ss:$24 sps:$4 sm:$0xff]  }
 0x127   : > { %1552 = vmatprep.subr.bf16.mxu1 %v5153_v44  ;;  %1508 = vmatpush1.bf16.msra.mxu0 %v5152_v45  ;;  %v5182_v1 = vld [vmem:[%s5765_s24] ss:$24 sps:$4 sm:$0xff]   ;;  %v5186_v2 = vld [vmem:[%s5765_s24 + $0x2d4] ss:$24 sps:$4 sm:$0xff]   ;;  %v5188_v5 = vld [vmem:[%s5765_s24 + $0x2d0] ss:$24 sps:$4 sm:$0xff]  }
 0x128   : > { %1509 = vmatprep.subr.bf16.mxu0 %v5156_v46  ;;  %v5189_v4 = vld [vmem:[%s5765_s24 + $0x2ac] ss:$24 sps:$4 sm:$0xff]   ;;  %v5191_v7 = vld [vmem:[%s5765_s24 + $0x2a8] ss:$24 sps:$4 sm:$0xff]   ;;  %v5195_v8 = vld [vmem:[%s5765_s24 + $0x27c] ss:$24 sps:$4 sm:$0xff]  }
 0x129   : > { %v5192_v6 = vld [vmem:[%s5765_s24 + $0x2a4] ss:$24 sps:$4 sm:$0xff]   ;;  %v5194_v9 = vld [vmem:[%s5765_s24 + $0x2a0] ss:$24 sps:$4 sm:$0xff]   ;;  %v5198_v10 = vld [vmem:[%s5765_s24 + $0x274] ss:$24 sps:$4 sm:$0xff]  }
 0x12a   : > { %1553 = vmatpush1.bf16.msra.mxu1 %v5155_v47  ;;  %v5197_v11 = vld [vmem:[%s5765_s24 + $0x278] ss:$24 sps:$4 sm:$0xff]   ;;  %v5201_v12 = vld [vmem:[%s5765_s24 + $0x24c] ss:$24 sps:$4 sm:$0xff]   ;;  %v5203_v17 = vld [vmem:[%s5765_s24 + $0x248] ss:$24 sps:$4 sm:$0xff]  }
 0x12b   : > { %1554 = vmatprep.subr.bf16.mxu1 %v5159_v48  ;;  %1510 = vmatpush1.bf16.msra.mxu0 %v5158_v49  ;;  %v5200_v13 = vld [vmem:[%s5765_s24 + $0x270] ss:$24 sps:$4 sm:$0xff]   ;;  %v5204_v14 = vld [vmem:[%s5765_s24 + $0x244] ss:$24 sps:$4 sm:$0xff]   ;;  %v5206_v18 = vld [vmem:[%s5765_s24 + $0x240] ss:$24 sps:$4 sm:$0xff]  }
 0x12c   : > { %1511 = vmatprep.subr.bf16.mxu0 %v5162_v50  ;;  %v890_v15 = vld [vmem:[#allocation2] sm:$0xff]  ;;  %v892_v16 = vld [vmem:[#allocation2 + $0x8] sm:$0xff]  ;;  %v5207_v19 = vld [vmem:[%s5765_s24 + $0x21c] ss:$24 sps:$4 sm:$0xff]   ;;  %v5636_v39 = vmov 0.0   ;;  %vm5637_vm0 = vmmov 0  }
 0x12d   : > { %v894_v20 = vpack.c.bf16 %v892_v16, %v890_v15  ;;  %v5210_v21 = vld [vmem:[%s5765_s24 + $0x214] ss:$24 sps:$4 sm:$0xff]   ;;  %v5209_v22 = vld [vmem:[%s5765_s24 + $0x218] ss:$24 sps:$4 sm:$0xff]   ;;  %v5216_v25 = vld [vmem:[%s5765_s24 + $0x1e4] ss:$24 sps:$4 sm:$0xff]  }
 0x12e   : > { %1555 = vmatpush1.bf16.msra.mxu1 %v5161_v51  ;;  %v5213_v23 = vld [vmem:[%s5765_s24 + $0x1ec] ss:$24 sps:$4 sm:$0xff]   ;;  %v5212_v24 = vld [vmem:[%s5765_s24 + $0x210] ss:$24 sps:$4 sm:$0xff]   ;;  %v5219_v27 = vld [vmem:[%s5765_s24 + $0x1bc] ss:$24 sps:$4 sm:$0xff]  }
 0x12f   : > { %1556 = vmatprep.subr.bf16.mxu1 %v5165_v52  ;;  %1512 = vmatpush1.bf16.msra.mxu0 %v5164_v53  ;;  %v5215_v26 = vld [vmem:[%s5765_s24 + $0x1e8] ss:$24 sps:$4 sm:$0xff]   ;;  %v5222_v29 = vld [vmem:[%s5765_s24 + $0x1b4] ss:$24 sps:$4 sm:$0xff]   ;;  %v5221_v30 = vld [vmem:[%s5765_s24 + $0x1b8] ss:$24 sps:$4 sm:$0xff]  }
 0x130   : > { %1513 = vmatprep.subr.bf16.mxu0 %v5168_v54  ;;  %1578 = vmatprep.mubr.bf16.mxu1 %v894_v20  ;;  %v5218_v28 = vld [vmem:[%s5765_s24 + $0x1e0] ss:$24 sps:$4 sm:$0xff]   ;;  %v5225_v31 = vld [vmem:[%s5765_s24 + $0x18c] ss:$24 sps:$4 sm:$0xff]   ;;  %v5224_v32 = vld [vmem:[%s5765_s24 + $0x1b0] ss:$24 sps:$4 sm:$0xff]  }
 0x131   : > { %1535 = vmatprep.mubr.bf16.mxu0 %v894_v20  ;;  %v5228_v33 = vld [vmem:[%s5765_s24 + $0x184] ss:$24 sps:$4 sm:$0xff]   ;;  %v5227_v34 = vld [vmem:[%s5765_s24 + $0x188] ss:$24 sps:$4 sm:$0xff]   ;;  %v889_v35 = vld [vmem:[#allocation2 + $0x10] sm:$0xff]  ;;  %v5948_v41 = vshrl.u32 %v993_v40, 7 }
 0x132   : > { %1557 = vmatpush1.bf16.msra.mxu1 %v5167_v55  ;;  %v891_v36 = vld [vmem:[#allocation2 + $0x18] sm:$0xff]  ;;  %v5952_v43 = vld [vmem:[%s5775_s15] sm:$0x3f]  ;;  %vm1635_vm1 = vcmask 261120   ;;  %v5258_v15 = vld [vmem:[%s5765_s24 + $0x2b0] ss:$24 sps:$4 sm:$0xff]  }
 0x133   : > { %1558 = vmatprep.subr.bf16.mxu1 %v5171_v56  ;;  %1514 = vmatpush1.bf16.msra.mxu0 %v5170_v57  ;;  %v5230_v37 = vld [vmem:[%s5765_s24 + $0x180] ss:$24 sps:$4 sm:$0xff]   ;;  %v5940_v38 = vpack.c.bf16 %v891_v36, %v889_v35  ;;  %v1003_v42 = vsub.s32 2, %v5948_v41  ;;  %v5960_v48 = vsub.s32 0, %v5948_v41  ;;  %v5263_v16 = vld [vmem:[%s5765_s24 + $0x284] ss:$24 sps:$4 sm:$0xff]  }
 0x134   : > { %1515 = vmatprep.subr.bf16.mxu0 %v5174_v58  ;;  %vm1685_vm2 = vcmask 130048   ;;  %s5638_s15 = smov 96   ;;  %s5641_s30 = smov 32  }
 0x135   : > { %v1004_v45 = vrot.slane %v5952_v43, %v1003_v42  ;;  %v996_v53 = vrot.slane %v5952_v43, %v5960_v48  ;;  %s6594_s4 = sld [smem:[#allocation15_spill]] }
 0x136   : > { %1559 = vmatpush1.bf16.msra.mxu1 %v5173_v59 }
 0x137   : > { %1560 = vmatprep.subr.bf16.mxu1 %v5177_v60  ;;  %1516 = vmatpush1.bf16.msra.mxu0 %v5176_v61  ;;  %v5231_v60 = vld [vmem:[%s5765_s24 + $0x160] ss:$24 sps:$4 sm:$0xff]   ;;  %v5233_v61 = vld [vmem:[%s5765_s24 + $0x164] ss:$24 sps:$4 sm:$0xff]  }
 0x138   : > { %1517 = vmatprep.subr.bf16.mxu0 %v5180_v62  ;;  %v5236_v62 = vld [vmem:[%s5765_s24 + $0x134] ss:$24 sps:$4 sm:$0xff]  }
 0x13a   : > { %1561 = vmatpush1.bf16.msra.mxu1 %v5179_v63  ;;  %v5234_v63 = vld [vmem:[%s5765_s24 + $0x130] ss:$24 sps:$4 sm:$0xff]  }
 0x13b   : > { %1562 = vmatprep.subr.bf16.mxu1 %v5183_v0  ;;  %1518 = vmatpush1.bf16.msra.mxu0 %v5182_v1  ;;  %v5239_v0 = vld [vmem:[%s5765_s24 + $0x104] ss:$24 sps:$4 sm:$0xff]   ;;  %v5237_v1 = vld [vmem:[%s5765_s24 + $0x100] ss:$24 sps:$4 sm:$0xff]   ;;  %s6595_s11 = scalar_lea.vmem %s6594_s4, %s5777_s26 }
 0x13c   : > { %1519 = vmatprep.subr.bf16.mxu0 %v5186_v2  ;;  %v5242_v2 = vld [vmem:[%s5765_s24 + $0xd4] ss:$24 sps:$4 sm:$0xff]  }
 0x13e   : > { %1563 = vmatpush2.bf16.msra.mxu1 %v5185_v3  ;;  %v5240_v3 = vld [vmem:[%s5765_s24 + $0xd0] ss:$24 sps:$4 sm:$0xff]  }
 0x13f   : > { %1564 = vmatprep.subr.bf16.mxu1 %v5189_v4  ;;  %1520 = vmatpush2.bf16.msra.mxu0 %v5188_v5  ;;  %v5245_v4 = vld [vmem:[%s5765_s24 + $0xa4] ss:$24 sps:$4 sm:$0xff]   ;;  %v5243_v5 = vld [vmem:[%s5765_s24 + $0xa0] ss:$24 sps:$4 sm:$0xff]  }
 0x140   : > { %1521 = vmatprep.subr.bf16.mxu0 %v5192_v6  ;;  %v5248_v6 = vld [vmem:[%s5765_s24 + $0x74] ss:$24 sps:$4 sm:$0xff]  }
 0x142   : > { %1565 = vmatpush2.bf16.msra.mxu1 %v5191_v7  ;;  %v5246_v7 = vld [vmem:[%s5765_s24 + $0x70] ss:$24 sps:$4 sm:$0xff]  }
 0x143   : > { %1566 = vmatprep.subr.bf16.mxu1 %v5195_v8  ;;  %1522 = vmatpush2.bf16.msra.mxu0 %v5194_v9  ;;  %v5251_v8 = vld [vmem:[%s5765_s24 + $0x44] ss:$24 sps:$4 sm:$0xff]   ;;  %v5249_v9 = vld [vmem:[%s5765_s24 + $0x40] ss:$24 sps:$4 sm:$0xff]  }
 0x144   : > { %1523 = vmatprep.subr.bf16.mxu0 %v5198_v10  ;;  %v5254_v10 = vld [vmem:[%s5765_s24 + $0x14] ss:$24 sps:$4 sm:$0xff]  }
 0x146   : > { %1567 = vmatpush2.bf16.msra.mxu1 %v5197_v11  ;;  %v5252_v11 = vld [vmem:[%s5765_s24 + $0x10] ss:$24 sps:$4 sm:$0xff]  }
 0x147   : > { %1568 = vmatprep.subr.bf16.mxu1 %v5201_v12  ;;  %1524 = vmatpush2.bf16.msra.mxu0 %v5200_v13  ;;  %v5257_v12 = vld [vmem:[%s5765_s24 + $0x2e4] ss:$24 sps:$4 sm:$0xff]   ;;  %v5255_v13 = vld [vmem:[%s5765_s24 + $0x2e0] ss:$24 sps:$4 sm:$0xff]  }
 0x148   : > { %1525 = vmatprep.subr.bf16.mxu0 %v5204_v14  ;;  %v5260_v14 = vld [vmem:[%s5765_s24 + $0x2b4] ss:$24 sps:$4 sm:$0xff]  }
 0x14a   : > { %1569 = vmatpush2.bf16.msra.mxu1 %v5203_v17  ;;  %v5261_v17 = vld [vmem:[%s5765_s24 + $0x280] ss:$24 sps:$4 sm:$0xff]  }
 0x14b   : > { %1570 = vmatprep.subr.bf16.mxu1 %v5207_v19  ;;  %1526 = vmatpush2.bf16.msra.mxu0 %v5206_v18  ;;  %v5266_v18 = vld [vmem:[%s5765_s24 + $0x254] ss:$24 sps:$4 sm:$0xff]   ;;  %v5264_v19 = vld [vmem:[%s5765_s24 + $0x250] ss:$24 sps:$4 sm:$0xff]  }
 0x14c   : > { %1527 = vmatprep.subr.bf16.mxu0 %v5210_v21  ;;  %v5267_v21 = vld [vmem:[%s5765_s24 + $0x220] ss:$24 sps:$4 sm:$0xff]  }
 0x14e   : > { %1571 = vmatpush2.bf16.msra.mxu1 %v5209_v22  ;;  %v5272_v22 = vld [vmem:[%s5765_s24 + $0x1f4] ss:$24 sps:$4 sm:$0xff]  }
 0x14f   : > { %1572 = vmatprep.subr.bf16.mxu1 %v5213_v23  ;;  %1528 = vmatpush2.bf16.msra.mxu0 %v5212_v24  ;;  %v5270_v23 = vld [vmem:[%s5765_s24 + $0x1f0] ss:$24 sps:$4 sm:$0xff]   ;;  %v5275_v24 = vld [vmem:[%s5765_s24 + $0x1c4] ss:$24 sps:$4 sm:$0xff]  }
 0x150   : > { %1529 = vmatprep.subr.bf16.mxu0 %v5216_v25  ;;  %v5273_v25 = vld [vmem:[%s5765_s24 + $0x1c0] ss:$24 sps:$4 sm:$0xff]  }
 0x152   : > { %1573 = vmatpush2.bf16.msra.mxu1 %v5215_v26  ;;  %v5278_v26 = vld [vmem:[%s5765_s24 + $0x194] ss:$24 sps:$4 sm:$0xff]  }
 0x153   : > { %1574 = vmatprep.subr.bf16.mxu1 %v5219_v27  ;;  %1530 = vmatpush2.bf16.msra.mxu0 %v5218_v28  ;;  %v5276_v27 = vld [vmem:[%s5765_s24 + $0x190] ss:$24 sps:$4 sm:$0xff]  }
 0x154   : > { %1531 = vmatprep.subr.bf16.mxu0 %v5222_v29 }
 0x156   : > { %1575 = vmatpush2.bf16.msra.mxu1 %v5221_v30 }
 0x157   : > { %1576 = vmatprep.subr.bf16.mxu1 %v5225_v31  ;;  %1532 = vmatpush2.bf16.msra.mxu0 %v5224_v32 }
 0x158   : > { %1533 = vmatprep.subr.bf16.mxu0 %v5228_v33 }
 0x15a   : > { %1577 = vmatpush2.bf16.msra.mxu1 %v5227_v34 }
 0x15b   : > { %1534 = vmatpush2.bf16.msra.mxu0 %v5230_v37  ;;  %4964 = vmatprep.subr.bf16.mxu1 %v5636_v39 }
 0x15c   : > { %1589 = vmatprep.subr.bf16.mxu0 %v5233_v61 }
 0x15d   : > { %1579 = vmatmul.mubr.bf16.vlgmr.msra.gmra.mxu1 %v5940_v38 }
 0x15e   : > { %1536 = vmatmul.mubr.bf16.vlgmr.msra.gmra.mxu0 %v5940_v38  ;;  %4966 = vmatprep.mubr.msk.bf16.mxu1 %vm5637_vm0, %v5636_v39 }
 0x15f   : > { %1621 = vmatprep.mubr.bf16.mxu0 %v894_v20  ;;  %1590 = vmatpush1.bf16.msra.mxu0 %v5231_v60  ;;  %v5269_v20 = vld [vmem:[%s5765_s24 + $0x224] ss:$24 sps:$4 sm:$0xff]   ;;  %s5639_s24 = smov 64  }
 0x160   : > { %1591 = vmatprep.subr.bf16.mxu0 %v5236_v62 }
 0x163   : > { %1592 = vmatpush1.bf16.msra.mxu0 %v5234_v63 }
 0x164   : > { %1593 = vmatprep.subr.bf16.mxu0 %v5239_v0 }
 0x167   : > { %1594 = vmatpush1.bf16.msra.mxu0 %v5237_v1 }
 0x168   : > { %1595 = vmatprep.subr.bf16.mxu0 %v5242_v2 }
 0x16b   : > { %1596 = vmatpush1.bf16.msra.mxu0 %v5240_v3 }
 0x16c   : > { %1597 = vmatprep.subr.bf16.mxu0 %v5245_v4 }
 0x16f   : > { %1598 = vmatpush1.bf16.msra.mxu0 %v5243_v5 }
 0x170   : > { %1599 = vmatprep.subr.bf16.mxu0 %v5248_v6 }
 0x173   : > { %1600 = vmatpush1.bf16.msra.mxu0 %v5246_v7 }
 0x174   : > { %1601 = vmatprep.subr.bf16.mxu0 %v5251_v8 }
 0x177   : > { %1602 = vmatpush1.bf16.msra.mxu0 %v5249_v9 }
 0x178   : > { %1603 = vmatprep.subr.bf16.mxu0 %v5254_v10 }
 0x17b   : > { %1604 = vmatpush1.bf16.msra.mxu0 %v5252_v11 }
 0x17c   : > { %1605 = vmatprep.subr.bf16.mxu0 %v5257_v12 }
 0x17f   : > { %1606 = vmatpush2.bf16.msra.mxu0 %v5255_v13 }
 0x180   : > { %1607 = vmatprep.subr.bf16.mxu0 %v5260_v14 }
 0x183   : > { %1608 = vmatpush2.bf16.msra.mxu0 %v5258_v15 }
 0x184   : > { %1609 = vmatprep.subr.bf16.mxu0 %v5263_v16 }
 0x187   : > { %1610 = vmatpush2.bf16.msra.mxu0 %v5261_v17 }
 0x188   : > { %1611 = vmatprep.subr.bf16.mxu0 %v5266_v18 }
 0x18b   : > { %1612 = vmatpush2.bf16.msra.mxu0 %v5264_v19 }
 0x18c   : > { %1613 = vmatprep.subr.bf16.mxu0 %v5269_v20 }
 0x18f   : > { %1614 = vmatpush2.bf16.msra.mxu0 %v5267_v21 }
 0x190   : > { %1615 = vmatprep.subr.bf16.mxu0 %v5272_v22 }
 0x193   : > { %1616 = vmatpush2.bf16.msra.mxu0 %v5270_v23 }
 0x194   : > { %1617 = vmatprep.subr.bf16.mxu0 %v5275_v24 }
 0x197   : > { %1618 = vmatpush2.bf16.msra.mxu0 %v5273_v25 }
 0x198   : > { %1619 = vmatprep.subr.bf16.mxu0 %v5278_v26 }
 0x19b   : > { %1620 = vmatpush2.bf16.msra.mxu0 %v5276_v27 }
 0x19e   : > { %1622 = vmatmul.mubr.bf16.vlgmr.msra.gmra.mxu0 %v5940_v38 }
 0x21d   : > { %v1580_v44 = vpop.f32.mrf.mxu1 }
 0x21e   : > { %v1537_v47 = vpop.f32.mrf.mxu0  ;;  %v1581_v50 = vadd.f32 %v1580_v44, %v1004_v45 }
 0x21f   : > { %v5957_v46 = vpop.f32.mrf.mxu1  ;;  %v1538_v57 = vadd.f32 %v1537_v47, %v996_v53 }
 0x220   : > { %v5962_v52 = vpop.f32.mrf.mxu0 }
 0x221   : > { %v1584_v49 = vpop.f32.mrf.mxu1 }
 0x222   : > { %v1585_v51 = vadd.f32 %v1584_v49, %v1004_v45  ;;  %v1541_v56 = vpop.f32.mrf.mxu0 }
 0x223   : > { %v1542_v58 = vadd.f32 %v1541_v56, %v996_v53  ;;  %v6010_v28 = vpop.f32.mrf.mxu1 }
 0x224   : > { %v5966_v54 = vpack.c.bf16 %v1585_v51, %v1581_v50  ;;  %v6018_v56 = vpop.f32.mrf.mxu0 }
 0x225   : > { %v5971_v59 = vpack.c.bf16 %v1542_v58, %v1538_v57  ;;  %v1011_v57 = vsub.s32 4, %v5948_v41 }
 0x226   : > { %v1640_v55 = vsel %vm1635_vm1, %v5966_v54, 0 }
 0x227   : > { %4965 = vmatpush3.bf16.xpose.msra.mxu1 %v1640_v55  ;;  %v1012_v60 = vrot.slane %v5952_v43, %v1011_v57  ;;  %v5282_v57 = vld [vmem:[%s5770_s1 + $0x20] ss:$8 sps:$4 sm:$0xff]  }
 0x228   : > { %4970 = vmatprep.subr.bf16.mxu1 %v5636_v39 }
 0x22e   : > { %4967 = vmatmul.mubr.msk.bf16.vlgmr.msra.gmra.mxu1 %vm1635_vm1, %v5971_v59 }
 0x22f   : > { %4972 = vmatprep.mubr.msk.bf16.mxu1 %vm5637_vm0, %v5636_v39 }
 0x25e   : > { %v1623_v58 = vpop.f32.mrf.mxu0 }
 0x25f   : > { %v1624_v62 = vadd.f32 %v1623_v58, %v1012_v60  ;;  %v5287_v58 = vld [vmem:[%s5770_s1 + $0x14] ss:$8 sps:$4 sm:$0xff]  }
 0x260   : > { %v6022_v61 = vpop.f32.mrf.mxu0 }
 0x262   : > { %v1627_v63 = vpop.f32.mrf.mxu0 }
 0x263   : > { %v1628_v0 = vadd.f32 %v1627_v63, %v1012_v60  ;;  %v5640_v60 = vmov 0  }
 0x264   : > { %2204 = vmatprep.mubr.bf16.mxu0 %v5640_v60 }
 0x265   : > { %v6024_v1 = vpack.c.bf16 %v1628_v0, %v1624_v62 }
 0x267   : > { %4971 = vmatpush3.bf16.msra.mxu1 %v6024_v1 }
 0x268   : > { %4976 = vmatprep.subr.bf16.mxu1 %v5636_v39 }
 0x2ee   : > { %v1676_v29 = vpop.f32.mrf.mxu1 }
 0x2ef   : > { %v1683_v30 = vmul.f32 0.17677669, %v1676_v29 }
 0x2f0   : > { %v4968_v31 = vpop.f32.mrf.mxu1 }
 0x2f1   : > { %v1686_v32 = vsel %vm1685_vm2, %v1683_v30, -inf }
 0x2f2   : > { %1687 = vmax.xlane.f32.xlu0 %v1686_v32  ;;  %v1679_v33 = vpop.f32.mrf.mxu1 }
 0x2f3   : > { %v1684_v34 = vmul.f32 0.17677669, %v1679_v33 }
 0x2f4   : > { %v4969_v35 = vpop.f32.mrf.mxu1 }
 0x2f5   : > { %v1689_v36 = vsel %vm1685_vm2, %v1684_v34, -inf }
 0x2f6   : > { %1690 = vmax.xlane.f32.xlu0 %v1689_v36 }
 0x30c   : > { %1762 = vrot.lane.b32.xlu0 %v5966_v54, %s5638_s15 }
 0x37b   : > { %v1688_v37 = vpop.xlane.xlu0 %1687 }
 0x37c   : > { %v1692_v38 = vsub.f32 %v1683_v30, %v1688_v37  ;;  %v5281_v37 = vld [vmem:[%s5770_s1 + $0x34] ss:$8 sps:$4 sm:$0xff]  }
 0x37e   : > { %v1694_v44 = vmul.f32 1.442695, %v1692_v38 }
 0x37f   : > { %v1691_v45 = vpop.xlane.xlu0 %1690 }
 0x380   : > { %5519 = vpow2.f32 %v1694_v44  ;;  %v1693_v47 = vsub.f32 %v1684_v34, %v1691_v45 }
 0x382   : > { %v1696_v49 = vmul.f32 1.442695, %v1693_v47 }
 0x383   : > { %v1763_v8 = vpop.permute.xlu0 %1762 }
 0x384   : > { %5521 = vpow2.f32 %v1696_v49  ;;  %v1768_v10 = vsel %vm1635_vm1, %v1763_v8, 0 }
 0x38d   : > { %v5520_v50 = vpop.eup %5519 }
 0x38e   : > { %v1698_v51 = vsel %vm1685_vm2, %v5520_v50, 0.0 }
 0x38f   : > { %1699 = vadd.xlane.f32.xlu1 %v1698_v51  ;;  %v5279_v51 = vld [vmem:[%s5770_s1 + $0x30] ss:$8 sps:$4 sm:$0xff]  }
 0x391   : > { %v5522_v53 = vpop.eup %5521 }
 0x392   : > { %v1701_v55 = vsel %vm1685_vm2, %v5522_v53, 0.0 }
 0x393   : > { %1702 = vadd.xlane.f32.xlu1 %v1701_v55  ;;  %v5284_v55 = vld [vmem:[%s5770_s1 + $0x24] ss:$8 sps:$4 sm:$0xff]  }
 0x3a4   : > { %1759 = vrot.lane.b32.xlu1 %v5971_v59, %s5638_s15 }
 0x418   : > { %v1700_v2 = vpop.xlane.xlu1 %1699 }
 0x419   : > { %5523 = vrcp.f32 %v1700_v2  ;;  %v5285_v2 = vld [vmem:[%s5770_s1 + $0x10] ss:$8 sps:$4 sm:$0xff]  }
 0x41c   : > { %v1703_v3 = vpop.xlane.xlu1 %1702 }
 0x41d   : > { %5525 = vrcp.f32 %v1703_v3 }
 0x420   : > { %v1760_v11 = vpop.permute.xlu1 %1759 }
 0x426   : > { %v5524_v4 = vpop.eup %5523 }
 0x427   : > { %v1706_v6 = vmul.f32 %v5524_v4, %v5520_v50  ;;  %v5290_v4 = vld [vmem:[%s5770_s1 + $0x4] ss:$8 sps:$4 sm:$0xff]  }
 0x42a   : > { %v5526_v5 = vpop.eup %5525 }
 0x42b   : > { %v1707_v7 = vmul.f32 %v5526_v5, %v5522_v53 }
 0x42d   : > { %v1708_v9 = vpack.c.bf16 %v1707_v7, %v1706_v6  ;;  %v5288_v6 = vld [vmem:[%s5770_s1] ss:$8 sps:$4 sm:$0xff]  }
 0x42f   : > { %4973 = vmatmul.mubr.msk.bf16.vlgmr.msra.gmra.mxu1 %vm1685_vm2, %v1708_v9 }
 0x430   : > { %4977 = vmatpush3.bf16.xpose.msra.mxu1 %v1768_v10  ;;  %4978 = vmatprep.mubr.msk.bf16.mxu1 %vm5637_vm0, %v5636_v39 }
 0x431   : > { %4982 = vmatprep.subr.bf16.mxu1 %v5636_v39 }
 0x437   : > { %4979 = vmatmul.mubr.msk.bf16.vlgmr.msra.gmra.mxu1 %vm1635_vm1, %v1760_v11 }
 0x438   : > { %4984 = vmatprep.mubr.msk.bf16.mxu1 %vm5637_vm0, %v5636_v39 }
 0x4ef   : > { %v6038_v12 = vpop.f32.mrf.mxu1 }
 0x4f1   : > { %v4974_v13 = vpop.f32.mrf.mxu1 }
 0x4f3   : > { %v6040_v14 = vpop.f32.mrf.mxu1 }
 0x4f4   : > { %v1753_v15 = vpack.c.bf16 %v6040_v14, %v6038_v12 }
 0x4f5   : > { %v4975_v16 = vpop.f32.mrf.mxu1 }
 0x4f7   : > { %v1804_v17 = vpop.f32.mrf.mxu1 }
 0x4f8   : > { %v1811_v18 = vmul.f32 0.17677669, %v1804_v17 }
 0x4f9   : > { %v4980_v19 = vpop.f32.mrf.mxu1 }
 0x4fa   : > { %v1813_v20 = vsel %vm1685_vm2, %v1811_v18, -inf }
 0x4fb   : > { %1814 = vmax.xlane.f32.xlu1 %v1813_v20  ;;  %v1807_v21 = vpop.f32.mrf.mxu1 }
 0x4fc   : > { %v1812_v22 = vmul.f32 0.17677669, %v1807_v21 }
 0x4fd   : > { %v4981_v23 = vpop.f32.mrf.mxu1 }
 0x4fe   : > { %v1816_v24 = vsel %vm1685_vm2, %v1812_v22, -inf }
 0x4ff   : > { %1817 = vmax.xlane.f32.xlu0 %v1816_v24 }
 0x584   : > { %v1815_v25 = vpop.xlane.xlu1 %1814 }
 0x585   : > { %v1819_v26 = vsub.f32 %v1811_v18, %v1815_v25 }
 0x587   : > { %v1821_v27 = vmul.f32 1.442695, %v1819_v26 }
 0x588   : > { %v1818_v29 = vpop.xlane.xlu0 %1817 }
 0x589   : > { %5527 = vpow2.f32 %v1821_v27  ;;  %v1820_v30 = vsub.f32 %v1812_v22, %v1818_v29 }
 0x58b   : > { %v1823_v31 = vmul.f32 1.442695, %v1820_v30 }
 0x58d   : > { %5529 = vpow2.f32 %v1823_v31 }
 0x596   : > { %v5528_v32 = vpop.eup %5527 }
 0x597   : > { %v1825_v33 = vsel %vm1685_vm2, %v5528_v32, 0.0 }
 0x598   : > { %1826 = vadd.xlane.f32.xlu0 %v1825_v33 }
 0x59a   : > { %v5530_v34 = vpop.eup %5529 }
 0x59b   : > { %v1828_v35 = vsel %vm1685_vm2, %v5530_v34, 0.0 }
 0x59c   : > { %1829 = vadd.xlane.f32.xlu1 %v1828_v35 }
 0x5ad   : > { %2023 = vrot.lane.b32.xlu1 %v5966_v54, %s5639_s24 }
 0x5ae   : > { %1837 = vrot.lane.b32.xlu0 %v6024_v1, %s5638_s15 }
 0x5b1   : > { %2021 = vrot.lane.b32.xlu1 %v5971_v59, %s5639_s24 }
 0x621   : > { %v1827_v36 = vpop.xlane.xlu0 %1826 }
 0x622   : > { %5531 = vrcp.f32 %v1827_v36 }
 0x625   : > { %v1830_v38 = vpop.xlane.xlu1 %1829  ;;  %v1838_v44 = vpop.permute.xlu0 %1837 }
 0x626   : > { %5533 = vrcp.f32 %v1830_v38  ;;  %4983 = vmatpush3.bf16.msra.mxu1 %v1838_v44 }
 0x627   : > { %1924 = vmatprep.subr.bf16.mxu1 %v5281_v37 }
 0x629   : > { %v2024_v7 = vpop.permute.xlu1 %2023 }
 0x62a   : > { %v2029_v8 = vsel %vm1635_vm1, %v2024_v7, 0 }
 0x62d   : > { %v2022_v9 = vpop.permute.xlu1 %2021 }
 0x62f   : > { %v5532_v45 = vpop.eup %5531 }
 0x630   : > { %v1833_v49 = vmul.f32 %v5532_v45, %v5528_v32 }
 0x633   : > { %v5534_v47 = vpop.eup %5533 }
 0x634   : > { %v1834_v50 = vmul.f32 %v5534_v47, %v5530_v34  ;;  %v5291_v47 = vld [vmem:[%s5770_s1 + $0x50] ss:$8 sps:$4 sm:$0xff]  }
 0x636   : > { %v1835_v53 = vpack.c.bf16 %v1834_v50, %v1833_v49  ;;  %v5293_v49 = vld [vmem:[%s5770_s1 + $0x54] ss:$8 sps:$4 sm:$0xff]  }
 0x637   : > { %2184 = vmatprep.subr.bf16.mxu0 %v5293_v49 }
 0x638   : > { %4985 = vmatmul.mubr.msk.bf16.vlgmr.msra.gmra.mxu1 %vm1685_vm2, %v1835_v53  ;;  %2185 = vmatpush1.bf16.msra.mxu0 %v5291_v47  ;;  %v5297_v47 = vld [vmem:[%s5770_s1 + $0x70] ss:$8 sps:$4 sm:$0xff]  }
 0x639   : > { %1925 = vmatpush1.bf16.msra.mxu1 %v5279_v51  ;;  %1944 = vmatprep.mubr.bf16.mxu1 %v5640_v60 }
 0x63a   : > { %1926 = vmatprep.subr.bf16.mxu1 %v5284_v55 }
 0x63d   : > { %1927 = vmatpush1.bf16.msra.mxu1 %v5282_v57 }
 0x63e   : > { %1990 = vmatprep.subr.bf16.mxu1 %v5287_v58 }
 0x6f8   : > { %v1877_v62 = vpop.f32.mrf.mxu1 }
 0x6fa   : > { %v4986_v63 = vpop.f32.mrf.mxu1 }
 0x6fc   : > { %v1880_v0 = vpop.f32.mrf.mxu1 }
 0x6fd   : > { %v1884_v3 = vpack.c.bf16 %v1880_v0, %v1877_v62 }
 0x6fe   : > { %v4987_v5 = vpop.f32.mrf.mxu1 }
 0x6ff   : > { %4749 = vmatmul.mubr.msk.bf16.vlgmr.msra.gmra.mxu1 %vm1635_vm1, %v1884_v3  ;;  %v5296_v3 = vld [vmem:[%s5770_s1 + $0x44] ss:$8 sps:$4 sm:$0xff]  }
 0x700   : > { %1991 = vmatpush1.bf16.msra.mxu1 %v5285_v2  ;;  %2010 = vmatprep.mubr.bf16.mxu1 %v5640_v60  ;;  %v5294_v2 = vld [vmem:[%s5770_s1 + $0x40] ss:$8 sps:$4 sm:$0xff]  }
 0x701   : > { %1992 = vmatprep.subr.bf16.mxu1 %v5290_v4  ;;  %2186 = vmatprep.subr.bf16.mxu0 %v5296_v3 }
 0x702   : > { %2187 = vmatpush1.bf16.msra.mxu0 %v5294_v2  ;;  %v1015_v2 = vsub.s32 5, %v5948_v41 }
 0x703   : > { %5006 = vmatprep.subr.bf16.mxu0 %v5636_v39 }
 0x704   : > { %1993 = vmatpush1.bf16.msra.mxu1 %v5288_v6  ;;  %v1016_v3 = vrot.slane %v5952_v43, %v1015_v2 }
 0x705   : > { %4988 = vmatprep.subr.bf16.mxu1 %v5636_v39 }
 0x707   : > { %4754 = vmatmul.mubr.msk.bf16.vlgmr.msra.gmra.mxu1 %vm1635_vm1, %v1753_v15 }
 0x708   : > { %4989 = vmatpush3.bf16.xpose.msra.mxu1 %v2029_v8  ;;  %4990 = vmatprep.mubr.msk.bf16.mxu1 %vm5637_vm0, %v5636_v39 }
 0x709   : > { %4994 = vmatprep.subr.bf16.mxu1 %v5636_v39 }
 0x70f   : > { %4991 = vmatmul.mubr.msk.bf16.vlgmr.msra.gmra.mxu1 %vm1635_vm1, %v2022_v9 }
 0x710   : > { %4996 = vmatprep.mubr.msk.bf16.mxu1 %vm5637_vm0, %v5636_v39 }
 0x7bf   : > { %v1946_v10 = vpop.f32.mrf.mxu1 }
 0x7c1   : > { %v1948_v11 = vpop.f32.mrf.mxu1 }
 0x7c3   : > { %v1950_v13 = vpop.f32.mrf.mxu1 }
 0x7c5   : > { %v1952_v16 = vpop.f32.mrf.mxu1 }
 0x7c7   : > { %v2012_v17 = vpop.f32.mrf.mxu1 }
 0x7c8   : > { %v6079_v12 = vadd.f32 %v2012_v17, %v1946_v10 }
 0x7c9   : > { %v2014_v14 = vpop.f32.mrf.mxu1 }
 0x7ca   : > { %v6081_v15 = vadd.f32 %v2014_v14, %v1948_v11 }
 0x7cb   : > { %v2016_v18 = vpop.f32.mrf.mxu1 }
 0x7cc   : > { %v6083_v19 = vadd.f32 %v2016_v18, %v1950_v13 }
 0x7cd   : > { %v2018_v20 = vpop.f32.mrf.mxu1 }
 0x7ce   : > { %v6085_v21 = vadd.f32 %v2018_v20, %v1952_v16 }
 0x7cf   : > { %v2065_v22 = vpop.f32.mrf.mxu1 }
 0x7d0   : > { %v2072_v23 = vmul.f32 0.17677669, %v2065_v22 }
 0x7d1   : > { %v4992_v24 = vpop.f32.mrf.mxu1 }
 0x7d2   : > { %v2074_v25 = vsel %vm1685_vm2, %v2072_v23, -inf }
 0x7d3   : > { %2075 = vmax.xlane.f32.xlu1 %v2074_v25  ;;  %v2068_v26 = vpop.f32.mrf.mxu1 }
 0x7d4   : > { %v2073_v27 = vmul.f32 0.17677669, %v2068_v26 }
 0x7d5   : > { %v4993_v29 = vpop.f32.mrf.mxu1 }
 0x7d6   : > { %v2077_v30 = vsel %vm1685_vm2, %v2073_v27, -inf }
 0x7d7   : > { %2078 = vmax.xlane.f32.xlu0 %v2077_v30 }
 0x7e4   : > { %2097 = vrot.lane.b32.xlu1 %v6024_v1, %s5639_s24 }
 0x7e8   : > { %2219 = vrot.lane.b32.xlu1 %v5971_v59, %s5641_s30 }
 0x85c   : > { %v2076_v31 = vpop.xlane.xlu1 %2075 }
 0x85d   : > { %v2080_v32 = vsub.f32 %v2072_v23, %v2076_v31 }
 0x85f   : > { %v2082_v33 = vmul.f32 1.442695, %v2080_v32  ;;  %v6117_v32 = vsub.s32 1, %v5948_v41 }
 0x860   : > { %v2098_v34 = vpop.permute.xlu1 %2097  ;;  %v2079_v35 = vpop.xlane.xlu0 %2078 }
 0x861   : > { %5535 = vpow2.f32 %v2082_v33  ;;  %v2081_v36 = vsub.f32 %v2073_v27, %v2079_v35  ;;  %4995 = vmatpush3.bf16.msra.mxu1 %v2098_v34  ;;  %v1000_v33 = vrot.slane %v5952_v43, %v6117_v32 }
 0x862   : > { %5000 = vmatprep.subr.bf16.mxu1 %v5636_v39 }
 0x863   : > { %v2084_v37 = vmul.f32 1.442695, %v2081_v36  ;;  %v1540_v34 = vadd.f32 %v5962_v52, %v1000_v33  ;;  %v1544_v35 = vadd.f32 %v6018_v56, %v1000_v33 }
 0x865   : > { %5537 = vpow2.f32 %v2084_v37  ;;  %v6125_v36 = vpack.c.bf16 %v1544_v35, %v1540_v34  ;;  %v1629_v37 = vpop.f32.mrf.mxu0 }
 0x86e   : > { %v5536_v38 = vpop.eup %5535 }
 0x86f   : > { %v2086_v44 = vsel %vm1685_vm2, %v5536_v38, 0.0 }
 0x870   : > { %2087 = vadd.xlane.f32.xlu0 %v2086_v44 }
 0x872   : > { %v5538_v45 = vpop.eup %5537 }
 0x873   : > { %v2089_v59 = vsel %vm1685_vm2, %v5538_v45, 0.0 }
 0x874   : > { %2090 = vadd.xlane.f32.xlu0 %v2089_v59 }
 0x88a   : > { %2221 = vrot.lane.b32.xlu0 %v5966_v54, %s5641_s30  ;;  %v2220_v54 = vpop.permute.xlu1 %2219 }
 0x8f9   : > { %v2088_v50 = vpop.xlane.xlu0 %2087 }
 0x8fa   : > { %5539 = vrcp.f32 %v2088_v50 }
 0x8fd   : > { %v2091_v51 = vpop.xlane.xlu0 %2090 }
 0x8fe   : > { %5541 = vrcp.f32 %v2091_v51 }
 0x901   : > { %v2222_v62 = vpop.permute.xlu0 %2221 }
 0x902   : > { %v2227_v0 = vsel %vm1635_vm1, %v2222_v62, 0 }
 0x907   : > { %v5540_v53 = vpop.eup %5539 }
 0x908   : > { %v2094_v57 = vmul.f32 %v5540_v53, %v5536_v38 }
 0x90b   : > { %v5542_v55 = vpop.eup %5541 }
 0x90c   : > { %v2095_v58 = vmul.f32 %v5542_v55, %v5538_v45 }
 0x90e   : > { %v2096_v63 = vpack.c.bf16 %v2095_v58, %v2094_v57 }
 0x910   : > { %4997 = vmatmul.mubr.msk.bf16.vlgmr.msra.gmra.mxu1 %vm1685_vm2, %v2096_v63 }
 0x911   : > { %5001 = vmatpush3.bf16.xpose.msra.mxu1 %v2227_v0  ;;  %5002 = vmatprep.mubr.msk.bf16.mxu1 %vm5637_vm0, %v5636_v39 }
 0x918   : > { %5003 = vmatmul.mubr.msk.bf16.vlgmr.msra.gmra.mxu1 %vm1635_vm1, %v2220_v54 }
 0x919   : > { %2402 = vmatprep.mubr.bf16.mxu1 %v5640_v60 }
 0x9d0   : > { %v2137_v4 = vpop.f32.mrf.mxu1 }
 0x9d2   : > { %v4998_v5 = vpop.f32.mrf.mxu1 }
 0x9d4   : > { %v2140_v6 = vpop.f32.mrf.mxu1 }
 0x9d5   : > { %v2144_v7 = vpack.c.bf16 %v2140_v6, %v2137_v4  ;;  %v1626_v6 = vadd.f32 %v6022_v61, %v1016_v3 }
 0x9d6   : > { %v4999_v8 = vpop.f32.mrf.mxu1 }
 0x9d7   : > { %4761 = vmatmul.mubr.msk.bf16.vlgmr.msra.gmra.mxu0 %vm1635_vm1, %v2144_v7  ;;  %v1630_v7 = vadd.f32 %v1629_v37, %v1016_v3 }
 0x9d8   : > { %v2263_v9 = vpop.f32.mrf.mxu1  ;;  %5008 = vmatprep.mubr.msk.bf16.mxu0 %vm5637_vm0, %v5636_v39 }
 0x9d9   : > { %v2270_v10 = vmul.f32 0.17677669, %v2263_v9 }
 0x9da   : > { %v5004_v11 = vpop.f32.mrf.mxu1 }
 0x9db   : > { %v2272_v13 = vsel %vm1685_vm2, %v2270_v10, -inf  ;;  %v6165_v11 = vpack.c.bf16 %v1630_v7, %v1626_v6 }
 0x9dc   : > { %2273 = vmax.xlane.f32.xlu1 %v2272_v13  ;;  %v2266_v16 = vpop.f32.mrf.mxu1 }
 0x9dd   : > { %v2271_v17 = vmul.f32 0.17677669, %v2266_v16 }
 0x9de   : > { %v5005_v14 = vpop.f32.mrf.mxu1 }
 0x9df   : > { %v2275_v18 = vsel %vm1685_vm2, %v2271_v17, -inf }
 0x9e0   : > { %2276 = vmax.xlane.f32.xlu0 %v2275_v18 }
 0xa65   : > { %v2274_v20 = vpop.xlane.xlu1 %2273 }
 0xa66   : > { %v2278_v22 = vsub.f32 %v2270_v10, %v2274_v20 }
 0xa68   : > { %v2280_v23 = vmul.f32 1.442695, %v2278_v22 }
 0xa69   : > { %v2277_v24 = vpop.xlane.xlu0 %2276 }
 0xa6a   : > { %5543 = vpow2.f32 %v2280_v23  ;;  %v2279_v25 = vsub.f32 %v2271_v17, %v2277_v24 }
 0xa6c   : > { %v2282_v26 = vmul.f32 1.442695, %v2279_v25 }
 0xa6e   : > { %5545 = vpow2.f32 %v2282_v26 }
 0xa77   : > { %v5544_v27 = vpop.eup %5543 }
 0xa78   : > { %v2284_v29 = vsel %vm1685_vm2, %v5544_v27, 0.0 }
 0xa79   : > { %2285 = vadd.xlane.f32.xlu0 %v2284_v29 }
 0xa7b   : > { %v5546_v30 = vpop.eup %5545 }
 0xa7c   : > { %v2287_v31 = vsel %vm1685_vm2, %v5546_v30, 0.0 }
 0xa7d   : > { %2288 = vadd.xlane.f32.xlu1 %v2287_v31 }
 0xa8f   : > { %2295 = vrot.lane.b32.xlu0 %v6024_v1, %s5641_s30  ;;  %v5299_v1 = vld [vmem:[%s5770_s1 + $0x74] ss:$8 sps:$4 sm:$0xff]  }
 0xa90   : > { %2382 = vmatprep.subr.bf16.mxu1 %v5299_v1  ;;  %v5303_v1 = vld [vmem:[%s5770_s1 + $0x90] ss:$8 sps:$4 sm:$0xff]  }
 0xa91   : > { %2383 = vmatpush1.bf16.msra.mxu1 %v5297_v47 }
 0xa93   : > { %2612 = vrot.lane.b32.xlu0 %v6125_v36, %s5638_s15 }
 0xa97   : > { %v2206_v38 = vpop.f32.mrf.mxu0 }
 0xa98   : > { %v6130_v44 = vadd.f32 %v2206_v38, %v6079_v12  ;;  %v1007_v12 = vsub.s32 3, %v5948_v41 }
 0xa99   : > { %v2208_v45 = vpop.f32.mrf.mxu0 }
 0xa9a   : > { %v6133_v59 = vadd.f32 %v2208_v45, %v6081_v15  ;;  %v1008_v15 = vrot.slane %v5952_v43, %v1007_v12 }
 0xa9b   : > { %v2210_v52 = vpop.f32.mrf.mxu0 }
 0xa9c   : > { %v6136_v56 = vadd.f32 %v2210_v52, %v6083_v19  ;;  %v1587_v19 = vadd.f32 %v6010_v28, %v1008_v15  ;;  %v1583_v55 = vadd.f32 %v5957_v46, %v1008_v15  ;;  %v5302_v46 = vld [vmem:[%s5770_s1 + $0x64] ss:$8 sps:$4 sm:$0xff]   ;;  %v5300_v28 = vld [vmem:[%s5770_s1 + $0x60] ss:$8 sps:$4 sm:$0xff]  }
 0xa9d   : > { %2384 = vmatprep.subr.bf16.mxu1 %v5302_v46  ;;  %v6162_v4 = vpop.f32.mrf.mxu0 }
 0xa9e   : > { %v6147_v58 = vpack.c.bf16 %v1587_v19, %v1583_v55  ;;  %2385 = vmatpush1.bf16.msra.mxu1 %v5300_v28 }
 0xa9f   : > { %5018 = vmatprep.subr.bf16.mxu1 %v5636_v39 }
 0xaa0   : > { %v2424_v54 = vsel %vm1635_vm1, %v6147_v58, 0 }
 0xb02   : > { %v2286_v49 = vpop.xlane.xlu0 %2285 }
 0xb03   : > { %5547 = vrcp.f32 %v2286_v49  ;;  %v5305_v49 = vld [vmem:[%s5770_s1 + $0x94] ss:$8 sps:$4 sm:$0xff]  }
 0xb06   : > { %v2289_v50 = vpop.xlane.xlu1 %2288  ;;  %v2296_v51 = vpop.permute.xlu0 %2295 }
 0xb07   : > { %5549 = vrcp.f32 %v2289_v50  ;;  %5007 = vmatpush3.bf16.msra.mxu0 %v2296_v51 }
 0xb08   : > { %5012 = vmatprep.subr.bf16.mxu0 %v5636_v39 }
 0xb10   : > { %v5548_v53 = vpop.eup %5547 }
 0xb11   : > { %v2292_v62 = vmul.f32 %v5548_v53, %v5544_v27 }
 0xb14   : > { %v5550_v57 = vpop.eup %5549 }
 0xb15   : > { %v2293_v63 = vmul.f32 %v5550_v57, %v5546_v30 }
 0xb17   : > { %v2294_v0 = vpack.c.bf16 %v2293_v63, %v2292_v62  ;;  %v5306_v62 = vld [vmem:[%s5770_s1 + $0x80] ss:$8 sps:$4 sm:$0xff]   ;;  %v5308_v63 = vld [vmem:[%s5770_s1 + $0x84] ss:$8 sps:$4 sm:$0xff]  }
 0xb19   : > { %5009 = vmatmul.mubr.msk.bf16.vlgmr.msra.gmra.mxu0 %vm1685_vm2, %v2294_v0 }
 0xb1a   : > { %5013 = vmatpush3.bf16.xpose.msra.mxu0 %v2424_v54  ;;  %5014 = vmatprep.mubr.msk.bf16.mxu0 %vm5637_vm0, %v5636_v39 }
 0xb1b   : > { %2576 = vmatprep.subr.bf16.mxu0 %v5305_v49 }
 0xb21   : > { %5015 = vmatmul.mubr.msk.bf16.vlgmr.msra.gmra.mxu0 %vm1635_vm1, %v6125_v36 }
 0xb22   : > { %2596 = vmatprep.mubr.bf16.mxu0 %v5640_v60  ;;  %2577 = vmatpush1.bf16.msra.mxu0 %v5303_v1 }
 0xb23   : > { %2578 = vmatprep.subr.bf16.mxu0 %v5308_v63 }
 0xb26   : > { %2579 = vmatpush1.bf16.msra.mxu0 %v5306_v62 }
 0xb27   : > { %5030 = vmatprep.subr.bf16.mxu0 %v5636_v39 }
 0xbd9   : > { %v2335_v5 = vpop.f32.mrf.mxu0 }
 0xbdb   : > { %v5010_v8 = vpop.f32.mrf.mxu0 }
 0xbdd   : > { %v2338_v9 = vpop.f32.mrf.mxu0 }
 0xbde   : > { %v2342_v10 = vpack.c.bf16 %v2338_v9, %v2335_v5 }
 0xbdf   : > { %v5011_v13 = vpop.f32.mrf.mxu0 }
 0xbe0   : > { %4768 = vmatmul.mubr.msk.bf16.vlgmr.msra.gmra.mxu1 %vm1635_vm1, %v2342_v10 }
 0xbe1   : > { %5019 = vmatpush3.bf16.msra.mxu1 %v6165_v11  ;;  %v2460_v16 = vpop.f32.mrf.mxu0  ;;  %5020 = vmatprep.mubr.msk.bf16.mxu1 %vm5637_vm0, %v5636_v39 }
 0xbe2   : > { %v2467_v43 = vmul.f32 0.17677669, %v2460_v16  ;;  %5024 = vmatprep.subr.bf16.mxu1 %v5636_v39 }
 0xbe3   : > { %v5016_v17 = vpop.f32.mrf.mxu0 }
 0xbe4   : > { %v2469_v61 = vsel %vm1685_vm2, %v2467_v43, -inf }
 0xbe5   : > { %2470 = vmax.xlane.f32.xlu1 %v2469_v61  ;;  %v2463_v14 = vpop.f32.mrf.mxu0 }
 0xbe6   : > { %v2468_v18 = vmul.f32 0.17677669, %v2463_v14 }
 0xbe7   : > { %v5017_v20 = vpop.f32.mrf.mxu0 }
 0xbe8   : > { %v2472_v22 = vsel %vm1685_vm2, %v2468_v18, -inf }
 0xbe9   : > { %2473 = vmax.xlane.f32.xlu1 %v2472_v22 }
 0xc6e   : > { %v2471_v23 = vpop.xlane.xlu1 %2470 }
 0xc6f   : > { %v2475_v24 = vsub.f32 %v2467_v43, %v2471_v23 }
 0xc71   : > { %v2477_v25 = vmul.f32 1.442695, %v2475_v24 }
 0xc72   : > { %v2474_v26 = vpop.xlane.xlu1 %2473 }
 0xc73   : > { %5551 = vpow2.f32 %v2477_v25  ;;  %v2476_v27 = vsub.f32 %v2468_v18, %v2474_v26 }
 0xc75   : > { %v2479_v29 = vmul.f32 1.442695, %v2476_v27 }
 0xc77   : > { %5553 = vpow2.f32 %v2479_v29 }
 0xc80   : > { %v5552_v30 = vpop.eup %5551 }
 0xc81   : > { %v2481_v31 = vsel %vm1685_vm2, %v5552_v30, 0.0 }
 0xc82   : > { %2482 = vadd.xlane.f32.xlu1 %v2481_v31 }
 0xc84   : > { %v5554_v33 = vpop.eup %5553 }
 0xc85   : > { %v2484_v34 = vsel %vm1685_vm2, %v5554_v33, 0.0 }
 0xc86   : > { %2485 = vadd.xlane.f32.xlu1 %v2484_v34  ;;  %v5309_v34 = vld [vmem:[%s5770_s1 + $0xb0] ss:$8 sps:$4 sm:$0xff]  }
 0xc97   : > { %2615 = vrot.lane.b32.xlu1 %v6147_v58, %s5638_s15 }
 0xca0   : > { %v2404_v35 = vpop.f32.mrf.mxu1 }
 0xca1   : > { %v6179_v37 = vadd.f32 %v2404_v35, %v6130_v44  ;;  %v5311_v35 = vld [vmem:[%s5770_s1 + $0xb4] ss:$8 sps:$4 sm:$0xff]  }
 0xca2   : > { %v2406_v38 = vpop.f32.mrf.mxu1 }
 0xca3   : > { %v6182_v45 = vadd.f32 %v2406_v38, %v6133_v59 }
 0xca4   : > { %v2408_v52 = vpop.f32.mrf.mxu1 }
 0xca5   : > { %v6185_v47 = vadd.f32 %v2408_v52, %v6136_v56  ;;  %v2613_v56 = vpop.permute.xlu0 %2612 }
 0xca6   : > { %v6198_v0 = vpop.f32.mrf.mxu1 }
 0xd0b   : > { %v2483_v50 = vpop.xlane.xlu1 %2482 }
 0xd0c   : > { %5555 = vrcp.f32 %v2483_v50 }
 0xd0f   : > { %v2486_v51 = vpop.xlane.xlu1 %2485 }
 0xd10   : > { %5557 = vrcp.f32 %v2486_v51 }
 0xd13   : > { %v2616_v59 = vpop.permute.xlu1 %2615 }
 0xd14   : > { %v2621_v57 = vsel %vm1635_vm1, %v2616_v59, 0 }
 0xd19   : > { %v5556_v44 = vpop.eup %5555 }
 0xd1a   : > { %v2489_v19 = vmul.f32 %v5556_v44, %v5552_v30 }
 0xd1d   : > { %v5558_v15 = vpop.eup %5557 }
 0xd1e   : > { %v2490_v53 = vmul.f32 %v5558_v15, %v5554_v33 }
 0xd20   : > { %v2491_v55 = vpack.c.bf16 %v2490_v53, %v2489_v19  ;;  %v5312_v19 = vld [vmem:[%s5770_s1 + $0xa0] ss:$8 sps:$4 sm:$0xff]   ;;  %v5314_v53 = vld [vmem:[%s5770_s1 + $0xa4] ss:$8 sps:$4 sm:$0xff]  }
 0xd22   : > { %5021 = vmatmul.mubr.msk.bf16.vlgmr.msra.gmra.mxu1 %vm1685_vm2, %v2491_v55 }
 0xd23   : > { %5025 = vmatpush3.bf16.xpose.msra.mxu1 %v2621_v57  ;;  %5026 = vmatprep.mubr.msk.bf16.mxu1 %vm5637_vm0, %v5636_v39 }
 0xd24   : > { %2777 = vmatprep.subr.bf16.mxu1 %v5311_v35 }
 0xd2a   : > { %5027 = vmatmul.mubr.msk.bf16.vlgmr.msra.gmra.mxu1 %vm1635_vm1, %v2613_v56 }
 0xd2b   : > { %2797 = vmatprep.mubr.bf16.mxu1 %v5640_v60  ;;  %2778 = vmatpush1.bf16.msra.mxu1 %v5309_v34 }
 0xd2c   : > { %2779 = vmatprep.subr.bf16.mxu1 %v5314_v53 }
 0xd2f   : > { %2780 = vmatpush1.bf16.msra.mxu1 %v5312_v19 }
 0xd30   : > { %5042 = vmatprep.subr.bf16.mxu1 %v5636_v39 }
 0xde2   : > { %v2529_v54 = vpop.f32.mrf.mxu1 }
 0xde4   : > { %v5022_v46 = vpop.f32.mrf.mxu1 }
 0xde6   : > { %v2532_v28 = vpop.f32.mrf.mxu1 }
 0xde7   : > { %v2536_v2 = vpack.c.bf16 %v2532_v28, %v2529_v54 }
 0xde8   : > { %v5023_v3 = vpop.f32.mrf.mxu1 }
 0xde9   : > { %4775 = vmatmul.mubr.msk.bf16.vlgmr.msra.gmra.mxu0 %vm1635_vm1, %v2536_v2 }
 0xdea   : > { %v2657_v5 = vpop.f32.mrf.mxu1  ;;  %5032 = vmatprep.mubr.msk.bf16.mxu0 %vm5637_vm0, %v5636_v39 }
 0xdeb   : > { %v2664_v6 = vmul.f32 0.17677669, %v2657_v5 }
 0xdec   : > { %v5028_v7 = vpop.f32.mrf.mxu1 }
 0xded   : > { %v2666_v8 = vsel %vm1685_vm2, %v2664_v6, -inf }
 0xdee   : > { %2667 = vmax.xlane.f32.xlu0 %v2666_v8  ;;  %v2660_v9 = vpop.f32.mrf.mxu1 }
 0xdef   : > { %v2665_v10 = vmul.f32 0.17677669, %v2660_v9 }
 0xdf0   : > { %v5029_v13 = vpop.f32.mrf.mxu1 }
 0xdf1   : > { %v2669_v16 = vsel %vm1685_vm2, %v2665_v10, -inf }
 0xdf2   : > { %2670 = vmax.xlane.f32.xlu1 %v2669_v16 }
 0xe03   : > { %2814 = vrot.lane.b32.xlu1 %v6147_v58, %s5639_s24 }
 0xe07   : > { %2812 = vrot.lane.b32.xlu1 %v6125_v36, %s5639_s24 }
 0xe77   : > { %v2668_v43 = vpop.xlane.xlu0 %2667 }
 0xe78   : > { %v2672_v17 = vsub.f32 %v2664_v6, %v2668_v43 }
 0xe7a   : > { %v2674_v61 = vmul.f32 1.442695, %v2672_v17 }
 0xe7b   : > { %v2671_v14 = vpop.xlane.xlu1 %2670 }
 0xe7c   : > { %5559 = vpow2.f32 %v2674_v61  ;;  %v2673_v18 = vsub.f32 %v2665_v10, %v2671_v14 }
 0xe7e   : > { %v2676_v20 = vmul.f32 1.442695, %v2673_v18 }
 0xe80   : > { %5561 = vpow2.f32 %v2676_v20 }
 0xe89   : > { %v5560_v22 = vpop.eup %5559 }
 0xe8a   : > { %v2678_v23 = vsel %vm1685_vm2, %v5560_v22, 0.0 }
 0xe8b   : > { %2679 = vadd.xlane.f32.xlu0 %v2678_v23 }
 0xe8d   : > { %v5562_v24 = vpop.eup %5561 }
 0xe8e   : > { %v2681_v25 = vsel %vm1685_vm2, %v5562_v24, 0.0 }
 0xe8f   : > { %2682 = vadd.xlane.f32.xlu0 %v2681_v25  ;;  %v5315_v25 = vld [vmem:[%s5770_s1 + $0xd0] ss:$8 sps:$4 sm:$0xff]  }
 0xea5   : > { %2690 = vrot.lane.b32.xlu0 %v6165_v11, %s5638_s15 }
 0xea9   : > { %v2598_v26 = vpop.f32.mrf.mxu0 }
 0xeaa   : > { %v6214_v27 = vadd.f32 %v2598_v26, %v6179_v37  ;;  %v5317_v26 = vld [vmem:[%s5770_s1 + $0xd4] ss:$8 sps:$4 sm:$0xff]  }
 0xeab   : > { %v2600_v29 = vpop.f32.mrf.mxu0 }
 0xeac   : > { %v6217_v30 = vadd.f32 %v2600_v29, %v6182_v45 }
 0xead   : > { %v2602_v31 = vpop.f32.mrf.mxu0 }
 0xeae   : > { %v6220_v33 = vadd.f32 %v2602_v31, %v6185_v47  ;;  %v2815_v47 = vpop.permute.xlu1 %2814 }
 0xeaf   : > { %v2820_v44 = vsel %vm1635_vm1, %v2815_v47, 0  ;;  %v6234_v59 = vpop.f32.mrf.mxu0 }
 0xeb2   : > { %v2813_v15 = vpop.permute.xlu1 %2812 }
 0xf14   : > { %v2680_v38 = vpop.xlane.xlu0 %2679 }
 0xf15   : > { %5563 = vrcp.f32 %v2680_v38 }
 0xf18   : > { %v2683_v52 = vpop.xlane.xlu0 %2682 }
 0xf19   : > { %5565 = vrcp.f32 %v2683_v52 }
 0xf1c   : > { %v2691_v1 = vpop.permute.xlu0 %2690 }
 0xf1d   : > { %5031 = vmatpush3.bf16.msra.mxu0 %v2691_v1 }
 0xf1e   : > { %5036 = vmatprep.subr.bf16.mxu0 %v5636_v39 }
 0xf22   : > { %v5564_v37 = vpop.eup %5563 }
 0xf23   : > { %v2686_v49 = vmul.f32 %v5564_v37, %v5560_v22 }
 0xf26   : > { %v5566_v45 = vpop.eup %5565 }
 0xf27   : > { %v2687_v50 = vmul.f32 %v5566_v45, %v5562_v24  ;;  %v5318_v45 = vld [vmem:[%s5770_s1 + $0xc0] ss:$8 sps:$4 sm:$0xff]  }
 0xf29   : > { %v2688_v51 = vpack.c.bf16 %v2687_v50, %v2686_v49  ;;  %v5320_v49 = vld [vmem:[%s5770_s1 + $0xc4] ss:$8 sps:$4 sm:$0xff]  }
 0xf2b   : > { %5033 = vmatmul.mubr.msk.bf16.vlgmr.msra.gmra.mxu0 %vm1685_vm2, %v2688_v51 }
 0xf2c   : > { %5037 = vmatpush3.bf16.xpose.msra.mxu0 %v2820_v44  ;;  %5038 = vmatprep.mubr.msk.bf16.mxu0 %vm5637_vm0, %v5636_v39 }
 0xf2d   : > { %2975 = vmatprep.subr.bf16.mxu0 %v5317_v26 }
 0xf33   : > { %5039 = vmatmul.mubr.msk.bf16.vlgmr.msra.gmra.mxu0 %vm1635_vm1, %v2813_v15 }
 0xf34   : > { %2995 = vmatprep.mubr.bf16.mxu0 %v5640_v60  ;;  %2976 = vmatpush1.bf16.msra.mxu0 %v5315_v25 }
 0xf35   : > { %2977 = vmatprep.subr.bf16.mxu0 %v5320_v49 }
 0xf38   : > { %2978 = vmatpush1.bf16.msra.mxu0 %v5318_v45 }
 0xf39   : > { %5054 = vmatprep.subr.bf16.mxu0 %v5636_v39 }
 0xfeb   : > { %v2730_v55 = vpop.f32.mrf.mxu0 }
 0xfed   : > { %v5034_v57 = vpop.f32.mrf.mxu0 }
 0xfef   : > { %v2733_v56 = vpop.f32.mrf.mxu0 }
 0xff0   : > { %v2737_v62 = vpack.c.bf16 %v2733_v56, %v2730_v55 }
 0xff1   : > { %v5035_v63 = vpop.f32.mrf.mxu0 }
 0xff2   : > { %4782 = vmatmul.mubr.msk.bf16.vlgmr.msra.gmra.mxu1 %vm1635_vm1, %v2737_v62 }
 0xff3   : > { %v2856_v54 = vpop.f32.mrf.mxu0  ;;  %5044 = vmatprep.mubr.msk.bf16.mxu1 %vm5637_vm0, %v5636_v39 }
 0xff4   : > { %v2863_v46 = vmul.f32 0.17677669, %v2856_v54 }
 0xff5   : > { %v5040_v28 = vpop.f32.mrf.mxu0 }
 0xff6   : > { %v2865_v2 = vsel %vm1685_vm2, %v2863_v46, -inf }
 0xff7   : > { %2866 = vmax.xlane.f32.xlu0 %v2865_v2  ;;  %v2859_v3 = vpop.f32.mrf.mxu0 }
 0xff8   : > { %v2864_v5 = vmul.f32 0.17677669, %v2859_v3 }
 0xff9   : > { %v5041_v6 = vpop.f32.mrf.mxu0 }
 0xffa   : > { %v2868_v7 = vsel %vm1685_vm2, %v2864_v5, -inf }
 0xffb   : > { %2869 = vmax.xlane.f32.xlu1 %v2868_v7 }
0x100c   : > { %3012 = vrot.lane.b32.xlu1 %v6147_v58, %s5641_s30 }
0x1010   : > { %3010 = vrot.lane.b32.xlu1 %v6125_v36, %s5641_s30 }
0x1080   : > { %v2867_v8 = vpop.xlane.xlu0 %2866 }
0x1081   : > { %v2871_v9 = vsub.f32 %v2863_v46, %v2867_v8 }
0x1083   : > { %v2873_v10 = vmul.f32 1.442695, %v2871_v9 }
0x1084   : > { %v2870_v13 = vpop.xlane.xlu1 %2869 }
0x1085   : > { %5567 = vpow2.f32 %v2873_v10  ;;  %v2872_v16 = vsub.f32 %v2864_v5, %v2870_v13 }
0x1087   : > { %v2875_v43 = vmul.f32 1.442695, %v2872_v16 }
0x1089   : > { %5569 = vpow2.f32 %v2875_v43  ;;  %v5321_v43 = vld [vmem:[%s5770_s1 + $0xf0] ss:$8 sps:$4 sm:$0xff]  }
0x1092   : > { %v5568_v17 = vpop.eup %5567 }
0x1093   : > { %v2877_v61 = vsel %vm1685_vm2, %v5568_v17, 0.0 }
0x1094   : > { %2878 = vadd.xlane.f32.xlu0 %v2877_v61 }
0x1096   : > { %v5570_v14 = vpop.eup %5569 }
0x1097   : > { %v2880_v58 = vsel %vm1685_vm2, %v5570_v14, 0.0 }
0x1098   : > { %2881 = vadd.xlane.f32.xlu0 %v2880_v58 }
0x10ae   : > { %2888 = vrot.lane.b32.xlu0 %v6165_v11, %s5639_s24 }
0x10b2   : > { %v2799_v36 = vpop.f32.mrf.mxu1 }
0x10b3   : > { %v6250_v18 = vadd.f32 %v2799_v36, %v6214_v27 }
0x10b4   : > { %v2801_v20 = vpop.f32.mrf.mxu1 }
0x10b5   : > { %v6253_v22 = vadd.f32 %v2801_v20, %v6217_v30 }
0x10b6   : > { %v2803_v23 = vpop.f32.mrf.mxu1 }
0x10b7   : > { %v6256_v24 = vadd.f32 %v2803_v23, %v6220_v33  ;;  %v3013_v33 = vpop.permute.xlu1 %3012 }
0x10b8   : > { %v3018_v1 = vsel %vm1635_vm1, %v3013_v33, 0  ;;  %v6270_v50 = vpop.f32.mrf.mxu1  ;;  %v3208_v33 = vld [vmem:[%s6595_s11] sm:$0x3] }
0x10bb   : > { %v3011_v37 = vpop.permute.xlu1 %3010 }
0x111d   : > { %v2879_v29 = vpop.xlane.xlu0 %2878 }
0x111e   : > { %5571 = vrcp.f32 %v2879_v29 }
0x1121   : > { %v2882_v31 = vpop.xlane.xlu0 %2881 }
0x1122   : > { %5573 = vrcp.f32 %v2882_v31  ;;  %v5324_v31 = vld [vmem:[%s5770_s1 + $0xe0] ss:$8 sps:$4 sm:$0xff]  }
0x1125   : > { %v2889_v34 = vpop.permute.xlu0 %2888 }
0x1126   : > { %5043 = vmatpush3.bf16.msra.mxu1 %v2889_v34 }
0x1127   : > { %5048 = vmatprep.subr.bf16.mxu1 %v5636_v39 }
0x112b   : > { %v5572_v27 = vpop.eup %5571 }
0x112c   : > { %v2885_v35 = vmul.f32 %v5572_v27, %v5568_v17  ;;  %v5323_v17 = vld [vmem:[%s5770_s1 + $0xf4] ss:$8 sps:$4 sm:$0xff]  }
0x112f   : > { %v5574_v30 = vpop.eup %5573 }
0x1130   : > { %v2886_v38 = vmul.f32 %v5574_v30, %v5570_v14 }
0x1132   : > { %v2887_v52 = vpack.c.bf16 %v2886_v38, %v2885_v35 }
0x1134   : > { %5045 = vmatmul.mubr.msk.bf16.vlgmr.msra.gmra.mxu1 %vm1685_vm2, %v2887_v52  ;;  %v2218_v52 = vadd.f32 %v6162_v4, %v6085_v21 }
0x1135   : > { %5049 = vmatpush3.bf16.xpose.msra.mxu1 %v3018_v1  ;;  %5050 = vmatprep.mubr.msk.bf16.mxu1 %vm5637_vm0, %v5636_v39 }
0x1136   : > { %3173 = vmatprep.subr.bf16.mxu1 %v5323_v17  ;;  %v2416_v1 = vadd.f32 %v6198_v0, %v2218_v52  ;;  %v5344_v17 = vld [vmem:[%s5794_s3 + $0xac] ss:$16 sps:$4 sm:$0xff]  }
0x1137   : > { %v5374_v52 = vld [vmem:[%s5794_s3 + $0xc] ss:$16 sps:$4 sm:$0xff]  }
0x1138   : > { %v2610_v49 = vadd.f32 %v6234_v59, %v2416_v1  ;;  %v5369_v1 = vld [vmem:[%s5794_s3] ss:$16 sps:$4 sm:$0xff]  }
0x113c   : > { %5051 = vmatmul.mubr.msk.bf16.vlgmr.msra.gmra.mxu1 %vm1635_vm1, %v3011_v37  ;;  %v3213_v37 = vrot.slane %v3208_v33, %v5960_v48 }
0x113d   : > { %3193 = vmatprep.mubr.bf16.mxu1 %v5640_v60  ;;  %3174 = vmatpush1.bf16.msra.mxu1 %v5321_v43  ;;  %v5341_v43 = vld [vmem:[%s5794_s3 + $0xa4] ss:$16 sps:$4 sm:$0xff]  }
0x11f4   : > { %v2928_v47 = vpop.f32.mrf.mxu1 }
0x11f6   : > { %v5046_v51 = vpop.f32.mrf.mxu1 }
0x11f7   : > { %v3217_v51 = vrot.slane %v3208_v33, %v6117_v32  ;;  %v5371_v33 = vld [vmem:[%s5794_s3 + $0x4] ss:$16 sps:$4 sm:$0xff]  }
0x11f8   : > { %v2931_v44 = vpop.f32.mrf.mxu1 }
0x11f9   : > { %v2935_v15 = vpack.c.bf16 %v2931_v44, %v2928_v47 }
0x11fa   : > { %v5047_v19 = vpop.f32.mrf.mxu1 }
0x11fb   : > { %4789 = vmatmul.mubr.msk.bf16.vlgmr.msra.gmra.mxu0 %vm1635_vm1, %v2935_v15  ;;  %v2811_v15 = vadd.f32 %v6270_v50, %v2610_v49  ;;  %v5380_v49 = vld [vmem:[%s5794_s3 + $0x1ec] ss:$16 sps:$4 sm:$0xff]  }
0x11fc   : > { %v3054_v53 = vpop.f32.mrf.mxu1  ;;  %5056 = vmatprep.mubr.msk.bf16.mxu0 %vm5637_vm0, %v5636_v39 }
0x11fd   : > { %v3061_v60 = vmul.f32 0.17677669, %v3054_v53 }
0x11fe   : > { %v5052_v55 = vpop.f32.mrf.mxu1 }
0x11ff   : > { %v3063_v57 = vsel %vm1685_vm2, %v3061_v60, -inf }
0x1200   : > { %3064 = vmax.xlane.f32.xlu1 %v3063_v57  ;;  %v3057_v56 = vpop.f32.mrf.mxu1 }
0x1201   : > { %v3062_v62 = vmul.f32 0.17677669, %v3057_v56 }
0x1202   : > { %v5053_v63 = vpop.f32.mrf.mxu1 }
0x1203   : > { %v3066_v54 = vsel %vm1685_vm2, %v3062_v62, -inf  ;;  %v5592_v63 = vld [vmem:[#allocation2] sm:$0xff] }
0x1204   : > { %3067 = vmax.xlane.f32.xlu0 %v3066_v54 }
0x1211   : > { %3086 = vrot.lane.b32.xlu1 %v6165_v11, %s5641_s30 }
0x1289   : > { %v3065_v46 = vpop.xlane.xlu1 %3064 }
0x128a   : > { %v3069_v28 = vsub.f32 %v3061_v60, %v3065_v46 }
0x128c   : > { %v3071_v2 = vmul.f32 1.442695, %v3069_v28  ;;  %v5593_v28 = vld [vmem:[#allocation2 + $0x18] sm:$0xff] }
0x128d   : > { %v3087_v3 = vpop.permute.xlu1 %3086  ;;  %v3068_v39 = vpop.xlane.xlu0 %3067 }
0x128e   : > { %5575 = vpow2.f32 %v3071_v2  ;;  %v3070_v5 = vsub.f32 %v3062_v62, %v3068_v39  ;;  %5055 = vmatpush3.bf16.msra.mxu0 %v3087_v3  ;;  %v5591_v62 = vld [vmem:[#allocation2 + $0x10] sm:$0xff]  ;;  %v5594_v3 = vld [vmem:[#allocation2 + $0x8] sm:$0xff] }
0x1290   : > { %v3073_v6 = vmul.f32 1.442695, %v3070_v5 }
0x1292   : > { %5577 = vpow2.f32 %v3073_v6  ;;  %v5327_v6 = vld [vmem:[%s5794_s3 + $0xe0] ss:$16 sps:$4 sm:$0xff]  }
0x129b   : > { %v5576_v7 = vpop.eup %5575 }
0x129c   : > { %v3075_v8 = vsel %vm1685_vm2, %v5576_v7, 0.0 }
0x129d   : > { %3076 = vadd.xlane.f32.xlu0 %v3075_v8  ;;  %v5330_v8 = vld [vmem:[%s5794_s3 + $0xe8] ss:$16 sps:$4 sm:$0xff]  }
0x129f   : > { %v5578_v9 = vpop.eup %5577 }
0x12a0   : > { %v3078_v10 = vsel %vm1685_vm2, %v5578_v9, 0.0 }
0x12a1   : > { %3079 = vadd.xlane.f32.xlu0 %v3078_v10  ;;  %v5335_v10 = vld [vmem:[%s5794_s3 + $0xc4] ss:$16 sps:$4 sm:$0xff]  }
0x12bb   : > { %v2997_v11 = vpop.f32.mrf.mxu0 }
0x12bc   : > { %v3006_v13 = vadd.f32 %v2997_v11, %v6250_v18  ;;  %v5338_v11 = vld [vmem:[%s5794_s3 + $0xcc] ss:$16 sps:$4 sm:$0xff]  }
0x12bd   : > { %v2999_v16 = vpop.f32.mrf.mxu0 }
0x12be   : > { %v3007_v61 = vadd.f32 %v2999_v16, %v6253_v22  ;;  %v5326_v22 = vld [vmem:[%s5770_s1 + $0xe4] ss:$8 sps:$4 sm:$0xff]   ;;  %v5336_v16 = vld [vmem:[%s5794_s3 + $0xc8] ss:$16 sps:$4 sm:$0xff]  }
0x12bf   : > { %v3001_v14 = vpop.f32.mrf.mxu0  ;;  %3175 = vmatprep.subr.bf16.mxu1 %v5326_v22  ;;  %v5362_v22 = vld [vmem:[%s5794_s3 + $0x4c] ss:$16 sps:$4 sm:$0xff]  }
0x12c0   : > { %v3008_v58 = vadd.f32 %v3001_v14, %v6256_v24  ;;  %3176 = vmatpush1.bf16.msra.mxu1 %v5324_v31  ;;  %v5342_v14 = vld [vmem:[%s5794_s3 + $0xa8] ss:$16 sps:$4 sm:$0xff]   ;;  %v5359_v31 = vld [vmem:[%s5794_s3 + $0x44] ss:$16 sps:$4 sm:$0xff]  }
0x12c1   : > { %v3003_v34 = vpop.f32.mrf.mxu0 }
0x12c2   : > { %v3009_v55 = vadd.f32 %v3003_v34, %v2811_v15  ;;  %v5357_v34 = vld [vmem:[%s5794_s3 + $0x40] ss:$16 sps:$4 sm:$0xff]  }
0x1326   : > { %v3077_v36 = vpop.xlane.xlu0 %3076 }
0x1327   : > { %5579 = vrcp.f32 %v3077_v36  ;;  %v5350_v36 = vld [vmem:[%s5794_s3 + $0x8c] ss:$16 sps:$4 sm:$0xff]  }
0x132a   : > { %v3080_v20 = vpop.xlane.xlu0 %3079 }
0x132b   : > { %5581 = vrcp.f32 %v3080_v20  ;;  %v5345_v20 = vld [vmem:[%s5794_s3 + $0x80] ss:$16 sps:$4 sm:$0xff]  }
0x1334   : > { %v5580_v23 = vpop.eup %5579 }
0x1335   : > { %v3083_v18 = vmul.f32 %v5580_v23, %v5576_v7  ;;  %v5329_v7 = vld [vmem:[%s5794_s3 + $0xe4] ss:$16 sps:$4 sm:$0xff]   ;;  %v5348_v23 = vld [vmem:[%s5794_s3 + $0x88] ss:$16 sps:$4 sm:$0xff]  }
0x1336   : > { %3701 = vmatprep.subr.bf16.mxu0 %v5329_v7  ;;  %v5393_v7 = vld [vmem:[%s5794_s3 + $0x180] ss:$16 sps:$4 sm:$0xff]  }
0x1338   : > { %v5582_v25 = vpop.eup %5581 }
0x1339   : > { %v3084_v26 = vmul.f32 %v5582_v25, %v5578_v9  ;;  %v5332_v9 = vld [vmem:[%s5794_s3 + $0xec] ss:$16 sps:$4 sm:$0xff]   ;;  %v5353_v25 = vld [vmem:[%s5794_s3 + $0x64] ss:$16 sps:$4 sm:$0xff]  }
0x133a   : > { %3744 = vmatprep.subr.bf16.mxu1 %v5332_v9  ;;  %v5398_v9 = vld [vmem:[%s5794_s3 + $0x18c] ss:$16 sps:$4 sm:$0xff]  }
0x133b   : > { %v3085_v29 = vpack.c.bf16 %v3084_v26, %v3083_v18  ;;  %v5356_v18 = vld [vmem:[%s5794_s3 + $0x6c] ss:$16 sps:$4 sm:$0xff]   ;;  %v5351_v26 = vld [vmem:[%s5794_s3 + $0x60] ss:$16 sps:$4 sm:$0xff]  }
0x133d   : > { %5057 = vmatmul.mubr.msk.bf16.vlgmr.msra.gmra.mxu0 %vm1685_vm2, %v3085_v29  ;;  %v5354_v29 = vld [vmem:[%s5794_s3 + $0x68] ss:$16 sps:$4 sm:$0xff]  }
0x133e   : > { %3702 = vmatpush1.bf16.msra.mxu0 %v5327_v6  ;;  %v5395_v6 = vld [vmem:[%s5794_s3 + $0x184] ss:$16 sps:$4 sm:$0xff]  }
0x133f   : > { %3703 = vmatprep.subr.bf16.mxu0 %v5335_v10  ;;  %v5401_v10 = vld [vmem:[%s5794_s3 + $0x164] ss:$16 sps:$4 sm:$0xff]  }
0x13fd   : > { %v3126_v27 = vpop.f32.mrf.mxu0 }
0x13ff   : > { %v5058_v24 = vpop.f32.mrf.mxu0 }
0x1400   : > { %v5365_v24 = vld [vmem:[%s5794_s3 + $0x24] ss:$16 sps:$4 sm:$0xff]  }
0x1401   : > { %v3129_v30 = vpop.f32.mrf.mxu0 }
0x1402   : > { %v3133_v35 = vpack.c.bf16 %v3129_v30, %v3126_v27  ;;  %v5360_v27 = vld [vmem:[%s5794_s3 + $0x48] ss:$16 sps:$4 sm:$0xff]   ;;  %v5368_v30 = vld [vmem:[%s5794_s3 + $0x2c] ss:$16 sps:$4 sm:$0xff]  }
0x1403   : > { %v5059_v38 = vpop.f32.mrf.mxu0 }
0x1404   : > { %4796 = vmatmul.mubr.msk.bf16.vlgmr.msra.gmra.mxu1 %vm1635_vm1, %v3133_v35  ;;  %v5363_v35 = vld [vmem:[%s5794_s3 + $0x20] ss:$16 sps:$4 sm:$0xff]   ;;  %v5366_v38 = vld [vmem:[%s5794_s3 + $0x28] ss:$16 sps:$4 sm:$0xff]  }
0x1405   : > { %3745 = vmatpush1.bf16.msra.mxu1 %v5330_v8  ;;  %v5396_v8 = vld [vmem:[%s5794_s3 + $0x188] ss:$16 sps:$4 sm:$0xff]  }
0x1406   : > { %3746 = vmatprep.subr.bf16.mxu1 %v5338_v11  ;;  %v5404_v11 = vld [vmem:[%s5794_s3 + $0x16c] ss:$16 sps:$4 sm:$0xff]  }
0x1409   : > { %3747 = vmatpush1.bf16.msra.mxu1 %v5336_v16  ;;  %v5402_v16 = vld [vmem:[%s5794_s3 + $0x168] ss:$16 sps:$4 sm:$0xff]  }
0x140a   : > { %3748 = vmatprep.subr.bf16.mxu1 %v5344_v17  ;;  %v5410_v17 = vld [vmem:[%s5794_s3 + $0x14c] ss:$16 sps:$4 sm:$0xff]  }
0x140d   : > { %3749 = vmatpush1.bf16.msra.mxu1 %v5342_v14  ;;  %v5408_v14 = vld [vmem:[%s5794_s3 + $0x148] ss:$16 sps:$4 sm:$0xff]  }
0x140e   : > { %3750 = vmatprep.subr.bf16.mxu1 %v5350_v36  ;;  %v5416_v36 = vld [vmem:[%s5794_s3 + $0x12c] ss:$16 sps:$4 sm:$0xff]  }
0x1411   : > { %3751 = vmatpush1.bf16.msra.mxu1 %v5348_v23  ;;  %v5414_v23 = vld [vmem:[%s5794_s3 + $0x128] ss:$16 sps:$4 sm:$0xff]  }
0x1412   : > { %3752 = vmatprep.subr.bf16.mxu1 %v5356_v18  ;;  %v5422_v18 = vld [vmem:[%s5794_s3 + $0x10c] ss:$16 sps:$4 sm:$0xff]  }
0x1415   : > { %3753 = vmatpush1.bf16.msra.mxu1 %v5354_v29  ;;  %v5420_v29 = vld [vmem:[%s5794_s3 + $0x108] ss:$16 sps:$4 sm:$0xff]  }
0x1416   : > { %3754 = vmatprep.subr.bf16.mxu1 %v5362_v22  ;;  %v5428_v22 = vld [vmem:[%s5804_s2 + $0x174] ss:$8 sps:$4 sm:$0xff]  }
0x1419   : > { %3755 = vmatpush1.bf16.msra.mxu1 %v5360_v27 }
0x141a   : > { %3756 = vmatprep.subr.bf16.mxu1 %v5368_v30 }
0x141d   : > { %3757 = vmatpush1.bf16.msra.mxu1 %v5366_v38 }
0x141e   : > { %3758 = vmatprep.subr.bf16.mxu1 %v5374_v52 }
0x14c4   : > { %v3195_v45 = vpop.f32.mrf.mxu1 }
0x14c5   : > { %v3204_v47 = vadd.f32 %v3195_v45, %v3006_v13  ;;  %v5333_v13 = vld [vmem:[%s5794_s3 + $0xc0] ss:$16 sps:$4 sm:$0xff]   ;;  %v5377_v45 = vld [vmem:[%s5794_s3 + $0x1e4] ss:$16 sps:$4 sm:$0xff]  }
0x14c6   : > { %v3197_v44 = vpop.f32.mrf.mxu1  ;;  %3704 = vmatpush1.bf16.msra.mxu0 %v5333_v13  ;;  %v5399_v13 = vld [vmem:[%s5794_s3 + $0x160] ss:$16 sps:$4 sm:$0xff]  }
0x14c7   : > { %v3220_v19 = vadd.f32 %v3213_v37, %v3204_v47  ;;  %v3205_v53 = vadd.f32 %v3197_v44, %v3007_v61  ;;  %v5339_v61 = vld [vmem:[%s5794_s3 + $0xa0] ss:$16 sps:$4 sm:$0xff]   ;;  %3705 = vmatprep.subr.bf16.mxu0 %v5341_v43  ;;  %v5407_v43 = vld [vmem:[%s5794_s3 + $0x144] ss:$16 sps:$4 sm:$0xff]  }
0x14c8   : > { %v3199_v60 = vpop.f32.mrf.mxu1  ;;  %v5375_v47 = vld [vmem:[%s5794_s3 + $0x1e0] ss:$16 sps:$4 sm:$0xff]  }
0x14c9   : > { %v3221_v57 = vadd.f32 %v3217_v51, %v3205_v53  ;;  %v3206_v56 = vadd.f32 %v3199_v60, %v3008_v58  ;;  %v6302_v59 = vadd.f32 %v5591_v62, %v3220_v19  ;;  %v5347_v58 = vld [vmem:[%s5794_s3 + $0x84] ss:$16 sps:$4 sm:$0xff]  }
0x14ca   : > { %v3201_v21 = vpop.f32.mrf.mxu1  ;;  %3706 = vmatpush1.bf16.msra.mxu0 %v5339_v61  ;;  %v5405_v61 = vld [vmem:[%s5794_s3 + $0x140] ss:$16 sps:$4 sm:$0xff]  }
0x14cb   : > { %v3222_v4 = vadd.f32 %v3213_v37, %v3206_v56  ;;  %v3207_v0 = vadd.f32 %v3201_v21, %v3009_v55  ;;  %v6304_v54 = vadd.f32 %v5592_v63, %v3221_v57  ;;  %3707 = vmatprep.subr.bf16.mxu0 %v5347_v58  ;;  %v5372_v37 = vld [vmem:[%s5794_s3 + $0x8] ss:$16 sps:$4 sm:$0xff]   ;;  %v5413_v58 = vld [vmem:[%s5794_s3 + $0x124] ss:$16 sps:$4 sm:$0xff]  }
0x14cc   : > { %3759 = vmatpush1.bf16.msra.mxu1 %v5372_v37 }
0x14cd   : > { %v3223_v50 = vadd.f32 %v3217_v51, %v3207_v0  ;;  %v3230_v46 = vadd.f32 %v6304_v54, %v6302_v59  ;;  %v6308_v2 = vadd.f32 %v5593_v28, %v3222_v4  ;;  %v5378_v51 = vld [vmem:[%s5794_s3 + $0x1e8] ss:$16 sps:$4 sm:$0xff]   ;;  %3760 = vmatprep.subr.bf16.mxu1 %v5380_v49 }
0x14ce   : > { %3708 = vmatpush1.bf16.msra.mxu0 %v5345_v20  ;;  %v5384_v28 = vld [vmem:[%s5794_s3 + $0x1c8] ss:$16 sps:$4 sm:$0xff]   ;;  %v5411_v20 = vld [vmem:[%s5794_s3 + $0x120] ss:$16 sps:$4 sm:$0xff]  }
0x14cf   : > { %3231 = vadd.xlane.f32.xlu0 %v3230_v46  ;;  %v6310_v39 = vadd.f32 %v5594_v3, %v3223_v50  ;;  %3709 = vmatprep.subr.bf16.mxu0 %v5353_v25  ;;  %v5386_v50 = vld [vmem:[%s5794_s3 + $0x1cc] ss:$16 sps:$4 sm:$0xff]   ;;  %v5381_v46 = vld [vmem:[%s5794_s3 + $0x1c0] ss:$16 sps:$4 sm:$0xff]   ;;  %v5419_v25 = vld [vmem:[%s5794_s3 + $0x104] ss:$16 sps:$4 sm:$0xff]  }
0x14d0   : > { %3761 = vmatpush2.bf16.msra.mxu1 %v5378_v51  ;;  %v5392_v3 = vld [vmem:[%s5794_s3 + $0x1ac] ss:$16 sps:$4 sm:$0xff]  }
0x14d1   : > { %v3233_v5 = vadd.f32 %v6310_v39, %v6308_v2  ;;  %3762 = vmatprep.subr.bf16.mxu1 %v5386_v50  ;;  %v5426_v50 = vld [vmem:[%s5804_s2 + $0x170] ss:$8 sps:$4 sm:$0xff]  }
0x14d2   : > { %3710 = vmatpush1.bf16.msra.mxu0 %v5351_v26  ;;  %v5417_v26 = vld [vmem:[%s5794_s3 + $0x100] ss:$16 sps:$4 sm:$0xff]  }
0x14d3   : > { %3234 = vadd.xlane.f32.xlu0 %v3233_v5  ;;  %3711 = vmatprep.subr.bf16.mxu0 %v5359_v31  ;;  %v5390_v5 = vld [vmem:[%s5794_s3 + $0x1a8] ss:$16 sps:$4 sm:$0xff]   ;;  %v5425_v31 = vld [vmem:[%s5804_s2 + $0x74] ss:$8 sps:$4 sm:$0xff]  }
0x14d4   : > { %3763 = vmatpush2.bf16.msra.mxu1 %v5384_v28  ;;  %v5434_v28 = vld [vmem:[%s5804_s2 + $0x164] ss:$8 sps:$4 sm:$0xff]  }
0x14d5   : > { %3764 = vmatprep.subr.bf16.mxu1 %v5392_v3  ;;  %v5432_v3 = vld [vmem:[%s5804_s2 + $0x160] ss:$8 sps:$4 sm:$0xff]  }
0x14d6   : > { %3712 = vmatpush1.bf16.msra.mxu0 %v5357_v34 }
0x14d7   : > { %3713 = vmatprep.subr.bf16.mxu0 %v5365_v24 }
0x14d8   : > { %3765 = vmatpush2.bf16.msra.mxu1 %v5390_v5  ;;  %v5440_v5 = vld [vmem:[%s5804_s2 + $0x154] ss:$8 sps:$4 sm:$0xff]  }
0x14d9   : > { %3766 = vmatprep.subr.bf16.mxu1 %v5398_v9  ;;  %v5446_v9 = vld [vmem:[%s5804_s2 + $0x144] ss:$8 sps:$4 sm:$0xff]  }
0x14da   : > { %3714 = vmatpush1.bf16.msra.mxu0 %v5363_v35 }
0x14db   : > { %3715 = vmatprep.subr.bf16.mxu0 %v5371_v33  ;;  %v3228_v33 = vld [vmem:[%s6596_s18] sm:$0x3] }
0x14dc   : > { %3767 = vmatpush2.bf16.msra.mxu1 %v5396_v8  ;;  %v3271_v49 = vrot.slane %v3228_v33, %v6117_v32  ;;  %v5443_v8 = vld [vmem:[%s5804_s2 + $0x44] ss:$8 sps:$4 sm:$0xff]  }
0x14dd   : > { %3768 = vmatprep.subr.bf16.mxu1 %v5404_v11  ;;  %v5444_v11 = vld [vmem:[%s5804_s2 + $0x140] ss:$8 sps:$4 sm:$0xff]  }
0x14de   : > { %3716 = vmatpush1.bf16.msra.mxu0 %v5369_v1  ;;  %v3229_v1 = vld [vmem:[%s6597_s6] sm:$0x3] }
0x14df   : > { %3717 = vmatprep.subr.bf16.mxu0 %v5377_v45  ;;  %v3267_v45 = vrot.slane %v3228_v33, %v5960_v48  ;;  %v5477_v33 = vld [vmem:[%s5804_s2 + $0xe0] ss:$8 sps:$4 sm:$0xff]  }
0x14e0   : > { %3769 = vmatpush2.bf16.msra.mxu1 %v5402_v16  ;;  %v5452_v16 = vld [vmem:[%s5804_s2 + $0x134] ss:$8 sps:$4 sm:$0xff]  }
0x14e1   : > { %3770 = vmatprep.subr.bf16.mxu1 %v5410_v17  ;;  %v5450_v17 = vld [vmem:[%s5804_s2 + $0x130] ss:$8 sps:$4 sm:$0xff]  }
0x14e2   : > { %3718 = vmatpush2.bf16.msra.mxu0 %v5375_v47 }
0x14e4   : > { %3771 = vmatpush2.bf16.msra.mxu1 %v5408_v14  ;;  %v5458_v14 = vld [vmem:[%s5804_s2 + $0x124] ss:$8 sps:$4 sm:$0xff]  }
0x14e5   : > { %3772 = vmatprep.subr.bf16.mxu1 %v5416_v36  ;;  %v5456_v36 = vld [vmem:[%s5804_s2 + $0x120] ss:$8 sps:$4 sm:$0xff]  }
0x14e8   : > { %3773 = vmatpush2.bf16.msra.mxu1 %v5414_v23  ;;  %v5464_v23 = vld [vmem:[%s5804_s2 + $0x114] ss:$8 sps:$4 sm:$0xff]  }
0x14e9   : > { %3774 = vmatprep.subr.bf16.mxu1 %v5422_v18  ;;  %v5462_v18 = vld [vmem:[%s5804_s2 + $0x110] ss:$8 sps:$4 sm:$0xff]  }
0x14ec   : > { %3775 = vmatpush2.bf16.msra.mxu1 %v5420_v29  ;;  %v5470_v29 = vld [vmem:[%s5804_s2 + $0x104] ss:$8 sps:$4 sm:$0xff]  }
0x14ed   : > { %4238 = vmatprep.subr.bf16.mxu1 %v5428_v22  ;;  %v5468_v22 = vld [vmem:[%s5804_s2 + $0x100] ss:$8 sps:$4 sm:$0xff]  }
0x1558   : > { %v3232_v44 = vpop.xlane.xlu0 %3231 }
0x1559   : > { %v3237_v15 = vmul.f32 0.00390625, %v3232_v44  ;;  %v3282_v44 = vrot.slane %v3229_v1, %v5960_v48 }
0x155b   : > { %v6351_v19 = vsub.f32 %v6302_v59, %v3237_v15  ;;  %v6354_v53 = vsub.f32 %v6304_v54, %v3237_v15  ;;  %v5383_v54 = vld [vmem:[%s5794_s3 + $0x1c4] ss:$16 sps:$4 sm:$0xff]   ;;  %v3286_v15 = vrot.slane %v3229_v1, %v6117_v32 }
0x155c   : > { %v3235_v60 = vpop.xlane.xlu0 %3234  ;;  %3719 = vmatprep.subr.bf16.mxu0 %v5383_v54  ;;  %v5485_v1 = vld [vmem:[%s5804_s2 + $0xd4] ss:$8 sps:$4 sm:$0xff]  }
0x155d   : > { %v3238_v55 = vmul.f32 0.00390625, %v3235_v60  ;;  %v3243_v57 = vmul.f32 %v6351_v19, %v6351_v19  ;;  %v3244_v56 = vmul.f32 %v6354_v53, %v6354_v53  ;;  %3720 = vmatpush2.bf16.msra.mxu0 %v5381_v46  ;;  %v5431_v46 = vld [vmem:[%s5804_s2 + $0x64] ss:$8 sps:$4 sm:$0xff]  }
0x155f   : > { %v6361_v21 = vsub.f32 %v6308_v2, %v3238_v55  ;;  %v6364_v4 = vsub.f32 %v6310_v39, %v3238_v55  ;;  %v3247_v0 = vadd.f32 %v3244_v56, %v3243_v57  ;;  %v5389_v2 = vld [vmem:[%s5794_s3 + $0x1a4] ss:$16 sps:$4 sm:$0xff]   ;;  %v5387_v39 = vld [vmem:[%s5794_s3 + $0x1a0] ss:$16 sps:$4 sm:$0xff]  }
0x1560   : > { %3721 = vmatprep.subr.bf16.mxu0 %v5389_v2  ;;  %v5429_v2 = vld [vmem:[%s5804_s2 + $0x60] ss:$8 sps:$4 sm:$0xff]  }
0x1561   : > { %3248 = vadd.xlane.f32.xlu0 %v3247_v0  ;;  %v3245_v62 = vmul.f32 %v6361_v21, %v6361_v21  ;;  %v3246_v59 = vmul.f32 %v6364_v4, %v6364_v4  ;;  %3722 = vmatpush2.bf16.msra.mxu0 %v5387_v39  ;;  %v5437_v39 = vld [vmem:[%s5804_s2 + $0x54] ss:$8 sps:$4 sm:$0xff]  }
0x1562   : > { %3723 = vmatprep.subr.bf16.mxu0 %v5395_v6  ;;  %v5435_v6 = vld [vmem:[%s5804_s2 + $0x50] ss:$8 sps:$4 sm:$0xff]  }
0x1563   : > { %v3250_v63 = vadd.f32 %v3246_v59, %v3245_v62 }
0x1565   : > { %3251 = vadd.xlane.f32.xlu0 %v3250_v63  ;;  %3724 = vmatpush2.bf16.msra.mxu0 %v5393_v7  ;;  %v5438_v7 = vld [vmem:[%s5804_s2 + $0x150] ss:$8 sps:$4 sm:$0xff]  }
0x1566   : > { %3725 = vmatprep.subr.bf16.mxu0 %v5401_v10  ;;  %v5441_v10 = vld [vmem:[%s5804_s2 + $0x40] ss:$8 sps:$4 sm:$0xff]  }
0x1569   : > { %3726 = vmatpush2.bf16.msra.mxu0 %v5399_v13  ;;  %v5449_v13 = vld [vmem:[%s5804_s2 + $0x34] ss:$8 sps:$4 sm:$0xff]  }
0x156a   : > { %3727 = vmatprep.subr.bf16.mxu0 %v5407_v43  ;;  %v5447_v43 = vld [vmem:[%s5804_s2 + $0x30] ss:$8 sps:$4 sm:$0xff]  }
0x156d   : > { %3728 = vmatpush2.bf16.msra.mxu0 %v5405_v61  ;;  %v5455_v61 = vld [vmem:[%s5804_s2 + $0x24] ss:$8 sps:$4 sm:$0xff]  }
0x156e   : > { %3729 = vmatprep.subr.bf16.mxu0 %v5413_v58  ;;  %v5453_v58 = vld [vmem:[%s5804_s2 + $0x20] ss:$8 sps:$4 sm:$0xff]  }
0x1571   : > { %3730 = vmatpush2.bf16.msra.mxu0 %v5411_v20  ;;  %v5461_v20 = vld [vmem:[%s5804_s2 + $0x14] ss:$8 sps:$4 sm:$0xff]  }
0x1572   : > { %3731 = vmatprep.subr.bf16.mxu0 %v5419_v25  ;;  %v5459_v25 = vld [vmem:[%s5804_s2 + $0x10] ss:$8 sps:$4 sm:$0xff]  }
0x1575   : > { %3732 = vmatpush2.bf16.msra.mxu0 %v5417_v26  ;;  %v5467_v26 = vld [vmem:[%s5804_s2 + $0x4] ss:$8 sps:$4 sm:$0xff]  }
0x1576   : > { %4195 = vmatprep.subr.bf16.mxu0 %v5425_v31  ;;  %v5465_v31 = vld [vmem:[%s5804_s2] ss:$8 sps:$4 sm:$0xff]  }
0x15ea   : > { %v3249_v34 = vpop.xlane.xlu0 %3248 }
0x15eb   : > { %v3253_v27 = vmul.f32 0.00390625, %v3249_v34  ;;  %v5473_v34 = vld [vmem:[%s5804_s2 + $0xf4] ss:$8 sps:$4 sm:$0xff]  }
0x15ed   : > { %v3255_v24 = vadd.f32 1e-05, %v3253_v27  ;;  %v5476_v27 = vld [vmem:[%s5804_s2 + $0x1f4] ss:$8 sps:$4 sm:$0xff]  }
0x15ee   : > { %v3252_v30 = vpop.xlane.xlu0 %3251 }
0x15ef   : > { %5583 = vrsqrt.f32 %v3255_v24  ;;  %v3254_v35 = vmul.f32 0.00390625, %v3252_v30  ;;  %v5471_v24 = vld [vmem:[%s5804_s2 + $0xf0] ss:$8 sps:$4 sm:$0xff]  }
0x15f0   : > { %v5474_v30 = vld [vmem:[%s5804_s2 + $0x1f0] ss:$8 sps:$4 sm:$0xff]  }
0x15f1   : > { %v3256_v38 = vadd.f32 1e-05, %v3254_v35  ;;  %v5479_v35 = vld [vmem:[%s5804_s2 + $0xe4] ss:$8 sps:$4 sm:$0xff]  }
0x15f3   : > { %5585 = vrsqrt.f32 %v3256_v38  ;;  %v5482_v38 = vld [vmem:[%s5804_s2 + $0x1e4] ss:$8 sps:$4 sm:$0xff]  }
0x15fc   : > { %v5584_v52 = vpop.eup %5583 }
0x15fd   : > { %v3260_v37 = vmul.f32 %v5584_v52, %v6354_v53  ;;  %v3259_v47 = vmul.f32 %v5584_v52, %v6351_v19  ;;  %v5480_v52 = vld [vmem:[%s5804_s2 + $0x1e0] ss:$8 sps:$4 sm:$0xff]  }
0x15ff   : > { %v3275_v55 = vmul.f32 %v3271_v49, %v3260_v37  ;;  %v3274_v57 = vmul.f32 %v3267_v45, %v3259_v47  ;;  %v5488_v37 = vld [vmem:[%s5804_s2 + $0x1d4] ss:$8 sps:$4 sm:$0xff]   ;;  %v5491_v47 = vld [vmem:[%s5804_s2 + $0xc4] ss:$8 sps:$4 sm:$0xff]  }
0x1600   : > { %v5586_v51 = vpop.eup %5585 }
0x1601   : > { %v3262_v60 = vmul.f32 %v5586_v51, %v6364_v4  ;;  %v3261_v53 = vmul.f32 %v5586_v51, %v6361_v21  ;;  %v6418_v62 = vadd.f32 %v3286_v15, %v3275_v55  ;;  %v6422_v59 = vadd.f32 %v3282_v44, %v3274_v57  ;;  %v5423_v4 = vld [vmem:[%s5804_s2 + $0x70] ss:$8 sps:$4 sm:$0xff]   ;;  %v5494_v51 = vld [vmem:[%s5804_s2 + $0x1c4] ss:$8 sps:$4 sm:$0xff]   ;;  %v5500_v55 = vld [vmem:[%s5804_s2 + $0x1b4] ss:$8 sps:$4 sm:$0xff]  }
0x1602   : > { %v5498_v57 = vld [vmem:[%s5804_s2 + $0x1b0] ss:$8 sps:$4 sm:$0xff]  }
0x1603   : > { %v3277_v56 = vmul.f32 %v3271_v49, %v3262_v60  ;;  %v3276_v0 = vmul.f32 %v3267_v45, %v3261_v53  ;;  %v5483_v45 = vld [vmem:[%s5804_s2 + $0xd0] ss:$8 sps:$4 sm:$0xff]   ;;  %v5497_v60 = vld [vmem:[%s5804_s2 + $0xb4] ss:$8 sps:$4 sm:$0xff]  }
0x1604   : > { %v5486_v49 = vld [vmem:[%s5804_s2 + $0x1d0] ss:$8 sps:$4 sm:$0xff]  }
0x1605   : > { %v6420_v19 = vadd.f32 %v3286_v15, %v3277_v56  ;;  %v6424_v63 = vadd.f32 %v3282_v44, %v3276_v0  ;;  %v5489_v44 = vld [vmem:[%s5804_s2 + $0xc0] ss:$8 sps:$4 sm:$0xff]   ;;  %v5495_v53 = vld [vmem:[%s5804_s2 + $0xb0] ss:$8 sps:$4 sm:$0xff]   ;;  %v5503_v56 = vld [vmem:[%s5804_s2 + $0xa4] ss:$8 sps:$4 sm:$0xff]  }
0x1606   : > { %v5492_v15 = vld [vmem:[%s5804_s2 + $0x1c0] ss:$8 sps:$4 sm:$0xff]   ;;  %v5506_v0 = vld [vmem:[%s5804_s2 + $0x1a4] ss:$8 sps:$4 sm:$0xff]  }
0x1607   : > { %v3294_v54 = vpack.c.bf16 %v6420_v19, %v6418_v62  ;;  %v3293_v21 = vpack.c.bf16 %v6424_v63, %v6422_v59 }
0x1609   : > { %3733 = vmatprep.mubr.bf16.mxu0 %v3294_v54  ;;  %3776 = vmatprep.mubr.bf16.mxu1 %v3294_v54  ;;  %v5501_v54 = vld [vmem:[%s5804_s2 + $0xa0] ss:$8 sps:$4 sm:$0xff]  }
0x160a   : > { %3734 = vmatmul.mubr.bf16.vlgmr.msra.gmra.mxu0 %v3293_v21  ;;  %3777 = vmatmul.mubr.bf16.vlgmr.msra.gmra.mxu1 %v3293_v21  ;;  %v5504_v21 = vld [vmem:[%s5804_s2 + $0x1a0] ss:$8 sps:$4 sm:$0xff]  }
0x160b   : > { %4196 = vmatpush1.bf16.msra.mxu0 %v5423_v4  ;;  %4239 = vmatpush1.bf16.msra.mxu1 %v5426_v50  ;;  %v5509_v4 = vld [vmem:[%s5804_s2 + $0x94] ss:$8 sps:$4 sm:$0xff]  }
0x160c   : > { %4197 = vmatprep.subr.bf16.mxu0 %v5431_v46  ;;  %4240 = vmatprep.subr.bf16.mxu1 %v5434_v28  ;;  %v5512_v50 = vld [vmem:[%s5804_s2 + $0x194] ss:$8 sps:$4 sm:$0xff]   ;;  %v5507_v46 = vld [vmem:[%s5804_s2 + $0x90] ss:$8 sps:$4 sm:$0xff]  }
0x160d   : > { %v5510_v28 = vld [vmem:[%s5804_s2 + $0x190] ss:$8 sps:$4 sm:$0xff]  }
0x160f   : > { %4198 = vmatpush1.bf16.msra.mxu0 %v5429_v2  ;;  %4241 = vmatpush1.bf16.msra.mxu1 %v5432_v3  ;;  %v5515_v2 = vld [vmem:[%s5804_s2 + $0x84] ss:$8 sps:$4 sm:$0xff]  }
0x1610   : > { %4199 = vmatprep.subr.bf16.mxu0 %v5437_v39  ;;  %4242 = vmatprep.subr.bf16.mxu1 %v5440_v5  ;;  %v5518_v3 = vld [vmem:[%s5804_s2 + $0x184] ss:$8 sps:$4 sm:$0xff]   ;;  %v5513_v39 = vld [vmem:[%s5804_s2 + $0x80] ss:$8 sps:$4 sm:$0xff]  }
0x1611   : > { %v5516_v5 = vld [vmem:[%s5804_s2 + $0x180] ss:$8 sps:$4 sm:$0xff]  }
0x1613   : > { %4200 = vmatpush1.bf16.msra.mxu0 %v5435_v6  ;;  %4243 = vmatpush1.bf16.msra.mxu1 %v5438_v7  ;;  %v3359_v6 = vld [vmem:[%s5799_s5] sm:$0xf] }
0x1614   : > { %4201 = vmatprep.subr.bf16.mxu0 %v5443_v8  ;;  %4244 = vmatprep.subr.bf16.mxu1 %v5446_v9  ;;  %v3368_v9 = vrot.slane %v3359_v6, %v6117_v32 }
0x1617   : > { %4202 = vmatpush1.bf16.msra.mxu0 %v5441_v10  ;;  %4245 = vmatpush1.bf16.msra.mxu1 %v5444_v11  ;;  %v3376_v10 = vrot.slane %v3359_v6, %v1007_v12  ;;  %v3364_v11 = vrot.slane %v3359_v6, %v5960_v48 }
0x1618   : > { %4203 = vmatprep.subr.bf16.mxu0 %v5449_v13  ;;  %4246 = vmatprep.subr.bf16.mxu1 %v5452_v16  ;;  %v3372_v13 = vrot.slane %v3359_v6, %v1003_v42 }
0x161b   : > { %4204 = vmatpush1.bf16.msra.mxu0 %v5447_v43  ;;  %4247 = vmatpush1.bf16.msra.mxu1 %v5450_v17 }
0x161c   : > { %4205 = vmatprep.subr.bf16.mxu0 %v5455_v61  ;;  %4248 = vmatprep.subr.bf16.mxu1 %v5458_v14 }
0x161f   : > { %4206 = vmatpush1.bf16.msra.mxu0 %v5453_v58  ;;  %4249 = vmatpush1.bf16.msra.mxu1 %v5456_v36 }
0x1620   : > { %4207 = vmatprep.subr.bf16.mxu0 %v5461_v20  ;;  %4250 = vmatprep.subr.bf16.mxu1 %v5464_v23 }
0x1623   : > { %4208 = vmatpush1.bf16.msra.mxu0 %v5459_v25  ;;  %4251 = vmatpush1.bf16.msra.mxu1 %v5462_v18 }
0x1624   : > { %4209 = vmatprep.subr.bf16.mxu0 %v5467_v26  ;;  %4252 = vmatprep.subr.bf16.mxu1 %v5470_v29 }
0x1627   : > { %4210 = vmatpush1.bf16.msra.mxu0 %v5465_v31  ;;  %4253 = vmatpush1.bf16.msra.mxu1 %v5468_v22 }
0x1628   : > { %4211 = vmatprep.subr.bf16.mxu0 %v5473_v34  ;;  %4254 = vmatprep.subr.bf16.mxu1 %v5476_v27 }
0x162b   : > { %4212 = vmatpush2.bf16.msra.mxu0 %v5471_v24  ;;  %4255 = vmatpush2.bf16.msra.mxu1 %v5474_v30 }
0x162c   : > { %4213 = vmatprep.subr.bf16.mxu0 %v5479_v35  ;;  %4256 = vmatprep.subr.bf16.mxu1 %v5482_v38 }
0x162f   : > { %4214 = vmatpush2.bf16.msra.mxu0 %v5477_v33  ;;  %4257 = vmatpush2.bf16.msra.mxu1 %v5480_v52 }
0x1630   : > { %4215 = vmatprep.subr.bf16.mxu0 %v5485_v1  ;;  %4258 = vmatprep.subr.bf16.mxu1 %v5488_v37  ;;  %v3863_v37 = vld [vmem:[%s6598_s20] sm:$0x3] }
0x1633   : > { %4216 = vmatpush2.bf16.msra.mxu0 %v5483_v45  ;;  %4259 = vmatpush2.bf16.msra.mxu1 %v5486_v49  ;;  %v3868_v45 = vrot.slane %v3863_v37, %v5960_v48  ;;  %v3872_v49 = vrot.slane %v3863_v37, %v6117_v32 }
0x1634   : > { %4217 = vmatprep.subr.bf16.mxu0 %v5491_v47  ;;  %4260 = vmatprep.subr.bf16.mxu1 %v5494_v51 }
0x1637   : > { %4218 = vmatpush2.bf16.msra.mxu0 %v5489_v44  ;;  %4261 = vmatpush2.bf16.msra.mxu1 %v5492_v15 }
0x1638   : > { %4219 = vmatprep.subr.bf16.mxu0 %v5497_v60  ;;  %4262 = vmatprep.subr.bf16.mxu1 %v5500_v55 }
0x163b   : > { %4220 = vmatpush2.bf16.msra.mxu0 %v5495_v53  ;;  %4263 = vmatpush2.bf16.msra.mxu1 %v5498_v57 }
0x163c   : > { %4221 = vmatprep.subr.bf16.mxu0 %v5503_v56  ;;  %4264 = vmatprep.subr.bf16.mxu1 %v5506_v0 }
0x163f   : > { %4222 = vmatpush2.bf16.msra.mxu0 %v5501_v54  ;;  %4265 = vmatpush2.bf16.msra.mxu1 %v5504_v21 }
0x1640   : > { %4223 = vmatprep.subr.bf16.mxu0 %v5509_v4  ;;  %4266 = vmatprep.subr.bf16.mxu1 %v5512_v50 }
0x1643   : > { %4224 = vmatpush2.bf16.msra.mxu0 %v5507_v46  ;;  %4267 = vmatpush2.bf16.msra.mxu1 %v5510_v28 }
0x1644   : > { %4225 = vmatprep.subr.bf16.mxu0 %v5515_v2  ;;  %4268 = vmatprep.subr.bf16.mxu1 %v5518_v3 }
0x1647   : > { %4226 = vmatpush2.bf16.msra.mxu0 %v5513_v39  ;;  %4269 = vmatpush2.bf16.msra.mxu1 %v5516_v5 }
0x16ca   : > { %v3735_v7 = vpop.f32.mrf.mxu0  ;;  %v3778_v8 = vpop.f32.mrf.mxu1 }
0x16cb   : > { %v3736_v23 = vadd.f32 %v3735_v7, %v3364_v11  ;;  %v3779_v25 = vadd.f32 %v3778_v8, %v3372_v13 }
0x16cc   : > { %v3737_v16 = vpop.f32.mrf.mxu0  ;;  %v3780_v43 = vpop.f32.mrf.mxu1 }
0x16cd   : > { %v3738_v14 = vadd.f32 %v3737_v16, %v3368_v9  ;;  %v3781_v58 = vadd.f32 %v3780_v43, %v3376_v10  ;;  %v3787_v30 = vmax.f32 %v3736_v23, 0.0  ;;  %v3789_v35 = vmax.f32 %v3779_v25, 0.0 }
0x16ce   : > { %v3739_v17 = vpop.f32.mrf.mxu0  ;;  %v3782_v61 = vpop.f32.mrf.mxu1 }
0x16cf   : > { %v3740_v36 = vadd.f32 %v3739_v17, %v3364_v11  ;;  %v3783_v20 = vadd.f32 %v3782_v61, %v3372_v13  ;;  %v3788_v34 = vmax.f32 %v3738_v14, 0.0  ;;  %v3790_v27 = vmax.f32 %v3781_v58, 0.0 }
0x16d0   : > { %v3741_v18 = vpop.f32.mrf.mxu0  ;;  %v3784_v26 = vpop.f32.mrf.mxu1 }
0x16d1   : > { %v3742_v29 = vadd.f32 %v3741_v18, %v3368_v9  ;;  %v3785_v31 = vadd.f32 %v3784_v26, %v3376_v10  ;;  %v3791_v12 = vmax.f32 %v3740_v36, 0.0  ;;  %v3793_v22 = vmax.f32 %v3783_v20, 0.0  ;;  %v4285_v26 = vld [vmem:[%s712_s0] sm:$0x3] }
0x16d3   : > { %v3792_v42 = vmax.f32 %v3742_v29, 0.0  ;;  %v3794_v24 = vmax.f32 %v3785_v31, 0.0  ;;  %v3795_v52 = vpack.c.bf16 %v3791_v12, %v3787_v30  ;;  %v3797_v1 = vpack.c.bf16 %v3793_v22, %v3789_v35  ;;  %v4286_v29 = vld [vmem:[%s716_s9] sm:$0x3]  ;;  %s6599_s9 = sld [smem:[#allocation3_spill]] }
0x16d4   : > { %v4323_v31 = vrot.slane %v4285_v26, %v5960_v48  ;;  %v4327_v12 = vrot.slane %v4285_v26, %v6117_v32 }
0x16d5   : > { %v3796_v38 = vpack.c.bf16 %v3792_v42, %v3788_v34  ;;  %v3798_v33 = vpack.c.bf16 %v3794_v24, %v3790_v27  ;;  %v4338_v34 = vrot.slane %v4286_v29, %v5960_v48  ;;  %v4342_v27 = vrot.slane %v4286_v29, %v6117_v32 }
0x16d7   : > { %4227 = vmatprep.mubr.bf16.mxu0 %v3796_v38  ;;  %4270 = vmatprep.mubr.bf16.mxu1 %v3798_v33 }
0x16d8   : > { %4228 = vmatmul.mubr.bf16.vlgmr.msra.gmra.mxu0 %v3795_v52  ;;  %4271 = vmatmul.mubr.bf16.vlgmr.msra.gmra.mxu1 %v3797_v1 }
0x16d9   : > { %p4925_p8 = scmp.ne.s32.totalorder %s6599_s9, 1 }
0x1798   : > { %v4229_v47 = vpop.f32.mrf.mxu0  ;;  %v4272_v51 = vpop.f32.mrf.mxu1 }
0x1799   : > { %v4230_v44 = vadd.f32 %v4229_v47, %v3868_v45 }
0x179a   : > { %v4231_v15 = vpop.f32.mrf.mxu0  ;;  %v4274_v60 = vpop.f32.mrf.mxu1 }
0x179b   : > { %v4273_v55 = vadd.f32 %v4272_v51, %v4230_v44  ;;  %v4232_v53 = vadd.f32 %v4231_v15, %v3872_v49 }
0x179c   : > { %v4233_v57 = vpop.f32.mrf.mxu0  ;;  %v4276_v56 = vpop.f32.mrf.mxu1 }
0x179d   : > { %v4275_v0 = vadd.f32 %v4274_v60, %v4232_v53  ;;  %v4234_v54 = vadd.f32 %v4233_v57, %v3868_v45  ;;  %v4281_v4 = vadd.f32 %v4273_v55, %v6422_v59 }
0x179e   : > { %v4235_v21 = vpop.f32.mrf.mxu0  ;;  %v4278_v2 = vpop.f32.mrf.mxu1 }
0x179f   : > { %v4282_v50 = vadd.f32 %v4275_v0, %v6418_v62  ;;  %v4277_v46 = vadd.f32 %v4276_v56, %v4234_v54  ;;  %v4236_v28 = vadd.f32 %v4235_v21, %v3872_v49 }
0x17a1   : > { %v4279_v3 = vadd.f32 %v4278_v2, %v4236_v28  ;;  %v4287_v39 = vadd.f32 %v4282_v50, %v4281_v4  ;;  %v4283_v5 = vadd.f32 %v4277_v46, %v6424_v63 }
0x17a3   : > { %v4284_v6 = vadd.f32 %v4279_v3, %v6420_v19  ;;  %4288 = vadd.xlane.f32.xlu1 %v4287_v39 }
0x17a5   : > { %v4290_v7 = vadd.f32 %v4284_v6, %v4283_v5 }
0x17a7   : > { %4291 = vadd.xlane.f32.xlu0 %v4290_v7 }
0x182c   : > { %v4289_v8 = vpop.xlane.xlu1 %4288 }
0x182d   : > { %v4293_v9 = vmul.f32 0.00390625, %v4289_v8 }
0x182f   : > { %v4295_v10 = vsub.f32 %v4281_v4, %v4293_v9  ;;  %v4296_v11 = vsub.f32 %v4282_v50, %v4293_v9 }
0x1830   : > { %v4292_v13 = vpop.xlane.xlu0 %4291 }
0x1831   : > { %v4294_v59 = vmul.f32 0.00390625, %v4292_v13  ;;  %v4299_v16 = vmul.f32 %v4295_v10, %v4295_v10  ;;  %v4300_v62 = vmul.f32 %v4296_v11, %v4296_v11 }
0x1833   : > { %v4297_v43 = vsub.f32 %v4283_v5, %v4294_v59  ;;  %v4298_v17 = vsub.f32 %v4284_v6, %v4294_v59  ;;  %v4303_v61 = vadd.f32 %v4300_v62, %v4299_v16 }
0x1835   : > { %4304 = vadd.xlane.f32.xlu0 %v4303_v61  ;;  %v4301_v63 = vmul.f32 %v4297_v43, %v4297_v43  ;;  %v4302_v14 = vmul.f32 %v4298_v17, %v4298_v17 }
0x1837   : > { %v4306_v19 = vadd.f32 %v4302_v14, %v4301_v63 }
0x1839   : > { %4307 = vadd.xlane.f32.xlu0 %v4306_v19 }
0x18be   : > { %v4305_v58 = vpop.xlane.xlu0 %4304 }
0x18bf   : > { %v4309_v36 = vmul.f32 0.00390625, %v4305_v58 }
0x18c1   : > { %v4311_v20 = vadd.f32 1e-05, %v4309_v36 }
0x18c2   : > { %v4308_v23 = vpop.xlane.xlu0 %4307 }
0x18c3   : > { %5587 = vrsqrt.f32 %v4311_v20  ;;  %v4310_v25 = vmul.f32 0.00390625, %v4308_v23 }
0x18c5   : > { %v4312_v18 = vadd.f32 1e-05, %v4310_v25 }
0x18c7   : > { %5589 = vrsqrt.f32 %v4312_v18 }
0x18d0   : > { %v5588_v22 = vpop.eup %5587 }
0x18d1   : > { %v4315_v42 = vmul.f32 %v5588_v22, %v4295_v10  ;;  %v4316_v24 = vmul.f32 %v5588_v22, %v4296_v11 }
0x18d3   : > { %v4330_v30 = vmul.f32 %v4323_v31, %v4315_v42  ;;  %v4331_v35 = vmul.f32 %v4327_v12, %v4316_v24 }
0x18d4   : > { %v5590_v38 = vpop.eup %5589 }
0x18d5   : > { %v4345_v33 = vadd.f32 %v4338_v34, %v4330_v30  ;;  %v4346_v52 = vadd.f32 %v4342_v27, %v4331_v35  ;;  %v4317_v1 = vmul.f32 %v5590_v38, %v4297_v43  ;;  %v4318_v37 = vmul.f32 %v5590_v38, %v4298_v17 }
0x18d7   : > { %4349 = vst [vmem:[#allocation2 + $0x10] sm:$0xff] %v4345_v33  ;;  %4350 = vst [vmem:[#allocation2] sm:$0xff] %v4346_v52  ;;  %v4332_v45 = vmul.f32 %v4323_v31, %v4317_v1  ;;  %v4333_v49 = vmul.f32 %v4327_v12, %v4318_v37  ;;  %4356 = sbr.rel (%p4925_p8) target bundleno = 6387 (0x18f3), region = 88 }
0x18d9   : > { %v4347_v47 = vadd.f32 %v4338_v34, %v4332_v45  ;;  %v4348_v51 = vadd.f32 %v4342_v27, %v4333_v49 }
0x18db   : > { %4351 = vst [vmem:[#allocation2 + $0x18] sm:$0xff] %v4347_v47  ;;  %4352 = vst [vmem:[#allocation2 + $0x8] sm:$0xff] %v4348_v51 }
0x18dc   : > { %v4357_v48 = vadd.f32 %v4347_v47, %v4345_v33  ;;  %v4364_v32 = vadd.f32 %v4348_v51, %v4346_v52  ;;  %v5642_v56 = vmov 1966171168   ;;  %vm4394_vm3 = vcmp.lt.s32.totalorder %v993_v40, 256 }
0x18dd   : > { %v4378_v0 = vunpack.c.l.s4 %v5642_v56 }
0x18de   : > { %v4358_v44 = vrot.slane %v4357_v48, 4  ;;  %v4365_v15 = vrot.slane %v4364_v32, 4 }
0x18df   : > { %v4379_v46 = vunpack.c.0.s8 %v4378_v0 }
0x18e0   : > { %v4359_v60 = vadd.f32 %v4358_v44, %v4357_v48  ;;  %v4366_v55 = vadd.f32 %v4365_v15, %v4364_v32 }
0x18e1   : > { %v4382_v5 = vsub.s32 %v4379_v46, %v5948_v41 }
0x18e2   : > { %v4360_v53 = vrot.slane %v4359_v60, 2  ;;  %v4367_v57 = vrot.slane %v4366_v55, 2 }
0x18e4   : > { %v4361_v54 = vadd.f32 %v4360_v53, %v4359_v60  ;;  %v4368_v21 = vadd.f32 %v4367_v57, %v4366_v55 }
0x18e6   : > { %v4362_v4 = vrot.slane %v4361_v54, 1  ;;  %v4369_v50 = vrot.slane %v4368_v21, 1 }
0x18e8   : > { %v4363_v28 = vadd.f32 %v4362_v4, %v4361_v54  ;;  %v4370_v2 = vadd.f32 %v4369_v50, %v4368_v21 }
0x18ea   : > { %v4372_v3 = vmul.f32 0.0625, %v4363_v28  ;;  %v4373_v39 = vmul.f32 0.0625, %v4370_v2 }
0x18ec   : > { %v4376_v6 = vcombine.low %v4372_v3, %v4373_v39 }
0x18ee   : > { %v4383_v7 = vrot.slane %v4376_v6, %v4382_v5 }
0x18f0   : > { %v4390_v8 = vrot.slane %v4383_v7, %v4382_v5 }
0x18f2   : > { %4396 = vst.msk [vmem:[%s5821_s10] sm:$0x3] %vm4394_vm3, %v4390_v8 }
0x18f3 PF: > { %s6600_s26 = sld [smem:[#allocation6_spill]] }
0x18f4   : > { %s6601_s18 = sld [smem:[#allocation4_spill]] }
0x18f5   : > { %s6602_s19 = sld [smem:[#allocation5_spill]] }
0x18f6   : > { %s6603_s20 = sld [smem:[#allocation7_spill]] }
0x18f7   : > { %s6604_s21 = sld [smem:[#allocation8_spill]] }
0x18f9   : > { %s25_s22 = sadd.s32 1, %s6600_s26  }
0x18fa   : > { %p22_p9 = scmp.ge.s32.totalorder %s25_s22, 6  }
0x18fc   :  { %24 = sbr.rel (!%p22_p9) target bundleno = 12 (0xc), region = 154 }

</bundles_post_ra>
